<compile_context>
chip_gen: v5e
topology: v5e:2x2
jax: 0.10.0
libtpu: 0.0.40
codegen_flags: <defaults>
</compile_context>

<pallas_src>
import functools

import jax
import jax.numpy as jnp
from jax.experimental import pallas as pl
from jax.experimental.pallas import tpu as pltpu

_LANES = 128


def _rup(x, m):
    return (x + m - 1) // m * m


def _vmem_limit_bytes():
    # v5e/v6e have 128 MiB physical VMEM (default scoped limit is much lower);
    # v7x only has 64 MiB -> derive the limit from the device, don't hard-code.
    try:
        cap = pltpu.get_tpu_info().vmem_capacity_bytes
        return int(min(cap * 3 // 4, 64 * 1024 * 1024))
    except Exception:
        return None  # fall back to the compiler default


_VMEM_LIMIT = _vmem_limit_bytes()


def _cparams(*dims):
    return pltpu.CompilerParams(dimension_semantics=dims,
                                vmem_limit_bytes=_VMEM_LIMIT)


# --------------------------------------------------------------------------
# Matmul with fused BN statistics (single K block, no scratch accumulator).
# --------------------------------------------------------------------------
def _mm_stats_kernel(a_ref, b_ref, o_ref, sum_ref, sq_ref, *, m_valid, tm):
    y = jnp.dot(a_ref[...], b_ref[...], preferred_element_type=jnp.float32)
    o_ref[...] = y.astype(o_ref.dtype)
    if m_valid is not None:  # static: mask OOB rows of a ragged tail tile
        rows = pl.program_id(0) * tm + jax.lax.broadcasted_iota(jnp.int32, y.shape, 0)
        y = jnp.where(rows < m_valid, y, 0.0)
    sum_ref[0] = jnp.sum(y, axis=0, keepdims=True)
    sq_ref[0] = jnp.sum(y * y, axis=0, keepdims=True)


def matmul_stats(a, b):
    """(M, K) @ (K, Np) on the MXU with per-column sum / sum-of-squares of the
    f32 result fused into the epilogue (BN batch statistics for free)."""
    M, K = a.shape
    K2, Np = b.shape
    assert K == K2 and K % 8 == 0 and Np % _LANES == 0
    a = a.astype(jnp.bfloat16)
    b = b.astype(jnp.bfloat16)
    if M >= 512:
        tm = 256
    elif M >= 16:
        tm = _rup(pl.cdiv(M, 2), 8)     # >=2 row tiles keeps both v7x cores busy
    else:
        tm = M                          # full-extent block (exempt from (8,128))
    tn = Np if Np <= 512 else 256       # keep Nt==1 at ResNet widths -> A read once
    Mt, Nt = pl.cdiv(M, tm), pl.cdiv(Np, tn)
    m_valid = None if M % tm == 0 else M
    y, s, q = pl.pallas_call(
        functools.partial(_mm_stats_kernel, m_valid=m_valid, tm=tm),
        out_shape=(jax.ShapeDtypeStruct((M, Np), jnp.bfloat16),
                   jax.ShapeDtypeStruct((Mt, 1, Np), jnp.float32),
                   jax.ShapeDtypeStruct((Mt, 1, Np), jnp.float32)),
        grid=(Mt, Nt),
        in_specs=[pl.BlockSpec((tm, K), lambda i, j: (i, 0)),
                  pl.BlockSpec((K, tn), lambda i, j: (0, j))],
        out_specs=(pl.BlockSpec((tm, tn), lambda i, j: (i, j)),
                   pl.BlockSpec((1, 1, tn), lambda i, j: (i, 0, j)),
                   pl.BlockSpec((1, 1, tn), lambda i, j: (i, 0, j))),
        compiler_params=_cparams("parallel", "parallel"),
    )(a, b)
    return y, s.sum(axis=(0, 1)), q.sum(axis=(0, 1))


def _mm_bias_kernel(a_ref, b_ref, bias_ref, o_ref):
    y = jnp.dot(a_ref[...], b_ref[...], preferred_element_type=jnp.float32)
    o_ref[...] = (y + bias_ref[...]).astype(o_ref.dtype)


def matmul_bias(a, b, bias, out_dtype=jnp.float32):
    """(M, K) @ (K, Np) + bias, bias add fused into the matmul epilogue (FC)."""
    M, K = a.shape
    _, Np = b.shape
    a = a.astype(jnp.bfloat16)
    b = b.astype(jnp.bfloat16)
    bias2 = bias.reshape(1, Np).astype(jnp.float32)
    tm = 256 if M >= 512 else (_rup(pl.cdiv(M, 2), 8) if M >= 16 else M)
    tn = Np if Np <= 512 else 256
    return pl.pallas_call(
        _mm_bias_kernel,
        out_shape=jax.ShapeDtypeStruct((M, Np), out_dtype),
        grid=(pl.cdiv(M, tm), pl.cdiv(Np, tn)),
        in_specs=[pl.BlockSpec((tm, K), lambda i, j: (i, 0)),
                  pl.BlockSpec((K, tn), lambda i, j: (0, j)),
                  pl.BlockSpec((1, tn), lambda i, j: (0, j))],
        out_specs=pl.BlockSpec((tm, tn), lambda i, j: (i, j)),
        compiler_params=_cparams("parallel", "parallel"),
    )(a, b, bias2)


# --------------------------------------------------------------------------
# Stride-1 3x3 conv without an HBM im2col: halo row blocks + in-VMEM patches,
# BN statistics fused from the f32 accumulator.
# --------------------------------------------------------------------------
def _pick_row_tile(Ho):
    for r in (16, 14, 8, 7, 4, 2):
        if Ho % r == 0 and Ho > r:
            return r
    return Ho


def _conv3x3_s1_kernel(lo_ref, h1_ref, h2_ref, w_ref, o_ref, sum_ref, sq_ref,
                       *, R, Wo):
    # lo_ref: (1, R, Wp, Cp) aligned row tile of the spatially padded input;
    # h1/h2:  (1, 1, Wp, Cp) one-row halo blocks; w_ref: (9*Cp, Coutp).
    def in_row(idx):  # static dispatch: row tile + 2-row halo
        if idx < R:
            return lo_ref[0, idx]
        if idx == R:
            return h1_ref[0, 0]
        return h2_ref[0, 0]

    w = w_ref[...]
    sums = None
    sqs = None
    for r in range(R):
        # Build the 3x3 patch matrix for one output row entirely in VMEM.
        patch = jnp.concatenate(
            [in_row(r + ki)[kj:kj + Wo, :] for ki in range(3) for kj in range(3)],
            axis=-1)                                           # (Wo, 9*Cp)
        acc = jnp.dot(patch, w, preferred_element_type=jnp.float32)  # (Wo, Coutp)
        o_ref[0, r] = acc.astype(o_ref.dtype)
        s = jnp.sum(acc, axis=0, keepdims=True)
        q = jnp.sum(acc * acc, axis=0, keepdims=True)
        sums = s if sums is None else sums + s
        sqs = q if sqs is None else sqs + q
    sum_ref[0] = sums
    sq_ref[0] = sqs


def conv3x3_s1_halo(xp, wflat, Ho, Wo, Coutp):
    """xp: spatially padded NHWC bf16 (N, Ho+2, Wo+2, Cp); wflat: (9*Cp, Coutp)."""
    N, Hp, Wp, Cp = xp.shape
    R = _pick_row_tile(Ho)
    HoT = Ho // R
    y, s, q = pl.pallas_call(
        functools.partial(_conv3x3_s1_kernel, R=R, Wo=Wo),
        out_shape=(jax.ShapeDtypeStruct((N, Ho, Wo, Coutp), jnp.bfloat16),
                   jax.ShapeDtypeStruct((N * HoT, 1, Coutp), jnp.float32),
                   jax.ShapeDtypeStruct((N * HoT, 1, Coutp), jnp.float32)),
        grid=(N, HoT),
        in_specs=[
            pl.BlockSpec((1, R, Wp, Cp), lambda n, i: (n, i, 0, 0)),
            pl.BlockSpec((1, 1, Wp, Cp), lambda n, i: (n, (i + 1) * R, 0, 0)),
            pl.BlockSpec((1, 1, Wp, Cp), lambda n, i: (n, (i + 1) * R + 1, 0, 0)),
            pl.BlockSpec((9 * Cp, Coutp), lambda n, i: (0, 0)),
        ],
        out_specs=(
            pl.BlockSpec((1, R, Wo, Coutp), lambda n, i: (n, i, 0, 0)),
            pl.BlockSpec((1, 1, Coutp), lambda n, i: (n * HoT + i, 0, 0)),
            pl.BlockSpec((1, 1, Coutp), lambda n, i: (n * HoT + i, 0, 0)),
        ),
        compiler_params=_cparams("parallel", "parallel"),
    )(xp, xp, xp, wflat)
    return y, s.sum(axis=(0, 1)), q.sum(axis=(0, 1))


# --------------------------------------------------------------------------
# Fused BN-affine (+ residual with its own affine) (+ ReLU), lane-dense rows.
# --------------------------------------------------------------------------
def _affine_kernel(x_ref, s_ref, b_ref, o_ref, *, relu):
    y = x_ref[...].astype(jnp.float32) * s_ref[...] + b_ref[...]
    if relu:
        y = jnp.maximum(y, 0.0)
    o_ref[...] = y.astype(o_ref.dtype)


def _affine_res_kernel(x_ref, s_ref, b_ref, r_ref, rs_ref, rb_ref, o_ref, *, relu):
    y = x_ref[...].astype(jnp.float32) * s_ref[...] + b_ref[...]
    y = y + (r_ref[...].astype(jnp.float32) * rs_ref[...] + rb_ref[...])
    if relu:
        y = jnp.maximum(y, 0.0)
    o_ref[...] = y.astype(o_ref.dtype)


def _pick_rows(P, Cp):
    cap = max(8, (2 * 1024 * 1024) // (Cp * 2))   # keep each buffer ~<=2 MiB (v5e)
    tr = min(P, 1024, cap)
    if P >= 16:
        tr = min(tr, _rup(pl.cdiv(P, 2), 8))      # >=2 grid steps for v7x megacore
    if tr < P:
        tr = _rup(tr, 8)
    return tr


def pallas_affine(x2d, scale, bias, residual=None, res_scale=None, res_bias=None,
                  relu=True, out_dtype=jnp.bfloat16):
    P, Cp = x2d.shape
    tr = _pick_rows(P, Cp)
    grid = (pl.cdiv(P, tr),)
    row = pl.BlockSpec((tr, Cp), lambda i: (i, 0))
    vec = pl.BlockSpec((1, Cp), lambda i: (0, 0))
    s2 = scale.reshape(1, Cp).astype(jnp.float32)
    b2 = bias.reshape(1, Cp).astype(jnp.float32)
    if residual is None:
        return pl.pallas_call(
            functools.partial(_affine_kernel, relu=relu),
            out_shape=jax.ShapeDtypeStruct((P, Cp), out_dtype),
            grid=grid, in_specs=[row, vec, vec], out_specs=row,
            compiler_params=_cparams("parallel"))(x2d, s2, b2)
    if res_scale is None:
        res_scale = jnp.ones((Cp,), jnp.float32)
        res_bias = jnp.zeros((Cp,), jnp.float32)
    rs2 = res_scale.reshape(1, Cp).astype(jnp.float32)
    rb2 = res_bias.reshape(1, Cp).astype(jnp.float32)
    return pl.pallas_call(
        functools.partial(_affine_res_kernel, relu=relu),
        out_shape=jax.ShapeDtypeStruct((P, Cp), out_dtype),
        grid=grid, in_specs=[row, vec, vec, row, vec, vec], out_specs=row,
        compiler_params=_cparams("parallel"))(x2d, s2, b2, residual, rs2, rb2)


# --------------------------------------------------------------------------
# Conv dispatch (all paths return the raw conv output + fused BN statistics).
# --------------------------------------------------------------------------
def conv2d_raw(x, w, stride, pad, in_scale=None, in_bias=None, in_relu=False):
    """x: (N,H,W,Cx) bf16 (channel-padded, or the raw 3-ch image for the stem);
    w: PyTorch (Cout, Cin, KH, KW).  Returns (y (N,Ho,Wo,Coutp) bf16,
    (col_sum, col_sumsq, pixel_count)) with Coutp a multiple of 128."""
    Cout, Cin, KH, KW = map(int, w.shape)
    Coutp = _rup(Cout, _LANES)
    Cx = int(x.shape[-1])
    if in_scale is not None:
        # Previous BN affine (+ReLU) folded into the pad / patch-gather copy that
        # this conv needs anyway (XLA fuses the elementwise into the copy).
        x = x.astype(jnp.float32) * in_scale + in_bias
        if in_relu:
            x = jnp.maximum(x, 0.0)
    x = x.astype(jnp.bfloat16)
    N, H, W, _ = x.shape

    if KH == 1 and KW == 1:
        xs = x if stride == 1 else x[:, ::stride, ::stride, :]
        Nn, Ho, Wo, _ = xs.shape
        wm = jnp.pad(w[:, :, 0, 0].T, ((0, Cx - Cin), (0, Coutp - Cout)))
        y, s, q = matmul_stats(xs.reshape(Nn * Ho * Wo, Cx), wm.astype(jnp.bfloat16))
        return y.reshape(Nn, Ho, Wo, Coutp), (s, q, Nn * Ho * Wo)

    Ho = (H + 2 * pad - KH) // stride + 1
    Wo = (W + 2 * pad - KW) // stride + 1
    xp = jnp.pad(x, ((0, 0), (pad, pad), (pad, pad), (0, 0)))

    if stride == 1 and KH == 3 and KW == 3 and pad == 1:
        wt = jnp.transpose(w, (2, 3, 1, 0))                       # (3,3,Cin,Cout)
        wt = jnp.pad(wt, ((0, 0), (0, 0), (0, Cx - Cin), (0, Coutp - Cout)))
        wt = wt.reshape(9 * Cx, Coutp).astype(jnp.bfloat16)
        y, s, q = conv3x3_s1_halo(xp, wt, Ho, Wo, Coutp)
        return y, (s, q, N * Ho * Wo)

    # TODO(synk): stride-2 k>1 convs still materialize im2col patches in HBM.
    cols = []
    for i in range(KH):
        for j in range(KW):
            cols.append(xp[:, i:i + stride * Ho:stride, j:j + stride * Wo:stride, :])
    patches = jnp.concatenate(cols, axis=-1).reshape(N * Ho * Wo, KH * KW * Cx)
    wt = jnp.transpose(w, (2, 3, 1, 0))
    wt = jnp.pad(wt, ((0, 0), (0, 0), (0, Cx - Cin), (0, Coutp - Cout)))
    wm = wt.reshape(KH * KW * Cx, Coutp)
    K = KH * KW * Cx
    Kp = _rup(K, _LANES)                 # pad K to a lane multiple (stem: 147 -> 256)
    if Kp != K:
        patches = jnp.pad(patches, ((0, 0), (0, Kp - K)))
        wm = jnp.pad(wm, ((0, Kp - K), (0, 0)))
    y, s, q = matmul_stats(patches, wm.astype(jnp.bfloat16))
    return y.reshape(N, Ho, Wo, Coutp), (s, q, N * Ho * Wo)


def bn_scale_bias(stats, gamma, beta, eps=1e-5):
    """Training-mode BN (batch stats, biased var) -> per-channel scale/bias.
    Stats come from the f32 matmul accumulator (fused), padded channels get 0."""
    s, q, count = stats
    Cp = s.shape[0]
    g = jnp.pad(gamma, (0, Cp - gamma.shape[0])).astype(jnp.float32)
    bt = jnp.pad(beta, (0, Cp - beta.shape[0])).astype(jnp.float32)
    mean = s / count
    var = jnp.maximum(q / count - mean * mean, 0.0)
    scale = g * jax.lax.rsqrt(var + eps)
    bias = bt - mean * scale
    return scale, bias


def block_output(y_raw, scale, bias, residual, res_scale=None, res_bias=None):
    """relu(y*scale + bias + (residual*res_scale + res_bias)) in one Pallas pass."""
    N, Ho, Wo, Cp = y_raw.shape
    out = pallas_affine(y_raw.reshape(N * Ho * Wo, Cp), scale, bias,
                        residual=residual.reshape(N * Ho * Wo, Cp),
                        res_scale=res_scale, res_bias=res_bias, relu=True)
    return out.reshape(N, Ho, Wo, Cp)


def maxpool_3x3_s2_p1(x):
    # TODO(synk): pooling window max kept as XLA glue (minor next to the convs).
    N, H, W, C = x.shape
    xp = jnp.pad(x, ((0, 0), (1, 1), (1, 1), (0, 0)), constant_values=-jnp.inf)
    Ho = (H + 2 - 3) // 2 + 1
    Wo = (W + 2 - 3) // 2 + 1
    out = None
    for i in range(3):
        for j in range(3):
            s = xp[:, i:i + 2 * Ho:2, j:j + 2 * Wo:2, :]
            out = s if out is None else jnp.maximum(out, s)
    return out


# --------------------------------------------------------------------------
# Blocks
# --------------------------------------------------------------------------
def basic_block(x, p, stride):
    y1, st1 = conv2d_raw(x, p["conv1_w"], stride, 1)
    sc1, b1 = bn_scale_bias(st1, p["bn1_g"], p["bn1_b"])
    # bn1 affine + ReLU folded into conv2's pad copy; bn1 stats were fused above.
    y2, st2 = conv2d_raw(y1, p["conv2_w"], 1, 1,
                         in_scale=sc1, in_bias=b1, in_relu=True)
    sc2, b2 = bn_scale_bias(st2, p["bn2_g"], p["bn2_b"])
    if "ds_conv_w" in p:
        r, std = conv2d_raw(x, p["ds_conv_w"], stride, 0)
        scd, bd = bn_scale_bias(std, p["ds_bn_g"], p["ds_bn_b"])
    else:
        r, scd, bd = x, None, None
    return block_output(y2, sc2, b2, r, scd, bd)


def bottleneck_block(x, p, stride):
    y1, st1 = conv2d_raw(x, p["conv1_w"], 1, 0)
    sc1, b1 = bn_scale_bias(st1, p["bn1_g"], p["bn1_b"])
    y2, st2 = conv2d_raw(y1, p["conv2_w"], stride, 1,
                         in_scale=sc1, in_bias=b1, in_relu=True)
    sc2, b2 = bn_scale_bias(st2, p["bn2_g"], p["bn2_b"])
    y3, st3 = conv2d_raw(y2, p["conv3_w"], 1, 0,
                         in_scale=sc2, in_bias=b2, in_relu=True)
    sc3, b3 = bn_scale_bias(st3, p["bn3_g"], p["bn3_b"])
    if "ds_conv_w" in p:
        r, std = conv2d_raw(x, p["ds_conv_w"], stride, 0)
        scd, bd = bn_scale_bias(std, p["ds_bn_g"], p["ds_bn_b"])
    else:
        r, scd, bd = x, None, None
    return block_output(y3, sc3, b3, r, scd, bd)


# --------------------------------------------------------------------------
# Parameter init (deterministic, synthetic)
# --------------------------------------------------------------------------
def _conv_w(key, cout, cin, kh, kw):
    return 0.1 * jax.random.normal(key, (cout, cin, kh, kw), jnp.float32)


def _bn_pair(k1, k2, c):
    g = jnp.ones((c,), jnp.float32) + 0.1 * jax.random.normal(k1, (c,), jnp.float32)
    b = 0.1 * jax.random.normal(k2, (c,), jnp.float32)
    return g, b


def init_resnet_params(key, block, n_blocks, channels, output_dim):
    expansion = 1 if block == "basic" else 4
    keys = iter(jax.random.split(key, 512))
    nk = lambda: next(keys)
    params = {}
    in_ch = channels[0]
    params["conv1_w"] = _conv_w(nk(), in_ch, 3, 7, 7)
    params["bn1_g"], params["bn1_b"] = _bn_pair(nk(), nk(), in_ch)
    layers = []
    for li in range(4):
        ch = channels[li]
        blocks = []
        for bi in range(n_blocks[li]):
            ic = in_ch if bi == 0 else expansion * ch
            p = {}
            if block == "basic":
                p["conv1_w"] = _conv_w(nk(), ch, ic, 3, 3)
                p["bn1_g"], p["bn1_b"] = _bn_pair(nk(), nk(), ch)
                p["conv2_w"] = _conv_w(nk(), ch, ch, 3, 3)
                p["bn2_g"], p["bn2_b"] = _bn_pair(nk(), nk(), ch)
            else:
                p["conv1_w"] = _conv_w(nk(), ch, ic, 1, 1)
                p["bn1_g"], p["bn1_b"] = _bn_pair(nk(), nk(), ch)
                p["conv2_w"] = _conv_w(nk(), ch, ch, 3, 3)
                p["bn2_g"], p["bn2_b"] = _bn_pair(nk(), nk(), ch)
                p["conv3_w"] = _conv_w(nk(), expansion * ch, ch, 1, 1)
                p["bn3_g"], p["bn3_b"] = _bn_pair(nk(), nk(), expansion * ch)
            if bi == 0 and ic != expansion * ch:  # same rule as get_resnet_layer
                p["ds_conv_w"] = _conv_w(nk(), expansion * ch, ic, 1, 1)
                p["ds_bn_g"], p["ds_bn_b"] = _bn_pair(nk(), nk(), expansion * ch)
            blocks.append(p)
        layers.append(blocks)
        in_ch = expansion * ch
    params["layers"] = layers
    params["fc_w"] = 0.1 * jax.random.normal(nk(), (output_dim, in_ch), jnp.float32)
    params["fc_b"] = 0.1 * jax.random.normal(nk(), (output_dim,), jnp.float32)
    return params


# --------------------------------------------------------------------------
# Full forward
# --------------------------------------------------------------------------
def resnet_forward(x_nchw, params, block, n_blocks):
    x = jnp.transpose(x_nchw, (0, 2, 3, 1)).astype(jnp.bfloat16)  # NCHW -> NHWC
    y, st = conv2d_raw(x, params["conv1_w"], stride=2, pad=3)     # stem, fused stats
    sc, b = bn_scale_bias(st, params["bn1_g"], params["bn1_b"])
    # Stem BN affine + ReLU stays in JAX so XLA fuses it into the maxpool read
    # (one elementwise+pool pass, no separate affine launch).
    N, Ho, Wo, Cp = y.shape
    y = jnp.maximum(y.astype(jnp.float32) * sc + b, 0.0).astype(jnp.bfloat16)
    x = maxpool_3x3_s2_p1(y)

    for li in range(4):
        layer_stride = 1 if li == 0 else 2
        for bi in range(n_blocks[li]):
            s = layer_stride if bi == 0 else 1
            p = params["layers"][li][bi]
            x = basic_block(x, p, s) if block == "basic" else bottleneck_block(x, p, s)

    c_real = params["fc_w"].shape[1]
    h_pad = jnp.mean(x.astype(jnp.float32), axis=(1, 2))          # (N, Cp), padded ch = 0
    h = h_pad[:, :c_real]
    Cp = h_pad.shape[-1]
    od = params["fc_b"].shape[0]
    odp = _rup(od, _LANES)
    wfc = jnp.pad(params["fc_w"].T, ((0, Cp - c_real), (0, odp - od)))
    bfc = jnp.pad(params["fc_b"], (0, odp - od))
    logits = matmul_bias(h_pad.astype(jnp.bfloat16), wfc.astype(jnp.bfloat16), bfc)
    return logits[:, :od], h


if __name__ == "__main__":
    key = jax.random.PRNGKey(0)
    k_x, k_p = jax.random.split(key)

    # Small ResNet config: BasicBlock, one block per stage, tiny channel widths.
    block = "basic"
    n_blocks = (1, 1, 1, 1)
    channels = (8, 16, 32, 64)
    output_dim = 10

    x = jax.random.normal(k_x, (2, 3, 32, 32), jnp.float32)  # NCHW, like PyTorch
    params = init_resnet_params(k_p, block, n_blocks, channels, output_dim)

    fwd = jax.jit(functools.partial(resnet_forward, block=block, n_blocks=n_blocks))
    logits, h = fwd(x, params)
    jax.block_until_ready((logits, h))

    assert logits.shape == (2, output_dim), logits.shape
    assert h.shape == (2, channels[3]), h.shape
    assert jnp.all(jnp.isfinite(logits)) and jnp.all(jnp.isfinite(h))
    print("KERNEL_OK")
</pallas_src>

<mosaic_0001>
module attributes {stable_mosaic.version = 11 : i64} {
  func.func @_mm_stats_kernel(%arg0: i32, %arg1: i32, %arg2: memref<256x256xbf16, #tpu.memory_space<vmem>>, %arg3: memref<256x128xbf16, #tpu.memory_space<vmem>>, %arg4: memref<256x128xbf16, #tpu.memory_space<vmem>>, %arg5: memref<1x1x128xf32, #tpu.memory_space<vmem>>, %arg6: memref<1x1x128xf32, #tpu.memory_space<vmem>>) attributes {dimension_semantics = [#tpu.dimension_semantics<parallel>, #tpu.dimension_semantics<parallel>], iteration_bounds = array<i64: 2, 1>, scalar_prefetch = 0 : i64, scratch_operands = 0 : i64, tpu.core_type = #tpu.core_type<tc>, window_params = [{transform_indices = @transform_0, window_bounds = array<i64: 256, 256>}, {transform_indices = @transform_1, window_bounds = array<i64: 256, 128>}, {transform_indices = @transform_2, window_bounds = array<i64: 256, 128>}, {transform_indices = @transform_3, window_bounds = array<i64: 1, 1, 128>}, {transform_indices = @transform_4, window_bounds = array<i64: 1, 1, 128>}]} {
    %c0 = arith.constant 0 : index
    %c0_0 = arith.constant 0 : index
    %0 = vector.load %arg2[%c0, %c0_0] : memref<256x256xbf16, #tpu.memory_space<vmem>>, vector<256x256xbf16>
    %c0_1 = arith.constant 0 : index
    %c0_2 = arith.constant 0 : index
    %1 = vector.load %arg3[%c0_1, %c0_2] : memref<256x128xbf16, #tpu.memory_space<vmem>>, vector<256x128xbf16>
    %cst = arith.constant dense<0.000000e+00> : vector<256x128xf32>
    %2 = tpu.matmul %0, %1, %cst {dimension_numbers = #tpu.dot_dimension_numbers<[1], [0], [0], [1], [0, 0, 1, 1], [], []>} : vector<256x256xbf16>, vector<256x128xbf16>, vector<256x128xf32> -> vector<256x128xf32>
    %3 = arith.truncf %2 : vector<256x128xf32> to vector<256x128xbf16>
    %c0_3 = arith.constant 0 : index
    %c0_4 = arith.constant 0 : index
    %4 = vector.load %arg4[%c0_3, %c0_4] : memref<256x128xbf16, #tpu.memory_space<vmem>>, vector<256x128xbf16>
    tpu.vector_store %arg4[%c0_3, %c0_4], %3 {strides = array<i32>} : memref<256x128xbf16, #tpu.memory_space<vmem>>, vector<256x128xbf16>,
    %cst_5 = arith.constant dense<0.000000e+00> : vector<128xf32>
    %5 = vector.multi_reduction <add>, %2, %cst_5 [0] : vector<256x128xf32> to vector<128xf32>
    %6 = vector.shape_cast %5 : vector<128xf32> to vector<1x128xf32>
    %c0_6 = arith.constant 0 : index
    %c0_7 = arith.constant 0 : index
    %c0_8 = arith.constant 0 : index
    %7 = vector.load %arg5[%c0_6, %c0_7, %c0_8] : memref<1x1x128xf32, #tpu.memory_space<vmem>>, vector<1x1x128xf32>
    %8 = vector.shape_cast %7 : vector<1x1x128xf32> to vector<1x128xf32>
    %9 = vector.shape_cast %6 : vector<1x128xf32> to vector<1x1x128xf32>
    tpu.vector_store %arg5[%c0_6, %c0_7, %c0_8], %9 {strides = array<i32>} : memref<1x1x128xf32, #tpu.memory_space<vmem>>, vector<1x1x128xf32>,
    %10 = arith.mulf %2, %2 : vector<256x128xf32>
    %cst_9 = arith.constant dense<0.000000e+00> : vector<128xf32>
    %11 = vector.multi_reduction <add>, %10, %cst_9 [0] : vector<256x128xf32> to vector<128xf32>
    %12 = vector.shape_cast %11 : vector<128xf32> to vector<1x128xf32>
    %c0_10 = arith.constant 0 : index
    %c0_11 = arith.constant 0 : index
    %c0_12 = arith.constant 0 : index
    %13 = vector.load %arg6[%c0_10, %c0_11, %c0_12] : memref<1x1x128xf32, #tpu.memory_space<vmem>>, vector<1x1x128xf32>
    %14 = vector.shape_cast %13 : vector<1x1x128xf32> to vector<1x128xf32>
    %15 = vector.shape_cast %12 : vector<1x128xf32> to vector<1x1x128xf32>
    tpu.vector_store %arg6[%c0_10, %c0_11, %c0_12], %15 {strides = array<i32>} : memref<1x1x128xf32, #tpu.memory_space<vmem>>, vector<1x1x128xf32>,
    return
  }
  func.func @transform_0(%arg0: i32, %arg1: i32) -> (i32, i32) {
    %c0_i32 = arith.constant 0 : i32
    %c0_i32_0 = arith.constant 0 : i32
    return %arg0, %c0_i32 : i32, i32
  }
  func.func @transform_1(%arg0: i32, %arg1: i32) -> (i32, i32) {
    %c0_i32 = arith.constant 0 : i32
    %c0_i32_0 = arith.constant 0 : i32
    return %c0_i32, %arg1 : i32, i32
  }
  func.func @transform_2(%arg0: i32, %arg1: i32) -> (i32, i32) {
    %c0_i32 = arith.constant 0 : i32
    return %arg0, %arg1 : i32, i32
  }
  func.func @transform_3(%arg0: i32, %arg1: i32) -> (i32, i32, i32) {
    %c0_i32 = arith.constant 0 : i32
    %c0_i32_0 = arith.constant 0 : i32
    return %arg0, %c0_i32, %arg1 : i32, i32, i32
  }
  func.func @transform_4(%arg0: i32, %arg1: i32) -> (i32, i32, i32) {
    %c0_i32 = arith.constant 0 : i32
    %c0_i32_0 = arith.constant 0 : i32
    return %arg0, %c0_i32, %arg1 : i32, i32, i32
  }
}

module attributes {stable_mosaic.version = 11 : i64} {
  func.func @_conv3x3_s1_kernel(%arg0: i32, %arg1: i32, %arg2: memref<1x4x10x128xbf16, #tpu.memory_space<vmem>>, %arg3: memref<1x1x10x128xbf16, #tpu.memory_space<vmem>>, %arg4: memref<1x1x10x128xbf16, #tpu.memory_space<vmem>>, %arg5: memref<1152x128xbf16, #tpu.memory_space<vmem>>, %arg6: memref<1x4x8x128xbf16, #tpu.memory_space<vmem>>, %arg7: memref<1x1x128xf32, #tpu.memory_space<vmem>>, %arg8: memref<1x1x128xf32, #tpu.memory_space<vmem>>) attributes {dimension_semantics = [#tpu.dimension_semantics<parallel>, #tpu.dimension_semantics<parallel>], iteration_bounds = array<i64: 2, 2>, scalar_prefetch = 0 : i64, scratch_operands = 0 : i64, tpu.core_type = #tpu.core_type<tc>, window_params = [{transform_indices = @transform_0, window_bounds = array<i64: 1, 4, 10, 128>}, {transform_indices = @transform_1, window_bounds = array<i64: 1, 1, 10, 128>}, {transform_indices = @transform_2, window_bounds = array<i64: 1, 1, 10, 128>}, {pipeline_mode = #tpu.pipeline_mode<synchronous>, transform_indices = @transform_3, window_bounds = array<i64: 1152, 128>}, {transform_indices = @transform_4, window_bounds = array<i64: 1, 4, 8, 128>}, {transform_indices = @transform_5, window_bounds = array<i64: 1, 1, 128>}, {transform_indices = @transform_6, window_bounds = array<i64: 1, 1, 128>}]} {
    %c0 = arith.constant 0 : index
    %c0_0 = arith.constant 0 : index
    %0 = vector.load %arg5[%c0, %c0_0] : memref<1152x128xbf16, #tpu.memory_space<vmem>>, vector<1152x128xbf16>
    %c0_1 = arith.constant 0 : index
    %c0_2 = arith.constant 0 : index
    %c0_3 = arith.constant 0 : index
    %c0_4 = arith.constant 0 : index
    %1 = vector.load %arg2[%c0_1, %c0_2, %c0_3, %c0_4] : memref<1x4x10x128xbf16, #tpu.memory_space<vmem>>, vector<1x1x10x128xbf16>
    %2 = vector.shape_cast %1 : vector<1x1x10x128xbf16> to vector<10x128xbf16>
    %3 = vector.extract_strided_slice %2 {offsets = [0, 0], sizes = [8, 128], strides = [1, 1]} : vector<10x128xbf16> to vector<8x128xbf16>
    %c0_5 = arith.constant 0 : index
    %c0_6 = arith.constant 0 : index
    %c0_7 = arith.constant 0 : index
    %c0_8 = arith.constant 0 : index
    %4 = vector.load %arg2[%c0_5, %c0_6, %c0_7, %c0_8] : memref<1x4x10x128xbf16, #tpu.memory_space<vmem>>, vector<1x1x10x128xbf16>
    %5 = vector.shape_cast %4 : vector<1x1x10x128xbf16> to vector<10x128xbf16>
    %6 = vector.extract_strided_slice %5 {offsets = [1, 0], sizes = [8, 128], strides = [1, 1]} : vector<10x128xbf16> to vector<8x128xbf16>
    %c0_9 = arith.constant 0 : index
    %c0_10 = arith.constant 0 : index
    %c0_11 = arith.constant 0 : index
    %c0_12 = arith.constant 0 : index
    %7 = vector.load %arg2[%c0_9, %c0_10, %c0_11, %c0_12] : memref<1x4x10x128xbf16, #tpu.memory_space<vmem>>, vector<1x1x10x128xbf16>
    %8 = vector.shape_cast %7 : vector<1x1x10x128xbf16> to vector<10x128xbf16>
    %9 = vector.extract_strided_slice %8 {offsets = [2, 0], sizes = [8, 128], strides = [1, 1]} : vector<10x128xbf16> to vector<8x128xbf16>
    %c0_13 = arith.constant 0 : index
    %c1 = arith.constant 1 : index
    %c0_14 = arith.constant 0 : index
    %c0_15 = arith.constant 0 : index
    %10 = vector.load %arg2[%c0_13, %c1, %c0_14, %c0_15] : memref<1x4x10x128xbf16, #tpu.memory_space<vmem>>, vector<1x1x10x128xbf16>
    %11 = vector.shape_cast %10 : vector<1x1x10x128xbf16> to vector<10x128xbf16>
    %12 = vector.extract_strided_slice %11 {offsets = [0, 0], sizes = [8, 128], strides = [1, 1]} : vector<10x128xbf16> to vector<8x128xbf16>
    %c0_16 = arith.constant 0 : index
    %c1_17 = arith.constant 1 : index
    %c0_18 = arith.constant 0 : index
    %c0_19 = arith.constant 0 : index
    %13 = vector.load %arg2[%c0_16, %c1_17, %c0_18, %c0_19] : memref<1x4x10x128xbf16, #tpu.memory_space<vmem>>, vector<1x1x10x128xbf16>
    %14 = vector.shape_cast %13 : vector<1x1x10x128xbf16> to vector<10x128xbf16>
    %15 = vector.extract_strided_slice %14 {offsets = [1, 0], sizes = [8, 128], strides = [1, 1]} : vector<10x128xbf16> to vector<8x128xbf16>
    %c0_20 = arith.constant 0 : index
    %c1_21 = arith.constant 1 : index
    %c0_22 = arith.constant 0 : index
    %c0_23 = arith.constant 0 : index
    %16 = vector.load %arg2[%c0_20, %c1_21, %c0_22, %c0_23] : memref<1x4x10x128xbf16, #tpu.memory_space<vmem>>, vector<1x1x10x128xbf16>
    %17 = vector.shape_cast %16 : vector<1x1x10x128xbf16> to vector<10x128xbf16>
    %18 = vector.extract_strided_slice %17 {offsets = [2, 0], sizes = [8, 128], strides = [1, 1]} : vector<10x128xbf16> to vector<8x128xbf16>
    %c0_24 = arith.constant 0 : index
    %c2 = arith.constant 2 : index
    %c0_25 = arith.constant 0 : index
    %c0_26 = arith.constant 0 : index
    %19 = vector.load %arg2[%c0_24, %c2, %c0_25, %c0_26] : memref<1x4x10x128xbf16, #tpu.memory_space<vmem>>, vector<1x1x10x128xbf16>
    %20 = vector.shape_cast %19 : vector<1x1x10x128xbf16> to vector<10x128xbf16>
    %21 = vector.extract_strided_slice %20 {offsets = [0, 0], sizes = [8, 128], strides = [1, 1]} : vector<10x128xbf16> to vector<8x128xbf16>
    %c0_27 = arith.constant 0 : index
    %c2_28 = arith.constant 2 : index
    %c0_29 = arith.constant 0 : index
    %c0_30 = arith.constant 0 : index
    %22 = vector.load %arg2[%c0_27, %c2_28, %c0_29, %c0_30] : memref<1x4x10x128xbf16, #tpu.memory_space<vmem>>, vector<1x1x10x128xbf16>
    %23 = vector.shape_cast %22 : vector<1x1x10x128xbf16> to vector<10x128xbf16>
    %24 = vector.extract_strided_slice %23 {offsets = [1, 0], sizes = [8, 128], strides = [1, 1]} : vector<10x128xbf16> to vector<8x128xbf16>
    %c0_31 = arith.constant 0 : index
    %c2_32 = arith.constant 2 : index
    %c0_33 = arith.constant 0 : index
    %c0_34 = arith.constant 0 : index
    %25 = vector.load %arg2[%c0_31, %c2_32, %c0_33, %c0_34] : memref<1x4x10x128xbf16, #tpu.memory_space<vmem>>, vector<1x1x10x128xbf16>
    %26 = vector.shape_cast %25 : vector<1x1x10x128xbf16> to vector<10x128xbf16>
    %27 = vector.extract_strided_slice %26 {offsets = [2, 0], sizes = [8, 128], strides = [1, 1]} : vector<10x128xbf16> to vector<8x128xbf16>
    %28 = tpu.concatenate %3, %6, %9, %12, %15, %18, %21, %24, %27 in 1 : vector<8x128xbf16>, vector<8x128xbf16>, vector<8x128xbf16>, vector<8x128xbf16>, vector<8x128xbf16>, vector<8x128xbf16>, vector<8x128xbf16>, vector<8x128xbf16>, vector<8x128xbf16> -> vector<8x1152xbf16>
    %cst = arith.constant dense<0.000000e+00> : vector<8x128xf32>
    %29 = tpu.matmul %28, %0, %cst {dimension_numbers = #tpu.dot_dimension_numbers<[1], [0], [0], [1], [0, 0, 1, 1], [], []>} : vector<8x1152xbf16>, vector<1152x128xbf16>, vector<8x128xf32> -> vector<8x128xf32>
    %30 = arith.truncf %29 : vector<8x128xf32> to vector<8x128xbf16>
    %c0_35 = arith.constant 0 : index
    %c0_36 = arith.constant 0 : index
    %c0_37 = arith.constant 0 : index
    %c0_38 = arith.constant 0 : index
    %31 = vector.load %arg6[%c0_35, %c0_36, %c0_37, %c0_38] : memref<1x4x8x128xbf16, #tpu.memory_space<vmem>>, vector<1x1x8x128xbf16>
    %32 = vector.shape_cast %31 : vector<1x1x8x128xbf16> to vector<8x128xbf16>
    %33 = vector.shape_cast %30 : vector<8x128xbf16> to vector<1x1x8x128xbf16>
    tpu.vector_store %arg6[%c0_35, %c0_36, %c0_37, %c0_38], %33 {strides = array<i32>} : memref<1x4x8x128xbf16, #tpu.memory_space<vmem>>, vector<1x1x8x128xbf16>,
    %cst_39 = arith.constant dense<0.000000e+00> : vector<128xf32>
    %34 = vector.multi_reduction <add>, %29, %cst_39 [0] : vector<8x128xf32> to vector<128xf32>
    %35 = vector.shape_cast %34 : vector<128xf32> to vector<1x128xf32>
    %36 = arith.mulf %29, %29 : vector<8x128xf32>
    %cst_40 = arith.constant dense<0.000000e+00> : vector<128xf32>
    %37 = vector.multi_reduction <add>, %36, %cst_40 [0] : vector<8x128xf32> to vector<128xf32>
    %38 = vector.shape_cast %37 : vector<128xf32> to vector<1x128xf32>
    %c0_41 = arith.constant 0 : index
    %c1_42 = arith.constant 1 : index
    %c0_43 = arith.constant 0 : index
    %c0_44 = arith.constant 0 : index
    %39 = vector.load %arg2[%c0_41, %c1_42, %c0_43, %c0_44] : memref<1x4x10x128xbf16, #tpu.memory_space<vmem>>, vector<1x1x10x128xbf16>
    %40 = vector.shape_cast %39 : vector<1x1x10x128xbf16> to vector<10x128xbf16>
    %41 = vector.extract_strided_slice %40 {offsets = [0, 0], sizes = [8, 128], strides = [1, 1]} : vector<10x128xbf16> to vector<8x128xbf16>
    %c0_45 = arith.constant 0 : index
    %c1_46 = arith.constant 1 : index
    %c0_47 = arith.constant 0 : index
    %c0_48 = arith.constant 0 : index
    %42 = vector.load %arg2[%c0_45, %c1_46, %c0_47, %c0_48] : memref<1x4x10x128xbf16, #tpu.memory_space<vmem>>, vector<1x1x10x128xbf16>
    %43 = vector.shape_cast %42 : vector<1x1x10x128xbf16> to vector<10x128xbf16>
    %44 = vector.extract_strided_slice %43 {offsets = [1, 0], sizes = [8, 128], strides = [1, 1]} : vector<10x128xbf16> to vector<8x128xbf16>
    %c0_49 = arith.constant 0 : index
    %c1_50 = arith.constant 1 : index
    %c0_51 = arith.constant 0 : index
    %c0_52 = arith.constant 0 : index
    %45 = vector.load %arg2[%c0_49, %c1_50, %c0_51, %c0_52] : memref<1x4x10x128xbf16, #tpu.memory_space<vmem>>, vector<1x1x10x128xbf16>
    %46 = vector.shape_cast %45 : vector<1x1x10x128xbf16> to vector<10x128xbf16>
    %47 = vector.extract_strided_slice %46 {offsets = [2, 0], sizes = [8, 128], strides = [1, 1]} : vector<10x128xbf16> to vector<8x128xbf16>
    %c0_53 = arith.constant 0 : index
    %c2_54 = arith.constant 2 : index
    %c0_55 = arith.constant 0 : index
    %c0_56 = arith.constant 0 : index
    %48 = vector.load %arg2[%c0_53, %c2_54, %c0_55, %c0_56] : memref<1x4x10x128xbf16, #tpu.memory_space<vmem>>, vector<1x1x10x128xbf16>
    %49 = vector.shape_cast %48 : vector<1x1x10x128xbf16> to vector<10x128xbf16>
    %50 = vector.extract_strided_slice %49 {offsets = [0, 0], sizes = [8, 128], strides = [1, 1]} : vector<10x128xbf16> to vector<8x128xbf16>
    %c0_57 = arith.constant 0 : index
    %c2_58 = arith.constant 2 : index
    %c0_59 = arith.constant 0 : index
    %c0_60 = arith.constant 0 : index
    %51 = vector.load %arg2[%c0_57, %c2_58, %c0_59, %c0_60] : memref<1x4x10x128xbf16, #tpu.memory_space<vmem>>, vector<1x1x10x128xbf16>
    %52 = vector.shape_cast %51 : vector<1x1x10x128xbf16> to vector<10x128xbf16>
    %53 = vector.extract_strided_slice %52 {offsets = [1, 0], sizes = [8, 128], strides = [1, 1]} : vector<10x128xbf16> to vector<8x128xbf16>
    %c0_61 = arith.constant 0 : index
    %c2_62 = arith.constant 2 : index
    %c0_63 = arith.constant 0 : index
    %c0_64 = arith.constant 0 : index
    %54 = vector.load %arg2[%c0_61, %c2_62, %c0_63, %c0_64] : memref<1x4x10x128xbf16, #tpu.memory_space<vmem>>, vector<1x1x10x128xbf16>
    %55 = vector.shape_cast %54 : vector<1x1x10x128xbf16> to vector<10x128xbf16>
    %56 = vector.extract_strided_slice %55 {offsets = [2, 0], sizes = [8, 128], strides = [1, 1]} : vector<10x128xbf16> to vector<8x128xbf16>
    %c0_65 = arith.constant 0 : index
    %c3 = arith.constant 3 : index
    %c0_66 = arith.constant 0 : index
    %c0_67 = arith.constant 0 : index
    %57 = vector.load %arg2[%c0_65, %c3, %c0_66, %c0_67] : memref<1x4x10x128xbf16, #tpu.memory_space<vmem>>, vector<1x1x10x128xbf16>
    %58 = vector.shape_cast %57 : vector<1x1x10x128xbf16> to vector<10x128xbf16>
    %59 = vector.extract_strided_slice %58 {offsets = [0, 0], sizes = [8, 128], strides = [1, 1]} : vector<10x128xbf16> to vector<8x128xbf16>
    %c0_68 = arith.constant 0 : index
    %c3_69 = arith.constant 3 : index
    %c0_70 = arith.constant 0 : index
    %c0_71 = arith.constant 0 : index
    %60 = vector.load %arg2[%c0_68, %c3_69, %c0_70, %c0_71] : memref<1x4x10x128xbf16, #tpu.memory_space<vmem>>, vector<1x1x10x128xbf16>
    %61 = vector.shape_cast %60 : vector<1x1x10x128xbf16> to vector<10x128xbf16>
    %62 = vector.extract_strided_slice %61 {offsets = [1, 0], sizes = [8, 128], strides = [1, 1]} : vector<10x128xbf16> to vector<8x128xbf16>
    %c0_72 = arith.constant 0 : index
    %c3_73 = arith.constant 3 : index
    %c0_74 = arith.constant 0 : index
    %c0_75 = arith.constant 0 : index
    %63 = vector.load %arg2[%c0_72, %c3_73, %c0_74, %c0_75] : memref<1x4x10x128xbf16, #tpu.memory_space<vmem>>, vector<1x1x10x128xbf16>
    %64 = vector.shape_cast %63 : vector<1x1x10x128xbf16> to vector<10x128xbf16>
    %65 = vector.extract_strided_slice %64 {offsets = [2, 0], sizes = [8, 128], strides = [1, 1]} : vector<10x128xbf16> to vector<8x128xbf16>
    %66 = tpu.concatenate %41, %44, %47, %50, %53, %56, %59, %62, %65 in 1 : vector<8x128xbf16>, vector<8x128xbf16>, vector<8x128xbf16>, vector<8x128xbf16>, vector<8x128xbf16>, vector<8x128xbf16>, vector<8x128xbf16>, vector<8x128xbf16>, vector<8x128xbf16> -> vector<8x1152xbf16>
    %cst_76 = arith.constant dense<0.000000e+00> : vector<8x128xf32>
    %67 = tpu.matmul %66, %0, %cst_76 {dimension_numbers = #tpu.dot_dimension_numbers<[1], [0], [0], [1], [0, 0, 1, 1], [], []>} : vector<8x1152xbf16>, vector<1152x128xbf16>, vector<8x128xf32> -> vector<8x128xf32>
    %68 = arith.truncf %67 : vector<8x128xf32> to vector<8x128xbf16>
    %c0_77 = arith.constant 0 : index
    %c1_78 = arith.constant 1 : index
    %c0_79 = arith.constant 0 : index
    %c0_80 = arith.constant 0 : index
    %69 = vector.load %arg6[%c0_77, %c1_78, %c0_79, %c0_80] : memref<1x4x8x128xbf16, #tpu.memory_space<vmem>>, vector<1x1x8x128xbf16>
    %70 = vector.shape_cast %69 : vector<1x1x8x128xbf16> to vector<8x128xbf16>
    %71 = vector.shape_cast %68 : vector<8x128xbf16> to vector<1x1x8x128xbf16>
    tpu.vector_store %arg6[%c0_77, %c1_78, %c0_79, %c0_80], %71 {strides = array<i32>} : memref<1x4x8x128xbf16, #tpu.memory_space<vmem>>, vector<1x1x8x128xbf16>,
    %cst_81 = arith.constant dense<0.000000e+00> : vector<128xf32>
    %72 = vector.multi_reduction <add>, %67, %cst_81 [0] : vector<8x128xf32> to vector<128xf32>
    %73 = vector.shape_cast %72 : vector<128xf32> to vector<1x128xf32>
    %74 = arith.mulf %67, %67 : vector<8x128xf32>
    %cst_82 = arith.constant dense<0.000000e+00> : vector<128xf32>
    %75 = vector.multi_reduction <add>, %74, %cst_82 [0] : vector<8x128xf32> to vector<128xf32>
    %76 = vector.shape_cast %75 : vector<128xf32> to vector<1x128xf32>
    %77 = arith.addf %35, %73 : vector<1x128xf32>
    %78 = arith.addf %38, %76 : vector<1x128xf32>
    %c0_83 = arith.constant 0 : index
    %c2_84 = arith.constant 2 : index
    %c0_85 = arith.constant 0 : index
    %c0_86 = arith.constant 0 : index
    %79 = vector.load %arg2[%c0_83, %c2_84, %c0_85, %c0_86] : memref<1x4x10x128xbf16, #tpu.memory_space<vmem>>, vector<1x1x10x128xbf16>
    %80 = vector.shape_cast %79 : vector<1x1x10x128xbf16> to vector<10x128xbf16>
    %81 = vector.extract_strided_slice %80 {offsets = [0, 0], sizes = [8, 128], strides = [1, 1]} : vector<10x128xbf16> to vector<8x128xbf16>
    %c0_87 = arith.constant 0 : index
    %c2_88 = arith.constant 2 : index
    %c0_89 = arith.constant 0 : index
    %c0_90 = arith.constant 0 : index
    %82 = vector.load %arg2[%c0_87, %c2_88, %c0_89, %c0_90] : memref<1x4x10x128xbf16, #tpu.memory_space<vmem>>, vector<1x1x10x128xbf16>
    %83 = vector.shape_cast %82 : vector<1x1x10x128xbf16> to vector<10x128xbf16>
    %84 = vector.extract_strided_slice %83 {offsets = [1, 0], sizes = [8, 128], strides = [1, 1]} : vector<10x128xbf16> to vector<8x128xbf16>
    %c0_91 = arith.constant 0 : index
    %c2_92 = arith.constant 2 : index
    %c0_93 = arith.constant 0 : index
    %c0_94 = arith.constant 0 : index
    %85 = vector.load %arg2[%c0_91, %c2_92, %c0_93, %c0_94] : memref<1x4x10x128xbf16, #tpu.memory_space<vmem>>, vector<1x1x10x128xbf16>
    %86 = vector.shape_cast %85 : vector<1x1x10x128xbf16> to vector<10x128xbf16>
    %87 = vector.extract_strided_slice %86 {offsets = [2, 0], sizes = [8, 128], strides = [1, 1]} : vector<10x128xbf16> to vector<8x128xbf16>
    %c0_95 = arith.constant 0 : index
    %c3_96 = arith.constant 3 : index
    %c0_97 = arith.constant 0 : index
    %c0_98 = arith.constant 0 : index
    %88 = vector.load %arg2[%c0_95, %c3_96, %c0_97, %c0_98] : memref<1x4x10x128xbf16, #tpu.memory_space<vmem>>, vector<1x1x10x128xbf16>
    %89 = vector.shape_cast %88 : vector<1x1x10x128xbf16> to vector<10x128xbf16>
    %90 = vector.extract_strided_slice %89 {offsets = [0, 0], sizes = [8, 128], strides = [1, 1]} : vector<10x128xbf16> to vector<8x128xbf16>
    %c0_99 = arith.constant 0 : index
    %c3_100 = arith.constant 3 : index
    %c0_101 = arith.constant 0 : index
    %c0_102 = arith.constant 0 : index
    %91 = vector.load %arg2[%c0_99, %c3_100, %c0_101, %c0_102] : memref<1x4x10x128xbf16, #tpu.memory_space<vmem>>, vector<1x1x10x128xbf16>
    %92 = vector.shape_cast %91 : vector<1x1x10x128xbf16> to vector<10x128xbf16>
    %93 = vector.extract_strided_slice %92 {offsets = [1, 0], sizes = [8, 128], strides = [1, 1]} : vector<10x128xbf16> to vector<8x128xbf16>
    %c0_103 = arith.constant 0 : index
    %c3_104 = arith.constant 3 : index
    %c0_105 = arith.constant 0 : index
    %c0_106 = arith.constant 0 : index
    %94 = vector.load %arg2[%c0_103, %c3_104, %c0_105, %c0_106] : memref<1x4x10x128xbf16, #tpu.memory_space<vmem>>, vector<1x1x10x128xbf16>
    %95 = vector.shape_cast %94 : vector<1x1x10x128xbf16> to vector<10x128xbf16>
    %96 = vector.extract_strided_slice %95 {offsets = [2, 0], sizes = [8, 128], strides = [1, 1]} : vector<10x128xbf16> to vector<8x128xbf16>
    %c0_107 = arith.constant 0 : index
    %c0_108 = arith.constant 0 : index
    %c0_109 = arith.constant 0 : index
    %c0_110 = arith.constant 0 : index
    %97 = vector.load %arg3[%c0_107, %c0_108, %c0_109, %c0_110] : memref<1x1x10x128xbf16, #tpu.memory_space<vmem>>, vector<1x1x10x128xbf16>
    %98 = vector.shape_cast %97 : vector<1x1x10x128xbf16> to vector<10x128xbf16>
    %99 = vector.extract_strided_slice %98 {offsets = [0, 0], sizes = [8, 128], strides = [1, 1]} : vector<10x128xbf16> to vector<8x128xbf16>
    %c0_111 = arith.constant 0 : index
    %c0_112 = arith.constant 0 : index
    %c0_113 = arith.constant 0 : index
    %c0_114 = arith.constant 0 : index
    %100 = vector.load %arg3[%c0_111, %c0_112, %c0_113, %c0_114] : memref<1x1x10x128xbf16, #tpu.memory_space<vmem>>, vector<1x1x10x128xbf16>
    %101 = vector.shape_cast %100 : vector<1x1x10x128xbf16> to vector<10x128xbf16>
    %102 = vector.extract_strided_slice %101 {offsets = [1, 0], sizes = [8, 128], strides = [1, 1]} : vector<10x128xbf16> to vector<8x128xbf16>
    %c0_115 = arith.constant 0 : index
    %c0_116 = arith.constant 0 : index
    %c0_117 = arith.constant 0 : index
    %c0_118 = arith.constant 0 : index
    %103 = vector.load %arg3[%c0_115, %c0_116, %c0_117, %c0_118] : memref<1x1x10x128xbf16, #tpu.memory_space<vmem>>, vector<1x1x10x128xbf16>
    %104 = vector.shape_cast %103 : vector<1x1x10x128xbf16> to vector<10x128xbf16>
    %105 = vector.extract_strided_slice %104 {offsets = [2, 0], sizes = [8, 128], strides = [1, 1]} : vector<10x128xbf16> to vector<8x128xbf16>
    %106 = tpu.concatenate %81, %84, %87, %90, %93, %96, %99, %102, %105 in 1 : vector<8x128xbf16>, vector<8x128xbf16>, vector<8x128xbf16>, vector<8x128xbf16>, vector<8x128xbf16>, vector<8x128xbf16>, vector<8x128xbf16>, vector<8x128xbf16>, vector<8x128xbf16> -> vector<8x1152xbf16>
    %cst_119 = arith.constant dense<0.000000e+00> : vector<8x128xf32>
    %107 = tpu.matmul %106, %0, %cst_119 {dimension_numbers = #tpu.dot_dimension_numbers<[1], [0], [0], [1], [0, 0, 1, 1], [], []>} : vector<8x1152xbf16>, vector<1152x128xbf16>, vector<8x128xf32> -> vector<8x128xf32>
    %108 = arith.truncf %107 : vector<8x128xf32> to vector<8x128xbf16>
    %c0_120 = arith.constant 0 : index
    %c2_121 = arith.constant 2 : index
    %c0_122 = arith.constant 0 : index
    %c0_123 = arith.constant 0 : index
    %109 = vector.load %arg6[%c0_120, %c2_121, %c0_122, %c0_123] : memref<1x4x8x128xbf16, #tpu.memory_space<vmem>>, vector<1x1x8x128xbf16>
    %110 = vector.shape_cast %109 : vector<1x1x8x128xbf16> to vector<8x128xbf16>
    %111 = vector.shape_cast %108 : vector<8x128xbf16> to vector<1x1x8x128xbf16>
    tpu.vector_store %arg6[%c0_120, %c2_121, %c0_122, %c0_123], %111 {strides = array<i32>} : memref<1x4x8x128xbf16, #tpu.memory_space<vmem>>, vector<1x1x8x128xbf16>,
    %cst_124 = arith.constant dense<0.000000e+00> : vector<128xf32>
    %112 = vector.multi_reduction <add>, %107, %cst_124 [0] : vector<8x128xf32> to vector<128xf32>
    %113 = vector.shape_cast %112 : vector<128xf32> to vector<1x128xf32>
    %114 = arith.mulf %107, %107 : vector<8x128xf32>
    %cst_125 = arith.constant dense<0.000000e+00> : vector<128xf32>
    %115 = vector.multi_reduction <add>, %114, %cst_125 [0] : vector<8x128xf32> to vector<128xf32>
    %116 = vector.shape_cast %115 : vector<128xf32> to vector<1x128xf32>
    %117 = arith.addf %77, %113 : vector<1x128xf32>
    %118 = arith.addf %78, %116 : vector<1x128xf32>
    %c0_126 = arith.constant 0 : index
    %c3_127 = arith.constant 3 : index
    %c0_128 = arith.constant 0 : index
    %c0_129 = arith.constant 0 : index
    %119 = vector.load %arg2[%c0_126, %c3_127, %c0_128, %c0_129] : memref<1x4x10x128xbf16, #tpu.memory_space<vmem>>, vector<1x1x10x128xbf16>
    %120 = vector.shape_cast %119 : vector<1x1x10x128xbf16> to vector<10x128xbf16>
    %121 = vector.extract_strided_slice %120 {offsets = [0, 0], sizes = [8, 128], strides = [1, 1]} : vector<10x128xbf16> to vector<8x128xbf16>
    %c0_130 = arith.constant 0 : index
    %c3_131 = arith.constant 3 : index
    %c0_132 = arith.constant 0 : index
    %c0_133 = arith.constant 0 : index
    %122 = vector.load %arg2[%c0_130, %c3_131, %c0_132, %c0_133] : memref<1x4x10x128xbf16, #tpu.memory_space<vmem>>, vector<1x1x10x128xbf16>
    %123 = vector.shape_cast %122 : vector<1x1x10x128xbf16> to vector<10x128xbf16>
    %124 = vector.extract_strided_slice %123 {offsets = [1, 0], sizes = [8, 128], strides = [1, 1]} : vector<10x128xbf16> to vector<8x128xbf16>
    %c0_134 = arith.constant 0 : index
    %c3_135 = arith.constant 3 : index
    %c0_136 = arith.constant 0 : index
    %c0_137 = arith.constant 0 : index
    %125 = vector.load %arg2[%c0_134, %c3_135, %c0_136, %c0_137] : memref<1x4x10x128xbf16, #tpu.memory_space<vmem>>, vector<1x1x10x128xbf16>
    %126 = vector.shape_cast %125 : vector<1x1x10x128xbf16> to vector<10x128xbf16>
    %127 = vector.extract_strided_slice %126 {offsets = [2, 0], sizes = [8, 128], strides = [1, 1]} : vector<10x128xbf16> to vector<8x128xbf16>
    %c0_138 = arith.constant 0 : index
    %c0_139 = arith.constant 0 : index
    %c0_140 = arith.constant 0 : index
    %c0_141 = arith.constant 0 : index
    %128 = vector.load %arg3[%c0_138, %c0_139, %c0_140, %c0_141] : memref<1x1x10x128xbf16, #tpu.memory_space<vmem>>, vector<1x1x10x128xbf16>
    %129 = vector.shape_cast %128 : vector<1x1x10x128xbf16> to vector<10x128xbf16>
    %130 = vector.extract_strided_slice %129 {offsets = [0, 0], sizes = [8, 128], strides = [1, 1]} : vector<10x128xbf16> to vector<8x128xbf16>
    %c0_142 = arith.constant 0 : index
    %c0_143 = arith.constant 0 : index
    %c0_144 = arith.constant 0 : index
    %c0_145 = arith.constant 0 : index
    %131 = vector.load %arg3[%c0_142, %c0_143, %c0_144, %c0_145] : memref<1x1x10x128xbf16, #tpu.memory_space<vmem>>, vector<1x1x10x128xbf16>
    %132 = vector.shape_cast %131 : vector<1x1x10x128xbf16> to vector<10x128xbf16>
    %133 = vector.extract_strided_slice %132 {offsets = [1, 0], sizes = [8, 128], strides = [1, 1]} : vector<10x128xbf16> to vector<8x128xbf16>
    %c0_146 = arith.constant 0 : index
    %c0_147 = arith.constant 0 : index
    %c0_148 = arith.constant 0 : index
    %c0_149 = arith.constant 0 : index
    %134 = vector.load %arg3[%c0_146, %c0_147, %c0_148, %c0_149] : memref<1x1x10x128xbf16, #tpu.memory_space<vmem>>, vector<1x1x10x128xbf16>
    %135 = vector.shape_cast %134 : vector<1x1x10x128xbf16> to vector<10x128xbf16>
    %136 = vector.extract_strided_slice %135 {offsets = [2, 0], sizes = [8, 128], strides = [1, 1]} : vector<10x128xbf16> to vector<8x128xbf16>
    %c0_150 = arith.constant 0 : index
    %c0_151 = arith.constant 0 : index
    %c0_152 = arith.constant 0 : index
    %c0_153 = arith.constant 0 : index
    %137 = vector.load %arg4[%c0_150, %c0_151, %c0_152, %c0_153] : memref<1x1x10x128xbf16, #tpu.memory_space<vmem>>, vector<1x1x10x128xbf16>
    %138 = vector.shape_cast %137 : vector<1x1x10x128xbf16> to vector<10x128xbf16>
    %139 = vector.extract_strided_slice %138 {offsets = [0, 0], sizes = [8, 128], strides = [1, 1]} : vector<10x128xbf16> to vector<8x128xbf16>
    %c0_154 = arith.constant 0 : index
    %c0_155 = arith.constant 0 : index
    %c0_156 = arith.constant 0 : index
    %c0_157 = arith.constant 0 : index
    %140 = vector.load %arg4[%c0_154, %c0_155, %c0_156, %c0_157] : memref<1x1x10x128xbf16, #tpu.memory_space<vmem>>, vector<1x1x10x128xbf16>
    %141 = vector.shape_cast %140 : vector<1x1x10x128xbf16> to vector<10x128xbf16>
    %142 = vector.extract_strided_slice %141 {offsets = [1, 0], sizes = [8, 128], strides = [1, 1]} : vector<10x128xbf16> to vector<8x128xbf16>
    %c0_158 = arith.constant 0 : index
    %c0_159 = arith.constant 0 : index
    %c0_160 = arith.constant 0 : index
    %c0_161 = arith.constant 0 : index
    %143 = vector.load %arg4[%c0_158, %c0_159, %c0_160, %c0_161] : memref<1x1x10x128xbf16, #tpu.memory_space<vmem>>, vector<1x1x10x128xbf16>
    %144 = vector.shape_cast %143 : vector<1x1x10x128xbf16> to vector<10x128xbf16>
    %145 = vector.extract_strided_slice %144 {offsets = [2, 0], sizes = [8, 128], strides = [1, 1]} : vector<10x128xbf16> to vector<8x128xbf16>
    %146 = tpu.concatenate %121, %124, %127, %130, %133, %136, %139, %142, %145 in 1 : vector<8x128xbf16>, vector<8x128xbf16>, vector<8x128xbf16>, vector<8x128xbf16>, vector<8x128xbf16>, vector<8x128xbf16>, vector<8x128xbf16>, vector<8x128xbf16>, vector<8x128xbf16> -> vector<8x1152xbf16>
    %cst_162 = arith.constant dense<0.000000e+00> : vector<8x128xf32>
    %147 = tpu.matmul %146, %0, %cst_162 {dimension_numbers = #tpu.dot_dimension_numbers<[1], [0], [0], [1], [0, 0, 1, 1], [], []>} : vector<8x1152xbf16>, vector<1152x128xbf16>, vector<8x128xf32> -> vector<8x128xf32>
    %148 = arith.truncf %147 : vector<8x128xf32> to vector<8x128xbf16>
    %c0_163 = arith.constant 0 : index
    %c3_164 = arith.constant 3 : index
    %c0_165 = arith.constant 0 : index
    %c0_166 = arith.constant 0 : index
    %149 = vector.load %arg6[%c0_163, %c3_164, %c0_165, %c0_166] : memref<1x4x8x128xbf16, #tpu.memory_space<vmem>>, vector<1x1x8x128xbf16>
    %150 = vector.shape_cast %149 : vector<1x1x8x128xbf16> to vector<8x128xbf16>
    %151 = vector.shape_cast %148 : vector<8x128xbf16> to vector<1x1x8x128xbf16>
    tpu.vector_store %arg6[%c0_163, %c3_164, %c0_165, %c0_166], %151 {strides = array<i32>} : memref<1x4x8x128xbf16, #tpu.memory_space<vmem>>, vector<1x1x8x128xbf16>,
    %cst_167 = arith.constant dense<0.000000e+00> : vector<128xf32>
    %152 = vector.multi_reduction <add>, %147, %cst_167 [0] : vector<8x128xf32> to vector<128xf32>
    %153 = vector.shape_cast %152 : vector<128xf32> to vector<1x128xf32>
    %154 = arith.mulf %147, %147 : vector<8x128xf32>
    %cst_168 = arith.constant dense<0.000000e+00> : vector<128xf32>
    %155 = vector.multi_reduction <add>, %154, %cst_168 [0] : vector<8x128xf32> to vector<128xf32>
    %156 = vector.shape_cast %155 : vector<128xf32> to vector<1x128xf32>
    %157 = arith.addf %117, %153 : vector<1x128xf32>
    %158 = arith.addf %118, %156 : vector<1x128xf32>
    %c0_169 = arith.constant 0 : index
    %c0_170 = arith.constant 0 : index
    %c0_171 = arith.constant 0 : index
    %159 = vector.load %arg7[%c0_169, %c0_170, %c0_171] : memref<1x1x128xf32, #tpu.memory_space<vmem>>, vector<1x1x128xf32>
    %160 = vector.shape_cast %159 : vector<1x1x128xf32> to vector<1x128xf32>
    %161 = vector.shape_cast %157 : vector<1x128xf32> to vector<1x1x128xf32>
    tpu.vector_store %arg7[%c0_169, %c0_170, %c0_171], %161 {strides = array<i32>} : memref<1x1x128xf32, #tpu.memory_space<vmem>>, vector<1x1x128xf32>,
    %c0_172 = arith.constant 0 : index
    %c0_173 = arith.constant 0 : index
    %c0_174 = arith.constant 0 : index
    %162 = vector.load %arg8[%c0_172, %c0_173, %c0_174] : memref<1x1x128xf32, #tpu.memory_space<vmem>>, vector<1x1x128xf32>
    %163 = vector.shape_cast %162 : vector<1x1x128xf32> to vector<1x128xf32>
    %164 = vector.shape_cast %158 : vector<1x128xf32> to vector<1x1x128xf32>
    tpu.vector_store %arg8[%c0_172, %c0_173, %c0_174], %164 {strides = array<i32>} : memref<1x1x128xf32, #tpu.memory_space<vmem>>, vector<1x1x128xf32>,
    return
  }
  func.func @transform_0(%arg0: i32, %arg1: i32) -> (i32, i32, i32, i32) {
    %c0_i32 = arith.constant 0 : i32
    %c0_i32_0 = arith.constant 0 : i32
    %c0_i32_1 = arith.constant 0 : i32
    return %arg0, %arg1, %c0_i32, %c0_i32_0 : i32, i32, i32, i32
  }
  func.func @transform_1(%arg0: i32, %arg1: i32) -> (i32, i32, i32, i32) {
    %c1_i32 = arith.constant 1 : i32
    %0 = arith.addi %arg1, %c1_i32 : i32
    %c4_i32 = arith.constant 4 : i32
    %1 = arith.muli %0, %c4_i32 : i32
    %c0_i32 = arith.constant 0 : i32
    %c0_i32_0 = arith.constant 0 : i32
    %c0_i32_1 = arith.constant 0 : i32
    return %arg0, %1, %c0_i32, %c0_i32_0 : i32, i32, i32, i32
  }
  func.func @transform_2(%arg0: i32, %arg1: i32) -> (i32, i32, i32, i32) {
    %c1_i32 = arith.constant 1 : i32
    %0 = arith.addi %arg1, %c1_i32 : i32
    %c4_i32 = arith.constant 4 : i32
    %1 = arith.muli %0, %c4_i32 : i32
    %c1_i32_0 = arith.constant 1 : i32
    %2 = arith.addi %1, %c1_i32_0 : i32
    %c0_i32 = arith.constant 0 : i32
    %c0_i32_1 = arith.constant 0 : i32
    %c0_i32_2 = arith.constant 0 : i32
    return %arg0, %2, %c0_i32, %c0_i32_1 : i32, i32, i32, i32
  }
  func.func @transform_3(%arg0: i32, %arg1: i32) -> (i32, i32) {
    %c0_i32 = arith.constant 0 : i32
    %c0_i32_0 = arith.constant 0 : i32
    %c0_i32_1 = arith.constant 0 : i32
    return %c0_i32, %c0_i32_0 : i32, i32
  }
  func.func @transform_4(%arg0: i32, %arg1: i32) -> (i32, i32, i32, i32) {
    %c0_i32 = arith.constant 0 : i32
    %c0_i32_0 = arith.constant 0 : i32
    %c0_i32_1 = arith.constant 0 : i32
    return %arg0, %arg1, %c0_i32, %c0_i32_0 : i32, i32, i32, i32
  }
  func.func @transform_5(%arg0: i32, %arg1: i32) -> (i32, i32, i32) {
    %c2_i32 = arith.constant 2 : i32
    %0 = arith.muli %arg0, %c2_i32 : i32
    %1 = arith.addi %0, %arg1 : i32
    %c0_i32 = arith.constant 0 : i32
    %c0_i32_0 = arith.constant 0 : i32
    %c0_i32_1 = arith.constant 0 : i32
    return %1, %c0_i32, %c0_i32_0 : i32, i32, i32
  }
  func.func @transform_6(%arg0: i32, %arg1: i32) -> (i32, i32, i32) {
    %c2_i32 = arith.constant 2 : i32
    %0 = arith.muli %arg0, %c2_i32 : i32
    %1 = arith.addi %0, %arg1 : i32
    %c0_i32 = arith.constant 0 : i32
    %c0_i32_0 = arith.constant 0 : i32
    %c0_i32_1 = arith.constant 0 : i32
    return %1, %c0_i32, %c0_i32_0 : i32, i32, i32
  }
}

module attributes {stable_mosaic.version = 11 : i64} {
  func.func @_mm_stats_kernel(%arg0: i32, %arg1: i32, %arg2: memref<16x128xbf16, #tpu.memory_space<vmem>>, %arg3: memref<128x128xbf16, #tpu.memory_space<vmem>>, %arg4: memref<16x128xbf16, #tpu.memory_space<vmem>>, %arg5: memref<1x1x128xf32, #tpu.memory_space<vmem>>, %arg6: memref<1x1x128xf32, #tpu.memory_space<vmem>>) attributes {dimension_semantics = [#tpu.dimension_semantics<parallel>, #tpu.dimension_semantics<parallel>], iteration_bounds = array<i64: 2, 1>, scalar_prefetch = 0 : i64, scratch_operands = 0 : i64, tpu.core_type = #tpu.core_type<tc>, window_params = [{transform_indices = @transform_0, window_bounds = array<i64: 16, 128>}, {transform_indices = @transform_1, window_bounds = array<i64: 128, 128>}, {transform_indices = @transform_2, window_bounds = array<i64: 16, 128>}, {transform_indices = @transform_3, window_bounds = array<i64: 1, 1, 128>}, {transform_indices = @transform_4, window_bounds = array<i64: 1, 1, 128>}]} {
    %c0 = arith.constant 0 : index
    %c0_0 = arith.constant 0 : index
    %0 = vector.load %arg2[%c0, %c0_0] : memref<16x128xbf16, #tpu.memory_space<vmem>>, vector<16x128xbf16>
    %c0_1 = arith.constant 0 : index
    %c0_2 = arith.constant 0 : index
    %1 = vector.load %arg3[%c0_1, %c0_2] : memref<128x128xbf16, #tpu.memory_space<vmem>>, vector<128x128xbf16>
    %cst = arith.constant dense<0.000000e+00> : vector<16x128xf32>
    %2 = tpu.matmul %0, %1, %cst {dimension_numbers = #tpu.dot_dimension_numbers<[1], [0], [0], [1], [0, 0, 1, 1], [], []>} : vector<16x128xbf16>, vector<128x128xbf16>, vector<16x128xf32> -> vector<16x128xf32>
    %3 = arith.truncf %2 : vector<16x128xf32> to vector<16x128xbf16>
    %c0_3 = arith.constant 0 : index
    %c0_4 = arith.constant 0 : index
    %4 = vector.load %arg4[%c0_3, %c0_4] : memref<16x128xbf16, #tpu.memory_space<vmem>>, vector<16x128xbf16>
    tpu.vector_store %arg4[%c0_3, %c0_4], %3 {strides = array<i32>} : memref<16x128xbf16, #tpu.memory_space<vmem>>, vector<16x128xbf16>,
    %cst_5 = arith.constant dense<0.000000e+00> : vector<128xf32>
    %5 = vector.multi_reduction <add>, %2, %cst_5 [0] : vector<16x128xf32> to vector<128xf32>
    %6 = vector.shape_cast %5 : vector<128xf32> to vector<1x128xf32>
    %c0_6 = arith.constant 0 : index
    %c0_7 = arith.constant 0 : index
    %c0_8 = arith.constant 0 : index
    %7 = vector.load %arg5[%c0_6, %c0_7, %c0_8] : memref<1x1x128xf32, #tpu.memory_space<vmem>>, vector<1x1x128xf32>
    %8 = vector.shape_cast %7 : vector<1x1x128xf32> to vector<1x128xf32>
    %9 = vector.shape_cast %6 : vector<1x128xf32> to vector<1x1x128xf32>
    tpu.vector_store %arg5[%c0_6, %c0_7, %c0_8], %9 {strides = array<i32>} : memref<1x1x128xf32, #tpu.memory_space<vmem>>, vector<1x1x128xf32>,
    %10 = arith.mulf %2, %2 : vector<16x128xf32>
    %cst_9 = arith.constant dense<0.000000e+00> : vector<128xf32>
    %11 = vector.multi_reduction <add>, %10, %cst_9 [0] : vector<16x128xf32> to vector<128xf32>
    %12 = vector.shape_cast %11 : vector<128xf32> to vector<1x128xf32>
    %c0_10 = arith.constant 0 : index
    %c0_11 = arith.constant 0 : index
    %c0_12 = arith.constant 0 : index
    %13 = vector.load %arg6[%c0_10, %c0_11, %c0_12] : memref<1x1x128xf32, #tpu.memory_space<vmem>>, vector<1x1x128xf32>
    %14 = vector.shape_cast %13 : vector<1x1x128xf32> to vector<1x128xf32>
    %15 = vector.shape_cast %12 : vector<1x128xf32> to vector<1x1x128xf32>
    tpu.vector_store %arg6[%c0_10, %c0_11, %c0_12], %15 {strides = array<i32>} : memref<1x1x128xf32, #tpu.memory_space<vmem>>, vector<1x1x128xf32>,
    return
  }
  func.func @transform_0(%arg0: i32, %arg1: i32) -> (i32, i32) {
    %c0_i32 = arith.constant 0 : i32
    %c0_i32_0 = arith.constant 0 : i32
    return %arg0, %c0_i32 : i32, i32
  }
  func.func @transform_1(%arg0: i32, %arg1: i32) -> (i32, i32) {
    %c0_i32 = arith.constant 0 : i32
    %c0_i32_0 = arith.constant 0 : i32
    return %c0_i32, %arg1 : i32, i32
  }
  func.func @transform_2(%arg0: i32, %arg1: i32) -> (i32, i32) {
    %c0_i32 = arith.constant 0 : i32
    return %arg0, %arg1 : i32, i32
  }
  func.func @transform_3(%arg0: i32, %arg1: i32) -> (i32, i32, i32) {
    %c0_i32 = arith.constant 0 : i32
    %c0_i32_0 = arith.constant 0 : i32
    return %arg0, %c0_i32, %arg1 : i32, i32, i32
  }
  func.func @transform_4(%arg0: i32, %arg1: i32) -> (i32, i32, i32) {
    %c0_i32 = arith.constant 0 : i32
    %c0_i32_0 = arith.constant 0 : i32
    return %arg0, %c0_i32, %arg1 : i32, i32, i32
  }
}

module attributes {stable_mosaic.version = 11 : i64} {
  func.func @_affine_res_kernel(%arg0: i32, %arg1: memref<64x128xbf16, #tpu.memory_space<vmem>>, %arg2: memref<1x128xf32, #tpu.memory_space<vmem>>, %arg3: memref<1x128xf32, #tpu.memory_space<vmem>>, %arg4: memref<64x128xbf16, #tpu.memory_space<vmem>>, %arg5: memref<1x128xf32, #tpu.memory_space<vmem>>, %arg6: memref<1x128xf32, #tpu.memory_space<vmem>>, %arg7: memref<64x128xbf16, #tpu.memory_space<vmem>>) attributes {dimension_semantics = [#tpu.dimension_semantics<parallel>], iteration_bounds = array<i64: 2>, scalar_prefetch = 0 : i64, scratch_operands = 0 : i64, tpu.core_type = #tpu.core_type<tc>, window_params = [{transform_indices = @transform_0, window_bounds = array<i64: 64, 128>}, {pipeline_mode = #tpu.pipeline_mode<synchronous>, transform_indices = @transform_1, window_bounds = array<i64: 1, 128>}, {pipeline_mode = #tpu.pipeline_mode<synchronous>, transform_indices = @transform_2, window_bounds = array<i64: 1, 128>}, {transform_indices = @transform_3, window_bounds = array<i64: 64, 128>}, {pipeline_mode = #tpu.pipeline_mode<synchronous>, transform_indices = @transform_4, window_bounds = array<i64: 1, 128>}, {pipeline_mode = #tpu.pipeline_mode<synchronous>, transform_indices = @transform_5, window_bounds = array<i64: 1, 128>}, {transform_indices = @transform_6, window_bounds = array<i64: 64, 128>}]} {
    %c0 = arith.constant 0 : index
    %c0_0 = arith.constant 0 : index
    %0 = vector.load %arg1[%c0, %c0_0] : memref<64x128xbf16, #tpu.memory_space<vmem>>, vector<64x128xbf16>
    %1 = arith.extf %0 : vector<64x128xbf16> to vector<64x128xf32>
    %c0_1 = arith.constant 0 : index
    %c0_2 = arith.constant 0 : index
    %2 = vector.load %arg2[%c0_1, %c0_2] : memref<1x128xf32, #tpu.memory_space<vmem>>, vector<1x128xf32>
    %3 = vector.broadcast %2 : vector<1x128xf32> to vector<64x128xf32>
    %4 = arith.mulf %1, %3 : vector<64x128xf32>
    %c0_3 = arith.constant 0 : index
    %c0_4 = arith.constant 0 : index
    %5 = vector.load %arg3[%c0_3, %c0_4] : memref<1x128xf32, #tpu.memory_space<vmem>>, vector<1x128xf32>
    %6 = vector.broadcast %5 : vector<1x128xf32> to vector<64x128xf32>
    %7 = arith.addf %4, %6 : vector<64x128xf32>
    %c0_5 = arith.constant 0 : index
    %c0_6 = arith.constant 0 : index
    %8 = vector.load %arg4[%c0_5, %c0_6] : memref<64x128xbf16, #tpu.memory_space<vmem>>, vector<64x128xbf16>
    %9 = arith.extf %8 : vector<64x128xbf16> to vector<64x128xf32>
    %c0_7 = arith.constant 0 : index
    %c0_8 = arith.constant 0 : index
    %10 = vector.load %arg5[%c0_7, %c0_8] : memref<1x128xf32, #tpu.memory_space<vmem>>, vector<1x128xf32>
    %11 = vector.broadcast %10 : vector<1x128xf32> to vector<64x128xf32>
    %12 = arith.mulf %9, %11 : vector<64x128xf32>
    %c0_9 = arith.constant 0 : index
    %c0_10 = arith.constant 0 : index
    %13 = vector.load %arg6[%c0_9, %c0_10] : memref<1x128xf32, #tpu.memory_space<vmem>>, vector<1x128xf32>
    %14 = vector.broadcast %13 : vector<1x128xf32> to vector<64x128xf32>
    %15 = arith.addf %12, %14 : vector<64x128xf32>
    %16 = arith.addf %7, %15 : vector<64x128xf32>
    %cst = arith.constant 0.000000e+00 : f32
    %17 = vector.broadcast %cst : f32 to vector<64x128xf32>
    %18 = arith.maximumf %16, %17 : vector<64x128xf32>
    %19 = arith.truncf %18 : vector<64x128xf32> to vector<64x128xbf16>
    %c0_11 = arith.constant 0 : index
    %c0_12 = arith.constant 0 : index
    %20 = vector.load %arg7[%c0_11, %c0_12] : memref<64x128xbf16, #tpu.memory_space<vmem>>, vector<64x128xbf16>
    tpu.vector_store %arg7[%c0_11, %c0_12], %19 {strides = array<i32>} : memref<64x128xbf16, #tpu.memory_space<vmem>>, vector<64x128xbf16>,
    return
  }
  func.func @transform_0(%arg0: i32) -> (i32, i32) {
    %c0_i32 = arith.constant 0 : i32
    %c0_i32_0 = arith.constant 0 : i32
    return %arg0, %c0_i32 : i32, i32
  }
  func.func @transform_1(%arg0: i32) -> (i32, i32) {
    %c0_i32 = arith.constant 0 : i32
    %c0_i32_0 = arith.constant 0 : i32
    %c0_i32_1 = arith.constant 0 : i32
    return %c0_i32, %c0_i32_0 : i32, i32
  }
  func.func @transform_2(%arg0: i32) -> (i32, i32) {
    %c0_i32 = arith.constant 0 : i32
    %c0_i32_0 = arith.constant 0 : i32
    %c0_i32_1 = arith.constant 0 : i32
    return %c0_i32, %c0_i32_0 : i32, i32
  }
  func.func @transform_3(%arg0: i32) -> (i32, i32) {
    %c0_i32 = arith.constant 0 : i32
    %c0_i32_0 = arith.constant 0 : i32
    return %arg0, %c0_i32 : i32, i32
  }
  func.func @transform_4(%arg0: i32) -> (i32, i32) {
    %c0_i32 = arith.constant 0 : i32
    %c0_i32_0 = arith.constant 0 : i32
    %c0_i32_1 = arith.constant 0 : i32
    return %c0_i32, %c0_i32_0 : i32, i32
  }
  func.func @transform_5(%arg0: i32) -> (i32, i32) {
    %c0_i32 = arith.constant 0 : i32
    %c0_i32_0 = arith.constant 0 : i32
    %c0_i32_1 = arith.constant 0 : i32
    return %c0_i32, %c0_i32_0 : i32, i32
  }
  func.func @transform_6(%arg0: i32) -> (i32, i32) {
    %c0_i32 = arith.constant 0 : i32
    %c0_i32_0 = arith.constant 0 : i32
    return %arg0, %c0_i32 : i32, i32
  }
}

module attributes {stable_mosaic.version = 11 : i64} {
  func.func @_mm_stats_kernel(%arg0: i32, %arg1: i32, %arg2: memref<16x1152xbf16, #tpu.memory_space<vmem>>, %arg3: memref<1152x128xbf16, #tpu.memory_space<vmem>>, %arg4: memref<16x128xbf16, #tpu.memory_space<vmem>>, %arg5: memref<1x1x128xf32, #tpu.memory_space<vmem>>, %arg6: memref<1x1x128xf32, #tpu.memory_space<vmem>>) attributes {dimension_semantics = [#tpu.dimension_semantics<parallel>, #tpu.dimension_semantics<parallel>], iteration_bounds = array<i64: 2, 1>, scalar_prefetch = 0 : i64, scratch_operands = 0 : i64, tpu.core_type = #tpu.core_type<tc>, window_params = [{transform_indices = @transform_0, window_bounds = array<i64: 16, 1152>}, {transform_indices = @transform_1, window_bounds = array<i64: 1152, 128>}, {transform_indices = @transform_2, window_bounds = array<i64: 16, 128>}, {transform_indices = @transform_3, window_bounds = array<i64: 1, 1, 128>}, {transform_indices = @transform_4, window_bounds = array<i64: 1, 1, 128>}]} {
    %c0 = arith.constant 0 : index
    %c0_0 = arith.constant 0 : index
    %0 = vector.load %arg2[%c0, %c0_0] : memref<16x1152xbf16, #tpu.memory_space<vmem>>, vector<16x1152xbf16>
    %c0_1 = arith.constant 0 : index
    %c0_2 = arith.constant 0 : index
    %1 = vector.load %arg3[%c0_1, %c0_2] : memref<1152x128xbf16, #tpu.memory_space<vmem>>, vector<1152x128xbf16>
    %cst = arith.constant dense<0.000000e+00> : vector<16x128xf32>
    %2 = tpu.matmul %0, %1, %cst {dimension_numbers = #tpu.dot_dimension_numbers<[1], [0], [0], [1], [0, 0, 1, 1], [], []>} : vector<16x1152xbf16>, vector<1152x128xbf16>, vector<16x128xf32> -> vector<16x128xf32>
    %3 = arith.truncf %2 : vector<16x128xf32> to vector<16x128xbf16>
    %c0_3 = arith.constant 0 : index
    %c0_4 = arith.constant 0 : index
    %4 = vector.load %arg4[%c0_3, %c0_4] : memref<16x128xbf16, #tpu.memory_space<vmem>>, vector<16x128xbf16>
    tpu.vector_store %arg4[%c0_3, %c0_4], %3 {strides = array<i32>} : memref<16x128xbf16, #tpu.memory_space<vmem>>, vector<16x128xbf16>,
    %cst_5 = arith.constant dense<0.000000e+00> : vector<128xf32>
    %5 = vector.multi_reduction <add>, %2, %cst_5 [0] : vector<16x128xf32> to vector<128xf32>
    %6 = vector.shape_cast %5 : vector<128xf32> to vector<1x128xf32>
    %c0_6 = arith.constant 0 : index
    %c0_7 = arith.constant 0 : index
    %c0_8 = arith.constant 0 : index
    %7 = vector.load %arg5[%c0_6, %c0_7, %c0_8] : memref<1x1x128xf32, #tpu.memory_space<vmem>>, vector<1x1x128xf32>
    %8 = vector.shape_cast %7 : vector<1x1x128xf32> to vector<1x128xf32>
    %9 = vector.shape_cast %6 : vector<1x128xf32> to vector<1x1x128xf32>
    tpu.vector_store %arg5[%c0_6, %c0_7, %c0_8], %9 {strides = array<i32>} : memref<1x1x128xf32, #tpu.memory_space<vmem>>, vector<1x1x128xf32>,
    %10 = arith.mulf %2, %2 : vector<16x128xf32>
    %cst_9 = arith.constant dense<0.000000e+00> : vector<128xf32>
    %11 = vector.multi_reduction <add>, %10, %cst_9 [0] : vector<16x128xf32> to vector<128xf32>
    %12 = vector.shape_cast %11 : vector<128xf32> to vector<1x128xf32>
    %c0_10 = arith.constant 0 : index
    %c0_11 = arith.constant 0 : index
    %c0_12 = arith.constant 0 : index
    %13 = vector.load %arg6[%c0_10, %c0_11, %c0_12] : memref<1x1x128xf32, #tpu.memory_space<vmem>>, vector<1x1x128xf32>
    %14 = vector.shape_cast %13 : vector<1x1x128xf32> to vector<1x128xf32>
    %15 = vector.shape_cast %12 : vector<1x128xf32> to vector<1x1x128xf32>
    tpu.vector_store %arg6[%c0_10, %c0_11, %c0_12], %15 {strides = array<i32>} : memref<1x1x128xf32, #tpu.memory_space<vmem>>, vector<1x1x128xf32>,
    return
  }
  func.func @transform_0(%arg0: i32, %arg1: i32) -> (i32, i32) {
    %c0_i32 = arith.constant 0 : i32
    %c0_i32_0 = arith.constant 0 : i32
    return %arg0, %c0_i32 : i32, i32
  }
  func.func @transform_1(%arg0: i32, %arg1: i32) -> (i32, i32) {
    %c0_i32 = arith.constant 0 : i32
    %c0_i32_0 = arith.constant 0 : i32
    return %c0_i32, %arg1 : i32, i32
  }
  func.func @transform_2(%arg0: i32, %arg1: i32) -> (i32, i32) {
    %c0_i32 = arith.constant 0 : i32
    return %arg0, %arg1 : i32, i32
  }
  func.func @transform_3(%arg0: i32, %arg1: i32) -> (i32, i32, i32) {
    %c0_i32 = arith.constant 0 : i32
    %c0_i32_0 = arith.constant 0 : i32
    return %arg0, %c0_i32, %arg1 : i32, i32, i32
  }
  func.func @transform_4(%arg0: i32, %arg1: i32) -> (i32, i32, i32) {
    %c0_i32 = arith.constant 0 : i32
    %c0_i32_0 = arith.constant 0 : i32
    return %arg0, %c0_i32, %arg1 : i32, i32, i32
  }
}

module attributes {stable_mosaic.version = 11 : i64} {
  func.func @_affine_res_kernel(%arg0: i32, %arg1: memref<16x128xbf16, #tpu.memory_space<vmem>>, %arg2: memref<1x128xf32, #tpu.memory_space<vmem>>, %arg3: memref<1x128xf32, #tpu.memory_space<vmem>>, %arg4: memref<16x128xbf16, #tpu.memory_space<vmem>>, %arg5: memref<1x128xf32, #tpu.memory_space<vmem>>, %arg6: memref<1x128xf32, #tpu.memory_space<vmem>>, %arg7: memref<16x128xbf16, #tpu.memory_space<vmem>>) attributes {dimension_semantics = [#tpu.dimension_semantics<parallel>], iteration_bounds = array<i64: 2>, scalar_prefetch = 0 : i64, scratch_operands = 0 : i64, tpu.core_type = #tpu.core_type<tc>, window_params = [{transform_indices = @transform_0, window_bounds = array<i64: 16, 128>}, {pipeline_mode = #tpu.pipeline_mode<synchronous>, transform_indices = @transform_1, window_bounds = array<i64: 1, 128>}, {pipeline_mode = #tpu.pipeline_mode<synchronous>, transform_indices = @transform_2, window_bounds = array<i64: 1, 128>}, {transform_indices = @transform_3, window_bounds = array<i64: 16, 128>}, {pipeline_mode = #tpu.pipeline_mode<synchronous>, transform_indices = @transform_4, window_bounds = array<i64: 1, 128>}, {pipeline_mode = #tpu.pipeline_mode<synchronous>, transform_indices = @transform_5, window_bounds = array<i64: 1, 128>}, {transform_indices = @transform_6, window_bounds = array<i64: 16, 128>}]} {
    %c0 = arith.constant 0 : index
    %c0_0 = arith.constant 0 : index
    %0 = vector.load %arg1[%c0, %c0_0] : memref<16x128xbf16, #tpu.memory_space<vmem>>, vector<16x128xbf16>
    %1 = arith.extf %0 : vector<16x128xbf16> to vector<16x128xf32>
    %c0_1 = arith.constant 0 : index
    %c0_2 = arith.constant 0 : index
    %2 = vector.load %arg2[%c0_1, %c0_2] : memref<1x128xf32, #tpu.memory_space<vmem>>, vector<1x128xf32>
    %3 = vector.broadcast %2 : vector<1x128xf32> to vector<16x128xf32>
    %4 = arith.mulf %1, %3 : vector<16x128xf32>
    %c0_3 = arith.constant 0 : index
    %c0_4 = arith.constant 0 : index
    %5 = vector.load %arg3[%c0_3, %c0_4] : memref<1x128xf32, #tpu.memory_space<vmem>>, vector<1x128xf32>
    %6 = vector.broadcast %5 : vector<1x128xf32> to vector<16x128xf32>
    %7 = arith.addf %4, %6 : vector<16x128xf32>
    %c0_5 = arith.constant 0 : index
    %c0_6 = arith.constant 0 : index
    %8 = vector.load %arg4[%c0_5, %c0_6] : memref<16x128xbf16, #tpu.memory_space<vmem>>, vector<16x128xbf16>
    %9 = arith.extf %8 : vector<16x128xbf16> to vector<16x128xf32>
    %c0_7 = arith.constant 0 : index
    %c0_8 = arith.constant 0 : index
    %10 = vector.load %arg5[%c0_7, %c0_8] : memref<1x128xf32, #tpu.memory_space<vmem>>, vector<1x128xf32>
    %11 = vector.broadcast %10 : vector<1x128xf32> to vector<16x128xf32>
    %12 = arith.mulf %9, %11 : vector<16x128xf32>
    %c0_9 = arith.constant 0 : index
    %c0_10 = arith.constant 0 : index
    %13 = vector.load %arg6[%c0_9, %c0_10] : memref<1x128xf32, #tpu.memory_space<vmem>>, vector<1x128xf32>
    %14 = vector.broadcast %13 : vector<1x128xf32> to vector<16x128xf32>
    %15 = arith.addf %12, %14 : vector<16x128xf32>
    %16 = arith.addf %7, %15 : vector<16x128xf32>
    %cst = arith.constant 0.000000e+00 : f32
    %17 = vector.broadcast %cst : f32 to vector<16x128xf32>
    %18 = arith.maximumf %16, %17 : vector<16x128xf32>
    %19 = arith.truncf %18 : vector<16x128xf32> to vector<16x128xbf16>
    %c0_11 = arith.constant 0 : index
    %c0_12 = arith.constant 0 : index
    %20 = vector.load %arg7[%c0_11, %c0_12] : memref<16x128xbf16, #tpu.memory_space<vmem>>, vector<16x128xbf16>
    tpu.vector_store %arg7[%c0_11, %c0_12], %19 {strides = array<i32>} : memref<16x128xbf16, #tpu.memory_space<vmem>>, vector<16x128xbf16>,
    return
  }
  func.func @transform_0(%arg0: i32) -> (i32, i32) {
    %c0_i32 = arith.constant 0 : i32
    %c0_i32_0 = arith.constant 0 : i32
    return %arg0, %c0_i32 : i32, i32
  }
  func.func @transform_1(%arg0: i32) -> (i32, i32) {
    %c0_i32 = arith.constant 0 : i32
    %c0_i32_0 = arith.constant 0 : i32
    %c0_i32_1 = arith.constant 0 : i32
    return %c0_i32, %c0_i32_0 : i32, i32
  }
  func.func @transform_2(%arg0: i32) -> (i32, i32) {
    %c0_i32 = arith.constant 0 : i32
    %c0_i32_0 = arith.constant 0 : i32
    %c0_i32_1 = arith.constant 0 : i32
    return %c0_i32, %c0_i32_0 : i32, i32
  }
  func.func @transform_3(%arg0: i32) -> (i32, i32) {
    %c0_i32 = arith.constant 0 : i32
    %c0_i32_0 = arith.constant 0 : i32
    return %arg0, %c0_i32 : i32, i32
  }
  func.func @transform_4(%arg0: i32) -> (i32, i32) {
    %c0_i32 = arith.constant 0 : i32
    %c0_i32_0 = arith.constant 0 : i32
    %c0_i32_1 = arith.constant 0 : i32
    return %c0_i32, %c0_i32_0 : i32, i32
  }
  func.func @transform_5(%arg0: i32) -> (i32, i32) {
    %c0_i32 = arith.constant 0 : i32
    %c0_i32_0 = arith.constant 0 : i32
    %c0_i32_1 = arith.constant 0 : i32
    return %c0_i32, %c0_i32_0 : i32, i32
  }
  func.func @transform_6(%arg0: i32) -> (i32, i32) {
    %c0_i32 = arith.constant 0 : i32
    %c0_i32_0 = arith.constant 0 : i32
    return %arg0, %c0_i32 : i32, i32
  }
}

module attributes {stable_mosaic.version = 11 : i64} {
  func.func @_conv3x3_s1_kernel(%arg0: i32, %arg1: i32, %arg2: memref<1x2x6x128xbf16, #tpu.memory_space<vmem>>, %arg3: memref<1x1x6x128xbf16, #tpu.memory_space<vmem>>, %arg4: memref<1x1x6x128xbf16, #tpu.memory_space<vmem>>, %arg5: memref<1152x128xbf16, #tpu.memory_space<vmem>>, %arg6: memref<1x2x4x128xbf16, #tpu.memory_space<vmem>>, %arg7: memref<1x1x128xf32, #tpu.memory_space<vmem>>, %arg8: memref<1x1x128xf32, #tpu.memory_space<vmem>>) attributes {dimension_semantics = [#tpu.dimension_semantics<parallel>, #tpu.dimension_semantics<parallel>], iteration_bounds = array<i64: 2, 2>, scalar_prefetch = 0 : i64, scratch_operands = 0 : i64, tpu.core_type = #tpu.core_type<tc>, window_params = [{transform_indices = @transform_0, window_bounds = array<i64: 1, 2, 6, 128>}, {transform_indices = @transform_1, window_bounds = array<i64: 1, 1, 6, 128>}, {transform_indices = @transform_2, window_bounds = array<i64: 1, 1, 6, 128>}, {pipeline_mode = #tpu.pipeline_mode<synchronous>, transform_indices = @transform_3, window_bounds = array<i64: 1152, 128>}, {transform_indices = @transform_4, window_bounds = array<i64: 1, 2, 4, 128>}, {transform_indices = @transform_5, window_bounds = array<i64: 1, 1, 128>}, {transform_indices = @transform_6, window_bounds = array<i64: 1, 1, 128>}]} {
    %c0 = arith.constant 0 : index
    %c0_0 = arith.constant 0 : index
    %0 = vector.load %arg5[%c0, %c0_0] : memref<1152x128xbf16, #tpu.memory_space<vmem>>, vector<1152x128xbf16>
    %c0_1 = arith.constant 0 : index
    %c0_2 = arith.constant 0 : index
    %c0_3 = arith.constant 0 : index
    %c0_4 = arith.constant 0 : index
    %1 = vector.load %arg2[%c0_1, %c0_2, %c0_3, %c0_4] : memref<1x2x6x128xbf16, #tpu.memory_space<vmem>>, vector<1x1x6x128xbf16>
    %2 = vector.shape_cast %1 : vector<1x1x6x128xbf16> to vector<6x128xbf16>
    %3 = vector.extract_strided_slice %2 {offsets = [0, 0], sizes = [4, 128], strides = [1, 1]} : vector<6x128xbf16> to vector<4x128xbf16>
    %c0_5 = arith.constant 0 : index
    %c0_6 = arith.constant 0 : index
    %c0_7 = arith.constant 0 : index
    %c0_8 = arith.constant 0 : index
    %4 = vector.load %arg2[%c0_5, %c0_6, %c0_7, %c0_8] : memref<1x2x6x128xbf16, #tpu.memory_space<vmem>>, vector<1x1x6x128xbf16>
    %5 = vector.shape_cast %4 : vector<1x1x6x128xbf16> to vector<6x128xbf16>
    %6 = vector.extract_strided_slice %5 {offsets = [1, 0], sizes = [4, 128], strides = [1, 1]} : vector<6x128xbf16> to vector<4x128xbf16>
    %c0_9 = arith.constant 0 : index
    %c0_10 = arith.constant 0 : index
    %c0_11 = arith.constant 0 : index
    %c0_12 = arith.constant 0 : index
    %7 = vector.load %arg2[%c0_9, %c0_10, %c0_11, %c0_12] : memref<1x2x6x128xbf16, #tpu.memory_space<vmem>>, vector<1x1x6x128xbf16>
    %8 = vector.shape_cast %7 : vector<1x1x6x128xbf16> to vector<6x128xbf16>
    %9 = vector.extract_strided_slice %8 {offsets = [2, 0], sizes = [4, 128], strides = [1, 1]} : vector<6x128xbf16> to vector<4x128xbf16>
    %c0_13 = arith.constant 0 : index
    %c1 = arith.constant 1 : index
    %c0_14 = arith.constant 0 : index
    %c0_15 = arith.constant 0 : index
    %10 = vector.load %arg2[%c0_13, %c1, %c0_14, %c0_15] : memref<1x2x6x128xbf16, #tpu.memory_space<vmem>>, vector<1x1x6x128xbf16>
    %11 = vector.shape_cast %10 : vector<1x1x6x128xbf16> to vector<6x128xbf16>
    %12 = vector.extract_strided_slice %11 {offsets = [0, 0], sizes = [4, 128], strides = [1, 1]} : vector<6x128xbf16> to vector<4x128xbf16>
    %c0_16 = arith.constant 0 : index
    %c1_17 = arith.constant 1 : index
    %c0_18 = arith.constant 0 : index
    %c0_19 = arith.constant 0 : index
    %13 = vector.load %arg2[%c0_16, %c1_17, %c0_18, %c0_19] : memref<1x2x6x128xbf16, #tpu.memory_space<vmem>>, vector<1x1x6x128xbf16>
    %14 = vector.shape_cast %13 : vector<1x1x6x128xbf16> to vector<6x128xbf16>
    %15 = vector.extract_strided_slice %14 {offsets = [1, 0], sizes = [4, 128], strides = [1, 1]} : vector<6x128xbf16> to vector<4x128xbf16>
    %c0_20 = arith.constant 0 : index
    %c1_21 = arith.constant 1 : index
    %c0_22 = arith.constant 0 : index
    %c0_23 = arith.constant 0 : index
    %16 = vector.load %arg2[%c0_20, %c1_21, %c0_22, %c0_23] : memref<1x2x6x128xbf16, #tpu.memory_space<vmem>>, vector<1x1x6x128xbf16>
    %17 = vector.shape_cast %16 : vector<1x1x6x128xbf16> to vector<6x128xbf16>
    %18 = vector.extract_strided_slice %17 {offsets = [2, 0], sizes = [4, 128], strides = [1, 1]} : vector<6x128xbf16> to vector<4x128xbf16>
    %c0_24 = arith.constant 0 : index
    %c0_25 = arith.constant 0 : index
    %c0_26 = arith.constant 0 : index
    %c0_27 = arith.constant 0 : index
    %19 = vector.load %arg3[%c0_24, %c0_25, %c0_26, %c0_27] : memref<1x1x6x128xbf16, #tpu.memory_space<vmem>>, vector<1x1x6x128xbf16>
    %20 = vector.shape_cast %19 : vector<1x1x6x128xbf16> to vector<6x128xbf16>
    %21 = vector.extract_strided_slice %20 {offsets = [0, 0], sizes = [4, 128], strides = [1, 1]} : vector<6x128xbf16> to vector<4x128xbf16>
    %c0_28 = arith.constant 0 : index
    %c0_29 = arith.constant 0 : index
    %c0_30 = arith.constant 0 : index
    %c0_31 = arith.constant 0 : index
    %22 = vector.load %arg3[%c0_28, %c0_29, %c0_30, %c0_31] : memref<1x1x6x128xbf16, #tpu.memory_space<vmem>>, vector<1x1x6x128xbf16>
    %23 = vector.shape_cast %22 : vector<1x1x6x128xbf16> to vector<6x128xbf16>
    %24 = vector.extract_strided_slice %23 {offsets = [1, 0], sizes = [4, 128], strides = [1, 1]} : vector<6x128xbf16> to vector<4x128xbf16>
    %c0_32 = arith.constant 0 : index
    %c0_33 = arith.constant 0 : index
    %c0_34 = arith.constant 0 : index
    %c0_35 = arith.constant 0 : index
    %25 = vector.load %arg3[%c0_32, %c0_33, %c0_34, %c0_35] : memref<1x1x6x128xbf16, #tpu.memory_space<vmem>>, vector<1x1x6x128xbf16>
    %26 = vector.shape_cast %25 : vector<1x1x6x128xbf16> to vector<6x128xbf16>
    %27 = vector.extract_strided_slice %26 {offsets = [2, 0], sizes = [4, 128], strides = [1, 1]} : vector<6x128xbf16> to vector<4x128xbf16>
    %28 = tpu.concatenate %3, %6, %9, %12, %15, %18, %21, %24, %27 in 1 : vector<4x128xbf16>, vector<4x128xbf16>, vector<4x128xbf16>, vector<4x128xbf16>, vector<4x128xbf16>, vector<4x128xbf16>, vector<4x128xbf16>, vector<4x128xbf16>, vector<4x128xbf16> -> vector<4x1152xbf16>
    %cst = arith.constant dense<0.000000e+00> : vector<4x128xf32>
    %29 = tpu.matmul %28, %0, %cst {dimension_numbers = #tpu.dot_dimension_numbers<[1], [0], [0], [1], [0, 0, 1, 1], [], []>} : vector<4x1152xbf16>, vector<1152x128xbf16>, vector<4x128xf32> -> vector<4x128xf32>
    %30 = arith.truncf %29 : vector<4x128xf32> to vector<4x128xbf16>
    %c0_36 = arith.constant 0 : index
    %c0_37 = arith.constant 0 : index
    %c0_38 = arith.constant 0 : index
    %c0_39 = arith.constant 0 : index
    %31 = vector.load %arg6[%c0_36, %c0_37, %c0_38, %c0_39] : memref<1x2x4x128xbf16, #tpu.memory_space<vmem>>, vector<1x1x4x128xbf16>
    %32 = vector.shape_cast %31 : vector<1x1x4x128xbf16> to vector<4x128xbf16>
    %33 = vector.shape_cast %30 : vector<4x128xbf16> to vector<1x1x4x128xbf16>
    tpu.vector_store %arg6[%c0_36, %c0_37, %c0_38, %c0_39], %33 {strides = array<i32>} : memref<1x2x4x128xbf16, #tpu.memory_space<vmem>>, vector<1x1x4x128xbf16>,
    %cst_40 = arith.constant dense<0.000000e+00> : vector<128xf32>
    %34 = vector.multi_reduction <add>, %29, %cst_40 [0] : vector<4x128xf32> to vector<128xf32>
    %35 = vector.shape_cast %34 : vector<128xf32> to vector<1x128xf32>
    %36 = arith.mulf %29, %29 : vector<4x128xf32>
    %cst_41 = arith.constant dense<0.000000e+00> : vector<128xf32>
    %37 = vector.multi_reduction <add>, %36, %cst_41 [0] : vector<4x128xf32> to vector<128xf32>
    %38 = vector.shape_cast %37 : vector<128xf32> to vector<1x128xf32>
    %c0_42 = arith.constant 0 : index
    %c1_43 = arith.constant 1 : index
    %c0_44 = arith.constant 0 : index
    %c0_45 = arith.constant 0 : index
    %39 = vector.load %arg2[%c0_42, %c1_43, %c0_44, %c0_45] : memref<1x2x6x128xbf16, #tpu.memory_space<vmem>>, vector<1x1x6x128xbf16>
    %40 = vector.shape_cast %39 : vector<1x1x6x128xbf16> to vector<6x128xbf16>
    %41 = vector.extract_strided_slice %40 {offsets = [0, 0], sizes = [4, 128], strides = [1, 1]} : vector<6x128xbf16> to vector<4x128xbf16>
    %c0_46 = arith.constant 0 : index
    %c1_47 = arith.constant 1 : index
    %c0_48 = arith.constant 0 : index
    %c0_49 = arith.constant 0 : index
    %42 = vector.load %arg2[%c0_46, %c1_47, %c0_48, %c0_49] : memref<1x2x6x128xbf16, #tpu.memory_space<vmem>>, vector<1x1x6x128xbf16>
    %43 = vector.shape_cast %42 : vector<1x1x6x128xbf16> to vector<6x128xbf16>
    %44 = vector.extract_strided_slice %43 {offsets = [1, 0], sizes = [4, 128], strides = [1, 1]} : vector<6x128xbf16> to vector<4x128xbf16>
    %c0_50 = arith.constant 0 : index
    %c1_51 = arith.constant 1 : index
    %c0_52 = arith.constant 0 : index
    %c0_53 = arith.constant 0 : index
    %45 = vector.load %arg2[%c0_50, %c1_51, %c0_52, %c0_53] : memref<1x2x6x128xbf16, #tpu.memory_space<vmem>>, vector<1x1x6x128xbf16>
    %46 = vector.shape_cast %45 : vector<1x1x6x128xbf16> to vector<6x128xbf16>
    %47 = vector.extract_strided_slice %46 {offsets = [2, 0], sizes = [4, 128], strides = [1, 1]} : vector<6x128xbf16> to vector<4x128xbf16>
    %c0_54 = arith.constant 0 : index
    %c0_55 = arith.constant 0 : index
    %c0_56 = arith.constant 0 : index
    %c0_57 = arith.constant 0 : index
    %48 = vector.load %arg3[%c0_54, %c0_55, %c0_56, %c0_57] : memref<1x1x6x128xbf16, #tpu.memory_space<vmem>>, vector<1x1x6x128xbf16>
    %49 = vector.shape_cast %48 : vector<1x1x6x128xbf16> to vector<6x128xbf16>
    %50 = vector.extract_strided_slice %49 {offsets = [0, 0], sizes = [4, 128], strides = [1, 1]} : vector<6x128xbf16> to vector<4x128xbf16>
    %c0_58 = arith.constant 0 : index
    %c0_59 = arith.constant 0 : index
    %c0_60 = arith.constant 0 : index
    %c0_61 = arith.constant 0 : index
    %51 = vector.load %arg3[%c0_58, %c0_59, %c0_60, %c0_61] : memref<1x1x6x128xbf16, #tpu.memory_space<vmem>>, vector<1x1x6x128xbf16>
    %52 = vector.shape_cast %51 : vector<1x1x6x128xbf16> to vector<6x128xbf16>
    %53 = vector.extract_strided_slice %52 {offsets = [1, 0], sizes = [4, 128], strides = [1, 1]} : vector<6x128xbf16> to vector<4x128xbf16>
    %c0_62 = arith.constant 0 : index
    %c0_63 = arith.constant 0 : index
    %c0_64 = arith.constant 0 : index
    %c0_65 = arith.constant 0 : index
    %54 = vector.load %arg3[%c0_62, %c0_63, %c0_64, %c0_65] : memref<1x1x6x128xbf16, #tpu.memory_space<vmem>>, vector<1x1x6x128xbf16>
    %55 = vector.shape_cast %54 : vector<1x1x6x128xbf16> to vector<6x128xbf16>
    %56 = vector.extract_strided_slice %55 {offsets = [2, 0], sizes = [4, 128], strides = [1, 1]} : vector<6x128xbf16> to vector<4x128xbf16>
    %c0_66 = arith.constant 0 : index
    %c0_67 = arith.constant 0 : index
    %c0_68 = arith.constant 0 : index
    %c0_69 = arith.constant 0 : index
    %57 = vector.load %arg4[%c0_66, %c0_67, %c0_68, %c0_69] : memref<1x1x6x128xbf16, #tpu.memory_space<vmem>>, vector<1x1x6x128xbf16>
    %58 = vector.shape_cast %57 : vector<1x1x6x128xbf16> to vector<6x128xbf16>
    %59 = vector.extract_strided_slice %58 {offsets = [0, 0], sizes = [4, 128], strides = [1, 1]} : vector<6x128xbf16> to vector<4x128xbf16>
    %c0_70 = arith.constant 0 : index
    %c0_71 = arith.constant 0 : index
    %c0_72 = arith.constant 0 : index
    %c0_73 = arith.constant 0 : index
    %60 = vector.load %arg4[%c0_70, %c0_71, %c0_72, %c0_73] : memref<1x1x6x128xbf16, #tpu.memory_space<vmem>>, vector<1x1x6x128xbf16>
    %61 = vector.shape_cast %60 : vector<1x1x6x128xbf16> to vector<6x128xbf16>
    %62 = vector.extract_strided_slice %61 {offsets = [1, 0], sizes = [4, 128], strides = [1, 1]} : vector<6x128xbf16> to vector<4x128xbf16>
    %c0_74 = arith.constant 0 : index
    %c0_75 = arith.constant 0 : index
    %c0_76 = arith.constant 0 : index
    %c0_77 = arith.constant 0 : index
    %63 = vector.load %arg4[%c0_74, %c0_75, %c0_76, %c0_77] : memref<1x1x6x128xbf16, #tpu.memory_space<vmem>>, vector<1x1x6x128xbf16>
    %64 = vector.shape_cast %63 : vector<1x1x6x128xbf16> to vector<6x128xbf16>
    %65 = vector.extract_strided_slice %64 {offsets = [2, 0], sizes = [4, 128], strides = [1, 1]} : vector<6x128xbf16> to vector<4x128xbf16>
    %66 = tpu.concatenate %41, %44, %47, %50, %53, %56, %59, %62, %65 in 1 : vector<4x128xbf16>, vector<4x128xbf16>, vector<4x128xbf16>, vector<4x128xbf16>, vector<4x128xbf16>, vector<4x128xbf16>, vector<4x128xbf16>, vector<4x128xbf16>, vector<4x128xbf16> -> vector<4x1152xbf16>
    %cst_78 = arith.constant dense<0.000000e+00> : vector<4x128xf32>
    %67 = tpu.matmul %66, %0, %cst_78 {dimension_numbers = #tpu.dot_dimension_numbers<[1], [0], [0], [1], [0, 0, 1, 1], [], []>} : vector<4x1152xbf16>, vector<1152x128xbf16>, vector<4x128xf32> -> vector<4x128xf32>
    %68 = arith.truncf %67 : vector<4x128xf32> to vector<4x128xbf16>
    %c0_79 = arith.constant 0 : index
    %c1_80 = arith.constant 1 : index
    %c0_81 = arith.constant 0 : index
    %c0_82 = arith.constant 0 : index
    %69 = vector.load %arg6[%c0_79, %c1_80, %c0_81, %c0_82] : memref<1x2x4x128xbf16, #tpu.memory_space<vmem>>, vector<1x1x4x128xbf16>
    %70 = vector.shape_cast %69 : vector<1x1x4x128xbf16> to vector<4x128xbf16>
    %71 = vector.shape_cast %68 : vector<4x128xbf16> to vector<1x1x4x128xbf16>
    tpu.vector_store %arg6[%c0_79, %c1_80, %c0_81, %c0_82], %71 {strides = array<i32>} : memref<1x2x4x128xbf16, #tpu.memory_space<vmem>>, vector<1x1x4x128xbf16>,
    %cst_83 = arith.constant dense<0.000000e+00> : vector<128xf32>
    %72 = vector.multi_reduction <add>, %67, %cst_83 [0] : vector<4x128xf32> to vector<128xf32>
    %73 = vector.shape_cast %72 : vector<128xf32> to vector<1x128xf32>
    %74 = arith.mulf %67, %67 : vector<4x128xf32>
    %cst_84 = arith.constant dense<0.000000e+00> : vector<128xf32>
    %75 = vector.multi_reduction <add>, %74, %cst_84 [0] : vector<4x128xf32> to vector<128xf32>
    %76 = vector.shape_cast %75 : vector<128xf32> to vector<1x128xf32>
    %77 = arith.addf %35, %73 : vector<1x128xf32>
    %78 = arith.addf %38, %76 : vector<1x128xf32>
    %c0_85 = arith.constant 0 : index
    %c0_86 = arith.constant 0 : index
    %c0_87 = arith.constant 0 : index
    %79 = vector.load %arg7[%c0_85, %c0_86, %c0_87] : memref<1x1x128xf32, #tpu.memory_space<vmem>>, vector<1x1x128xf32>
    %80 = vector.shape_cast %79 : vector<1x1x128xf32> to vector<1x128xf32>
    %81 = vector.shape_cast %77 : vector<1x128xf32> to vector<1x1x128xf32>
    tpu.vector_store %arg7[%c0_85, %c0_86, %c0_87], %81 {strides = array<i32>} : memref<1x1x128xf32, #tpu.memory_space<vmem>>, vector<1x1x128xf32>,
    %c0_88 = arith.constant 0 : index
    %c0_89 = arith.constant 0 : index
    %c0_90 = arith.constant 0 : index
    %82 = vector.load %arg8[%c0_88, %c0_89, %c0_90] : memref<1x1x128xf32, #tpu.memory_space<vmem>>, vector<1x1x128xf32>
    %83 = vector.shape_cast %82 : vector<1x1x128xf32> to vector<1x128xf32>
    %84 = vector.shape_cast %78 : vector<1x128xf32> to vector<1x1x128xf32>
    tpu.vector_store %arg8[%c0_88, %c0_89, %c0_90], %84 {strides = array<i32>} : memref<1x1x128xf32, #tpu.memory_space<vmem>>, vector<1x1x128xf32>,
    return
  }
  func.func @transform_0(%arg0: i32, %arg1: i32) -> (i32, i32, i32, i32) {
    %c0_i32 = arith.constant 0 : i32
    %c0_i32_0 = arith.constant 0 : i32
    %c0_i32_1 = arith.constant 0 : i32
    return %arg0, %arg1, %c0_i32, %c0_i32_0 : i32, i32, i32, i32
  }
  func.func @transform_1(%arg0: i32, %arg1: i32) -> (i32, i32, i32, i32) {
    %c1_i32 = arith.constant 1 : i32
    %0 = arith.addi %arg1, %c1_i32 : i32
    %c2_i32 = arith.constant 2 : i32
    %1 = arith.muli %0, %c2_i32 : i32
    %c0_i32 = arith.constant 0 : i32
    %c0_i32_0 = arith.constant 0 : i32
    %c0_i32_1 = arith.constant 0 : i32
    return %arg0, %1, %c0_i32, %c0_i32_0 : i32, i32, i32, i32
  }
  func.func @transform_2(%arg0: i32, %arg1: i32) -> (i32, i32, i32, i32) {
    %c1_i32 = arith.constant 1 : i32
    %0 = arith.addi %arg1, %c1_i32 : i32
    %c2_i32 = arith.constant 2 : i32
    %1 = arith.muli %0, %c2_i32 : i32
    %c1_i32_0 = arith.constant 1 : i32
    %2 = arith.addi %1, %c1_i32_0 : i32
    %c0_i32 = arith.constant 0 : i32
    %c0_i32_1 = arith.constant 0 : i32
    %c0_i32_2 = arith.constant 0 : i32
    return %arg0, %2, %c0_i32, %c0_i32_1 : i32, i32, i32, i32
  }
  func.func @transform_3(%arg0: i32, %arg1: i32) -> (i32, i32) {
    %c0_i32 = arith.constant 0 : i32
    %c0_i32_0 = arith.constant 0 : i32
    %c0_i32_1 = arith.constant 0 : i32
    return %c0_i32, %c0_i32_0 : i32, i32
  }
  func.func @transform_4(%arg0: i32, %arg1: i32) -> (i32, i32, i32, i32) {
    %c0_i32 = arith.constant 0 : i32
    %c0_i32_0 = arith.constant 0 : i32
    %c0_i32_1 = arith.constant 0 : i32
    return %arg0, %arg1, %c0_i32, %c0_i32_0 : i32, i32, i32, i32
  }
  func.func @transform_5(%arg0: i32, %arg1: i32) -> (i32, i32, i32) {
    %c2_i32 = arith.constant 2 : i32
    %0 = arith.muli %arg0, %c2_i32 : i32
    %1 = arith.addi %0, %arg1 : i32
    %c0_i32 = arith.constant 0 : i32
    %c0_i32_0 = arith.constant 0 : i32
    %c0_i32_1 = arith.constant 0 : i32
    return %1, %c0_i32, %c0_i32_0 : i32, i32, i32
  }
  func.func @transform_6(%arg0: i32, %arg1: i32) -> (i32, i32, i32) {
    %c2_i32 = arith.constant 2 : i32
    %0 = arith.muli %arg0, %c2_i32 : i32
    %1 = arith.addi %0, %arg1 : i32
    %c0_i32 = arith.constant 0 : i32
    %c0_i32_0 = arith.constant 0 : i32
    %c0_i32_1 = arith.constant 0 : i32
    return %1, %c0_i32, %c0_i32_0 : i32, i32, i32
  }
}

module attributes {stable_mosaic.version = 11 : i64} {
  func.func @_mm_stats_kernel(%arg0: i32, %arg1: i32, %arg2: memref<8x128xbf16, #tpu.memory_space<vmem>>, %arg3: memref<128x128xbf16, #tpu.memory_space<vmem>>, %arg4: memref<8x128xbf16, #tpu.memory_space<vmem>>, %arg5: memref<1x1x128xf32, #tpu.memory_space<vmem>>, %arg6: memref<1x1x128xf32, #tpu.memory_space<vmem>>) attributes {dimension_semantics = [#tpu.dimension_semantics<parallel>, #tpu.dimension_semantics<parallel>], iteration_bounds = array<i64: 1, 1>, scalar_prefetch = 0 : i64, scratch_operands = 0 : i64, tpu.core_type = #tpu.core_type<tc>, window_params = [{transform_indices = @transform_0, window_bounds = array<i64: 8, 128>}, {transform_indices = @transform_1, window_bounds = array<i64: 128, 128>}, {transform_indices = @transform_2, window_bounds = array<i64: 8, 128>}, {transform_indices = @transform_3, window_bounds = array<i64: 1, 1, 128>}, {transform_indices = @transform_4, window_bounds = array<i64: 1, 1, 128>}]} {
    %c0 = arith.constant 0 : index
    %c0_0 = arith.constant 0 : index
    %0 = vector.load %arg2[%c0, %c0_0] : memref<8x128xbf16, #tpu.memory_space<vmem>>, vector<8x128xbf16>
    %c0_1 = arith.constant 0 : index
    %c0_2 = arith.constant 0 : index
    %1 = vector.load %arg3[%c0_1, %c0_2] : memref<128x128xbf16, #tpu.memory_space<vmem>>, vector<128x128xbf16>
    %cst = arith.constant dense<0.000000e+00> : vector<8x128xf32>
    %2 = tpu.matmul %0, %1, %cst {dimension_numbers = #tpu.dot_dimension_numbers<[1], [0], [0], [1], [0, 0, 1, 1], [], []>} : vector<8x128xbf16>, vector<128x128xbf16>, vector<8x128xf32> -> vector<8x128xf32>
    %3 = arith.truncf %2 : vector<8x128xf32> to vector<8x128xbf16>
    %c0_3 = arith.constant 0 : index
    %c0_4 = arith.constant 0 : index
    %4 = vector.load %arg4[%c0_3, %c0_4] : memref<8x128xbf16, #tpu.memory_space<vmem>>, vector<8x128xbf16>
    tpu.vector_store %arg4[%c0_3, %c0_4], %3 {strides = array<i32>} : memref<8x128xbf16, #tpu.memory_space<vmem>>, vector<8x128xbf16>,
    %cst_5 = arith.constant dense<0.000000e+00> : vector<128xf32>
    %5 = vector.multi_reduction <add>, %2, %cst_5 [0] : vector<8x128xf32> to vector<128xf32>
    %6 = vector.shape_cast %5 : vector<128xf32> to vector<1x128xf32>
    %c0_6 = arith.constant 0 : index
    %c0_7 = arith.constant 0 : index
    %c0_8 = arith.constant 0 : index
    %7 = vector.load %arg5[%c0_6, %c0_7, %c0_8] : memref<1x1x128xf32, #tpu.memory_space<vmem>>, vector<1x1x128xf32>
    %8 = vector.shape_cast %7 : vector<1x1x128xf32> to vector<1x128xf32>
    %9 = vector.shape_cast %6 : vector<1x128xf32> to vector<1x1x128xf32>
    tpu.vector_store %arg5[%c0_6, %c0_7, %c0_8], %9 {strides = array<i32>} : memref<1x1x128xf32, #tpu.memory_space<vmem>>, vector<1x1x128xf32>,
    %10 = arith.mulf %2, %2 : vector<8x128xf32>
    %cst_9 = arith.constant dense<0.000000e+00> : vector<128xf32>
    %11 = vector.multi_reduction <add>, %10, %cst_9 [0] : vector<8x128xf32> to vector<128xf32>
    %12 = vector.shape_cast %11 : vector<128xf32> to vector<1x128xf32>
    %c0_10 = arith.constant 0 : index
    %c0_11 = arith.constant 0 : index
    %c0_12 = arith.constant 0 : index
    %13 = vector.load %arg6[%c0_10, %c0_11, %c0_12] : memref<1x1x128xf32, #tpu.memory_space<vmem>>, vector<1x1x128xf32>
    %14 = vector.shape_cast %13 : vector<1x1x128xf32> to vector<1x128xf32>
    %15 = vector.shape_cast %12 : vector<1x128xf32> to vector<1x1x128xf32>
    tpu.vector_store %arg6[%c0_10, %c0_11, %c0_12], %15 {strides = array<i32>} : memref<1x1x128xf32, #tpu.memory_space<vmem>>, vector<1x1x128xf32>,
    return
  }
  func.func @transform_0(%arg0: i32, %arg1: i32) -> (i32, i32) {
    %c0_i32 = arith.constant 0 : i32
    %c0_i32_0 = arith.constant 0 : i32
    return %arg0, %c0_i32 : i32, i32
  }
  func.func @transform_1(%arg0: i32, %arg1: i32) -> (i32, i32) {
    %c0_i32 = arith.constant 0 : i32
    %c0_i32_0 = arith.constant 0 : i32
    return %c0_i32, %arg1 : i32, i32
  }
  func.func @transform_2(%arg0: i32, %arg1: i32) -> (i32, i32) {
    %c0_i32 = arith.constant 0 : i32
    return %arg0, %arg1 : i32, i32
  }
  func.func @transform_3(%arg0: i32, %arg1: i32) -> (i32, i32, i32) {
    %c0_i32 = arith.constant 0 : i32
    %c0_i32_0 = arith.constant 0 : i32
    return %arg0, %c0_i32, %arg1 : i32, i32, i32
  }
  func.func @transform_4(%arg0: i32, %arg1: i32) -> (i32, i32, i32) {
    %c0_i32 = arith.constant 0 : i32
    %c0_i32_0 = arith.constant 0 : i32
    return %arg0, %c0_i32, %arg1 : i32, i32, i32
  }
}

module attributes {stable_mosaic.version = 11 : i64} {
  func.func @_mm_stats_kernel(%arg0: i32, %arg1: i32, %arg2: memref<8x1152xbf16, #tpu.memory_space<vmem>>, %arg3: memref<1152x128xbf16, #tpu.memory_space<vmem>>, %arg4: memref<8x128xbf16, #tpu.memory_space<vmem>>, %arg5: memref<1x1x128xf32, #tpu.memory_space<vmem>>, %arg6: memref<1x1x128xf32, #tpu.memory_space<vmem>>) attributes {dimension_semantics = [#tpu.dimension_semantics<parallel>, #tpu.dimension_semantics<parallel>], iteration_bounds = array<i64: 1, 1>, scalar_prefetch = 0 : i64, scratch_operands = 0 : i64, tpu.core_type = #tpu.core_type<tc>, window_params = [{transform_indices = @transform_0, window_bounds = array<i64: 8, 1152>}, {transform_indices = @transform_1, window_bounds = array<i64: 1152, 128>}, {transform_indices = @transform_2, window_bounds = array<i64: 8, 128>}, {transform_indices = @transform_3, window_bounds = array<i64: 1, 1, 128>}, {transform_indices = @transform_4, window_bounds = array<i64: 1, 1, 128>}]} {
    %c0 = arith.constant 0 : index
    %c0_0 = arith.constant 0 : index
    %0 = vector.load %arg2[%c0, %c0_0] : memref<8x1152xbf16, #tpu.memory_space<vmem>>, vector<8x1152xbf16>
    %c0_1 = arith.constant 0 : index
    %c0_2 = arith.constant 0 : index
    %1 = vector.load %arg3[%c0_1, %c0_2] : memref<1152x128xbf16, #tpu.memory_space<vmem>>, vector<1152x128xbf16>
    %cst = arith.constant dense<0.000000e+00> : vector<8x128xf32>
    %2 = tpu.matmul %0, %1, %cst {dimension_numbers = #tpu.dot_dimension_numbers<[1], [0], [0], [1], [0, 0, 1, 1], [], []>} : vector<8x1152xbf16>, vector<1152x128xbf16>, vector<8x128xf32> -> vector<8x128xf32>
    %3 = arith.truncf %2 : vector<8x128xf32> to vector<8x128xbf16>
    %c0_3 = arith.constant 0 : index
    %c0_4 = arith.constant 0 : index
    %4 = vector.load %arg4[%c0_3, %c0_4] : memref<8x128xbf16, #tpu.memory_space<vmem>>, vector<8x128xbf16>
    tpu.vector_store %arg4[%c0_3, %c0_4], %3 {strides = array<i32>} : memref<8x128xbf16, #tpu.memory_space<vmem>>, vector<8x128xbf16>,
    %cst_5 = arith.constant dense<0.000000e+00> : vector<128xf32>
    %5 = vector.multi_reduction <add>, %2, %cst_5 [0] : vector<8x128xf32> to vector<128xf32>
    %6 = vector.shape_cast %5 : vector<128xf32> to vector<1x128xf32>
    %c0_6 = arith.constant 0 : index
    %c0_7 = arith.constant 0 : index
    %c0_8 = arith.constant 0 : index
    %7 = vector.load %arg5[%c0_6, %c0_7, %c0_8] : memref<1x1x128xf32, #tpu.memory_space<vmem>>, vector<1x1x128xf32>
    %8 = vector.shape_cast %7 : vector<1x1x128xf32> to vector<1x128xf32>
    %9 = vector.shape_cast %6 : vector<1x128xf32> to vector<1x1x128xf32>
    tpu.vector_store %arg5[%c0_6, %c0_7, %c0_8], %9 {strides = array<i32>} : memref<1x1x128xf32, #tpu.memory_space<vmem>>, vector<1x1x128xf32>,
    %10 = arith.mulf %2, %2 : vector<8x128xf32>
    %cst_9 = arith.constant dense<0.000000e+00> : vector<128xf32>
    %11 = vector.multi_reduction <add>, %10, %cst_9 [0] : vector<8x128xf32> to vector<128xf32>
    %12 = vector.shape_cast %11 : vector<128xf32> to vector<1x128xf32>
    %c0_10 = arith.constant 0 : index
    %c0_11 = arith.constant 0 : index
    %c0_12 = arith.constant 0 : index
    %13 = vector.load %arg6[%c0_10, %c0_11, %c0_12] : memref<1x1x128xf32, #tpu.memory_space<vmem>>, vector<1x1x128xf32>
    %14 = vector.shape_cast %13 : vector<1x1x128xf32> to vector<1x128xf32>
    %15 = vector.shape_cast %12 : vector<1x128xf32> to vector<1x1x128xf32>
    tpu.vector_store %arg6[%c0_10, %c0_11, %c0_12], %15 {strides = array<i32>} : memref<1x1x128xf32, #tpu.memory_space<vmem>>, vector<1x1x128xf32>,
    return
  }
  func.func @transform_0(%arg0: i32, %arg1: i32) -> (i32, i32) {
    %c0_i32 = arith.constant 0 : i32
    %c0_i32_0 = arith.constant 0 : i32
    return %arg0, %c0_i32 : i32, i32
  }
  func.func @transform_1(%arg0: i32, %arg1: i32) -> (i32, i32) {
    %c0_i32 = arith.constant 0 : i32
    %c0_i32_0 = arith.constant 0 : i32
    return %c0_i32, %arg1 : i32, i32
  }
  func.func @transform_2(%arg0: i32, %arg1: i32) -> (i32, i32) {
    %c0_i32 = arith.constant 0 : i32
    return %arg0, %arg1 : i32, i32
  }
  func.func @transform_3(%arg0: i32, %arg1: i32) -> (i32, i32, i32) {
    %c0_i32 = arith.constant 0 : i32
    %c0_i32_0 = arith.constant 0 : i32
    return %arg0, %c0_i32, %arg1 : i32, i32, i32
  }
  func.func @transform_4(%arg0: i32, %arg1: i32) -> (i32, i32, i32) {
    %c0_i32 = arith.constant 0 : i32
    %c0_i32_0 = arith.constant 0 : i32
    return %arg0, %c0_i32, %arg1 : i32, i32, i32
  }
}

module attributes {stable_mosaic.version = 11 : i64} {
  func.func @_affine_res_kernel(%arg0: i32, %arg1: memref<8x128xbf16, #tpu.memory_space<vmem>>, %arg2: memref<1x128xf32, #tpu.memory_space<vmem>>, %arg3: memref<1x128xf32, #tpu.memory_space<vmem>>, %arg4: memref<8x128xbf16, #tpu.memory_space<vmem>>, %arg5: memref<1x128xf32, #tpu.memory_space<vmem>>, %arg6: memref<1x128xf32, #tpu.memory_space<vmem>>, %arg7: memref<8x128xbf16, #tpu.memory_space<vmem>>) attributes {dimension_semantics = [#tpu.dimension_semantics<parallel>], iteration_bounds = array<i64: 1>, scalar_prefetch = 0 : i64, scratch_operands = 0 : i64, tpu.core_type = #tpu.core_type<tc>, window_params = [{transform_indices = @transform_0, window_bounds = array<i64: 8, 128>}, {pipeline_mode = #tpu.pipeline_mode<synchronous>, transform_indices = @transform_1, window_bounds = array<i64: 1, 128>}, {pipeline_mode = #tpu.pipeline_mode<synchronous>, transform_indices = @transform_2, window_bounds = array<i64: 1, 128>}, {transform_indices = @transform_3, window_bounds = array<i64: 8, 128>}, {pipeline_mode = #tpu.pipeline_mode<synchronous>, transform_indices = @transform_4, window_bounds = array<i64: 1, 128>}, {pipeline_mode = #tpu.pipeline_mode<synchronous>, transform_indices = @transform_5, window_bounds = array<i64: 1, 128>}, {transform_indices = @transform_6, window_bounds = array<i64: 8, 128>}]} {
    %c0 = arith.constant 0 : index
    %c0_0 = arith.constant 0 : index
    %0 = vector.load %arg1[%c0, %c0_0] : memref<8x128xbf16, #tpu.memory_space<vmem>>, vector<8x128xbf16>
    %1 = arith.extf %0 : vector<8x128xbf16> to vector<8x128xf32>
    %c0_1 = arith.constant 0 : index
    %c0_2 = arith.constant 0 : index
    %2 = vector.load %arg2[%c0_1, %c0_2] : memref<1x128xf32, #tpu.memory_space<vmem>>, vector<1x128xf32>
    %3 = vector.broadcast %2 : vector<1x128xf32> to vector<8x128xf32>
    %4 = arith.mulf %1, %3 : vector<8x128xf32>
    %c0_3 = arith.constant 0 : index
    %c0_4 = arith.constant 0 : index
    %5 = vector.load %arg3[%c0_3, %c0_4] : memref<1x128xf32, #tpu.memory_space<vmem>>, vector<1x128xf32>
    %6 = vector.broadcast %5 : vector<1x128xf32> to vector<8x128xf32>
    %7 = arith.addf %4, %6 : vector<8x128xf32>
    %c0_5 = arith.constant 0 : index
    %c0_6 = arith.constant 0 : index
    %8 = vector.load %arg4[%c0_5, %c0_6] : memref<8x128xbf16, #tpu.memory_space<vmem>>, vector<8x128xbf16>
    %9 = arith.extf %8 : vector<8x128xbf16> to vector<8x128xf32>
    %c0_7 = arith.constant 0 : index
    %c0_8 = arith.constant 0 : index
    %10 = vector.load %arg5[%c0_7, %c0_8] : memref<1x128xf32, #tpu.memory_space<vmem>>, vector<1x128xf32>
    %11 = vector.broadcast %10 : vector<1x128xf32> to vector<8x128xf32>
    %12 = arith.mulf %9, %11 : vector<8x128xf32>
    %c0_9 = arith.constant 0 : index
    %c0_10 = arith.constant 0 : index
    %13 = vector.load %arg6[%c0_9, %c0_10] : memref<1x128xf32, #tpu.memory_space<vmem>>, vector<1x128xf32>
    %14 = vector.broadcast %13 : vector<1x128xf32> to vector<8x128xf32>
    %15 = arith.addf %12, %14 : vector<8x128xf32>
    %16 = arith.addf %7, %15 : vector<8x128xf32>
    %cst = arith.constant 0.000000e+00 : f32
    %17 = vector.broadcast %cst : f32 to vector<8x128xf32>
    %18 = arith.maximumf %16, %17 : vector<8x128xf32>
    %19 = arith.truncf %18 : vector<8x128xf32> to vector<8x128xbf16>
    %c0_11 = arith.constant 0 : index
    %c0_12 = arith.constant 0 : index
    %20 = vector.load %arg7[%c0_11, %c0_12] : memref<8x128xbf16, #tpu.memory_space<vmem>>, vector<8x128xbf16>
    tpu.vector_store %arg7[%c0_11, %c0_12], %19 {strides = array<i32>} : memref<8x128xbf16, #tpu.memory_space<vmem>>, vector<8x128xbf16>,
    return
  }
  func.func @transform_0(%arg0: i32) -> (i32, i32) {
    %c0_i32 = arith.constant 0 : i32
    %c0_i32_0 = arith.constant 0 : i32
    return %arg0, %c0_i32 : i32, i32
  }
  func.func @transform_1(%arg0: i32) -> (i32, i32) {
    %c0_i32 = arith.constant 0 : i32
    %c0_i32_0 = arith.constant 0 : i32
    %c0_i32_1 = arith.constant 0 : i32
    return %c0_i32, %c0_i32_0 : i32, i32
  }
  func.func @transform_2(%arg0: i32) -> (i32, i32) {
    %c0_i32 = arith.constant 0 : i32
    %c0_i32_0 = arith.constant 0 : i32
    %c0_i32_1 = arith.constant 0 : i32
    return %c0_i32, %c0_i32_0 : i32, i32
  }
  func.func @transform_3(%arg0: i32) -> (i32, i32) {
    %c0_i32 = arith.constant 0 : i32
    %c0_i32_0 = arith.constant 0 : i32
    return %arg0, %c0_i32 : i32, i32
  }
  func.func @transform_4(%arg0: i32) -> (i32, i32) {
    %c0_i32 = arith.constant 0 : i32
    %c0_i32_0 = arith.constant 0 : i32
    %c0_i32_1 = arith.constant 0 : i32
    return %c0_i32, %c0_i32_0 : i32, i32
  }
  func.func @transform_5(%arg0: i32) -> (i32, i32) {
    %c0_i32 = arith.constant 0 : i32
    %c0_i32_0 = arith.constant 0 : i32
    %c0_i32_1 = arith.constant 0 : i32
    return %c0_i32, %c0_i32_0 : i32, i32
  }
  func.func @transform_6(%arg0: i32) -> (i32, i32) {
    %c0_i32 = arith.constant 0 : i32
    %c0_i32_0 = arith.constant 0 : i32
    return %arg0, %c0_i32 : i32, i32
  }
}

module attributes {stable_mosaic.version = 11 : i64} {
  func.func @_conv3x3_s1_kernel(%arg0: i32, %arg1: i32, %arg2: memref<1x2x4x128xbf16, #tpu.memory_space<vmem>>, %arg3: memref<1x1x4x128xbf16, #tpu.memory_space<vmem>>, %arg4: memref<1x1x4x128xbf16, #tpu.memory_space<vmem>>, %arg5: memref<1152x128xbf16, #tpu.memory_space<vmem>>, %arg6: memref<1x2x2x128xbf16, #tpu.memory_space<vmem>>, %arg7: memref<1x1x128xf32, #tpu.memory_space<vmem>>, %arg8: memref<1x1x128xf32, #tpu.memory_space<vmem>>) attributes {dimension_semantics = [#tpu.dimension_semantics<parallel>, #tpu.dimension_semantics<parallel>], iteration_bounds = array<i64: 2, 1>, scalar_prefetch = 0 : i64, scratch_operands = 0 : i64, tpu.core_type = #tpu.core_type<tc>, window_params = [{transform_indices = @transform_0, window_bounds = array<i64: 1, 2, 4, 128>}, {transform_indices = @transform_1, window_bounds = array<i64: 1, 1, 4, 128>}, {transform_indices = @transform_2, window_bounds = array<i64: 1, 1, 4, 128>}, {pipeline_mode = #tpu.pipeline_mode<synchronous>, transform_indices = @transform_3, window_bounds = array<i64: 1152, 128>}, {transform_indices = @transform_4, window_bounds = array<i64: 1, 2, 2, 128>}, {transform_indices = @transform_5, window_bounds = array<i64: 1, 1, 128>}, {transform_indices = @transform_6, window_bounds = array<i64: 1, 1, 128>}]} {
    %c0 = arith.constant 0 : index
    %c0_0 = arith.constant 0 : index
    %0 = vector.load %arg5[%c0, %c0_0] : memref<1152x128xbf16, #tpu.memory_space<vmem>>, vector<1152x128xbf16>
    %c0_1 = arith.constant 0 : index
    %c0_2 = arith.constant 0 : index
    %c0_3 = arith.constant 0 : index
    %c0_4 = arith.constant 0 : index
    %1 = vector.load %arg2[%c0_1, %c0_2, %c0_3, %c0_4] : memref<1x2x4x128xbf16, #tpu.memory_space<vmem>>, vector<1x1x4x128xbf16>
    %2 = vector.shape_cast %1 : vector<1x1x4x128xbf16> to vector<4x128xbf16>
    %3 = vector.extract_strided_slice %2 {offsets = [0, 0], sizes = [2, 128], strides = [1, 1]} : vector<4x128xbf16> to vector<2x128xbf16>
    %c0_5 = arith.constant 0 : index
    %c0_6 = arith.constant 0 : index
    %c0_7 = arith.constant 0 : index
    %c0_8 = arith.constant 0 : index
    %4 = vector.load %arg2[%c0_5, %c0_6, %c0_7, %c0_8] : memref<1x2x4x128xbf16, #tpu.memory_space<vmem>>, vector<1x1x4x128xbf16>
    %5 = vector.shape_cast %4 : vector<1x1x4x128xbf16> to vector<4x128xbf16>
    %6 = vector.extract_strided_slice %5 {offsets = [1, 0], sizes = [2, 128], strides = [1, 1]} : vector<4x128xbf16> to vector<2x128xbf16>
    %c0_9 = arith.constant 0 : index
    %c0_10 = arith.constant 0 : index
    %c0_11 = arith.constant 0 : index
    %c0_12 = arith.constant 0 : index
    %7 = vector.load %arg2[%c0_9, %c0_10, %c0_11, %c0_12] : memref<1x2x4x128xbf16, #tpu.memory_space<vmem>>, vector<1x1x4x128xbf16>
    %8 = vector.shape_cast %7 : vector<1x1x4x128xbf16> to vector<4x128xbf16>
    %9 = vector.extract_strided_slice %8 {offsets = [2, 0], sizes = [2, 128], strides = [1, 1]} : vector<4x128xbf16> to vector<2x128xbf16>
    %c0_13 = arith.constant 0 : index
    %c1 = arith.constant 1 : index
    %c0_14 = arith.constant 0 : index
    %c0_15 = arith.constant 0 : index
    %10 = vector.load %arg2[%c0_13, %c1, %c0_14, %c0_15] : memref<1x2x4x128xbf16, #tpu.memory_space<vmem>>, vector<1x1x4x128xbf16>
    %11 = vector.shape_cast %10 : vector<1x1x4x128xbf16> to vector<4x128xbf16>
    %12 = vector.extract_strided_slice %11 {offsets = [0, 0], sizes = [2, 128], strides = [1, 1]} : vector<4x128xbf16> to vector<2x128xbf16>
    %c0_16 = arith.constant 0 : index
    %c1_17 = arith.constant 1 : index
    %c0_18 = arith.constant 0 : index
    %c0_19 = arith.constant 0 : index
    %13 = vector.load %arg2[%c0_16, %c1_17, %c0_18, %c0_19] : memref<1x2x4x128xbf16, #tpu.memory_space<vmem>>, vector<1x1x4x128xbf16>
    %14 = vector.shape_cast %13 : vector<1x1x4x128xbf16> to vector<4x128xbf16>
    %15 = vector.extract_strided_slice %14 {offsets = [1, 0], sizes = [2, 128], strides = [1, 1]} : vector<4x128xbf16> to vector<2x128xbf16>
    %c0_20 = arith.constant 0 : index
    %c1_21 = arith.constant 1 : index
    %c0_22 = arith.constant 0 : index
    %c0_23 = arith.constant 0 : index
    %16 = vector.load %arg2[%c0_20, %c1_21, %c0_22, %c0_23] : memref<1x2x4x128xbf16, #tpu.memory_space<vmem>>, vector<1x1x4x128xbf16>
    %17 = vector.shape_cast %16 : vector<1x1x4x128xbf16> to vector<4x128xbf16>
    %18 = vector.extract_strided_slice %17 {offsets = [2, 0], sizes = [2, 128], strides = [1, 1]} : vector<4x128xbf16> to vector<2x128xbf16>
    %c0_24 = arith.constant 0 : index
    %c0_25 = arith.constant 0 : index
    %c0_26 = arith.constant 0 : index
    %c0_27 = arith.constant 0 : index
    %19 = vector.load %arg3[%c0_24, %c0_25, %c0_26, %c0_27] : memref<1x1x4x128xbf16, #tpu.memory_space<vmem>>, vector<1x1x4x128xbf16>
    %20 = vector.shape_cast %19 : vector<1x1x4x128xbf16> to vector<4x128xbf16>
    %21 = vector.extract_strided_slice %20 {offsets = [0, 0], sizes = [2, 128], strides = [1, 1]} : vector<4x128xbf16> to vector<2x128xbf16>
    %c0_28 = arith.constant 0 : index
    %c0_29 = arith.constant 0 : index
    %c0_30 = arith.constant 0 : index
    %c0_31 = arith.constant 0 : index
    %22 = vector.load %arg3[%c0_28, %c0_29, %c0_30, %c0_31] : memref<1x1x4x128xbf16, #tpu.memory_space<vmem>>, vector<1x1x4x128xbf16>
    %23 = vector.shape_cast %22 : vector<1x1x4x128xbf16> to vector<4x128xbf16>
    %24 = vector.extract_strided_slice %23 {offsets = [1, 0], sizes = [2, 128], strides = [1, 1]} : vector<4x128xbf16> to vector<2x128xbf16>
    %c0_32 = arith.constant 0 : index
    %c0_33 = arith.constant 0 : index
    %c0_34 = arith.constant 0 : index
    %c0_35 = arith.constant 0 : index
    %25 = vector.load %arg3[%c0_32, %c0_33, %c0_34, %c0_35] : memref<1x1x4x128xbf16, #tpu.memory_space<vmem>>, vector<1x1x4x128xbf16>
    %26 = vector.shape_cast %25 : vector<1x1x4x128xbf16> to vector<4x128xbf16>
    %27 = vector.extract_strided_slice %26 {offsets = [2, 0], sizes = [2, 128], strides = [1, 1]} : vector<4x128xbf16> to vector<2x128xbf16>
    %28 = tpu.concatenate %3, %6, %9, %12, %15, %18, %21, %24, %27 in 1 : vector<2x128xbf16>, vector<2x128xbf16>, vector<2x128xbf16>, vector<2x128xbf16>, vector<2x128xbf16>, vector<2x128xbf16>, vector<2x128xbf16>, vector<2x128xbf16>, vector<2x128xbf16> -> vector<2x1152xbf16>
    %cst = arith.constant dense<0.000000e+00> : vector<2x128xf32>
    %29 = tpu.matmul %28, %0, %cst {dimension_numbers = #tpu.dot_dimension_numbers<[1], [0], [0], [1], [0, 0, 1, 1], [], []>} : vector<2x1152xbf16>, vector<1152x128xbf16>, vector<2x128xf32> -> vector<2x128xf32>
    %30 = arith.truncf %29 : vector<2x128xf32> to vector<2x128xbf16>
    %c0_36 = arith.constant 0 : index
    %c0_37 = arith.constant 0 : index
    %c0_38 = arith.constant 0 : index
    %c0_39 = arith.constant 0 : index
    %31 = vector.load %arg6[%c0_36, %c0_37, %c0_38, %c0_39] : memref<1x2x2x128xbf16, #tpu.memory_space<vmem>>, vector<1x1x2x128xbf16>
    %32 = vector.shape_cast %31 : vector<1x1x2x128xbf16> to vector<2x128xbf16>
    %33 = vector.shape_cast %30 : vector<2x128xbf16> to vector<1x1x2x128xbf16>
    tpu.vector_store %arg6[%c0_36, %c0_37, %c0_38, %c0_39], %33 {strides = array<i32>} : memref<1x2x2x128xbf16, #tpu.memory_space<vmem>>, vector<1x1x2x128xbf16>,
    %cst_40 = arith.constant dense<0.000000e+00> : vector<128xf32>
    %34 = vector.multi_reduction <add>, %29, %cst_40 [0] : vector<2x128xf32> to vector<128xf32>
    %35 = vector.shape_cast %34 : vector<128xf32> to vector<1x128xf32>
    %36 = arith.mulf %29, %29 : vector<2x128xf32>
    %cst_41 = arith.constant dense<0.000000e+00> : vector<128xf32>
    %37 = vector.multi_reduction <add>, %36, %cst_41 [0] : vector<2x128xf32> to vector<128xf32>
    %38 = vector.shape_cast %37 : vector<128xf32> to vector<1x128xf32>
    %c0_42 = arith.constant 0 : index
    %c1_43 = arith.constant 1 : index
    %c0_44 = arith.constant 0 : index
    %c0_45 = arith.constant 0 : index
    %39 = vector.load %arg2[%c0_42, %c1_43, %c0_44, %c0_45] : memref<1x2x4x128xbf16, #tpu.memory_space<vmem>>, vector<1x1x4x128xbf16>
    %40 = vector.shape_cast %39 : vector<1x1x4x128xbf16> to vector<4x128xbf16>
    %41 = vector.extract_strided_slice %40 {offsets = [0, 0], sizes = [2, 128], strides = [1, 1]} : vector<4x128xbf16> to vector<2x128xbf16>
    %c0_46 = arith.constant 0 : index
    %c1_47 = arith.constant 1 : index
    %c0_48 = arith.constant 0 : index
    %c0_49 = arith.constant 0 : index
    %42 = vector.load %arg2[%c0_46, %c1_47, %c0_48, %c0_49] : memref<1x2x4x128xbf16, #tpu.memory_space<vmem>>, vector<1x1x4x128xbf16>
    %43 = vector.shape_cast %42 : vector<1x1x4x128xbf16> to vector<4x128xbf16>
    %44 = vector.extract_strided_slice %43 {offsets = [1, 0], sizes = [2, 128], strides = [1, 1]} : vector<4x128xbf16> to vector<2x128xbf16>
    %c0_50 = arith.constant 0 : index
    %c1_51 = arith.constant 1 : index
    %c0_52 = arith.constant 0 : index
    %c0_53 = arith.constant 0 : index
    %45 = vector.load %arg2[%c0_50, %c1_51, %c0_52, %c0_53] : memref<1x2x4x128xbf16, #tpu.memory_space<vmem>>, vector<1x1x4x128xbf16>
    %46 = vector.shape_cast %45 : vector<1x1x4x128xbf16> to vector<4x128xbf16>
    %47 = vector.extract_strided_slice %46 {offsets = [2, 0], sizes = [2, 128], strides = [1, 1]} : vector<4x128xbf16> to vector<2x128xbf16>
    %c0_54 = arith.constant 0 : index
    %c0_55 = arith.constant 0 : index
    %c0_56 = arith.constant 0 : index
    %c0_57 = arith.constant 0 : index
    %48 = vector.load %arg3[%c0_54, %c0_55, %c0_56, %c0_57] : memref<1x1x4x128xbf16, #tpu.memory_space<vmem>>, vector<1x1x4x128xbf16>
    %49 = vector.shape_cast %48 : vector<1x1x4x128xbf16> to vector<4x128xbf16>
    %50 = vector.extract_strided_slice %49 {offsets = [0, 0], sizes = [2, 128], strides = [1, 1]} : vector<4x128xbf16> to vector<2x128xbf16>
    %c0_58 = arith.constant 0 : index
    %c0_59 = arith.constant 0 : index
    %c0_60 = arith.constant 0 : index
    %c0_61 = arith.constant 0 : index
    %51 = vector.load %arg3[%c0_58, %c0_59, %c0_60, %c0_61] : memref<1x1x4x128xbf16, #tpu.memory_space<vmem>>, vector<1x1x4x128xbf16>
    %52 = vector.shape_cast %51 : vector<1x1x4x128xbf16> to vector<4x128xbf16>
    %53 = vector.extract_strided_slice %52 {offsets = [1, 0], sizes = [2, 128], strides = [1, 1]} : vector<4x128xbf16> to vector<2x128xbf16>
    %c0_62 = arith.constant 0 : index
    %c0_63 = arith.constant 0 : index
    %c0_64 = arith.constant 0 : index
    %c0_65 = arith.constant 0 : index
    %54 = vector.load %arg3[%c0_62, %c0_63, %c0_64, %c0_65] : memref<1x1x4x128xbf16, #tpu.memory_space<vmem>>, vector<1x1x4x128xbf16>
    %55 = vector.shape_cast %54 : vector<1x1x4x128xbf16> to vector<4x128xbf16>
    %56 = vector.extract_strided_slice %55 {offsets = [2, 0], sizes = [2, 128], strides = [1, 1]} : vector<4x128xbf16> to vector<2x128xbf16>
    %c0_66 = arith.constant 0 : index
    %c0_67 = arith.constant 0 : index
    %c0_68 = arith.constant 0 : index
    %c0_69 = arith.constant 0 : index
    %57 = vector.load %arg4[%c0_66, %c0_67, %c0_68, %c0_69] : memref<1x1x4x128xbf16, #tpu.memory_space<vmem>>, vector<1x1x4x128xbf16>
    %58 = vector.shape_cast %57 : vector<1x1x4x128xbf16> to vector<4x128xbf16>
    %59 = vector.extract_strided_slice %58 {offsets = [0, 0], sizes = [2, 128], strides = [1, 1]} : vector<4x128xbf16> to vector<2x128xbf16>
    %c0_70 = arith.constant 0 : index
    %c0_71 = arith.constant 0 : index
    %c0_72 = arith.constant 0 : index
    %c0_73 = arith.constant 0 : index
    %60 = vector.load %arg4[%c0_70, %c0_71, %c0_72, %c0_73] : memref<1x1x4x128xbf16, #tpu.memory_space<vmem>>, vector<1x1x4x128xbf16>
    %61 = vector.shape_cast %60 : vector<1x1x4x128xbf16> to vector<4x128xbf16>
    %62 = vector.extract_strided_slice %61 {offsets = [1, 0], sizes = [2, 128], strides = [1, 1]} : vector<4x128xbf16> to vector<2x128xbf16>
    %c0_74 = arith.constant 0 : index
    %c0_75 = arith.constant 0 : index
    %c0_76 = arith.constant 0 : index
    %c0_77 = arith.constant 0 : index
    %63 = vector.load %arg4[%c0_74, %c0_75, %c0_76, %c0_77] : memref<1x1x4x128xbf16, #tpu.memory_space<vmem>>, vector<1x1x4x128xbf16>
    %64 = vector.shape_cast %63 : vector<1x1x4x128xbf16> to vector<4x128xbf16>
    %65 = vector.extract_strided_slice %64 {offsets = [2, 0], sizes = [2, 128], strides = [1, 1]} : vector<4x128xbf16> to vector<2x128xbf16>
    %66 = tpu.concatenate %41, %44, %47, %50, %53, %56, %59, %62, %65 in 1 : vector<2x128xbf16>, vector<2x128xbf16>, vector<2x128xbf16>, vector<2x128xbf16>, vector<2x128xbf16>, vector<2x128xbf16>, vector<2x128xbf16>, vector<2x128xbf16>, vector<2x128xbf16> -> vector<2x1152xbf16>
    %cst_78 = arith.constant dense<0.000000e+00> : vector<2x128xf32>
    %67 = tpu.matmul %66, %0, %cst_78 {dimension_numbers = #tpu.dot_dimension_numbers<[1], [0], [0], [1], [0, 0, 1, 1], [], []>} : vector<2x1152xbf16>, vector<1152x128xbf16>, vector<2x128xf32> -> vector<2x128xf32>
    %68 = arith.truncf %67 : vector<2x128xf32> to vector<2x128xbf16>
    %c0_79 = arith.constant 0 : index
    %c1_80 = arith.constant 1 : index
    %c0_81 = arith.constant 0 : index
    %c0_82 = arith.constant 0 : index
    %69 = vector.load %arg6[%c0_79, %c1_80, %c0_81, %c0_82] : memref<1x2x2x128xbf16, #tpu.memory_space<vmem>>, vector<1x1x2x128xbf16>
    %70 = vector.shape_cast %69 : vector<1x1x2x128xbf16> to vector<2x128xbf16>
    %71 = vector.shape_cast %68 : vector<2x128xbf16> to vector<1x1x2x128xbf16>
    tpu.vector_store %arg6[%c0_79, %c1_80, %c0_81, %c0_82], %71 {strides = array<i32>} : memref<1x2x2x128xbf16, #tpu.memory_space<vmem>>, vector<1x1x2x128xbf16>,
    %cst_83 = arith.constant dense<0.000000e+00> : vector<128xf32>
    %72 = vector.multi_reduction <add>, %67, %cst_83 [0] : vector<2x128xf32> to vector<128xf32>
    %73 = vector.shape_cast %72 : vector<128xf32> to vector<1x128xf32>
    %74 = arith.mulf %67, %67 : vector<2x128xf32>
    %cst_84 = arith.constant dense<0.000000e+00> : vector<128xf32>
    %75 = vector.multi_reduction <add>, %74, %cst_84 [0] : vector<2x128xf32> to vector<128xf32>
    %76 = vector.shape_cast %75 : vector<128xf32> to vector<1x128xf32>
    %77 = arith.addf %35, %73 : vector<1x128xf32>
    %78 = arith.addf %38, %76 : vector<1x128xf32>
    %c0_85 = arith.constant 0 : index
    %c0_86 = arith.constant 0 : index
    %c0_87 = arith.constant 0 : index
    %79 = vector.load %arg7[%c0_85, %c0_86, %c0_87] : memref<1x1x128xf32, #tpu.memory_space<vmem>>, vector<1x1x128xf32>
    %80 = vector.shape_cast %79 : vector<1x1x128xf32> to vector<1x128xf32>
    %81 = vector.shape_cast %77 : vector<1x128xf32> to vector<1x1x128xf32>
    tpu.vector_store %arg7[%c0_85, %c0_86, %c0_87], %81 {strides = array<i32>} : memref<1x1x128xf32, #tpu.memory_space<vmem>>, vector<1x1x128xf32>,
    %c0_88 = arith.constant 0 : index
    %c0_89 = arith.constant 0 : index
    %c0_90 = arith.constant 0 : index
    %82 = vector.load %arg8[%c0_88, %c0_89, %c0_90] : memref<1x1x128xf32, #tpu.memory_space<vmem>>, vector<1x1x128xf32>
    %83 = vector.shape_cast %82 : vector<1x1x128xf32> to vector<1x128xf32>
    %84 = vector.shape_cast %78 : vector<1x128xf32> to vector<1x1x128xf32>
    tpu.vector_store %arg8[%c0_88, %c0_89, %c0_90], %84 {strides = array<i32>} : memref<1x1x128xf32, #tpu.memory_space<vmem>>, vector<1x1x128xf32>,
    return
  }
  func.func @transform_0(%arg0: i32, %arg1: i32) -> (i32, i32, i32, i32) {
    %c0_i32 = arith.constant 0 : i32
    %c0_i32_0 = arith.constant 0 : i32
    %c0_i32_1 = arith.constant 0 : i32
    return %arg0, %arg1, %c0_i32, %c0_i32_0 : i32, i32, i32, i32
  }
  func.func @transform_1(%arg0: i32, %arg1: i32) -> (i32, i32, i32, i32) {
    %c1_i32 = arith.constant 1 : i32
    %0 = arith.addi %arg1, %c1_i32 : i32
    %c2_i32 = arith.constant 2 : i32
    %1 = arith.muli %0, %c2_i32 : i32
    %c0_i32 = arith.constant 0 : i32
    %c0_i32_0 = arith.constant 0 : i32
    %c0_i32_1 = arith.constant 0 : i32
    return %arg0, %1, %c0_i32, %c0_i32_0 : i32, i32, i32, i32
  }
  func.func @transform_2(%arg0: i32, %arg1: i32) -> (i32, i32, i32, i32) {
    %c1_i32 = arith.constant 1 : i32
    %0 = arith.addi %arg1, %c1_i32 : i32
    %c2_i32 = arith.constant 2 : i32
    %1 = arith.muli %0, %c2_i32 : i32
    %c1_i32_0 = arith.constant 1 : i32
    %2 = arith.addi %1, %c1_i32_0 : i32
    %c0_i32 = arith.constant 0 : i32
    %c0_i32_1 = arith.constant 0 : i32
    %c0_i32_2 = arith.constant 0 : i32
    return %arg0, %2, %c0_i32, %c0_i32_1 : i32, i32, i32, i32
  }
  func.func @transform_3(%arg0: i32, %arg1: i32) -> (i32, i32) {
    %c0_i32 = arith.constant 0 : i32
    %c0_i32_0 = arith.constant 0 : i32
    %c0_i32_1 = arith.constant 0 : i32
    return %c0_i32, %c0_i32_0 : i32, i32
  }
  func.func @transform_4(%arg0: i32, %arg1: i32) -> (i32, i32, i32, i32) {
    %c0_i32 = arith.constant 0 : i32
    %c0_i32_0 = arith.constant 0 : i32
    %c0_i32_1 = arith.constant 0 : i32
    return %arg0, %arg1, %c0_i32, %c0_i32_0 : i32, i32, i32, i32
  }
  func.func @transform_5(%arg0: i32, %arg1: i32) -> (i32, i32, i32) {
    %c1_i32 = arith.constant 1 : i32
    %0 = arith.muli %arg0, %c1_i32 : i32
    %1 = arith.addi %0, %arg1 : i32
    %c0_i32 = arith.constant 0 : i32
    %c0_i32_0 = arith.constant 0 : i32
    %c0_i32_1 = arith.constant 0 : i32
    return %1, %c0_i32, %c0_i32_0 : i32, i32, i32
  }
  func.func @transform_6(%arg0: i32, %arg1: i32) -> (i32, i32, i32) {
    %c1_i32 = arith.constant 1 : i32
    %0 = arith.muli %arg0, %c1_i32 : i32
    %1 = arith.addi %0, %arg1 : i32
    %c0_i32 = arith.constant 0 : i32
    %c0_i32_0 = arith.constant 0 : i32
    %c0_i32_1 = arith.constant 0 : i32
    return %1, %c0_i32, %c0_i32_0 : i32, i32, i32
  }
}

module attributes {stable_mosaic.version = 11 : i64} {
  func.func @_mm_stats_kernel(%arg0: i32, %arg1: i32, %arg2: memref<2x128xbf16, #tpu.memory_space<vmem>>, %arg3: memref<128x128xbf16, #tpu.memory_space<vmem>>, %arg4: memref<2x128xbf16, #tpu.memory_space<vmem>>, %arg5: memref<1x1x128xf32, #tpu.memory_space<vmem>>, %arg6: memref<1x1x128xf32, #tpu.memory_space<vmem>>) attributes {dimension_semantics = [#tpu.dimension_semantics<parallel>, #tpu.dimension_semantics<parallel>], iteration_bounds = array<i64: 1, 1>, scalar_prefetch = 0 : i64, scratch_operands = 0 : i64, tpu.core_type = #tpu.core_type<tc>, window_params = [{transform_indices = @transform_0, window_bounds = array<i64: 2, 128>}, {transform_indices = @transform_1, window_bounds = array<i64: 128, 128>}, {transform_indices = @transform_2, window_bounds = array<i64: 2, 128>}, {transform_indices = @transform_3, window_bounds = array<i64: 1, 1, 128>}, {transform_indices = @transform_4, window_bounds = array<i64: 1, 1, 128>}]} {
    %c0 = arith.constant 0 : index
    %c0_0 = arith.constant 0 : index
    %0 = vector.load %arg2[%c0, %c0_0] : memref<2x128xbf16, #tpu.memory_space<vmem>>, vector<2x128xbf16>
    %c0_1 = arith.constant 0 : index
    %c0_2 = arith.constant 0 : index
    %1 = vector.load %arg3[%c0_1, %c0_2] : memref<128x128xbf16, #tpu.memory_space<vmem>>, vector<128x128xbf16>
    %cst = arith.constant dense<0.000000e+00> : vector<2x128xf32>
    %2 = tpu.matmul %0, %1, %cst {dimension_numbers = #tpu.dot_dimension_numbers<[1], [0], [0], [1], [0, 0, 1, 1], [], []>} : vector<2x128xbf16>, vector<128x128xbf16>, vector<2x128xf32> -> vector<2x128xf32>
    %3 = arith.truncf %2 : vector<2x128xf32> to vector<2x128xbf16>
    %c0_3 = arith.constant 0 : index
    %c0_4 = arith.constant 0 : index
    %4 = vector.load %arg4[%c0_3, %c0_4] : memref<2x128xbf16, #tpu.memory_space<vmem>>, vector<2x128xbf16>
    tpu.vector_store %arg4[%c0_3, %c0_4], %3 {strides = array<i32>} : memref<2x128xbf16, #tpu.memory_space<vmem>>, vector<2x128xbf16>,
    %cst_5 = arith.constant dense<0.000000e+00> : vector<128xf32>
    %5 = vector.multi_reduction <add>, %2, %cst_5 [0] : vector<2x128xf32> to vector<128xf32>
    %6 = vector.shape_cast %5 : vector<128xf32> to vector<1x128xf32>
    %c0_6 = arith.constant 0 : index
    %c0_7 = arith.constant 0 : index
    %c0_8 = arith.constant 0 : index
    %7 = vector.load %arg5[%c0_6, %c0_7, %c0_8] : memref<1x1x128xf32, #tpu.memory_space<vmem>>, vector<1x1x128xf32>
    %8 = vector.shape_cast %7 : vector<1x1x128xf32> to vector<1x128xf32>
    %9 = vector.shape_cast %6 : vector<1x128xf32> to vector<1x1x128xf32>
    tpu.vector_store %arg5[%c0_6, %c0_7, %c0_8], %9 {strides = array<i32>} : memref<1x1x128xf32, #tpu.memory_space<vmem>>, vector<1x1x128xf32>,
    %10 = arith.mulf %2, %2 : vector<2x128xf32>
    %cst_9 = arith.constant dense<0.000000e+00> : vector<128xf32>
    %11 = vector.multi_reduction <add>, %10, %cst_9 [0] : vector<2x128xf32> to vector<128xf32>
    %12 = vector.shape_cast %11 : vector<128xf32> to vector<1x128xf32>
    %c0_10 = arith.constant 0 : index
    %c0_11 = arith.constant 0 : index
    %c0_12 = arith.constant 0 : index
    %13 = vector.load %arg6[%c0_10, %c0_11, %c0_12] : memref<1x1x128xf32, #tpu.memory_space<vmem>>, vector<1x1x128xf32>
    %14 = vector.shape_cast %13 : vector<1x1x128xf32> to vector<1x128xf32>
    %15 = vector.shape_cast %12 : vector<1x128xf32> to vector<1x1x128xf32>
    tpu.vector_store %arg6[%c0_10, %c0_11, %c0_12], %15 {strides = array<i32>} : memref<1x1x128xf32, #tpu.memory_space<vmem>>, vector<1x1x128xf32>,
    return
  }
  func.func @transform_0(%arg0: i32, %arg1: i32) -> (i32, i32) {
    %c0_i32 = arith.constant 0 : i32
    %c0_i32_0 = arith.constant 0 : i32
    return %arg0, %c0_i32 : i32, i32
  }
  func.func @transform_1(%arg0: i32, %arg1: i32) -> (i32, i32) {
    %c0_i32 = arith.constant 0 : i32
    %c0_i32_0 = arith.constant 0 : i32
    return %c0_i32, %arg1 : i32, i32
  }
  func.func @transform_2(%arg0: i32, %arg1: i32) -> (i32, i32) {
    %c0_i32 = arith.constant 0 : i32
    return %arg0, %arg1 : i32, i32
  }
  func.func @transform_3(%arg0: i32, %arg1: i32) -> (i32, i32, i32) {
    %c0_i32 = arith.constant 0 : i32
    %c0_i32_0 = arith.constant 0 : i32
    return %arg0, %c0_i32, %arg1 : i32, i32, i32
  }
  func.func @transform_4(%arg0: i32, %arg1: i32) -> (i32, i32, i32) {
    %c0_i32 = arith.constant 0 : i32
    %c0_i32_0 = arith.constant 0 : i32
    return %arg0, %c0_i32, %arg1 : i32, i32, i32
  }
}

module attributes {stable_mosaic.version = 11 : i64} {
  func.func @_mm_stats_kernel(%arg0: i32, %arg1: i32, %arg2: memref<2x1152xbf16, #tpu.memory_space<vmem>>, %arg3: memref<1152x128xbf16, #tpu.memory_space<vmem>>, %arg4: memref<2x128xbf16, #tpu.memory_space<vmem>>, %arg5: memref<1x1x128xf32, #tpu.memory_space<vmem>>, %arg6: memref<1x1x128xf32, #tpu.memory_space<vmem>>) attributes {dimension_semantics = [#tpu.dimension_semantics<parallel>, #tpu.dimension_semantics<parallel>], iteration_bounds = array<i64: 1, 1>, scalar_prefetch = 0 : i64, scratch_operands = 0 : i64, tpu.core_type = #tpu.core_type<tc>, window_params = [{transform_indices = @transform_0, window_bounds = array<i64: 2, 1152>}, {transform_indices = @transform_1, window_bounds = array<i64: 1152, 128>}, {transform_indices = @transform_2, window_bounds = array<i64: 2, 128>}, {transform_indices = @transform_3, window_bounds = array<i64: 1, 1, 128>}, {transform_indices = @transform_4, window_bounds = array<i64: 1, 1, 128>}]} {
    %c0 = arith.constant 0 : index
    %c0_0 = arith.constant 0 : index
    %0 = vector.load %arg2[%c0, %c0_0] : memref<2x1152xbf16, #tpu.memory_space<vmem>>, vector<2x1152xbf16>
    %c0_1 = arith.constant 0 : index
    %c0_2 = arith.constant 0 : index
    %1 = vector.load %arg3[%c0_1, %c0_2] : memref<1152x128xbf16, #tpu.memory_space<vmem>>, vector<1152x128xbf16>
    %cst = arith.constant dense<0.000000e+00> : vector<2x128xf32>
    %2 = tpu.matmul %0, %1, %cst {dimension_numbers = #tpu.dot_dimension_numbers<[1], [0], [0], [1], [0, 0, 1, 1], [], []>} : vector<2x1152xbf16>, vector<1152x128xbf16>, vector<2x128xf32> -> vector<2x128xf32>
    %3 = arith.truncf %2 : vector<2x128xf32> to vector<2x128xbf16>
    %c0_3 = arith.constant 0 : index
    %c0_4 = arith.constant 0 : index
    %4 = vector.load %arg4[%c0_3, %c0_4] : memref<2x128xbf16, #tpu.memory_space<vmem>>, vector<2x128xbf16>
    tpu.vector_store %arg4[%c0_3, %c0_4], %3 {strides = array<i32>} : memref<2x128xbf16, #tpu.memory_space<vmem>>, vector<2x128xbf16>,
    %cst_5 = arith.constant dense<0.000000e+00> : vector<128xf32>
    %5 = vector.multi_reduction <add>, %2, %cst_5 [0] : vector<2x128xf32> to vector<128xf32>
    %6 = vector.shape_cast %5 : vector<128xf32> to vector<1x128xf32>
    %c0_6 = arith.constant 0 : index
    %c0_7 = arith.constant 0 : index
    %c0_8 = arith.constant 0 : index
    %7 = vector.load %arg5[%c0_6, %c0_7, %c0_8] : memref<1x1x128xf32, #tpu.memory_space<vmem>>, vector<1x1x128xf32>
    %8 = vector.shape_cast %7 : vector<1x1x128xf32> to vector<1x128xf32>
    %9 = vector.shape_cast %6 : vector<1x128xf32> to vector<1x1x128xf32>
    tpu.vector_store %arg5[%c0_6, %c0_7, %c0_8], %9 {strides = array<i32>} : memref<1x1x128xf32, #tpu.memory_space<vmem>>, vector<1x1x128xf32>,
    %10 = arith.mulf %2, %2 : vector<2x128xf32>
    %cst_9 = arith.constant dense<0.000000e+00> : vector<128xf32>
    %11 = vector.multi_reduction <add>, %10, %cst_9 [0] : vector<2x128xf32> to vector<128xf32>
    %12 = vector.shape_cast %11 : vector<128xf32> to vector<1x128xf32>
    %c0_10 = arith.constant 0 : index
    %c0_11 = arith.constant 0 : index
    %c0_12 = arith.constant 0 : index
    %13 = vector.load %arg6[%c0_10, %c0_11, %c0_12] : memref<1x1x128xf32, #tpu.memory_space<vmem>>, vector<1x1x128xf32>
    %14 = vector.shape_cast %13 : vector<1x1x128xf32> to vector<1x128xf32>
    %15 = vector.shape_cast %12 : vector<1x128xf32> to vector<1x1x128xf32>
    tpu.vector_store %arg6[%c0_10, %c0_11, %c0_12], %15 {strides = array<i32>} : memref<1x1x128xf32, #tpu.memory_space<vmem>>, vector<1x1x128xf32>,
    return
  }
  func.func @transform_0(%arg0: i32, %arg1: i32) -> (i32, i32) {
    %c0_i32 = arith.constant 0 : i32
    %c0_i32_0 = arith.constant 0 : i32
    return %arg0, %c0_i32 : i32, i32
  }
  func.func @transform_1(%arg0: i32, %arg1: i32) -> (i32, i32) {
    %c0_i32 = arith.constant 0 : i32
    %c0_i32_0 = arith.constant 0 : i32
    return %c0_i32, %arg1 : i32, i32
  }
  func.func @transform_2(%arg0: i32, %arg1: i32) -> (i32, i32) {
    %c0_i32 = arith.constant 0 : i32
    return %arg0, %arg1 : i32, i32
  }
  func.func @transform_3(%arg0: i32, %arg1: i32) -> (i32, i32, i32) {
    %c0_i32 = arith.constant 0 : i32
    %c0_i32_0 = arith.constant 0 : i32
    return %arg0, %c0_i32, %arg1 : i32, i32, i32
  }
  func.func @transform_4(%arg0: i32, %arg1: i32) -> (i32, i32, i32) {
    %c0_i32 = arith.constant 0 : i32
    %c0_i32_0 = arith.constant 0 : i32
    return %arg0, %c0_i32, %arg1 : i32, i32, i32
  }
}

module attributes {stable_mosaic.version = 11 : i64} {
  func.func @_affine_res_kernel(%arg0: i32, %arg1: memref<2x128xbf16, #tpu.memory_space<vmem>>, %arg2: memref<1x128xf32, #tpu.memory_space<vmem>>, %arg3: memref<1x128xf32, #tpu.memory_space<vmem>>, %arg4: memref<2x128xbf16, #tpu.memory_space<vmem>>, %arg5: memref<1x128xf32, #tpu.memory_space<vmem>>, %arg6: memref<1x128xf32, #tpu.memory_space<vmem>>, %arg7: memref<2x128xbf16, #tpu.memory_space<vmem>>) attributes {dimension_semantics = [#tpu.dimension_semantics<parallel>], iteration_bounds = array<i64: 1>, scalar_prefetch = 0 : i64, scratch_operands = 0 : i64, tpu.core_type = #tpu.core_type<tc>, window_params = [{transform_indices = @transform_0, window_bounds = array<i64: 2, 128>}, {pipeline_mode = #tpu.pipeline_mode<synchronous>, transform_indices = @transform_1, window_bounds = array<i64: 1, 128>}, {pipeline_mode = #tpu.pipeline_mode<synchronous>, transform_indices = @transform_2, window_bounds = array<i64: 1, 128>}, {transform_indices = @transform_3, window_bounds = array<i64: 2, 128>}, {pipeline_mode = #tpu.pipeline_mode<synchronous>, transform_indices = @transform_4, window_bounds = array<i64: 1, 128>}, {pipeline_mode = #tpu.pipeline_mode<synchronous>, transform_indices = @transform_5, window_bounds = array<i64: 1, 128>}, {transform_indices = @transform_6, window_bounds = array<i64: 2, 128>}]} {
    %c0 = arith.constant 0 : index
    %c0_0 = arith.constant 0 : index
    %0 = vector.load %arg1[%c0, %c0_0] : memref<2x128xbf16, #tpu.memory_space<vmem>>, vector<2x128xbf16>
    %1 = arith.extf %0 : vector<2x128xbf16> to vector<2x128xf32>
    %c0_1 = arith.constant 0 : index
    %c0_2 = arith.constant 0 : index
    %2 = vector.load %arg2[%c0_1, %c0_2] : memref<1x128xf32, #tpu.memory_space<vmem>>, vector<1x128xf32>
    %3 = vector.broadcast %2 : vector<1x128xf32> to vector<2x128xf32>
    %4 = arith.mulf %1, %3 : vector<2x128xf32>
    %c0_3 = arith.constant 0 : index
    %c0_4 = arith.constant 0 : index
    %5 = vector.load %arg3[%c0_3, %c0_4] : memref<1x128xf32, #tpu.memory_space<vmem>>, vector<1x128xf32>
    %6 = vector.broadcast %5 : vector<1x128xf32> to vector<2x128xf32>
    %7 = arith.addf %4, %6 : vector<2x128xf32>
    %c0_5 = arith.constant 0 : index
    %c0_6 = arith.constant 0 : index
    %8 = vector.load %arg4[%c0_5, %c0_6] : memref<2x128xbf16, #tpu.memory_space<vmem>>, vector<2x128xbf16>
    %9 = arith.extf %8 : vector<2x128xbf16> to vector<2x128xf32>
    %c0_7 = arith.constant 0 : index
    %c0_8 = arith.constant 0 : index
    %10 = vector.load %arg5[%c0_7, %c0_8] : memref<1x128xf32, #tpu.memory_space<vmem>>, vector<1x128xf32>
    %11 = vector.broadcast %10 : vector<1x128xf32> to vector<2x128xf32>
    %12 = arith.mulf %9, %11 : vector<2x128xf32>
    %c0_9 = arith.constant 0 : index
    %c0_10 = arith.constant 0 : index
    %13 = vector.load %arg6[%c0_9, %c0_10] : memref<1x128xf32, #tpu.memory_space<vmem>>, vector<1x128xf32>
    %14 = vector.broadcast %13 : vector<1x128xf32> to vector<2x128xf32>
    %15 = arith.addf %12, %14 : vector<2x128xf32>
    %16 = arith.addf %7, %15 : vector<2x128xf32>
    %cst = arith.constant 0.000000e+00 : f32
    %17 = vector.broadcast %cst : f32 to vector<2x128xf32>
    %18 = arith.maximumf %16, %17 : vector<2x128xf32>
    %19 = arith.truncf %18 : vector<2x128xf32> to vector<2x128xbf16>
    %c0_11 = arith.constant 0 : index
    %c0_12 = arith.constant 0 : index
    %20 = vector.load %arg7[%c0_11, %c0_12] : memref<2x128xbf16, #tpu.memory_space<vmem>>, vector<2x128xbf16>
    tpu.vector_store %arg7[%c0_11, %c0_12], %19 {strides = array<i32>} : memref<2x128xbf16, #tpu.memory_space<vmem>>, vector<2x128xbf16>,
    return
  }
  func.func @transform_0(%arg0: i32) -> (i32, i32) {
    %c0_i32 = arith.constant 0 : i32
    %c0_i32_0 = arith.constant 0 : i32
    return %arg0, %c0_i32 : i32, i32
  }
  func.func @transform_1(%arg0: i32) -> (i32, i32) {
    %c0_i32 = arith.constant 0 : i32
    %c0_i32_0 = arith.constant 0 : i32
    %c0_i32_1 = arith.constant 0 : i32
    return %c0_i32, %c0_i32_0 : i32, i32
  }
  func.func @transform_2(%arg0: i32) -> (i32, i32) {
    %c0_i32 = arith.constant 0 : i32
    %c0_i32_0 = arith.constant 0 : i32
    %c0_i32_1 = arith.constant 0 : i32
    return %c0_i32, %c0_i32_0 : i32, i32
  }
  func.func @transform_3(%arg0: i32) -> (i32, i32) {
    %c0_i32 = arith.constant 0 : i32
    %c0_i32_0 = arith.constant 0 : i32
    return %arg0, %c0_i32 : i32, i32
  }
  func.func @transform_4(%arg0: i32) -> (i32, i32) {
    %c0_i32 = arith.constant 0 : i32
    %c0_i32_0 = arith.constant 0 : i32
    %c0_i32_1 = arith.constant 0 : i32
    return %c0_i32, %c0_i32_0 : i32, i32
  }
  func.func @transform_5(%arg0: i32) -> (i32, i32) {
    %c0_i32 = arith.constant 0 : i32
    %c0_i32_0 = arith.constant 0 : i32
    %c0_i32_1 = arith.constant 0 : i32
    return %c0_i32, %c0_i32_0 : i32, i32
  }
  func.func @transform_6(%arg0: i32) -> (i32, i32) {
    %c0_i32 = arith.constant 0 : i32
    %c0_i32_0 = arith.constant 0 : i32
    return %arg0, %c0_i32 : i32, i32
  }
}

module attributes {stable_mosaic.version = 11 : i64} {
  func.func @_conv3x3_s1_kernel(%arg0: i32, %arg1: i32, %arg2: memref<1x1x3x128xbf16, #tpu.memory_space<vmem>>, %arg3: memref<1x1x3x128xbf16, #tpu.memory_space<vmem>>, %arg4: memref<1x1x3x128xbf16, #tpu.memory_space<vmem>>, %arg5: memref<1152x128xbf16, #tpu.memory_space<vmem>>, %arg6: memref<1x1x1x128xbf16, #tpu.memory_space<vmem>>, %arg7: memref<1x1x128xf32, #tpu.memory_space<vmem>>, %arg8: memref<1x1x128xf32, #tpu.memory_space<vmem>>) attributes {dimension_semantics = [#tpu.dimension_semantics<parallel>, #tpu.dimension_semantics<parallel>], iteration_bounds = array<i64: 2, 1>, scalar_prefetch = 0 : i64, scratch_operands = 0 : i64, tpu.core_type = #tpu.core_type<tc>, window_params = [{transform_indices = @transform_0, window_bounds = array<i64: 1, 1, 3, 128>}, {transform_indices = @transform_1, window_bounds = array<i64: 1, 1, 3, 128>}, {transform_indices = @transform_2, window_bounds = array<i64: 1, 1, 3, 128>}, {pipeline_mode = #tpu.pipeline_mode<synchronous>, transform_indices = @transform_3, window_bounds = array<i64: 1152, 128>}, {transform_indices = @transform_4, window_bounds = array<i64: 1, 1, 1, 128>}, {transform_indices = @transform_5, window_bounds = array<i64: 1, 1, 128>}, {transform_indices = @transform_6, window_bounds = array<i64: 1, 1, 128>}]} {
    %c0 = arith.constant 0 : index
    %c0_0 = arith.constant 0 : index
    %0 = vector.load %arg5[%c0, %c0_0] : memref<1152x128xbf16, #tpu.memory_space<vmem>>, vector<1152x128xbf16>
    %c0_1 = arith.constant 0 : index
    %c0_2 = arith.constant 0 : index
    %c0_3 = arith.constant 0 : index
    %c0_4 = arith.constant 0 : index
    %1 = vector.load %arg2[%c0_1, %c0_2, %c0_3, %c0_4] : memref<1x1x3x128xbf16, #tpu.memory_space<vmem>>, vector<1x1x3x128xbf16>
    %2 = vector.shape_cast %1 : vector<1x1x3x128xbf16> to vector<3x128xbf16>
    %3 = vector.extract_strided_slice %2 {offsets = [0, 0], sizes = [1, 128], strides = [1, 1]} : vector<3x128xbf16> to vector<1x128xbf16>
    %c0_5 = arith.constant 0 : index
    %c0_6 = arith.constant 0 : index
    %c0_7 = arith.constant 0 : index
    %c0_8 = arith.constant 0 : index
    %4 = vector.load %arg2[%c0_5, %c0_6, %c0_7, %c0_8] : memref<1x1x3x128xbf16, #tpu.memory_space<vmem>>, vector<1x1x3x128xbf16>
    %5 = vector.shape_cast %4 : vector<1x1x3x128xbf16> to vector<3x128xbf16>
    %6 = vector.extract_strided_slice %5 {offsets = [1, 0], sizes = [1, 128], strides = [1, 1]} : vector<3x128xbf16> to vector<1x128xbf16>
    %c0_9 = arith.constant 0 : index
    %c0_10 = arith.constant 0 : index
    %c0_11 = arith.constant 0 : index
    %c0_12 = arith.constant 0 : index
    %7 = vector.load %arg2[%c0_9, %c0_10, %c0_11, %c0_12] : memref<1x1x3x128xbf16, #tpu.memory_space<vmem>>, vector<1x1x3x128xbf16>
    %8 = vector.shape_cast %7 : vector<1x1x3x128xbf16> to vector<3x128xbf16>
    %9 = vector.extract_strided_slice %8 {offsets = [2, 0], sizes = [1, 128], strides = [1, 1]} : vector<3x128xbf16> to vector<1x128xbf16>
    %c0_13 = arith.constant 0 : index
    %c0_14 = arith.constant 0 : index
    %c0_15 = arith.constant 0 : index
    %c0_16 = arith.constant 0 : index
    %10 = vector.load %arg3[%c0_13, %c0_14, %c0_15, %c0_16] : memref<1x1x3x128xbf16, #tpu.memory_space<vmem>>, vector<1x1x3x128xbf16>
    %11 = vector.shape_cast %10 : vector<1x1x3x128xbf16> to vector<3x128xbf16>
    %12 = vector.extract_strided_slice %11 {offsets = [0, 0], sizes = [1, 128], strides = [1, 1]} : vector<3x128xbf16> to vector<1x128xbf16>
    %c0_17 = arith.constant 0 : index
    %c0_18 = arith.constant 0 : index
    %c0_19 = arith.constant 0 : index
    %c0_20 = arith.constant 0 : index
    %13 = vector.load %arg3[%c0_17, %c0_18, %c0_19, %c0_20] : memref<1x1x3x128xbf16, #tpu.memory_space<vmem>>, vector<1x1x3x128xbf16>
    %14 = vector.shape_cast %13 : vector<1x1x3x128xbf16> to vector<3x128xbf16>
    %15 = vector.extract_strided_slice %14 {offsets = [1, 0], sizes = [1, 128], strides = [1, 1]} : vector<3x128xbf16> to vector<1x128xbf16>
    %c0_21 = arith.constant 0 : index
    %c0_22 = arith.constant 0 : index
    %c0_23 = arith.constant 0 : index
    %c0_24 = arith.constant 0 : index
    %16 = vector.load %arg3[%c0_21, %c0_22, %c0_23, %c0_24] : memref<1x1x3x128xbf16, #tpu.memory_space<vmem>>, vector<1x1x3x128xbf16>
    %17 = vector.shape_cast %16 : vector<1x1x3x128xbf16> to vector<3x128xbf16>
    %18 = vector.extract_strided_slice %17 {offsets = [2, 0], sizes = [1, 128], strides = [1, 1]} : vector<3x128xbf16> to vector<1x128xbf16>
    %c0_25 = arith.constant 0 : index
    %c0_26 = arith.constant 0 : index
    %c0_27 = arith.constant 0 : index
    %c0_28 = arith.constant 0 : index
    %19 = vector.load %arg4[%c0_25, %c0_26, %c0_27, %c0_28] : memref<1x1x3x128xbf16, #tpu.memory_space<vmem>>, vector<1x1x3x128xbf16>
    %20 = vector.shape_cast %19 : vector<1x1x3x128xbf16> to vector<3x128xbf16>
    %21 = vector.extract_strided_slice %20 {offsets = [0, 0], sizes = [1, 128], strides = [1, 1]} : vector<3x128xbf16> to vector<1x128xbf16>
    %c0_29 = arith.constant 0 : index
    %c0_30 = arith.constant 0 : index
    %c0_31 = arith.constant 0 : index
    %c0_32 = arith.constant 0 : index
    %22 = vector.load %arg4[%c0_29, %c0_30, %c0_31, %c0_32] : memref<1x1x3x128xbf16, #tpu.memory_space<vmem>>, vector<1x1x3x128xbf16>
    %23 = vector.shape_cast %22 : vector<1x1x3x128xbf16> to vector<3x128xbf16>
    %24 = vector.extract_strided_slice %23 {offsets = [1, 0], sizes = [1, 128], strides = [1, 1]} : vector<3x128xbf16> to vector<1x128xbf16>
    %c0_33 = arith.constant 0 : index
    %c0_34 = arith.constant 0 : index
    %c0_35 = arith.constant 0 : index
    %c0_36 = arith.constant 0 : index
    %25 = vector.load %arg4[%c0_33, %c0_34, %c0_35, %c0_36] : memref<1x1x3x128xbf16, #tpu.memory_space<vmem>>, vector<1x1x3x128xbf16>
    %26 = vector.shape_cast %25 : vector<1x1x3x128xbf16> to vector<3x128xbf16>
    %27 = vector.extract_strided_slice %26 {offsets = [2, 0], sizes = [1, 128], strides = [1, 1]} : vector<3x128xbf16> to vector<1x128xbf16>
    %28 = tpu.concatenate %3, %6, %9, %12, %15, %18, %21, %24, %27 in 1 : vector<1x128xbf16>, vector<1x128xbf16>, vector<1x128xbf16>, vector<1x128xbf16>, vector<1x128xbf16>, vector<1x128xbf16>, vector<1x128xbf16>, vector<1x128xbf16>, vector<1x128xbf16> -> vector<1x1152xbf16>
    %cst = arith.constant dense<0.000000e+00> : vector<1x128xf32>
    %29 = tpu.matmul %28, %0, %cst {dimension_numbers = #tpu.dot_dimension_numbers<[1], [0], [0], [1], [0, 0, 1, 1], [], []>} : vector<1x1152xbf16>, vector<1152x128xbf16>, vector<1x128xf32> -> vector<1x128xf32>
    %30 = arith.truncf %29 : vector<1x128xf32> to vector<1x128xbf16>
    %c0_37 = arith.constant 0 : index
    %c0_38 = arith.constant 0 : index
    %c0_39 = arith.constant 0 : index
    %c0_40 = arith.constant 0 : index
    %31 = vector.load %arg6[%c0_37, %c0_38, %c0_39, %c0_40] : memref<1x1x1x128xbf16, #tpu.memory_space<vmem>>, vector<1x1x1x128xbf16>
    %32 = vector.shape_cast %31 : vector<1x1x1x128xbf16> to vector<1x128xbf16>
    %33 = vector.shape_cast %30 : vector<1x128xbf16> to vector<1x1x1x128xbf16>
    tpu.vector_store %arg6[%c0_37, %c0_38, %c0_39, %c0_40], %33 {strides = array<i32>} : memref<1x1x1x128xbf16, #tpu.memory_space<vmem>>, vector<1x1x1x128xbf16>,
    %cst_41 = arith.constant dense<0.000000e+00> : vector<128xf32>
    %34 = vector.multi_reduction <add>, %29, %cst_41 [0] : vector<1x128xf32> to vector<128xf32>
    %35 = vector.shape_cast %34 : vector<128xf32> to vector<1x128xf32>
    %36 = arith.mulf %29, %29 : vector<1x128xf32>
    %cst_42 = arith.constant dense<0.000000e+00> : vector<128xf32>
    %37 = vector.multi_reduction <add>, %36, %cst_42 [0] : vector<1x128xf32> to vector<128xf32>
    %38 = vector.shape_cast %37 : vector<128xf32> to vector<1x128xf32>
    %c0_43 = arith.constant 0 : index
    %c0_44 = arith.constant 0 : index
    %c0_45 = arith.constant 0 : index
    %39 = vector.load %arg7[%c0_43, %c0_44, %c0_45] : memref<1x1x128xf32, #tpu.memory_space<vmem>>, vector<1x1x128xf32>
    %40 = vector.shape_cast %39 : vector<1x1x128xf32> to vector<1x128xf32>
    %41 = vector.shape_cast %35 : vector<1x128xf32> to vector<1x1x128xf32>
    tpu.vector_store %arg7[%c0_43, %c0_44, %c0_45], %41 {strides = array<i32>} : memref<1x1x128xf32, #tpu.memory_space<vmem>>, vector<1x1x128xf32>,
    %c0_46 = arith.constant 0 : index
    %c0_47 = arith.constant 0 : index
    %c0_48 = arith.constant 0 : index
    %42 = vector.load %arg8[%c0_46, %c0_47, %c0_48] : memref<1x1x128xf32, #tpu.memory_space<vmem>>, vector<1x1x128xf32>
    %43 = vector.shape_cast %42 : vector<1x1x128xf32> to vector<1x128xf32>
    %44 = vector.shape_cast %38 : vector<1x128xf32> to vector<1x1x128xf32>
    tpu.vector_store %arg8[%c0_46, %c0_47, %c0_48], %44 {strides = array<i32>} : memref<1x1x128xf32, #tpu.memory_space<vmem>>, vector<1x1x128xf32>,
    return
  }
  func.func @transform_0(%arg0: i32, %arg1: i32) -> (i32, i32, i32, i32) {
    %c0_i32 = arith.constant 0 : i32
    %c0_i32_0 = arith.constant 0 : i32
    %c0_i32_1 = arith.constant 0 : i32
    return %arg0, %arg1, %c0_i32, %c0_i32_0 : i32, i32, i32, i32
  }
  func.func @transform_1(%arg0: i32, %arg1: i32) -> (i32, i32, i32, i32) {
    %c1_i32 = arith.constant 1 : i32
    %0 = arith.addi %arg1, %c1_i32 : i32
    %c1_i32_0 = arith.constant 1 : i32
    %1 = arith.muli %0, %c1_i32_0 : i32
    %c0_i32 = arith.constant 0 : i32
    %c0_i32_1 = arith.constant 0 : i32
    %c0_i32_2 = arith.constant 0 : i32
    return %arg0, %1, %c0_i32, %c0_i32_1 : i32, i32, i32, i32
  }
  func.func @transform_2(%arg0: i32, %arg1: i32) -> (i32, i32, i32, i32) {
    %c1_i32 = arith.constant 1 : i32
    %0 = arith.addi %arg1, %c1_i32 : i32
    %c1_i32_0 = arith.constant 1 : i32
    %1 = arith.muli %0, %c1_i32_0 : i32
    %c1_i32_1 = arith.constant 1 : i32
    %2 = arith.addi %1, %c1_i32_1 : i32
    %c0_i32 = arith.constant 0 : i32
    %c0_i32_2 = arith.constant 0 : i32
    %c0_i32_3 = arith.constant 0 : i32
    return %arg0, %2, %c0_i32, %c0_i32_2 : i32, i32, i32, i32
  }
  func.func @transform_3(%arg0: i32, %arg1: i32) -> (i32, i32) {
    %c0_i32 = arith.constant 0 : i32
    %c0_i32_0 = arith.constant 0 : i32
    %c0_i32_1 = arith.constant 0 : i32
    return %c0_i32, %c0_i32_0 : i32, i32
  }
  func.func @transform_4(%arg0: i32, %arg1: i32) -> (i32, i32, i32, i32) {
    %c0_i32 = arith.constant 0 : i32
    %c0_i32_0 = arith.constant 0 : i32
    %c0_i32_1 = arith.constant 0 : i32
    return %arg0, %arg1, %c0_i32, %c0_i32_0 : i32, i32, i32, i32
  }
  func.func @transform_5(%arg0: i32, %arg1: i32) -> (i32, i32, i32) {
    %c1_i32 = arith.constant 1 : i32
    %0 = arith.muli %arg0, %c1_i32 : i32
    %1 = arith.addi %0, %arg1 : i32
    %c0_i32 = arith.constant 0 : i32
    %c0_i32_0 = arith.constant 0 : i32
    %c0_i32_1 = arith.constant 0 : i32
    return %1, %c0_i32, %c0_i32_0 : i32, i32, i32
  }
  func.func @transform_6(%arg0: i32, %arg1: i32) -> (i32, i32, i32) {
    %c1_i32 = arith.constant 1 : i32
    %0 = arith.muli %arg0, %c1_i32 : i32
    %1 = arith.addi %0, %arg1 : i32
    %c0_i32 = arith.constant 0 : i32
    %c0_i32_0 = arith.constant 0 : i32
    %c0_i32_1 = arith.constant 0 : i32
    return %1, %c0_i32, %c0_i32_0 : i32, i32, i32
  }
}

module attributes {stable_mosaic.version = 11 : i64} {
  func.func @_mm_bias_kernel(%arg0: i32, %arg1: i32, %arg2: memref<2x128xbf16, #tpu.memory_space<vmem>>, %arg3: memref<128x128xbf16, #tpu.memory_space<vmem>>, %arg4: memref<1x128xf32, #tpu.memory_space<vmem>>, %arg5: memref<2x128xf32, #tpu.memory_space<vmem>>) attributes {dimension_semantics = [#tpu.dimension_semantics<parallel>, #tpu.dimension_semantics<parallel>], iteration_bounds = array<i64: 1, 1>, scalar_prefetch = 0 : i64, scratch_operands = 0 : i64, tpu.core_type = #tpu.core_type<tc>, window_params = [{transform_indices = @transform_0, window_bounds = array<i64: 2, 128>}, {transform_indices = @transform_1, window_bounds = array<i64: 128, 128>}, {transform_indices = @transform_2, window_bounds = array<i64: 1, 128>}, {transform_indices = @transform_3, window_bounds = array<i64: 2, 128>}]} {
    %c0 = arith.constant 0 : index
    %c0_0 = arith.constant 0 : index
    %0 = vector.load %arg2[%c0, %c0_0] : memref<2x128xbf16, #tpu.memory_space<vmem>>, vector<2x128xbf16>
    %c0_1 = arith.constant 0 : index
    %c0_2 = arith.constant 0 : index
    %1 = vector.load %arg3[%c0_1, %c0_2] : memref<128x128xbf16, #tpu.memory_space<vmem>>, vector<128x128xbf16>
    %cst = arith.constant dense<0.000000e+00> : vector<2x128xf32>
    %2 = tpu.matmul %0, %1, %cst {dimension_numbers = #tpu.dot_dimension_numbers<[1], [0], [0], [1], [0, 0, 1, 1], [], []>} : vector<2x128xbf16>, vector<128x128xbf16>, vector<2x128xf32> -> vector<2x128xf32>
    %c0_3 = arith.constant 0 : index
    %c0_4 = arith.constant 0 : index
    %3 = vector.load %arg4[%c0_3, %c0_4] : memref<1x128xf32, #tpu.memory_space<vmem>>, vector<1x128xf32>
    %4 = vector.broadcast %3 : vector<1x128xf32> to vector<2x128xf32>
    %5 = arith.addf %2, %4 : vector<2x128xf32>
    %c0_5 = arith.constant 0 : index
    %c0_6 = arith.constant 0 : index
    %6 = vector.load %arg5[%c0_5, %c0_6] : memref<2x128xf32, #tpu.memory_space<vmem>>, vector<2x128xf32>
    tpu.vector_store %arg5[%c0_5, %c0_6], %5 {strides = array<i32>} : memref<2x128xf32, #tpu.memory_space<vmem>>, vector<2x128xf32>,
    return
  }
  func.func @transform_0(%arg0: i32, %arg1: i32) -> (i32, i32) {
    %c0_i32 = arith.constant 0 : i32
    %c0_i32_0 = arith.constant 0 : i32
    return %arg0, %c0_i32 : i32, i32
  }
  func.func @transform_1(%arg0: i32, %arg1: i32) -> (i32, i32) {
    %c0_i32 = arith.constant 0 : i32
    %c0_i32_0 = arith.constant 0 : i32
    return %c0_i32, %arg1 : i32, i32
  }
  func.func @transform_2(%arg0: i32, %arg1: i32) -> (i32, i32) {
    %c0_i32 = arith.constant 0 : i32
    %c0_i32_0 = arith.constant 0 : i32
    return %c0_i32, %arg1 : i32, i32
  }
  func.func @transform_3(%arg0: i32, %arg1: i32) -> (i32, i32) {
    %c0_i32 = arith.constant 0 : i32
    return %arg0, %arg1 : i32, i32
  }
}

</mosaic_0001>

<bundles_post_ra>
// kernel: resnet_forward.17
= control target key start
LH: loop header
LB: loop body
LE: loop exit
PB: predicated region body
PF: predicated region fallthrough
CT: control target
= control target key end

     0   :  { %s1542_s15 = smov 0   ;;  %s1544_s16 = smov 0   ;;  %s1818_s0 = inlined_call_operand.vmem [shape: bf16[512,256], index: 0, kind: input, shape index: {}]   ;;  %s1819_s1 = inlined_call_operand.vmem [shape: bf16[256,128], index: 1, kind: input, shape index: {}]   ;;  %s1820_s2 = inlined_call_operand.vmem [shape: bf16[512,128], index: 2, kind: output, shape index: {0}]   ;;  %s1821_s3 = inlined_call_operand.vmem [shape: f32[2,1,128], index: 3, kind: output, shape index: {1}]   ;;  %s1822_s4 = inlined_call_operand.vmem [shape: f32[2,1,128], index: 4, kind: output, shape index: {2}]  }
   0x1   :  { %s1546_s17 = smov 0  }
   0x2 LB: > { %s27_s18 = sadd.s32 1, %s1511_s16  ;;  %p1109_p0 = scmp.ge.s32.totalorder %s1515_s17, 1  ;;  %s1515_s17 = sphi %s1546_s17, %s15_s17   ;;  %s1511_s16 = sphi %s1544_s16, %s1824_s16   ;;  %s1507_s15 = sphi %s1542_s15, %s1823_s15  }
   0x3   : > { %p29_p1 = scmp.ge.s32.totalorder %s27_s18, 2  ;;  %p196_p2 = scmp.lt.s32.totalorder %s1515_s17, 3 }
   0x5   : > { %s1826_s18 = smov (%p29_p1, %s27_s18), 0  ;;  %p197_p3 = pnand %p1109_p0, %p196_p2 }
   0x6   : > { %s1110_s5 = sshll.u32 (!%p197_p3), %s1507_s15, 5  ;;  %p262_p5 = scmp.lt.s32.totalorder (!%p197_p3), %s1507_s15, 1 }
   0x7   : > { %200 = sbr.rel (%p197_p3) target bundleno = 342 (0x156), region = 28  ;;  %p243_p4 = scmp.lt.s32.totalorder (!%p197_p3), %s1110_s5, 63 }
   0xc   : > { %v1349_v0 = vld [vmem:[%s1819_s1 + $0x38] sm:$0xff]  ;;  %v1348_v2 = vld [vmem:[%s1819_s1 + $0x30] sm:$0xff]  ;;  %v1347_v4 = vld [vmem:[%s1819_s1 + $0x28] sm:$0xff]  ;;  %s1828_s5 = smov (!%p243_p4, %s1110_s5), 63  ;;  %s1830_s15 = smov (!%p262_p5, %s1507_s15), 1 }
   0xd   : > { %v1357_v1 = vld [vmem:[%s1819_s1 + $0x78] sm:$0xff]  ;;  %594 = vmatpush.bf16.msra.mxu0 %v1349_v0  ;;  %v1356_v3 = vld [vmem:[%s1819_s1 + $0x70] sm:$0xff]  ;;  %1453 = vmatpush.bf16.msra.mxu2 %v1349_v0  ;;  %v1355_v5 = vld [vmem:[%s1819_s1 + $0x68] sm:$0xff]  ;;  %s1309_s22 = sshll.u32 %s1828_s5, 3  ;;  %s1114_s9 = sshll.u32 %s1828_s5, 2 }
   0xe   : > { %683 = vmatpush.bf16.msra.mxu1 %v1357_v1  ;;  %1461 = vmatpush.bf16.msra.mxu3 %v1357_v1  ;;  %v1346_v6 = vld [vmem:[%s1819_s1 + $0x20] sm:$0xff]  ;;  %v1345_v8 = vld [vmem:[%s1819_s1 + $0x18] sm:$0xff]  ;;  %v1344_v10 = vld [vmem:[%s1819_s1 + $0x10] sm:$0xff]  ;;  %s1611_s29 = scalar_lea.vmem %s1818_s0, %s1309_s22  ;;  %s1687_s12 = scalar_lea.vmem %s1820_s2, %s1114_s9 }
   0xf   : > { %v1354_v7 = vld [vmem:[%s1819_s1 + $0x60] sm:$0xff]  ;;  %v1353_v9 = vld [vmem:[%s1819_s1 + $0x58] sm:$0xff]  ;;  %v1352_v11 = vld [vmem:[%s1819_s1 + $0x50] sm:$0xff]  ;;  %s267_s14 = scalar_lea.vmem %s1821_s3, %s1830_s15  ;;  %s273_s21 = scalar_lea.vmem %s1822_s4, %s1830_s15 }
  0x10   : > { %v1343_v12 = vld [vmem:[%s1819_s1 + $0x8] sm:$0xff]  ;;  %v1342_v14 = vld [vmem:[%s1819_s1] sm:$0xff]  ;;  %v1125_v28 = vld [vmem:[%s1611_s29 + $0x10] sm:$0xf] }
  0x11   : > { %595 = vmatpush.bf16.msra.mxu0 %v1348_v2  ;;  %1454 = vmatpush.bf16.msra.mxu2 %v1348_v2  ;;  %v1351_v13 = vld [vmem:[%s1819_s1 + $0x48] sm:$0xff]  ;;  %v1350_v15 = vld [vmem:[%s1819_s1 + $0x40] sm:$0xff]  ;;  %v1313_v29 = vld [vmem:[%s1611_s29 + $0x14] sm:$0xf0] }
  0x12   : > { %684 = vmatpush.bf16.msra.mxu1 %v1356_v3  ;;  %1462 = vmatpush.bf16.msra.mxu3 %v1356_v3  ;;  %v1117_v16 = vld [vmem:[%s1611_s29] sm:$0xf]  ;;  %v1311_v17 = vld [vmem:[%s1611_s29 + $0x4] sm:$0xf0]  ;;  %v1310_v18 = vld [vmem:[%s1611_s29 + $0x4] sm:$0xf]  ;;  %v1126_v36 = vor.u32 %v1313_v29, %v1125_v28 }
  0x13   : > { %v1119_v19 = vld [vmem:[%s1611_s29 + $0x8] sm:$0xf0]  ;;  %v1181_v20 = vld [vmem:[%s1611_s29 + $0x80] sm:$0xf]  ;;  %v1327_v21 = vld [vmem:[%s1611_s29 + $0x84] sm:$0xf0]  ;;  %v1118_v24 = vor.u32 %v1311_v17, %v1117_v16 }
  0x14   : > { %v1326_v22 = vld [vmem:[%s1611_s29 + $0x84] sm:$0xf]  ;;  %v1183_v23 = vld [vmem:[%s1611_s29 + $0x88] sm:$0xf0]  ;;  %v1122_v25 = vor.u32 %v1310_v18, %v1119_v19  ;;  %v1182_v26 = vor.u32 %v1327_v21, %v1181_v20  ;;  %v1312_v30 = vld [vmem:[%s1611_s29 + $0x14] sm:$0xf] }
  0x15   : > { %596 = vmatpush.bf16.msra.mxu0 %v1347_v4  ;;  %1455 = vmatpush.bf16.msra.mxu2 %v1347_v4  ;;  %v1186_v27 = vor.u32 %v1326_v22, %v1183_v23  ;;  %v1127_v31 = vld [vmem:[%s1611_s29 + $0x18] sm:$0xf0]  ;;  %v1189_v32 = vld [vmem:[%s1611_s29 + $0x90] sm:$0xf]  ;;  %v1329_v33 = vld [vmem:[%s1611_s29 + $0x94] sm:$0xf0] }
  0x16   : > { %685 = vmatpush.bf16.msra.mxu1 %v1355_v5  ;;  %1463 = vmatpush.bf16.msra.mxu3 %v1355_v5  ;;  %v1328_v34 = vld [vmem:[%s1611_s29 + $0x94] sm:$0xf]  ;;  %v1191_v35 = vld [vmem:[%s1611_s29 + $0x98] sm:$0xf0]  ;;  %v1130_v37 = vor.u32 %v1312_v30, %v1127_v31  ;;  %v1190_v38 = vor.u32 %v1329_v33, %v1189_v32  ;;  %v1133_v40 = vld [vmem:[%s1611_s29 + $0x20] sm:$0xf] }
  0x17   : > { %v1194_v39 = vor.u32 %v1328_v34, %v1191_v35  ;;  %v1315_v41 = vld [vmem:[%s1611_s29 + $0x24] sm:$0xf0]  ;;  %v1314_v42 = vld [vmem:[%s1611_s29 + $0x24] sm:$0xf]  ;;  %v1135_v43 = vld [vmem:[%s1611_s29 + $0x28] sm:$0xf0] }
  0x18   : > { %v1197_v44 = vld [vmem:[%s1611_s29 + $0xa0] sm:$0xf]  ;;  %v1331_v45 = vld [vmem:[%s1611_s29 + $0xa4] sm:$0xf0]  ;;  %v1330_v46 = vld [vmem:[%s1611_s29 + $0xa4] sm:$0xf]  ;;  %v1134_v48 = vor.u32 %v1315_v41, %v1133_v40  ;;  %v1138_v49 = vor.u32 %v1314_v42, %v1135_v43 }
  0x19   : > { %597 = vmatpush.bf16.msra.mxu0 %v1346_v6  ;;  %1456 = vmatpush.bf16.msra.mxu2 %v1346_v6  ;;  %v1199_v47 = vld [vmem:[%s1611_s29 + $0xa8] sm:$0xf0]  ;;  %v1198_v50 = vor.u32 %v1331_v45, %v1197_v44  ;;  %v1141_v52 = vld [vmem:[%s1611_s29 + $0x30] sm:$0xf]  ;;  %v1317_v53 = vld [vmem:[%s1611_s29 + $0x34] sm:$0xf0] }
  0x1a   : > { %686 = vmatpush.bf16.msra.mxu1 %v1354_v7  ;;  %1464 = vmatpush.bf16.msra.mxu3 %v1354_v7  ;;  %v1202_v51 = vor.u32 %v1330_v46, %v1199_v47  ;;  %v1316_v54 = vld [vmem:[%s1611_s29 + $0x34] sm:$0xf]  ;;  %v1143_v55 = vld [vmem:[%s1611_s29 + $0x38] sm:$0xf0]  ;;  %v1205_v56 = vld [vmem:[%s1611_s29 + $0xb0] sm:$0xf]  ;;  %v1142_v60 = vor.u32 %v1317_v53, %v1141_v52 }
  0x1b   : > { %v1333_v57 = vld [vmem:[%s1611_s29 + $0xb4] sm:$0xf0]  ;;  %v1332_v58 = vld [vmem:[%s1611_s29 + $0xb4] sm:$0xf]  ;;  %v1207_v59 = vld [vmem:[%s1611_s29 + $0xb8] sm:$0xf0]  ;;  %v1146_v61 = vor.u32 %v1316_v54, %v1143_v55 }
  0x1c   : > { %v1206_v62 = vor.u32 %v1333_v57, %v1205_v56  ;;  %v1210_v63 = vor.u32 %v1332_v58, %v1207_v59  ;;  %v1149_v0 = vld [vmem:[%s1611_s29 + $0x40] sm:$0xf]  ;;  %v1319_v1 = vld [vmem:[%s1611_s29 + $0x44] sm:$0xf0]  ;;  %v1318_v2 = vld [vmem:[%s1611_s29 + $0x44] sm:$0xf] }
  0x1d   : > { %598 = vmatpush.bf16.msra.mxu0 %v1345_v8  ;;  %1457 = vmatpush.bf16.msra.mxu2 %v1345_v8  ;;  %v1151_v3 = vld [vmem:[%s1611_s29 + $0x48] sm:$0xf0]  ;;  %v1213_v4 = vld [vmem:[%s1611_s29 + $0xc0] sm:$0xf]  ;;  %v1335_v5 = vld [vmem:[%s1611_s29 + $0xc4] sm:$0xf0]  ;;  %v1150_v8 = vor.u32 %v1319_v1, %v1149_v0 }
  0x1e   : > { %687 = vmatpush.bf16.msra.mxu1 %v1353_v9  ;;  %1465 = vmatpush.bf16.msra.mxu3 %v1353_v9  ;;  %v1334_v6 = vld [vmem:[%s1611_s29 + $0xc4] sm:$0xf]  ;;  %v1215_v7 = vld [vmem:[%s1611_s29 + $0xc8] sm:$0xf0]  ;;  %v1154_v9 = vor.u32 %v1318_v2, %v1151_v3  ;;  %v1221_v16 = vld [vmem:[%s1611_s29 + $0xd0] sm:$0xf] }
  0x1f   : > { %v1337_v17 = vld [vmem:[%s1611_s29 + $0xd4] sm:$0xf0]  ;;  %v1336_v18 = vld [vmem:[%s1611_s29 + $0xd4] sm:$0xf]  ;;  %v1223_v19 = vld [vmem:[%s1611_s29 + $0xd8] sm:$0xf0] }
  0x20   : > { %v1222_v22 = vor.u32 %v1337_v17, %v1221_v16  ;;  %v1226_v23 = vor.u32 %v1336_v18, %v1223_v19  ;;  %v1229_v28 = vld [vmem:[%s1611_s29 + $0xe0] sm:$0xf]  ;;  %v1339_v29 = vld [vmem:[%s1611_s29 + $0xe4] sm:$0xf0]  ;;  %v1338_v30 = vld [vmem:[%s1611_s29 + $0xe4] sm:$0xf] }
  0x21   : > { %599 = vmatpush.bf16.msra.mxu0 %v1344_v10  ;;  %1458 = vmatpush.bf16.msra.mxu2 %v1344_v10  ;;  %v1214_v10 = vor.u32 %v1335_v5, %v1213_v4  ;;  %v1231_v31 = vld [vmem:[%s1611_s29 + $0xe8] sm:$0xf0]  ;;  %v1230_v34 = vor.u32 %v1339_v29, %v1229_v28  ;;  %v1237_v40 = vld [vmem:[%s1611_s29 + $0xf0] sm:$0xf]  ;;  %v1341_v41 = vld [vmem:[%s1611_s29 + $0xf4] sm:$0xf0] }
  0x22   : > { %688 = vmatpush.bf16.msra.mxu1 %v1352_v11  ;;  %1466 = vmatpush.bf16.msra.mxu3 %v1352_v11  ;;  %v1218_v11 = vor.u32 %v1334_v6, %v1215_v7  ;;  %v1234_v35 = vor.u32 %v1338_v30, %v1231_v31  ;;  %v1340_v42 = vld [vmem:[%s1611_s29 + $0xf4] sm:$0xf]  ;;  %v1239_v43 = vld [vmem:[%s1611_s29 + $0xf8] sm:$0xf0]  ;;  %v1238_v46 = vor.u32 %v1341_v41, %v1237_v40 }
  0x23   : > { %v1242_v47 = vor.u32 %v1340_v42, %v1239_v43 }
  0x25   : > { %600 = vmatpush.bf16.msra.mxu0 %v1343_v12  ;;  %1459 = vmatpush.bf16.msra.mxu2 %v1343_v12  ;;  %v1157_v12 = vld [vmem:[%s1611_s29 + $0x50] sm:$0xf] }
  0x26   : > { %689 = vmatpush.bf16.msra.mxu1 %v1351_v13  ;;  %1467 = vmatpush.bf16.msra.mxu3 %v1351_v13  ;;  %v1321_v13 = vld [vmem:[%s1611_s29 + $0x54] sm:$0xf0] }
  0x27   : > { %v1158_v20 = vor.u32 %v1321_v13, %v1157_v12 }
  0x29   : > { %601 = vmatpush.bf16.msra.mxu0 %v1342_v14  ;;  %1460 = vmatpush.bf16.msra.mxu2 %v1342_v14  ;;  %v1320_v14 = vld [vmem:[%s1611_s29 + $0x54] sm:$0xf] }
  0x2a   : > { %690 = vmatpush.bf16.msra.mxu1 %v1350_v15  ;;  %1468 = vmatpush.bf16.msra.mxu3 %v1350_v15  ;;  %v1159_v15 = vld [vmem:[%s1611_s29 + $0x58] sm:$0xf0] }
  0x2b   : > { %v1162_v21 = vor.u32 %v1320_v14, %v1159_v15 }
  0x2c   : > { %602 = vmatmul.bf16.vlgmr.msra.gmra.mxu0 %v1118_v24  ;;  %642 = vmatmul.bf16.vlgmr.msra.gmra.mxu2 %v1182_v26  ;;  %v1165_v24 = vld [vmem:[%s1611_s29 + $0x60] sm:$0xf]  ;;  %v1322_v26 = vld [vmem:[%s1611_s29 + $0x64] sm:$0xf] }
  0x2d   : > { %691 = vmatmul.bf16.vlgmr.msra.gmra.mxu1 %v1122_v25  ;;  %731 = vmatmul.bf16.vlgmr.msra.gmra.mxu3 %v1186_v27  ;;  %v1323_v25 = vld [vmem:[%s1611_s29 + $0x64] sm:$0xf0]  ;;  %v1167_v27 = vld [vmem:[%s1611_s29 + $0x68] sm:$0xf0] }
  0x2e   : > { %v1166_v32 = vor.u32 %v1323_v25, %v1165_v24  ;;  %v1170_v33 = vor.u32 %v1322_v26, %v1167_v27 }
  0x3c   : > { %607 = vmatmul.bf16.gmra.mxu0 %v1126_v36  ;;  %647 = vmatmul.bf16.gmra.mxu2 %v1190_v38  ;;  %v1173_v36 = vld [vmem:[%s1611_s29 + $0x70] sm:$0xf]  ;;  %v1324_v38 = vld [vmem:[%s1611_s29 + $0x74] sm:$0xf] }
  0x3d   : > { %696 = vmatmul.bf16.gmra.mxu1 %v1130_v37  ;;  %736 = vmatmul.bf16.gmra.mxu3 %v1194_v39  ;;  %v1325_v37 = vld [vmem:[%s1611_s29 + $0x74] sm:$0xf0]  ;;  %v1175_v39 = vld [vmem:[%s1611_s29 + $0x78] sm:$0xf0] }
  0x3e   : > { %v1174_v44 = vor.u32 %v1325_v37, %v1173_v36  ;;  %v1178_v45 = vor.u32 %v1324_v38, %v1175_v39 }
  0x4c   : > { %612 = vmatmul.bf16.gmra.mxu0 %v1134_v48  ;;  %652 = vmatmul.bf16.gmra.mxu2 %v1198_v50 }
  0x4d   : > { %701 = vmatmul.bf16.gmra.mxu1 %v1138_v49  ;;  %741 = vmatmul.bf16.gmra.mxu3 %v1202_v51 }
  0x5c   : > { %617 = vmatmul.bf16.gmra.mxu0 %v1142_v60  ;;  %657 = vmatmul.bf16.gmra.mxu2 %v1206_v62 }
  0x5d   : > { %706 = vmatmul.bf16.gmra.mxu1 %v1146_v61  ;;  %746 = vmatmul.bf16.gmra.mxu3 %v1210_v63 }
  0x6c   : > { %622 = vmatmul.bf16.gmra.mxu0 %v1150_v8  ;;  %662 = vmatmul.bf16.gmra.mxu2 %v1214_v10 }
  0x6d   : > { %711 = vmatmul.bf16.gmra.mxu1 %v1154_v9  ;;  %751 = vmatmul.bf16.gmra.mxu3 %v1218_v11 }
  0x7c   : > { %627 = vmatmul.bf16.gmra.mxu0 %v1158_v20  ;;  %667 = vmatmul.bf16.gmra.mxu2 %v1222_v22 }
  0x7d   : > { %716 = vmatmul.bf16.gmra.mxu1 %v1162_v21  ;;  %756 = vmatmul.bf16.gmra.mxu3 %v1226_v23 }
  0x8c   : > { %632 = vmatmul.bf16.gmra.mxu0 %v1166_v32  ;;  %672 = vmatmul.bf16.gmra.mxu2 %v1230_v34 }
  0x8d   : > { %721 = vmatmul.bf16.gmra.mxu1 %v1170_v33  ;;  %761 = vmatmul.bf16.gmra.mxu3 %v1234_v35 }
  0x9c   : > { %637 = vmatmul.bf16.gmra.mxu0 %v1174_v44  ;;  %677 = vmatmul.bf16.gmra.mxu2 %v1238_v46 }
  0x9d   : > { %726 = vmatmul.bf16.gmra.mxu1 %v1178_v45  ;;  %766 = vmatmul.bf16.gmra.mxu3 %v1242_v47 }
  0xa9   : > { %v603_v48 = vpop.f32.mrf.mxu0 }
  0xaa   : > { %v692_v49 = vpop.f32.mrf.mxu1 }
  0xab   : > { %v693_v50 = vadd.f32 %v692_v49, %v603_v48 }
  0xad   : > { %v874_v56 = vmul.f32 %v693_v50, %v693_v50 }
  0xaf   : > { %v643_v51 = vpop.f32.mrf.mxu2 }
  0xb0   : > { %v732_v52 = vpop.f32.mrf.mxu3 }
  0xb1   : > { %v605_v53 = vpop.f32.mrf.mxu0  ;;  %v1690_v61 = vadd.f32 %v732_v52, %v643_v51 }
  0xb2   : > { %v694_v54 = vpop.f32.mrf.mxu1 }
  0xb3   : > { %v695_v55 = vadd.f32 %v694_v54, %v605_v53 }
  0xb5   : > { %v1361_v57 = vpack.c.bf16 %v695_v55, %v693_v50  ;;  %v836_v58 = vadd.f32 %v695_v55, %v693_v50  ;;  %v875_v59 = vmul.f32 %v695_v55, %v695_v55 }
  0xb7   : > { %1362 = vst [vmem:[%s1687_s12] sm:$0xff] %v1361_v57   ;;  %v906_v60 = vadd.f32 %v875_v59, %v874_v56  ;;  %v645_v62 = vpop.f32.mrf.mxu2 }
  0xb8   : > { %v734_v63 = vpop.f32.mrf.mxu3 }
  0xb9   : > { %v608_v0 = vpop.f32.mrf.mxu0  ;;  %v1692_v2 = vadd.f32 %v734_v63, %v645_v62 }
  0xba   : > { %v697_v1 = vpop.f32.mrf.mxu1 }
  0xbb   : > { %v698_v3 = vadd.f32 %v697_v1, %v608_v0  ;;  %v1401_v4 = vpack.c.bf16 %v1692_v2, %v1690_v61 }
  0xbd   : > { %v837_v5 = vadd.f32 %v836_v58, %v698_v3  ;;  %v876_v6 = vmul.f32 %v698_v3, %v698_v3  ;;  %1445 = vst [vmem:[%s1687_s12 + $0x40] sm:$0xff] %v1401_v4  }
  0xbf   : > { %v907_v7 = vadd.f32 %v906_v60, %v876_v6  ;;  %v648_v8 = vpop.f32.mrf.mxu2 }
  0xc0   : > { %v737_v9 = vpop.f32.mrf.mxu3 }
  0xc1   : > { %v610_v10 = vpop.f32.mrf.mxu0  ;;  %v1702_v17 = vadd.f32 %v737_v9, %v648_v8 }
  0xc2   : > { %v699_v11 = vpop.f32.mrf.mxu1 }
  0xc3   : > { %v700_v12 = vadd.f32 %v699_v11, %v610_v10 }
  0xc5   : > { %v1366_v13 = vpack.c.bf16 %v700_v12, %v698_v3  ;;  %v1697_v14 = vadd.f32 %v837_v5, %v700_v12  ;;  %v877_v15 = vmul.f32 %v700_v12, %v700_v12 }
  0xc7   : > { %1438 = vst [vmem:[%s1687_s12 + $0x8] sm:$0xff] %v1366_v13   ;;  %v1700_v16 = vadd.f32 %v907_v7, %v877_v15  ;;  %v650_v18 = vpop.f32.mrf.mxu2 }
  0xc8   : > { %v739_v19 = vpop.f32.mrf.mxu3 }
  0xc9   : > { %v613_v20 = vpop.f32.mrf.mxu0  ;;  %v1704_v22 = vadd.f32 %v739_v19, %v650_v18 }
  0xca   : > { %v702_v21 = vpop.f32.mrf.mxu1 }
  0xcb   : > { %v1406_v23 = vpack.c.bf16 %v1704_v22, %v1702_v17  ;;  %v703_v28 = vadd.f32 %v702_v21, %v613_v20 }
  0xcd   : > { %1446 = vst [vmem:[%s1687_s12 + $0x48] sm:$0xff] %v1406_v23   ;;  %v878_v20 = vmul.f32 %v703_v28, %v703_v28 }
  0xcf   : > { %v653_v24 = vpop.f32.mrf.mxu2 }
  0xd0   : > { %v742_v25 = vpop.f32.mrf.mxu3 }
  0xd1   : > { %v615_v26 = vpop.f32.mrf.mxu0  ;;  %v1713_v31 = vadd.f32 %v742_v25, %v653_v24  ;;  %v839_v24 = vadd.f32 %v1697_v14, %v703_v28  ;;  %v909_v25 = vadd.f32 %v1700_v16, %v878_v20 }
  0xd2   : > { %v704_v27 = vpop.f32.mrf.mxu1 }
  0xd3   : > { %v1709_v29 = vadd.f32 %v704_v27, %v615_v26 }
  0xd5   : > { %v1371_v30 = vpack.c.bf16 %v1709_v29, %v703_v28  ;;  %v879_v23 = vmul.f32 %v1709_v29, %v1709_v29  ;;  %v840_v26 = vadd.f32 %v839_v24, %v1709_v29 }
  0xd7   : > { %1439 = vst [vmem:[%s1687_s12 + $0x10] sm:$0xff] %v1371_v30   ;;  %v655_v32 = vpop.f32.mrf.mxu2 }
  0xd8   : > { %v744_v33 = vpop.f32.mrf.mxu3 }
  0xd9   : > { %v618_v34 = vpop.f32.mrf.mxu0  ;;  %v1715_v36 = vadd.f32 %v744_v33, %v655_v32  ;;  %v910_v33 = vadd.f32 %v909_v25, %v879_v23 }
  0xda   : > { %v707_v35 = vpop.f32.mrf.mxu1 }
  0xdb   : > { %v1411_v37 = vpack.c.bf16 %v1715_v36, %v1713_v31  ;;  %v708_v42 = vadd.f32 %v707_v35, %v618_v34 }
  0xdd   : > { %1447 = vst [vmem:[%s1687_s12 + $0x50] sm:$0xff] %v1411_v37   ;;  %v880_v27 = vmul.f32 %v708_v42, %v708_v42  ;;  %v841_v37 = vadd.f32 %v840_v26, %v708_v42  ;;  %v890_v26 = vmul.f32 %v1690_v61, %v1690_v61 }
  0xdf   : > { %v658_v38 = vpop.f32.mrf.mxu2 }
  0xe0   : > { %v747_v39 = vpop.f32.mrf.mxu3 }
  0xe1   : > { %v620_v40 = vpop.f32.mrf.mxu0  ;;  %v1721_v45 = vadd.f32 %v747_v39, %v658_v38 }
  0xe2   : > { %v709_v41 = vpop.f32.mrf.mxu1 }
  0xe3   : > { %v710_v43 = vadd.f32 %v709_v41, %v620_v40  ;;  %v911_v41 = vadd.f32 %v910_v33, %v880_v27  ;;  %v891_v33 = vmul.f32 %v1692_v2, %v1692_v2 }
  0xe5   : > { %v1376_v44 = vpack.c.bf16 %v710_v43, %v708_v42  ;;  %v881_v38 = vmul.f32 %v710_v43, %v710_v43 }
  0xe7   : > { %1440 = vst [vmem:[%s1687_s12 + $0x18] sm:$0xff] %v1376_v44   ;;  %v660_v46 = vpop.f32.mrf.mxu2  ;;  %v842_v44 = vadd.f32 %v841_v37, %v710_v43  ;;  %v912_v14 = vadd.f32 %v911_v41, %v881_v38 }
  0xe8   : > { %v749_v47 = vpop.f32.mrf.mxu3 }
  0xe9   : > { %v623_v48 = vpop.f32.mrf.mxu0  ;;  %v1723_v50 = vadd.f32 %v749_v47, %v660_v46 }
  0xea   : > { %v712_v49 = vpop.f32.mrf.mxu1 }
  0xeb   : > { %v1416_v51 = vpack.c.bf16 %v1723_v50, %v1721_v45  ;;  %v713_v56 = vadd.f32 %v712_v49, %v623_v48 }
  0xed   : > { %1448 = vst [vmem:[%s1687_s12 + $0x58] sm:$0xff] %v1416_v51   ;;  %v882_v46 = vmul.f32 %v713_v56, %v713_v56  ;;  %v843_v28 = vadd.f32 %v842_v44, %v713_v56 }
  0xef   : > { %v663_v52 = vpop.f32.mrf.mxu2  ;;  %v913_v48 = vadd.f32 %v912_v14, %v882_v46 }
  0xf0   : > { %v752_v53 = vpop.f32.mrf.mxu3 }
  0xf1   : > { %v625_v54 = vpop.f32.mrf.mxu0  ;;  %v1729_v59 = vadd.f32 %v752_v53, %v663_v52 }
  0xf2   : > { %v714_v55 = vpop.f32.mrf.mxu1 }
  0xf3   : > { %v715_v57 = vadd.f32 %v714_v55, %v625_v54 }
  0xf5   : > { %v1381_v58 = vpack.c.bf16 %v715_v57, %v713_v56  ;;  %v883_v16 = vmul.f32 %v715_v57, %v715_v57  ;;  %v844_v49 = vadd.f32 %v843_v28, %v715_v57 }
  0xf7   : > { %1441 = vst [vmem:[%s1687_s12 + $0x20] sm:$0xff] %v1381_v58   ;;  %v665_v60 = vpop.f32.mrf.mxu2  ;;  %v914_v58 = vadd.f32 %v913_v48, %v883_v16  ;;  %v895_v48 = vmul.f32 %v1715_v36, %v1715_v36 }
  0xf8   : > { %v754_v62 = vpop.f32.mrf.mxu3 }
  0xf9   : > { %v628_v63 = vpop.f32.mrf.mxu0  ;;  %v1731_v1 = vadd.f32 %v754_v62, %v665_v60 }
  0xfa   : > { %v717_v0 = vpop.f32.mrf.mxu1 }
  0xfb   : > { %v1421_v3 = vpack.c.bf16 %v1731_v1, %v1729_v59  ;;  %v718_v8 = vadd.f32 %v717_v0, %v628_v63 }
  0xfd   : > { %1449 = vst [vmem:[%s1687_s12 + $0x60] sm:$0xff] %v1421_v3   ;;  %v884_v51 = vmul.f32 %v718_v8, %v718_v8  ;;  %v845_v43 = vadd.f32 %v844_v49, %v718_v8 }
  0xff   : > { %v668_v4 = vpop.f32.mrf.mxu2  ;;  %v915_v62 = vadd.f32 %v914_v58, %v884_v51  ;;  %v896_v51 = vmul.f32 %v1721_v45, %v1721_v45 }
 0x100   : > { %v757_v5 = vpop.f32.mrf.mxu3 }
 0x101   : > { %v630_v6 = vpop.f32.mrf.mxu0  ;;  %v1737_v11 = vadd.f32 %v757_v5, %v668_v4 }
 0x102   : > { %v719_v7 = vpop.f32.mrf.mxu1 }
 0x103   : > { %v720_v9 = vadd.f32 %v719_v7, %v630_v6 }
 0x105   : > { %v1386_v10 = vpack.c.bf16 %v720_v9, %v718_v8  ;;  %v885_v60 = vmul.f32 %v720_v9, %v720_v9  ;;  %v846_v63 = vadd.f32 %v845_v43, %v720_v9 }
 0x107   : > { %1442 = vst [vmem:[%s1687_s12 + $0x28] sm:$0xff] %v1386_v10   ;;  %v670_v12 = vpop.f32.mrf.mxu2  ;;  %v916_v4 = vadd.f32 %v915_v62, %v885_v60 }
 0x108   : > { %v759_v13 = vpop.f32.mrf.mxu3 }
 0x109   : > { %v633_v15 = vpop.f32.mrf.mxu0  ;;  %v1739_v19 = vadd.f32 %v759_v13, %v670_v12 }
 0x10a   : > { %v722_v18 = vpop.f32.mrf.mxu1 }
 0x10b   : > { %v1426_v21 = vpack.c.bf16 %v1739_v19, %v1737_v11  ;;  %v723_v39 = vadd.f32 %v722_v18, %v633_v15 }
 0x10d   : > { %1450 = vst [vmem:[%s1687_s12 + $0x68] sm:$0xff] %v1426_v21   ;;  %v886_v0 = vmul.f32 %v723_v39, %v723_v39  ;;  %v847_v57 = vadd.f32 %v846_v63, %v723_v39 }
 0x10f   : > { %v673_v30 = vpop.f32.mrf.mxu2  ;;  %v917_v6 = vadd.f32 %v916_v4, %v886_v0 }
 0x110   : > { %v762_v32 = vpop.f32.mrf.mxu3 }
 0x111   : > { %v635_v34 = vpop.f32.mrf.mxu0  ;;  %v1750_v29 = vadd.f32 %v762_v32, %v673_v30 }
 0x112   : > { %v724_v35 = vpop.f32.mrf.mxu1 }
 0x113   : > { %v725_v40 = vadd.f32 %v724_v35, %v635_v34  ;;  %v902_v4 = vmul.f32 %v1750_v29, %v1750_v29 }
 0x115   : > { %v1391_v47 = vpack.c.bf16 %v725_v40, %v723_v39  ;;  %v887_v5 = vmul.f32 %v725_v40, %v725_v40  ;;  %v848_v7 = vadd.f32 %v847_v57, %v725_v40  ;;  %v892_v40 = vmul.f32 %v1702_v17, %v1702_v17 }
 0x117   : > { %1443 = vst [vmem:[%s1687_s12 + $0x30] sm:$0xff] %v1391_v47   ;;  %v675_v52 = vpop.f32.mrf.mxu2  ;;  %v918_v18 = vadd.f32 %v917_v6, %v887_v5 }
 0x118   : > { %v764_v53 = vpop.f32.mrf.mxu3 }
 0x119   : > { %v638_v42 = vpop.f32.mrf.mxu0  ;;  %v1752_v55 = vadd.f32 %v764_v53, %v675_v52  ;;  %v897_v53 = vmul.f32 %v1723_v50, %v1723_v50 }
 0x11a   : > { %v727_v54 = vpop.f32.mrf.mxu1 }
 0x11b   : > { %v1431_v56 = vpack.c.bf16 %v1752_v55, %v1750_v29  ;;  %v728_v3 = vadd.f32 %v727_v54, %v638_v42 }
 0x11d   : > { %1451 = vst [vmem:[%s1687_s12 + $0x70] sm:$0xff] %v1431_v56   ;;  %v888_v10 = vmul.f32 %v728_v3, %v728_v3  ;;  %v849_v20 = vadd.f32 %v848_v7, %v728_v3 }
 0x11f   : > { %v678_v12 = vpop.f32.mrf.mxu2  ;;  %v919_v23 = vadd.f32 %v918_v18, %v888_v10 }
 0x120   : > { %v767_v13 = vpop.f32.mrf.mxu3 }
 0x121   : > { %v640_v15 = vpop.f32.mrf.mxu0  ;;  %v768_v32 = vadd.f32 %v767_v13, %v678_v12 }
 0x122   : > { %v729_v8 = vpop.f32.mrf.mxu1 }
 0x123   : > { %v730_v21 = vadd.f32 %v729_v8, %v640_v15  ;;  %v904_v10 = vmul.f32 %v768_v32, %v768_v32 }
 0x125   : > { %v1396_v24 = vpack.c.bf16 %v730_v21, %v728_v3  ;;  %v850_v9 = vadd.f32 %v849_v20, %v730_v21  ;;  %v889_v25 = vmul.f32 %v730_v21, %v730_v21 }
 0x127   : > { %1444 = vst [vmem:[%s1687_s12 + $0x38] sm:$0xff] %v1396_v24   ;;  %v851_v27 = vadd.f32 %v850_v9, %v1690_v61  ;;  %v920_v30 = vadd.f32 %v919_v23, %v889_v25  ;;  %v680_v37 = vpop.f32.mrf.mxu2  ;;  %v893_v61 = vmul.f32 %v1704_v22, %v1704_v22 }
 0x128   : > { %v769_v38 = vpop.f32.mrf.mxu3 }
 0x129   : > { %v852_v34 = vadd.f32 %v851_v27, %v1692_v2  ;;  %v921_v35 = vadd.f32 %v920_v30, %v890_v26  ;;  %v770_v39 = vadd.f32 %v769_v38, %v680_v37  ;;  %v894_v2 = vmul.f32 %v1713_v31, %v1713_v31 }
 0x12b   : > { %v853_v41 = vadd.f32 %v852_v34, %v1702_v17  ;;  %v922_v44 = vadd.f32 %v921_v35, %v891_v33  ;;  %v1436_v46 = vpack.c.bf16 %v770_v39, %v768_v32  ;;  %v905_v13 = vmul.f32 %v770_v39, %v770_v39 }
 0x12d   : > { %v854_v47 = vadd.f32 %v853_v41, %v1704_v22  ;;  %v923_v14 = vadd.f32 %v922_v44, %v892_v40  ;;  %1452 = vst [vmem:[%s1687_s12 + $0x78] sm:$0xff] %v1436_v46  }
 0x12f   : > { %v855_v28 = vadd.f32 %v854_v47, %v1713_v31  ;;  %v924_v16 = vadd.f32 %v923_v14, %v893_v61  ;;  %v898_v31 = vmul.f32 %v1729_v59, %v1729_v59 }
 0x131   : > { %v856_v17 = vadd.f32 %v855_v28, %v1715_v36  ;;  %v925_v49 = vadd.f32 %v924_v16, %v894_v2  ;;  %v899_v36 = vmul.f32 %v1731_v1, %v1731_v1 }
 0x133   : > { %v926_v52 = vadd.f32 %v925_v49, %v895_v48  ;;  %v857_v22 = vadd.f32 %v856_v17, %v1721_v45  ;;  %v900_v45 = vmul.f32 %v1737_v11, %v1737_v11 }
 0x135   : > { %v858_v42 = vadd.f32 %v857_v22, %v1723_v50  ;;  %v927_v54 = vadd.f32 %v926_v52, %v896_v51  ;;  %v901_v50 = vmul.f32 %v1739_v19, %v1739_v19 }
 0x137   : > { %v859_v58 = vadd.f32 %v858_v42, %v1729_v59  ;;  %v928_v43 = vadd.f32 %v927_v54, %v897_v53 }
 0x139   : > { %v860_v60 = vadd.f32 %v859_v58, %v1731_v1  ;;  %v929_v56 = vadd.f32 %v928_v43, %v898_v31 }
 0x13b   : > { %v861_v62 = vadd.f32 %v860_v60, %v1737_v11  ;;  %v930_v63 = vadd.f32 %v929_v56, %v899_v36  ;;  %v903_v11 = vmul.f32 %v1752_v55, %v1752_v55 }
 0x13d   : > { %v862_v0 = vadd.f32 %v861_v62, %v1739_v19  ;;  %v931_v59 = vadd.f32 %v930_v63, %v900_v45 }
 0x13f   : > { %v863_v3 = vadd.f32 %v862_v0, %v1750_v29  ;;  %v932_v1 = vadd.f32 %v931_v59, %v901_v50 }
 0x141   : > { %v933_v57 = vadd.f32 %v932_v1, %v902_v4  ;;  %v864_v5 = vadd.f32 %v863_v3, %v1752_v55 }
 0x143   : > { %v934_v6 = vadd.f32 %v933_v57, %v903_v11  ;;  %v865_v7 = vadd.f32 %v864_v5, %v768_v32 }
 0x145   : > { %v935_v12 = vadd.f32 %v934_v6, %v904_v10  ;;  %v866_v19 = vadd.f32 %v865_v7, %v770_v39 }
 0x147   : > { %v867_v15 = vrot.slane %v866_v19, 4  ;;  %v936_v8 = vadd.f32 %v935_v12, %v905_v13 }
 0x149   : > { %v868_v18 = vadd.f32 %v867_v15, %v866_v19  ;;  %v937_v20 = vrot.slane %v936_v8, 4 }
 0x14b   : > { %v869_v29 = vrot.slane %v868_v18, 2  ;;  %v938_v21 = vadd.f32 %v937_v20, %v936_v8 }
 0x14d   : > { %v870_v23 = vadd.f32 %v869_v29, %v868_v18  ;;  %v939_v24 = vrot.slane %v938_v21, 2 }
 0x14f   : > { %v871_v9 = vrot.slane %v870_v23, 1  ;;  %v940_v25 = vadd.f32 %v939_v24, %v938_v21 }
 0x151   : > { %v872_v55 = vadd.f32 %v871_v9, %v870_v23  ;;  %v941_v26 = vrot.slane %v940_v25, 1 }
 0x153   : > { %873 = vst [vmem:[%s267_s14] sm:$0x1] %v872_v55  ;;  %v942_v27 = vadd.f32 %v941_v26, %v940_v25 }
 0x155   : > { %943 = vst [vmem:[%s273_s21] sm:$0x1] %v942_v27 }
 0x156 PF: > { %s15_s17 = sadd.s32 1, %s1515_s17   ;;  %s1823_s15 = smov %s1511_s16 }
 0x157   : > { %p12_p6 = scmp.ge.s32.totalorder %s15_s17, 4   ;;  %s1824_s16 = smov %s1826_s18 }
 0x159   :  { %14 = sbr.rel (!%p12_p6) target bundleno = 2 (0x2), region = 85 }

// kernel: resnet_forward.23
= control target key start
LH: loop header
LB: loop body
LE: loop exit
PB: predicated region body
PF: predicated region fallthrough
CT: control target
= control target key end

     0   :  { %s674_s15 = smov 0   ;;  %s676_s16 = smov 0   ;;  %s742_s0 = inlined_call_operand.vmem [shape: bf16[32,128], index: 0, kind: input, shape index: {}]   ;;  %s743_s1 = inlined_call_operand.vmem [shape: bf16[128,128], index: 1, kind: input, shape index: {}]   ;;  %s744_s2 = inlined_call_operand.vmem [shape: bf16[32,128], index: 2, kind: output, shape index: {0}]   ;;  %s745_s3 = inlined_call_operand.vmem [shape: f32[2,1,128], index: 3, kind: output, shape index: {1}]   ;;  %s746_s4 = inlined_call_operand.vmem [shape: f32[2,1,128], index: 4, kind: output, shape index: {2}]  }
   0x1   :  { %s678_s17 = smov 0  }
   0x2 LB: > { %s27_s18 = sadd.s32 1, %s643_s16  ;;  %p544_p0 = scmp.ge.s32.totalorder %s647_s17, 1  ;;  %s647_s17 = sphi %s678_s17, %s15_s17   ;;  %s643_s16 = sphi %s676_s16, %s748_s16   ;;  %s639_s15 = sphi %s674_s15, %s747_s15  }
   0x3   : > { %p29_p1 = scmp.ge.s32.totalorder %s27_s18, 2  ;;  %p195_p2 = scmp.lt.s32.totalorder %s647_s17, 3 }
   0x5   : > { %s750_s18 = smov (%p29_p1, %s27_s18), 0  ;;  %p196_p3 = pnand %p544_p0, %p195_p2 }
   0x6   : > { %s545_s27 = sshll.u32 (!%p196_p3), %s639_s15, 1  ;;  %p259_p5 = scmp.lt.s32.totalorder (!%p196_p3), %s639_s15, 1 }
   0x7   : > { %199 = sbr.rel (%p196_p3) target bundleno = 195 (0xc3), region = 28  ;;  %p241_p4 = scmp.lt.s32.totalorder (!%p196_p3), %s545_s27, 3 }
   0xc   : > { %v595_v0 = vld [vmem:[%s743_s1 + $0x38] sm:$0xff]  ;;  %v594_v1 = vld [vmem:[%s743_s1 + $0x30] sm:$0xff]  ;;  %v593_v2 = vld [vmem:[%s743_s1 + $0x28] sm:$0xff]  ;;  %s752_s27 = smov (!%p241_p4, %s545_s27), 3  ;;  %s754_s15 = smov (!%p259_p5, %s639_s15), 1 }
   0xd   : > { %343 = vmatpush.bf16.msra.mxu0 %v595_v0  ;;  %v592_v3 = vld [vmem:[%s743_s1 + $0x20] sm:$0xff]  ;;  %v591_v4 = vld [vmem:[%s743_s1 + $0x18] sm:$0xff]  ;;  %v590_v5 = vld [vmem:[%s743_s1 + $0x10] sm:$0xff]  ;;  %s546_s8 = sshll.u32 %s752_s27, 2  ;;  %s264_s23 = scalar_lea.vmem %s745_s3, %s754_s15 }
   0xe   : > { %v589_v6 = vld [vmem:[%s743_s1 + $0x8] sm:$0xff]  ;;  %v588_v7 = vld [vmem:[%s743_s1] sm:$0xff]  ;;  %s244_s13 = scalar_lea.vmem %s742_s0, %s546_s8  ;;  %s257_s20 = scalar_lea.vmem %s744_s2, %s546_s8 }
   0xf   : > { %v587_v8 = vld [vmem:[%s244_s13] sm:$0xff]  ;;  %s270_s26 = scalar_lea.vmem %s746_s4, %s754_s15 }
  0x11   : > { %344 = vmatpush.bf16.msra.mxu0 %v594_v1 }
  0x15   : > { %345 = vmatpush.bf16.msra.mxu0 %v593_v2 }
  0x19   : > { %346 = vmatpush.bf16.msra.mxu0 %v592_v3 }
  0x1d   : > { %347 = vmatpush.bf16.msra.mxu0 %v591_v4 }
  0x21   : > { %348 = vmatpush.bf16.msra.mxu0 %v590_v5 }
  0x25   : > { %349 = vmatpush.bf16.msra.mxu0 %v589_v6 }
  0x29   : > { %350 = vmatpush.bf16.msra.mxu0 %v588_v7 }
  0x2c   : > { %351 = vmatmul.bf16.vlgmr.msra.gmra.mxu0 %v587_v8 }
  0xa9   : > { %v352_v9 = vpop.f32.mrf.mxu0 }
  0xaa   : > { %v369_v11 = vmul.f32 %v352_v9, %v352_v9 }
  0xb1   : > { %v354_v10 = vpop.f32.mrf.mxu0 }
  0xb2   : > { %v599_v12 = vpack.c.bf16 %v354_v10, %v352_v9  ;;  %v361_v13 = vadd.f32 %v354_v10, %v352_v9  ;;  %v370_v14 = vmul.f32 %v354_v10, %v354_v10 }
  0xb4   : > { %600 = vst [vmem:[%s257_s20] sm:$0xff] %v599_v12   ;;  %v362_v15 = vrot.slane %v361_v13, 4  ;;  %v371_v16 = vadd.f32 %v370_v14, %v369_v11 }
  0xb6   : > { %v363_v17 = vadd.f32 %v362_v15, %v361_v13  ;;  %v372_v18 = vrot.slane %v371_v16, 4 }
  0xb8   : > { %v364_v19 = vrot.slane %v363_v17, 2  ;;  %v373_v20 = vadd.f32 %v372_v18, %v371_v16 }
  0xba   : > { %v365_v21 = vadd.f32 %v364_v19, %v363_v17  ;;  %v374_v22 = vrot.slane %v373_v20, 2 }
  0xbc   : > { %v366_v23 = vrot.slane %v365_v21, 1  ;;  %v375_v24 = vadd.f32 %v374_v22, %v373_v20 }
  0xbe   : > { %v367_v25 = vadd.f32 %v366_v23, %v365_v21  ;;  %v376_v26 = vrot.slane %v375_v24, 1 }
  0xc0   : > { %368 = vst [vmem:[%s264_s23] sm:$0x1] %v367_v25  ;;  %v377_v27 = vadd.f32 %v376_v26, %v375_v24 }
  0xc2   : > { %378 = vst [vmem:[%s270_s26] sm:$0x1] %v377_v27 }
  0xc3 PF: > { %s15_s17 = sadd.s32 1, %s647_s17   ;;  %s747_s15 = smov %s643_s16 }
  0xc4   : > { %p12_p6 = scmp.ge.s32.totalorder %s15_s17, 4   ;;  %s748_s16 = smov %s750_s18 }
  0xc6   :  { %14 = sbr.rel (!%p12_p6) target bundleno = 2 (0x2), region = 85 }

// kernel: resnet_forward.20
= control target key start
LH: loop header
LB: loop body
LE: loop exit
PB: predicated region body
PF: predicated region fallthrough
CT: control target
= control target key end

     0   :  { %s586_s21 = smov 0   ;;  %s681_s0 = inlined_call_operand.vmem [shape: bf16[128,128], index: 0, kind: input, shape index: {}]   ;;  %s682_s1 = inlined_call_operand.vmem [shape: f32[1,128], index: 1, kind: input, shape index: {}]   ;;  %s683_s2 = inlined_call_operand.vmem [shape: f32[1,128], index: 2, kind: input, shape index: {}]   ;;  %s684_s3 = inlined_call_operand.vmem [shape: bf16[128,128], index: 3, kind: input, shape index: {}]   ;;  %s685_s4 = inlined_call_operand.vmem [shape: f32[1,128], index: 4, kind: input, shape index: {}]   ;;  %s686_s5 = inlined_call_operand.vmem [shape: f32[1,128], index: 5, kind: input, shape index: {}]   ;;  %s687_s6 = inlined_call_operand.vmem [shape: bf16[128,128], index: 6, kind: output, shape index: {}]  }
   0x1 LB: > { %s457_s22 = sadd.s32 4294967295, %s549_s21   ;;  %p461_p0 = scmp.ge.s32.totalorder %s549_s21, 1  ;;  %s549_s21 = sphi %s586_s21, %s16_s21  }
   0x2   : > { %p224_p1 = scmp.lt.s32.totalorder %s549_s21, 3 }
   0x4   : > { %p225_p2 = pnand %p461_p0, %p224_p1 }
   0x5   : > { %s462_s23 = sshll.u32 (!%p225_p2), %s457_s22, 3 }
   0x6   : > { %228 = sbr.rel (%p225_p2) target bundleno = 40 (0x28), region = 44  ;;  %p260_p3 = scmp.lt.s32.totalorder (!%p225_p2), %s462_s23, 15 }
   0xb   : > { %s689_s23 = smov (!%p260_p3, %s462_s23), 15  ;;  %v611_v0 = vld [vmem:[%s682_s1] ss:$0 sm:$0xff] }
   0xc   : > { %s594_s24 = sshll.u32 %s689_s23, 2  ;;  %v616_v1 = vld [vmem:[%s685_s4] ss:$0 sm:$0xff] }
   0xd   : > { %s600_s27 = scalar_lea.vmem %s681_s0, %s594_s24  ;;  %s606_s30 = scalar_lea.vmem %s684_s3, %s594_s24  ;;  %v624_v7 = vld [vmem:[%s683_s2] ss:$0 sm:$0xff] }
   0xe   : > { %v471_v2 = vld [vmem:[%s600_s27] sm:$0xff]   ;;  %v522_v4 = vld [vmem:[%s600_s27 + $0x8] sm:$0xff]   ;;  %v523_v24 = vld [vmem:[%s600_s27 + $0x10] sm:$0xff]   ;;  %s657_s17 = scalar_lea.vmem %s687_s6, %s594_s24 }
   0xf   : > { %v487_v3 = vld [vmem:[%s606_s30] sm:$0xff]   ;;  %v472_v5 = vunpack.c.l.bf16 %v471_v2  ;;  %v473_v6 = vunpack.c.h.bf16 %v471_v2  ;;  %v525_v11 = vld [vmem:[%s606_s30 + $0x8] sm:$0xff]   ;;  %v476_v12 = vunpack.c.l.bf16 %v522_v4  ;;  %v477_v13 = vunpack.c.h.bf16 %v522_v4  ;;  %v526_v29 = vld [vmem:[%s606_s30 + $0x10] sm:$0xff]  }
  0x10   : > { %v488_v8 = vunpack.c.l.bf16 %v487_v3  ;;  %v489_v9 = vunpack.c.h.bf16 %v487_v3  ;;  %v629_v10 = vld [vmem:[%s686_s5] ss:$0 sm:$0xff]  ;;  %v492_v14 = vunpack.c.l.bf16 %v525_v11  ;;  %v493_v15 = vunpack.c.h.bf16 %v525_v11  ;;  %v524_v42 = vld [vmem:[%s600_s27 + $0x18] sm:$0xff]  }
  0x11   : > { %v297_v16 = vmul.f32 %v611_v0, %v472_v5  ;;  %v298_v17 = vmul.f32 %v611_v0, %v473_v6  ;;  %v299_v20 = vmul.f32 %v611_v0, %v476_v12  ;;  %v300_v21 = vmul.f32 %v611_v0, %v477_v13  ;;  %v527_v51 = vld [vmem:[%s606_s30 + $0x18] sm:$0xff]  }
  0x12   : > { %v337_v18 = vmul.f32 %v616_v1, %v488_v8  ;;  %v338_v19 = vmul.f32 %v616_v1, %v489_v9  ;;  %v339_v22 = vmul.f32 %v616_v1, %v492_v14  ;;  %v340_v23 = vmul.f32 %v616_v1, %v493_v15 }
  0x13   : > { %v309_v25 = vadd.f32 %v624_v7, %v297_v16  ;;  %v310_v26 = vadd.f32 %v624_v7, %v298_v17  ;;  %v311_v30 = vadd.f32 %v624_v7, %v299_v20  ;;  %v312_v31 = vadd.f32 %v624_v7, %v300_v21 }
  0x14   : > { %v349_v27 = vadd.f32 %v629_v10, %v337_v18  ;;  %v350_v28 = vadd.f32 %v629_v10, %v338_v19  ;;  %v351_v32 = vadd.f32 %v629_v10, %v339_v22  ;;  %v352_v33 = vadd.f32 %v629_v10, %v340_v23 }
  0x15   : > { %v480_v36 = vunpack.c.l.bf16 %v523_v24  ;;  %v481_v37 = vunpack.c.h.bf16 %v523_v24  ;;  %v496_v40 = vunpack.c.l.bf16 %v526_v29  ;;  %v497_v41 = vunpack.c.h.bf16 %v526_v29 }
  0x16   : > { %v357_v34 = vadd.f32 %v349_v27, %v309_v25  ;;  %v358_v35 = vadd.f32 %v350_v28, %v310_v26  ;;  %v359_v38 = vadd.f32 %v351_v32, %v311_v30  ;;  %v360_v39 = vadd.f32 %v352_v33, %v312_v31 }
  0x17   : > { %v301_v45 = vmul.f32 %v611_v0, %v480_v36  ;;  %v302_v46 = vmul.f32 %v611_v0, %v481_v37  ;;  %v341_v49 = vmul.f32 %v616_v1, %v496_v40  ;;  %v342_v50 = vmul.f32 %v616_v1, %v497_v41 }
  0x18   : > { %v365_v43 = vmax.f32 %v357_v34, 0.0  ;;  %v366_v44 = vmax.f32 %v358_v35, 0.0  ;;  %v367_v47 = vmax.f32 %v359_v38, 0.0  ;;  %v368_v48 = vmax.f32 %v360_v39, 0.0 }
  0x19   : > { %v313_v53 = vadd.f32 %v624_v7, %v301_v45  ;;  %v314_v54 = vadd.f32 %v624_v7, %v302_v46  ;;  %v484_v55 = vunpack.c.l.bf16 %v524_v42  ;;  %v353_v57 = vadd.f32 %v629_v10, %v341_v49 }
  0x1a   : > { %v505_v52 = vpack.c.bf16 %v366_v44, %v365_v43  ;;  %v510_v56 = vpack.c.bf16 %v368_v48, %v367_v47  ;;  %v354_v58 = vadd.f32 %v629_v10, %v342_v50  ;;  %v485_v59 = vunpack.c.h.bf16 %v524_v42 }
  0x1b   : > { %v303_v60 = vmul.f32 %v611_v0, %v484_v55  ;;  %v500_v61 = vunpack.c.l.bf16 %v527_v51  ;;  %v501_v62 = vunpack.c.h.bf16 %v527_v51  ;;  %v361_v63 = vadd.f32 %v353_v57, %v313_v53 }
  0x1c   : > { %506 = vst [vmem:[%s657_s17] sm:$0xff] %v505_v52   ;;  %v362_v2 = vadd.f32 %v354_v58, %v314_v54  ;;  %v304_v3 = vmul.f32 %v611_v0, %v485_v59 }
  0x1d   : > { %528 = vst [vmem:[%s657_s17 + $0x8] sm:$0xff] %v510_v56   ;;  %v315_v4 = vadd.f32 %v624_v7, %v303_v60  ;;  %v343_v5 = vmul.f32 %v616_v1, %v500_v61  ;;  %v344_v6 = vmul.f32 %v616_v1, %v501_v62  ;;  %v369_v8 = vmax.f32 %v361_v63, 0.0 }
  0x1e   : > { %v370_v9 = vmax.f32 %v362_v2, 0.0  ;;  %v316_v11 = vadd.f32 %v624_v7, %v304_v3 }
  0x1f   : > { %v355_v12 = vadd.f32 %v629_v10, %v343_v5  ;;  %v356_v13 = vadd.f32 %v629_v10, %v344_v6 }
  0x20   : > { %v515_v14 = vpack.c.bf16 %v370_v9, %v369_v8 }
  0x21   : > { %v363_v15 = vadd.f32 %v355_v12, %v315_v4  ;;  %v364_v16 = vadd.f32 %v356_v13, %v316_v11 }
  0x22   : > { %529 = vst [vmem:[%s657_s17 + $0x10] sm:$0xff] %v515_v14  }
  0x23   : > { %v371_v0 = vmax.f32 %v363_v15, 0.0  ;;  %v372_v17 = vmax.f32 %v364_v16, 0.0 }
  0x25   : > { %v520_v18 = vpack.c.bf16 %v372_v17, %v371_v0 }
  0x27   : > { %530 = vst [vmem:[%s657_s17 + $0x18] sm:$0xff] %v520_v18  }
  0x28 PF: > { %s16_s21 = sadd.s32 1, %s549_s21  }
  0x29   : > { %p13_p4 = scmp.ge.s32.totalorder %s16_s21, 4  }
  0x2b   :  { %15 = sbr.rel (!%p13_p4) target bundleno = 1 (0x1), region = 77 }

// kernel: resnet_forward.18
= control target key start
LH: loop header
LB: loop body
LE: loop exit
PB: predicated region body
PF: predicated region fallthrough
CT: control target
= control target key end

     0   :  { %s2574_s21 = smov 0   ;;  %s2576_s22 = smov 0   ;;  %s3413_s0 = inlined_call_operand.vmem [shape: bf16[2,10,10,128], index: 0, kind: input, shape index: {}, may-alias: {0,1,2}]   ;;  %s3414_s1 = inlined_call_operand.vmem [shape: bf16[2,10,10,128], index: 1, kind: input, shape index: {}, may-alias: {0,1,2}]   ;;  %s3415_s2 = inlined_call_operand.vmem [shape: bf16[2,10,10,128], index: 2, kind: input, shape index: {}, may-alias: {0,1,2}]   ;;  %s3416_s3 = inlined_call_operand.vmem [shape: bf16[1152,128], index: 3, kind: input, shape index: {}]   ;;  %s3417_s4 = inlined_call_operand.vmem [shape: bf16[2,8,8,128], index: 4, kind: output, shape index: {0}]   ;;  %s3418_s5 = inlined_call_operand.vmem [shape: f32[4,1,128], index: 5, kind: output, shape index: {1}]   ;;  %s3419_s6 = inlined_call_operand.vmem [shape: f32[4,1,128], index: 6, kind: output, shape index: {2}]  }
   0x1   :  { %s2578_s23 = smov 0   ;;  %s2580_s24 = smov 0  }
   0x2   :  { %s2582_s25 = smov 0  }
   0x3 LB: > { %s26_s26 = sadd.s32 1, %s2529_s23  ;;  %s29_s27 = sadd.s32 1, %s2533_s24  ;;  %s2537_s25 = sphi %s2582_s25, %s17_s25   ;;  %s2533_s24 = sphi %s2580_s24, %s3567_s24   ;;  %s2529_s23 = sphi %s2578_s23, %s3566_s23   ;;  %s2525_s22 = sphi %s2576_s22, %s3565_s22   ;;  %s2521_s21 = sphi %s2574_s21, %s3564_s21  }
   0x4   : > { %p27_p0 = scmp.ge.s32.totalorder %s26_s26, 2  ;;  %p1990_p1 = scmp.ge.s32.totalorder %s2537_s25, 1 }
   0x5   : > { %p309_p2 = scmp.lt.s32.totalorder %s2537_s25, 5 }
   0x6   : > { %s3569_s26 = smov (%p27_p0, %s26_s26), 0  ;;  %s3571_s27 = smov (!%p27_p0, %s29_s27), %s2533_s24 }
   0x7   : > { %p310_p3 = pnand %p1990_p1, %p309_p2  ;;  %p31_p4 = scmp.ge.s32.totalorder %s3571_s27, 2 }
   0x9   : > { %s3573_s27 = smov (%p31_p4, %s3571_s27), 0  ;;  %313 = sbr.rel (%p310_p3) target bundleno = 457 (0x1c9), region = 36 }
   0xe   : > { %v2611_v0 = vld [vmem:[%s3416_s3 + $0x38] sm:$0xff]  ;;  %s2624_s10 = sshll.u32 %s2521_s21, 2  ;;  %p392_p5 = scmp.lt.s32.totalorder %s2525_s22, 1  ;;  %v2638_v4 = vld [vmem:[%s3416_s3 + $0x30] sm:$0xff]  ;;  %v2669_v8 = vld [vmem:[%s3416_s3 + $0x28] sm:$0xff] }
   0xf   : > { %v2616_v1 = vld [vmem:[%s3416_s3 + $0x78] sm:$0xff]  ;;  %p394_p6 = scmp.lt.s32.totalorder %s2624_s10, 9  ;;  %1088 = vmatpush.bf16.msra.mxu0 %v2611_v0  ;;  %v2643_v5 = vld [vmem:[%s3416_s3 + $0x70] sm:$0xff]  ;;  %v2674_v9 = vld [vmem:[%s3416_s3 + $0x68] sm:$0xff]  ;;  %s3211_s9 = sadd.s32 4, %s2624_s10 }
  0x10   : > { %3484 = vst [vmem:[#allocation2_spill] sm:$0xff] %v2616_v1  ;;  %v2621_v2 = vld [vmem:[%s3416_s3 + $0xb8] sm:$0xff]  ;;  %1101 = vmatpush.bf16.msra.mxu1 %v2616_v1  ;;  %s2646_s17 = scalar_select %p392_p5, %s2525_s22, 1  ;;  %v2653_v6 = vld [vmem:[%s3416_s3 + $0xb0] sm:$0xff]  ;;  %v2681_v10 = vld [vmem:[%s3416_s3 + $0xa8] sm:$0xff] }
  0x11   : > { %v2630_v3 = vld [vmem:[%s3416_s3 + $0xf8] sm:$0xff]  ;;  %3485 = vst [vmem:[#allocation3_spill] sm:$0xff] %v2643_v5  ;;  %1114 = vmatpush.bf16.msra.mxu2 %v2621_v2  ;;  %v2658_v7 = vld [vmem:[%s3416_s3 + $0xf0] sm:$0xff]  ;;  %s395_s29 = scalar_select %p394_p6, %s2624_s10, 9  ;;  %v2686_v11 = vld [vmem:[%s3416_s3 + $0xe8] sm:$0xff] }
  0x12   : > { %1127 = vmatpush.bf16.msra.mxu3 %v2630_v3  ;;  %s2662_s30 = smul.u32 20, %s2646_s17  ;;  %3486 = vst [vmem:[#allocation4_spill] sm:$0xff] %v2674_v9  ;;  %v2694_v12 = vld [vmem:[%s3416_s3 + $0x20] sm:$0xff]  ;;  %v2718_v16 = vld [vmem:[%s3416_s3 + $0x18] sm:$0xff]  ;;  %v2749_v22 = vld [vmem:[%s3416_s3 + $0x10] sm:$0xff]  ;;  %p411_p7 = scmp.lt.s32.totalorder %s3211_s9, 9 }
  0x13   : > { %s1992_s7 = sshll.u32 %s395_s29, 1  ;;  %1089 = vmatpush.bf16.msra.mxu0 %v2638_v4  ;;  %3487 = vst [vmem:[#allocation5_spill] sm:$0xff] %v2681_v10  ;;  %v2699_v13 = vld [vmem:[%s3416_s3 + $0x60] sm:$0xff]  ;;  %v2723_v17 = vld [vmem:[%s3416_s3 + $0x58] sm:$0xff]  ;;  %v2754_v23 = vld [vmem:[%s3416_s3 + $0x50] sm:$0xff]  ;;  %p438_p8 = scmp.lt.s32.totalorder %s2624_s10, 7 }
  0x14   : > { %1102 = vmatpush.bf16.msra.mxu1 %v2643_v5  ;;  %s398_s18 = sadd.s32 %s2662_s30, %s1992_s7  ;;  %3488 = vst [vmem:[#allocation6_spill] sm:$0xff] %v2699_v13  ;;  %v2706_v14 = vld [vmem:[%s3416_s3 + $0xa0] sm:$0xff]  ;;  %v2735_v18 = vld [vmem:[%s3416_s3 + $0x98] sm:$0xff]  ;;  %v2761_v24 = vld [vmem:[%s3416_s3 + $0x90] sm:$0xff]  ;;  %s2001_s20 = sshll.u32 %s2646_s17, 3 }
  0x15   : > { %1115 = vmatpush.bf16.msra.mxu2 %v2653_v6  ;;  %3489 = vst [vmem:[#allocation7_spill] sm:$0xff] %v2706_v14  ;;  %v2711_v15 = vld [vmem:[%s3416_s3 + $0xe0] sm:$0xff]  ;;  %s1993_s12 = sshll.u32 %s398_s18, 2  ;;  %v2740_v19 = vld [vmem:[%s3416_s3 + $0xd8] sm:$0xff]  ;;  %v2766_v25 = vld [vmem:[%s3416_s3 + $0xd0] sm:$0xff]  ;;  %s3575_s10 = smov (!%p438_p8, %s2624_s10), 7 }
  0x16   : > { %1128 = vmatpush.bf16.msra.mxu3 %v2658_v7  ;;  %3490 = vst [vmem:[#allocation8_spill] sm:$0xff] %v2723_v17  ;;  %s2728_s28 = scalar_lea.vmem %s3413_s0, %s1993_s12  ;;  %v2773_v27 = vld [vmem:[%s3416_s3 + $0x8] sm:$0xff]  ;;  %v2797_v32 = vld [vmem:[%s3416_s3] sm:$0xff]  ;;  %v2819_v38 = vld [vmem:[%s3416_s3 + $0x138] sm:$0xff]  ;;  %s441_s18 = sadd.s32 %s2001_s20, %s3575_s10 }
  0x17   : > { %1090 = vmatpush.bf16.msra.mxu0 %v2669_v8  ;;  %3491 = vst [vmem:[#allocation9_spill] sm:$0xff] %v2735_v18  ;;  %v2011_v20 = vld [vmem:[%s2728_s28] sm:$0xf]  ;;  %v2446_v21 = vld [vmem:[%s2728_s28] sm:$0x10]  ;;  %v2778_v28 = vld [vmem:[%s3416_s3 + $0x48] sm:$0xff] }
  0x18   : > { %1103 = vmatpush.bf16.msra.mxu1 %v2674_v9  ;;  %3492 = vst [vmem:[#allocation10_spill] sm:$0xff] %v2754_v23  ;;  %v2012_v26 = vor.u32 %v2446_v21, %v2011_v20  ;;  %v2785_v29 = vld [vmem:[%s3416_s3 + $0x88] sm:$0xff]  ;;  %v2802_v33 = vld [vmem:[%s3416_s3 + $0x40] sm:$0xff]  ;;  %v2824_v39 = vld [vmem:[%s3416_s3 + $0x178] sm:$0xff]  ;;  %s412_s11 = scalar_select %p411_p7, %s3211_s9, 9 }
  0x19   : > { %1116 = vmatpush.bf16.msra.mxu2 %v2681_v10  ;;  %3493 = vst [vmem:[#allocation11_spill] sm:$0xff] %v2761_v24  ;;  %v2790_v30 = vld [vmem:[%s3416_s3 + $0xc8] sm:$0xff]  ;;  %v2809_v34 = vld [vmem:[%s3416_s3 + $0x80] sm:$0xff]  ;;  %v2829_v40 = vld [vmem:[%s3416_s3 + $0x1b8] sm:$0xff]  ;;  %s2002_s17 = sshll.u32 %s441_s18, 2 }
  0x1a   : > { %1129 = vmatpush.bf16.msra.mxu3 %v2686_v11  ;;  %3494 = vst [vmem:[#allocation12_spill] sm:$0xff] %v2790_v30  ;;  %v619_v31 = vshll.u32 %v2012_v26, 16  ;;  %v2814_v35 = vld [vmem:[%s3416_s3 + $0xc0] sm:$0xff]  ;;  %v617_v36 = vshrl.u32 %v2012_v26, 16  ;;  %v2834_v41 = vld [vmem:[%s3416_s3 + $0x1f8] sm:$0xff]  ;;  %v624_v42 = vrot.slane %v2012_v26, 1  ;;  %s3293_s8 = scalar_lea.vmem %s3417_s4, %s2002_s17 }
  0x1b   : > { %1091 = vmatpush.bf16.msra.mxu0 %v2694_v12  ;;  %3495 = vst [vmem:[#allocation13_spill] sm:$0xff] %v2814_v35  ;;  %v603_v43 = vld [vmem:[%s2728_s28] sm:$0xf]  ;;  %v2846_v45 = vld [vmem:[%s3416_s3 + $0x130] sm:$0xff]  ;;  %v2005_v47 = vld [vmem:[%s2728_s28 + $0x8] sm:$0xf] }
  0x1c   : > { %1104 = vmatpush.bf16.msra.mxu1 %v2699_v13  ;;  %v621_v37 = vrot.slane %v619_v31, 1  ;;  %3496 = vst [vmem:[#allocation14_spill] sm:$0xff] %v2824_v39  ;;  %v2851_v46 = vld [vmem:[%s3416_s3 + $0x170] sm:$0xff]  ;;  %v2871_v50 = vld [vmem:[%s3416_s3 + $0x128] sm:$0xff]  ;;  %v2895_v54 = vld [vmem:[%s3416_s3 + $0x120] sm:$0xff]  ;;  %s1995_s12 = sshll.u32 %s412_s11, 1 }
  0x1d   : > { %1117 = vmatpush.bf16.msra.mxu2 %v2706_v14  ;;  %3497 = vst [vmem:[#allocation15_spill] sm:$0xff] %v2829_v40  ;;  %v2859_v48 = vld [vmem:[%s3416_s3 + $0x1b0] sm:$0xff]  ;;  %v2876_v51 = vld [vmem:[%s3416_s3 + $0x168] sm:$0xff]  ;;  %v2900_v55 = vld [vmem:[%s3416_s3 + $0x160] sm:$0xff]  ;;  %s415_s13 = sadd.s32 %s2662_s30, %s1995_s12 }
  0x1e   : > { %1130 = vmatpush.bf16.msra.mxu3 %v2711_v15  ;;  %3498 = vst [vmem:[#allocation16_spill] sm:$0xff] %v2834_v41  ;;  %v622_v44 = vor.u32 %v621_v37, %v617_v36  ;;  %v2864_v49 = vld [vmem:[%s3416_s3 + $0x1f0] sm:$0xff]  ;;  %v2883_v52 = vld [vmem:[%s3416_s3 + $0x1a8] sm:$0xff]  ;;  %v2907_v56 = vld [vmem:[%s3416_s3 + $0x1a0] sm:$0xff]  ;;  %s1996_s14 = sshll.u32 %s415_s13, 2 }
  0x1f   : > { %1092 = vmatpush.bf16.msra.mxu0 %v2718_v16  ;;  %3499 = vst [vmem:[#allocation17_spill] sm:$0xff] %v2851_v46  ;;  %v2888_v53 = vld [vmem:[%s3416_s3 + $0x1e8] sm:$0xff]  ;;  %v2912_v57 = vld [vmem:[%s3416_s3 + $0x1e0] sm:$0xff]  ;;  %v2919_v58 = vld [vmem:[%s3416_s3 + $0x118] sm:$0xff]  ;;  %s3241_s19 = scalar_lea.vmem %s3414_s1, %s1996_s14 }
  0x20   : > { %1105 = vmatpush.bf16.msra.mxu1 %v2723_v17  ;;  %3500 = vst [vmem:[#allocation18_spill] sm:$0xff] %v2859_v48  ;;  %v2924_v59 = vld [vmem:[%s3416_s3 + $0x158] sm:$0xff]  ;;  %v2015_v62 = vld [vmem:[%s2728_s28 + $0x8] sm:$0xf]  ;;  %v2447_v63 = vld [vmem:[%s2728_s28 + $0x8] sm:$0x10] }
  0x21   : > { %1118 = vmatpush.bf16.msra.mxu2 %v2735_v18  ;;  %3501 = vst [vmem:[#allocation19_spill] sm:$0xff] %v2864_v49  ;;  %v2929_v60 = vld [vmem:[%s3416_s3 + $0x198] sm:$0xff]  ;;  %v2019_v20 = vld [vmem:[%s2728_s28 + $0x10] sm:$0xf]  ;;  %v2448_v21 = vld [vmem:[%s2728_s28 + $0x10] sm:$0x10]  ;;  %v2016_v36 = vor.u32 %v2447_v63, %v2015_v62 }
  0x22   : > { %1131 = vmatpush.bf16.msra.mxu3 %v2740_v19  ;;  %3502 = vst [vmem:[#allocation20_spill] sm:$0xff] %v2876_v51  ;;  %v2936_v61 = vld [vmem:[%s3416_s3 + $0x1d8] sm:$0xff]  ;;  %v2947_v26 = vld [vmem:[%s3416_s3 + $0x110] sm:$0xff]  ;;  %v2985_v63 = vld [vmem:[%s3416_s3 + $0x188] sm:$0xff] }
  0x23   : > { %1093 = vmatpush.bf16.msra.mxu0 %v2749_v22  ;;  %3503 = vst [vmem:[#allocation21_spill] sm:$0xff] %v2883_v52  ;;  %v2952_v31 = vld [vmem:[%s3416_s3 + $0x150] sm:$0xff]  ;;  %v634_v62 = vshll.u32 %v2016_v36, 16 }
  0x24   : > { %1106 = vmatpush.bf16.msra.mxu1 %v2754_v23  ;;  %3504 = vst [vmem:[#allocation22_spill] sm:$0xff] %v2888_v53  ;;  %v2959_v37 = vld [vmem:[%s3416_s3 + $0x190] sm:$0xff] }
  0x25   : > { %1119 = vmatpush.bf16.msra.mxu2 %v2761_v24  ;;  %3505 = vst [vmem:[#allocation23_spill] sm:$0xff] %v2900_v55 }
  0x26   : > { %1132 = vmatpush.bf16.msra.mxu3 %v2766_v25  ;;  %3506 = vst [vmem:[#allocation24_spill] sm:$0xff] %v2907_v56 }
  0x27   : > { %1094 = vmatpush.bf16.msra.mxu0 %v2773_v27  ;;  %3507 = vst [vmem:[#allocation25_spill] sm:$0xff] %v2912_v57 }
  0x28   : > { %1107 = vmatpush.bf16.msra.mxu1 %v2778_v28  ;;  %3508 = vst [vmem:[#allocation26_spill] sm:$0xff] %v2924_v59 }
  0x29   : > { %1120 = vmatpush.bf16.msra.mxu2 %v2785_v29  ;;  %3509 = vst [vmem:[#allocation27_spill] sm:$0xff] %v2929_v60 }
  0x2a   : > { %1133 = vmatpush.bf16.msra.mxu3 %v2790_v30  ;;  %3510 = vst [vmem:[#allocation28_spill] sm:$0xff] %v2936_v61  ;;  %v639_v30 = vrot.slane %v2016_v36, 1 }
  0x2b   : > { %1095 = vmatpush.bf16.msra.mxu0 %v2797_v32  ;;  %3511 = vst [vmem:[#allocation29_spill] sm:$0xff] %v2952_v31 }
  0x2c   : > { %1108 = vmatpush.bf16.msra.mxu1 %v2802_v33  ;;  %3512 = vst [vmem:[#allocation30_spill] sm:$0xff] %v2959_v37 }
  0x2d   : > { %1121 = vmatpush.bf16.msra.mxu2 %v2809_v34  ;;  %3516 = vst [vmem:[#allocation34_spill] sm:$0xff] %v2985_v63 }
  0x2e   : > { %1134 = vmatpush.bf16.msra.mxu3 %v2814_v35  ;;  %1096 = vmatmul.bf16.vlgmr.msra.gmra.mxu0 %v603_v43  ;;  %v2966_v43 = vor.u32 %v2448_v21, %v2019_v20  ;;  %v2990_v20 = vld [vmem:[%s3416_s3 + $0x1c8] sm:$0xff] }
  0x2f   : > { %1140 = vmatpush.bf16.msrb.mxu0 %v2819_v38  ;;  %1109 = vmatmul.bf16.vlgmr.msra.gmra.mxu1 %v622_v44  ;;  %v2973_v44 = vld [vmem:[%s3416_s3 + $0x108] sm:$0xff]  ;;  %3517 = vst [vmem:[#allocation35_spill] sm:$0xff] %v2990_v20 }
  0x30   : > { %1153 = vmatpush.bf16.msrb.mxu1 %v2824_v39  ;;  %1122 = vmatmul.bf16.vlgmr.msra.gmra.mxu2 %v624_v42  ;;  %v2964_v42 = vld [vmem:[%s3416_s3 + $0x1d0] sm:$0xff]  ;;  %3514 = vst [vmem:[#allocation32_spill] sm:$0xff] %v2973_v44  ;;  %v649_v21 = vshll.u32 %v2966_v43, 16  ;;  %v647_v35 = vshrl.u32 %v2966_v43, 16 }
  0x31   : > { %1166 = vmatpush.bf16.msrb.mxu2 %v2829_v40  ;;  %1135 = vmatmul.bf16.vlgmr.msra.gmra.mxu3 %v2005_v47  ;;  %3513 = vst [vmem:[#allocation31_spill] sm:$0xff] %v2964_v42  ;;  %v2978_v47 = vld [vmem:[%s3416_s3 + $0x148] sm:$0xff] }
  0x32   : > { %1179 = vmatpush.bf16.msrb.mxu3 %v2834_v41  ;;  %3515 = vst [vmem:[#allocation33_spill] sm:$0xff] %v2978_v47  ;;  %v3015_v41 = vld [vmem:[%s3416_s3 + $0x1c0] sm:$0xff] }
  0x33   : > { %1141 = vmatpush.bf16.msrb.mxu0 %v2846_v45 }
  0x34   : > { %1154 = vmatpush.bf16.msrb.mxu1 %v2851_v46 }
  0x35   : > { %1167 = vmatpush.bf16.msrb.mxu2 %v2859_v48 }
  0x36   : > { %1180 = vmatpush.bf16.msrb.mxu3 %v2864_v49  ;;  %v3010_v49 = vld [vmem:[%s3416_s3 + $0x180] sm:$0xff] }
  0x37   : > { %1142 = vmatpush.bf16.msrb.mxu0 %v2871_v50  ;;  %3519 = vst [vmem:[#allocation37_spill] sm:$0xff] %v3010_v49 }
  0x38   : > { %1155 = vmatpush.bf16.msrb.mxu1 %v2876_v51 }
  0x39   : > { %1168 = vmatpush.bf16.msrb.mxu2 %v2883_v52 }
  0x3a   : > { %1181 = vmatpush.bf16.msrb.mxu3 %v2888_v53  ;;  %v636_v53 = vrot.slane %v634_v62, 1  ;;  %v3021_v62 = vld [vmem:[%s3416_s3 + $0x238] sm:$0xff] }
  0x3b   : > { %1143 = vmatpush.bf16.msrb.mxu0 %v2895_v54 }
  0x3c   : > { %1156 = vmatpush.bf16.msrb.mxu1 %v2900_v55 }
  0x3d   : > { %1169 = vmatpush.bf16.msrb.mxu2 %v2907_v56 }
  0x3e   : > { %1182 = vmatpush.bf16.msrb.mxu3 %v2912_v57  ;;  %v632_v57 = vshrl.u32 %v2016_v36, 16  ;;  %v2449_v36 = vld [vmem:[%s2728_s28 + $0x8] sm:$0x10] }
  0x3f   : > { %1144 = vmatpush.bf16.msrb.mxu0 %v2919_v58 }
  0x40   : > { %1157 = vmatpush.bf16.msrb.mxu1 %v2924_v59 }
  0x41   : > { %1170 = vmatpush.bf16.msrb.mxu2 %v2929_v60 }
  0x42   : > { %1183 = vmatpush.bf16.msrb.mxu3 %v2936_v61  ;;  %v3003_v61 = vld [vmem:[%s3416_s3 + $0x140] sm:$0xff] }
  0x43   : > { %1145 = vmatpush.bf16.msrb.mxu0 %v2947_v26  ;;  %3518 = vst [vmem:[#allocation36_spill] sm:$0xff] %v3003_v61 }
  0x44   : > { %1158 = vmatpush.bf16.msrb.mxu1 %v2952_v31 }
  0x45   : > { %1171 = vmatpush.bf16.msrb.mxu2 %v2959_v37 }
  0x46   : > { %1184 = vmatpush.bf16.msrb.mxu3 %v2964_v42  ;;  %v2998_v42 = vld [vmem:[%s3416_s3 + $0x100] sm:$0xff] }
  0x47   : > { %1146 = vmatpush.bf16.msrb.mxu0 %v2973_v44 }
  0x48   : > { %1159 = vmatpush.bf16.msrb.mxu1 %v2978_v47  ;;  %v651_v47 = vrot.slane %v649_v21, 1  ;;  %v3033_v21 = vld [vmem:[%s3416_s3 + $0x230] sm:$0xff] }
  0x49   : > { %1172 = vmatpush.bf16.msrb.mxu2 %v2985_v63  ;;  %v2007_v63 = vld [vmem:[%s2728_s28 + $0x10] sm:$0xf] }
  0x4a   : > { %1185 = vmatpush.bf16.msrb.mxu3 %v2990_v20  ;;  %v637_v20 = vor.u32 %v636_v53, %v632_v57  ;;  %v652_v44 = vor.u32 %v651_v47, %v647_v35  ;;  %v3042_v35 = vld [vmem:[%s3416_s3 + $0x228] sm:$0xff]  ;;  %v3060_v53 = vld [vmem:[%s3416_s3 + $0x218] sm:$0xff] }
  0x4b   : > { %1147 = vmatpush.bf16.msrb.mxu0 %v2998_v42  ;;  %3521 = vst [vmem:[#allocation39_spill] sm:$0xff] %v3060_v53  ;;  %v2317_v57 = vld [vmem:[%s2728_s28 + $0x8] sm:$0xf] }
  0x4c   : > { %1160 = vmatpush.bf16.msrb.mxu1 %v3003_v61  ;;  %v2318_v47 = vor.u32 %v2449_v36, %v2317_v57  ;;  %v3089_v57 = vld [vmem:[%s3416_s3 + $0x200] sm:$0xff] }
  0x4d   : > { %1173 = vmatpush.bf16.msrb.mxu2 %v3010_v49 }
  0x4e   : > { %1186 = vmatpush.bf16.msrb.mxu3 %v3015_v41  ;;  %1148 = vmatmul.bf16.vlgmr.msrb.gmra.mxu0 %v637_v20  ;;  %v1235_v20 = vshll.u32 %v2318_v47, 16  ;;  %v1233_v36 = vshrl.u32 %v2318_v47, 16 }
  0x4f   : > { %1192 = vmatpush.bf16.msra.mxu0 %v3021_v62  ;;  %1161 = vmatmul.bf16.vlgmr.msrb.gmra.mxu1 %v639_v30  ;;  %v3051_v30 = vld [vmem:[%s3416_s3 + $0x220] sm:$0xff] }
  0x50   : > { %1272 = vmatpush.bf16.msra.mxu1 %v2611_v0  ;;  %1174 = vmatmul.bf16.vlgmr.msrb.gmra.mxu2 %v2007_v63  ;;  %3520 = vst [vmem:[#allocation38_spill] sm:$0xff] %v3051_v30  ;;  %v3080_v63 = vld [vmem:[%s3416_s3 + $0x208] sm:$0xff] }
  0x51   : > { %1285 = vmatpush.bf16.msra.mxu2 %v2616_v1  ;;  %1187 = vmatmul.bf16.vlgmr.msrb.gmra.mxu3 %v652_v44  ;;  %v3071_v44 = vld [vmem:[%s3416_s3 + $0x210] sm:$0xff]  ;;  %3522 = vst [vmem:[#allocation40_spill] sm:$0xff] %v3080_v63 }
  0x52   : > { %1298 = vmatpush.bf16.msra.mxu3 %v2621_v2 }
  0x53   : > { %1193 = vmatpush.bf16.msra.mxu0 %v3033_v21 }
  0x54   : > { %1273 = vmatpush.bf16.msra.mxu1 %v2638_v4 }
  0x55   : > { %1286 = vmatpush.bf16.msra.mxu2 %v2643_v5 }
  0x56   : > { %1299 = vmatpush.bf16.msra.mxu3 %v2653_v6 }
  0x57   : > { %1194 = vmatpush.bf16.msra.mxu0 %v3042_v35 }
  0x58   : > { %1274 = vmatpush.bf16.msra.mxu1 %v2669_v8 }
  0x59   : > { %1287 = vmatpush.bf16.msra.mxu2 %v2674_v9 }
  0x5a   : > { %1300 = vmatpush.bf16.msra.mxu3 %v2681_v10  ;;  %v1240_v10 = vrot.slane %v2318_v47, 1  ;;  %v3524_v47 = vld [vmem:[#allocation32_spill] sm:$0xff] }
  0x5b   : > { %1195 = vmatpush.bf16.msra.mxu0 %v3051_v30 }
  0x5c   : > { %1275 = vmatpush.bf16.msra.mxu1 %v2694_v12 }
  0x5d   : > { %1288 = vmatpush.bf16.msra.mxu2 %v2699_v13 }
  0x5e   : > { %1301 = vmatpush.bf16.msra.mxu3 %v2706_v14 }
  0x5f   : > { %1196 = vmatpush.bf16.msra.mxu0 %v3060_v53 }
  0x60   : > { %1276 = vmatpush.bf16.msra.mxu1 %v2718_v16 }
  0x61   : > { %1289 = vmatpush.bf16.msra.mxu2 %v2723_v17 }
  0x62   : > { %1302 = vmatpush.bf16.msra.mxu3 %v2735_v18  ;;  %v1237_v18 = vrot.slane %v1235_v20, 1  ;;  %v2309_v20 = vld [vmem:[%s2728_s28 + $0x8] sm:$0xf] }
  0x63   : > { %1197 = vmatpush.bf16.msra.mxu0 %v3071_v44 }
  0x64   : > { %1277 = vmatpush.bf16.msra.mxu1 %v2749_v22  ;;  %v1238_v14 = vor.u32 %v1237_v18, %v1233_v36  ;;  %v3525_v36 = vld [vmem:[#allocation33_spill] sm:$0xff] }
  0x65   : > { %1290 = vmatpush.bf16.msra.mxu2 %v2754_v23 }
  0x66   : > { %1303 = vmatpush.bf16.msra.mxu3 %v2761_v24  ;;  %v654_v24 = vrot.slane %v2966_v43, 1  ;;  %v3523_v43 = vld [vmem:[#allocation12_spill] sm:$0xff] }
  0x67   : > { %1198 = vmatpush.bf16.msra.mxu0 %v3080_v63 }
  0x68   : > { %1278 = vmatpush.bf16.msra.mxu1 %v2773_v27 }
  0x69   : > { %1291 = vmatpush.bf16.msra.mxu2 %v2778_v28 }
  0x6a   : > { %1304 = vmatpush.bf16.msra.mxu3 %v2785_v29 }
  0x6b   : > { %1199 = vmatpush.bf16.msra.mxu0 %v3089_v57 }
  0x6c   : > { %1279 = vmatpush.bf16.msra.mxu1 %v2797_v32 }
  0x6d   : > { %1292 = vmatpush.bf16.msra.mxu2 %v2802_v33 }
  0x6e   : > { %1305 = vmatpush.bf16.msra.mxu3 %v2809_v34  ;;  %1200 = vmatmul.bf16.vlgmr.msra.gmra.mxu0 %v654_v24 }
  0x6f   : > { %1311 = vmatpush.bf16.msrb.mxu0 %v2630_v3  ;;  %1280 = vmatmul.bf16.vlgmr.msra.gmra.mxu1 %v2309_v20  ;;  %v3526_v20 = vld [vmem:[#allocation34_spill] sm:$0xff] }
  0x70   : > { %1324 = vmatpush.bf16.msrb.mxu1 %v2819_v38  ;;  %1293 = vmatmul.bf16.vlgmr.msra.gmra.mxu2 %v1238_v14  ;;  %v2450_v14 = vld [vmem:[%s2728_s28 + $0x10] sm:$0x10] }
  0x71   : > { %1337 = vmatpush.bf16.msrb.mxu2 %v2824_v39  ;;  %1306 = vmatmul.bf16.vlgmr.msra.gmra.mxu3 %v1240_v10  ;;  %v2321_v10 = vld [vmem:[%s2728_s28 + $0x10] sm:$0xf] }
  0x72   : > { %1350 = vmatpush.bf16.msrb.mxu3 %v2829_v40  ;;  %v2322_v18 = vor.u32 %v2450_v14, %v2321_v10  ;;  %v2313_v40 = vld [vmem:[%s2728_s28 + $0x18] sm:$0xf] }
  0x73   : > { %1312 = vmatpush.bf16.msrb.mxu0 %v2658_v7 }
  0x74   : > { %1325 = vmatpush.bf16.msrb.mxu1 %v2846_v45  ;;  %v1250_v24 = vshll.u32 %v2322_v18, 16  ;;  %v1248_v10 = vshrl.u32 %v2322_v18, 16 }
  0x75   : > { %1338 = vmatpush.bf16.msrb.mxu2 %v2851_v46 }
  0x76   : > { %1351 = vmatpush.bf16.msrb.mxu3 %v2859_v48  ;;  %v1252_v14 = vrot.slane %v1250_v24, 1  ;;  %v3528_v48 = vld [vmem:[#allocation16_spill] sm:$0xff]  ;;  %v3530_v24 = vld [vmem:[#allocation22_spill] sm:$0xff] }
  0x77   : > { %1313 = vmatpush.bf16.msrb.mxu0 %v2686_v11 }
  0x78   : > { %1326 = vmatpush.bf16.msrb.mxu1 %v2871_v50 }
  0x79   : > { %1339 = vmatpush.bf16.msrb.mxu2 %v2876_v51 }
  0x7a   : > { %1352 = vmatpush.bf16.msrb.mxu3 %v2883_v52  ;;  %v1253_v52 = vor.u32 %v1252_v14, %v1248_v10  ;;  %v2452_v10 = vld [vmem:[%s2728_s28 + $0x10] sm:$0x10] }
  0x7b   : > { %1314 = vmatpush.bf16.msrb.mxu0 %v2711_v15  ;;  %v3532_v14 = vld [vmem:[#allocation28_spill] sm:$0xff] }
  0x7c   : > { %1327 = vmatpush.bf16.msrb.mxu1 %v2895_v54 }
  0x7d   : > { %1340 = vmatpush.bf16.msrb.mxu2 %v2900_v55 }
  0x7e   : > { %1353 = vmatpush.bf16.msrb.mxu3 %v2907_v56  ;;  %v1255_v56 = vrot.slane %v2322_v18, 1  ;;  %v3529_v18 = vld [vmem:[#allocation19_spill] sm:$0xff] }
  0x7f   : > { %1315 = vmatpush.bf16.msrb.mxu0 %v2740_v19 }
  0x80   : > { %1328 = vmatpush.bf16.msrb.mxu1 %v2919_v58 }
  0x81   : > { %1341 = vmatpush.bf16.msrb.mxu2 %v2924_v59 }
  0x82   : > { %1354 = vmatpush.bf16.msrb.mxu3 %v2929_v60  ;;  %v3527_v60 = vld [vmem:[#allocation13_spill] sm:$0xff] }
  0x83   : > { %1316 = vmatpush.bf16.msrb.mxu0 %v2766_v25 }
  0x84   : > { %1329 = vmatpush.bf16.msrb.mxu1 %v2947_v26 }
  0x85   : > { %1342 = vmatpush.bf16.msrb.mxu2 %v2952_v31 }
  0x86   : > { %1355 = vmatpush.bf16.msrb.mxu3 %v2959_v37  ;;  %v2311_v37 = vld [vmem:[%s2728_s28 + $0x10] sm:$0xf] }
  0x87   : > { %1317 = vmatpush.bf16.msrb.mxu0 %v3523_v43 }
  0x88   : > { %1330 = vmatpush.bf16.msrb.mxu1 %v3524_v47 }
  0x89   : > { %1343 = vmatpush.bf16.msrb.mxu2 %v3525_v36 }
  0x8a   : > { %1356 = vmatpush.bf16.msrb.mxu3 %v3526_v20  ;;  %v3534_v20 = vld [vmem:[#allocation35_spill] sm:$0xff] }
  0x8b   : > { %1318 = vmatpush.bf16.msrb.mxu0 %v3527_v60 }
  0x8c   : > { %1331 = vmatpush.bf16.msrb.mxu1 %v2998_v42 }
  0x8d   : > { %1344 = vmatpush.bf16.msrb.mxu2 %v3003_v61 }
  0x8e   : > { %1357 = vmatpush.bf16.msrb.mxu3 %v3010_v49  ;;  %1319 = vmatmul.bf16.vlgmr.msrb.gmra.mxu0 %v2311_v37  ;;  %v2334_v37 = vld [vmem:[%s2728_s28 + $0x10] sm:$0xf] }
  0x8f   : > { %1363 = vmatpush.bf16.msra.mxu0 %v3528_v48  ;;  %1332 = vmatmul.bf16.vlgmr.msrb.gmra.mxu1 %v1253_v52  ;;  %v2325_v52 = vld [vmem:[%s2728_s28 + $0x18] sm:$0xf] }
  0x90   : > { %1376 = vmatpush.bf16.msra.mxu1 %v3021_v62  ;;  %1345 = vmatmul.bf16.vlgmr.msrb.gmra.mxu2 %v1255_v56  ;;  %v2451_v56 = vld [vmem:[%s2728_s28 + $0x18] sm:$0x10] }
  0x91   : > { %1458 = vmatpush.bf16.msra.mxu2 %v2611_v0  ;;  %1358 = vmatmul.bf16.vlgmr.msrb.gmra.mxu3 %v2313_v40  ;;  %v3531_v40 = vld [vmem:[#allocation25_spill] sm:$0xff] }
  0x92   : > { %1471 = vmatpush.bf16.msra.mxu3 %v2616_v1  ;;  %v3533_v1 = vld [vmem:[#allocation31_spill] sm:$0xff] }
  0x93   : > { %1364 = vmatpush.bf16.msra.mxu0 %v3529_v18 }
  0x94   : > { %1377 = vmatpush.bf16.msra.mxu1 %v3033_v21 }
  0x95   : > { %1459 = vmatpush.bf16.msra.mxu2 %v2638_v4 }
  0x96   : > { %1472 = vmatpush.bf16.msra.mxu3 %v2643_v5  ;;  %v2326_v5 = vor.u32 %v2451_v56, %v2325_v52 }
  0x97   : > { %1365 = vmatpush.bf16.msra.mxu0 %v3530_v24 }
  0x98   : > { %1378 = vmatpush.bf16.msra.mxu1 %v3042_v35  ;;  %v1263_v52 = vshrl.u32 %v2326_v5, 16 }
  0x99   : > { %1460 = vmatpush.bf16.msra.mxu2 %v2669_v8 }
  0x9a   : > { %1473 = vmatpush.bf16.msra.mxu3 %v2674_v9  ;;  %v3159_v9 = vor.u32 %v2452_v10, %v2334_v37 }
  0x9b   : > { %1366 = vmatpush.bf16.msra.mxu0 %v3531_v40 }
  0x9c   : > { %1379 = vmatpush.bf16.msra.mxu1 %v3051_v30  ;;  %v1421_v49 = vshll.u32 %v3159_v9, 16  ;;  %v1419_v37 = vshrl.u32 %v3159_v9, 16 }
  0x9d   : > { %1461 = vmatpush.bf16.msra.mxu2 %v2694_v12 }
  0x9e   : > { %1474 = vmatpush.bf16.msra.mxu3 %v2699_v13  ;;  %v1265_v13 = vshll.u32 %v2326_v5, 16  ;;  %v1423_v10 = vrot.slane %v1421_v49, 1  ;;  %v3535_v49 = vld [vmem:[#allocation5_spill] sm:$0xff] }
  0x9f   : > { %1367 = vmatpush.bf16.msra.mxu0 %v3532_v14 }
  0xa0   : > { %1380 = vmatpush.bf16.msra.mxu1 %v3060_v53  ;;  %v1267_v56 = vrot.slane %v1265_v13, 1  ;;  %v2328_v13 = vld [vmem:[%s2728_s28 + $0x10] sm:$0xf] }
  0xa1   : > { %1462 = vmatpush.bf16.msra.mxu2 %v2718_v16 }
  0xa2   : > { %1475 = vmatpush.bf16.msra.mxu3 %v2723_v17  ;;  %v1270_v17 = vrot.slane %v2326_v5, 1 }
  0xa3   : > { %1368 = vmatpush.bf16.msra.mxu0 %v3533_v1 }
  0xa4   : > { %1381 = vmatpush.bf16.msra.mxu1 %v3071_v44 }
  0xa5   : > { %1463 = vmatpush.bf16.msra.mxu2 %v2749_v22 }
  0xa6   : > { %1476 = vmatpush.bf16.msra.mxu3 %v2754_v23  ;;  %v1268_v23 = vor.u32 %v1267_v56, %v1263_v52  ;;  %v2338_v52 = vld [vmem:[%s2728_s28 + $0x18] sm:$0xf]  ;;  %v2453_v56 = vld [vmem:[%s2728_s28 + $0x18] sm:$0x10] }
  0xa7   : > { %1369 = vmatpush.bf16.msra.mxu0 %v3534_v20 }
  0xa8   : > { %1382 = vmatpush.bf16.msra.mxu1 %v3080_v63  ;;  %v1424_v63 = vor.u32 %v1423_v10, %v1419_v37 }
  0xa9   : > { %1464 = vmatpush.bf16.msra.mxu2 %v2773_v27 }
  0xaa   : > { %1477 = vmatpush.bf16.msra.mxu3 %v2778_v28 }
  0xab   : > { %1370 = vmatpush.bf16.msra.mxu0 %v3015_v41  ;;  %v3184_v5 = vpop.f32.mrf.mxu0 }
  0xac   : > { %1383 = vmatpush.bf16.msra.mxu1 %v3089_v57 }
  0xad   : > { %1465 = vmatpush.bf16.msra.mxu2 %v2797_v32 }
  0xae   : > { %1478 = vmatpush.bf16.msra.mxu3 %v2802_v33  ;;  %1371 = vmatmul.bf16.vlgmr.msra.gmra.mxu0 %v1268_v23  ;;  %v3188_v23 = vpop.f32.mrf.mxu1 }
  0xaf   : > { %1484 = vmatpush.bf16.msrb.mxu0 %v2621_v2  ;;  %1384 = vmatmul.bf16.vlgmr.msra.gmra.mxu1 %v1270_v17  ;;  %v3536_v17 = vld [vmem:[#allocation7_spill] sm:$0xff] }
  0xb0   : > { %1497 = vmatpush.bf16.msrb.mxu1 %v2630_v3  ;;  %1466 = vmatmul.bf16.vlgmr.msra.gmra.mxu2 %v2328_v13  ;;  %v3537_v13 = vld [vmem:[#allocation9_spill] sm:$0xff] }
  0xb1   : > { %1510 = vmatpush.bf16.msrb.mxu2 %v2819_v38  ;;  %1479 = vmatmul.bf16.vlgmr.msra.gmra.mxu3 %v1424_v63 }
  0xb2   : > { %1523 = vmatpush.bf16.msrb.mxu3 %v2824_v39  ;;  %v3538_v39 = vld [vmem:[#allocation11_spill] sm:$0xff] }
  0xb3   : > { %1485 = vmatpush.bf16.msrb.mxu0 %v2653_v6  ;;  %v3196_v63 = vpop.f32.mrf.mxu2  ;;  %v1099_v10 = vpop.f32.mrf.mxu0 }
  0xb4   : > { %1498 = vmatpush.bf16.msrb.mxu1 %v2658_v7  ;;  %v3200_v37 = vpop.f32.mrf.mxu3 }
  0xb5   : > { %1511 = vmatpush.bf16.msrb.mxu2 %v2846_v45 }
  0xb6   : > { %1524 = vmatpush.bf16.msrb.mxu3 %v2851_v46  ;;  %v1112_v46 = vpop.f32.mrf.mxu1 }
  0xb7   : > { %1486 = vmatpush.bf16.msrb.mxu0 %v3535_v49 }
  0xb8   : > { %1499 = vmatpush.bf16.msrb.mxu1 %v2686_v11 }
  0xb9   : > { %1512 = vmatpush.bf16.msrb.mxu2 %v2871_v50 }
  0xba   : > { %1525 = vmatpush.bf16.msrb.mxu3 %v2876_v51  ;;  %v2339_v51 = vor.u32 %v2453_v56, %v2338_v52 }
  0xbb   : > { %1487 = vmatpush.bf16.msrb.mxu0 %v3536_v17  ;;  %v1125_v10 = vpop.f32.mrf.mxu2 }
  0xbc   : > { %1500 = vmatpush.bf16.msrb.mxu1 %v2711_v15  ;;  %v1138_v52 = vpop.f32.mrf.mxu3  ;;  %v1434_v46 = vshrl.u32 %v2339_v51, 16 }
  0xbd   : > { %1513 = vmatpush.bf16.msrb.mxu2 %v2895_v54  ;;  %v1441_v52 = vrot.slane %v2339_v51, 1 }
  0xbe   : > { %1526 = vmatpush.bf16.msrb.mxu3 %v2900_v55  ;;  %v1436_v55 = vshll.u32 %v2339_v51, 16 }
  0xbf   : > { %1488 = vmatpush.bf16.msrb.mxu0 %v3537_v13 }
  0xc0   : > { %1501 = vmatpush.bf16.msrb.mxu1 %v2740_v19  ;;  %v1438_v56 = vrot.slane %v1436_v55, 1  ;;  %v3539_v55 = vld [vmem:[#allocation15_spill] sm:$0xff] }
  0xc1   : > { %1514 = vmatpush.bf16.msrb.mxu2 %v2919_v58 }
  0xc2   : > { %1527 = vmatpush.bf16.msrb.mxu3 %v2924_v59  ;;  %v1439_v10 = vor.u32 %v1438_v56, %v1434_v46  ;;  %v2330_v59 = vld [vmem:[%s2728_s28 + $0x18] sm:$0xf]  ;;  %v2342_v56 = vld [vmem:[%s3241_s19] sm:$0xf] }
  0xc3   : > { %1489 = vmatpush.bf16.msrb.mxu0 %v3538_v39  ;;  %v3541_v46 = vld [vmem:[#allocation21_spill] sm:$0xff] }
  0xc4   : > { %1502 = vmatpush.bf16.msrb.mxu1 %v2766_v25 }
  0xc5   : > { %1515 = vmatpush.bf16.msrb.mxu2 %v2947_v26 }
  0xc6   : > { %1528 = vmatpush.bf16.msrb.mxu3 %v2952_v31  ;;  %v1426_v31 = vrot.slane %v3159_v9, 1  ;;  %v3540_v9 = vld [vmem:[#allocation18_spill] sm:$0xff] }
  0xc7   : > { %1490 = vmatpush.bf16.msrb.mxu0 %v2785_v29 }
  0xc8   : > { %1503 = vmatpush.bf16.msrb.mxu1 %v3523_v43 }
  0xc9   : > { %1516 = vmatpush.bf16.msrb.mxu2 %v3524_v47 }
  0xca   : > { %1529 = vmatpush.bf16.msrb.mxu3 %v3525_v36  ;;  %v3543_v36 = vld [vmem:[#allocation27_spill] sm:$0xff] }
  0xcb   : > { %1491 = vmatpush.bf16.msrb.mxu0 %v2809_v34  ;;  %v1149_v51 = vpop.f32.mrf.mxu0 }
  0xcc   : > { %1504 = vmatpush.bf16.msrb.mxu1 %v3527_v60 }
  0xcd   : > { %1517 = vmatpush.bf16.msrb.mxu2 %v2998_v42 }
  0xce   : > { %1530 = vmatpush.bf16.msrb.mxu3 %v3003_v61  ;;  %1492 = vmatmul.bf16.vlgmr.msrb.gmra.mxu0 %v1426_v31 }
  0xcf   : > { %1536 = vmatpush.bf16.msra.mxu0 %v3539_v55  ;;  %1505 = vmatmul.bf16.vlgmr.msrb.gmra.mxu1 %v2330_v59  ;;  %v3542_v59 = vld [vmem:[#allocation24_spill] sm:$0xff] }
  0xd0   : > { %1549 = vmatpush.bf16.msra.mxu1 %v3528_v48  ;;  %1518 = vmatmul.bf16.vlgmr.msrb.gmra.mxu2 %v1439_v10  ;;  %v2454_v10 = vld [vmem:[%s3241_s19] sm:$0x10] }
  0xd1   : > { %1562 = vmatpush.bf16.msra.mxu2 %v3021_v62  ;;  %1531 = vmatmul.bf16.vlgmr.msrb.gmra.mxu3 %v1441_v52 }
  0xd2   : > { %1644 = vmatpush.bf16.msra.mxu3 %v2611_v0  ;;  %v1162_v0 = vpop.f32.mrf.mxu1 }
  0xd3   : > { %1537 = vmatpush.bf16.msra.mxu0 %v3540_v9  ;;  %v1175_v31 = vpop.f32.mrf.mxu2  ;;  %v1151_v52 = vpop.f32.mrf.mxu0 }
  0xd4   : > { %1550 = vmatpush.bf16.msra.mxu1 %v3529_v18 }
  0xd5   : > { %1563 = vmatpush.bf16.msra.mxu2 %v3033_v21 }
  0xd6   : > { %1645 = vmatpush.bf16.msra.mxu3 %v2638_v4  ;;  %v1111_v4 = vadd.f32 %v3188_v23, %v3184_v5  ;;  %v2343_v23 = vor.u32 %v2454_v10, %v2342_v56  ;;  %v3547_v56 = vld [vmem:[#allocation37_spill] sm:$0xff]  ;;  %v1411_v10 = vld [vmem:[%s3241_s19] sm:$0xf] }
  0xd7   : > { %1538 = vmatpush.bf16.msra.mxu0 %v3541_v46 }
  0xd8   : > { %1551 = vmatpush.bf16.msra.mxu1 %v3530_v24  ;;  %v1124_v61 = vadd.f32 %v3196_v63, %v1111_v4  ;;  %v1451_v63 = vshll.u32 %v2343_v23, 16 }
  0xd9   : > { %1564 = vmatpush.bf16.msra.mxu2 %v3042_v35 }
  0xda   : > { %1646 = vmatpush.bf16.msra.mxu3 %v2669_v8  ;;  %v1188_v8 = vpop.f32.mrf.mxu3  ;;  %v1164_v5 = vpop.f32.mrf.mxu1 }
  0xdb   : > { %1539 = vmatpush.bf16.msra.mxu0 %v3542_v59  ;;  %v1177_v4 = vpop.f32.mrf.mxu2 }
  0xdc   : > { %1552 = vmatpush.bf16.msra.mxu1 %v3531_v40  ;;  %v3548_v4 = vld [vmem:[#allocation2_spill] sm:$0xff] }
  0xdd   : > { %1565 = vmatpush.bf16.msra.mxu2 %v3051_v30  ;;  %v3544_v30 = vld [vmem:[#allocation30_spill] sm:$0xff] }
  0xde   : > { %1647 = vmatpush.bf16.msra.mxu3 %v2694_v12  ;;  %v1137_v12 = vadd.f32 %v3200_v37, %v1124_v61  ;;  %v1449_v61 = vshrl.u32 %v2343_v23, 16  ;;  %v1453_v37 = vrot.slane %v1451_v63, 1  ;;  %v2456_v63 = vld [vmem:[%s3241_s19] sm:$0x10] }
  0xdf   : > { %1540 = vmatpush.bf16.msra.mxu0 %v3543_v36 }
  0xe0   : > { %1553 = vmatpush.bf16.msra.mxu1 %v3532_v14  ;;  %v1150_v5 = vadd.f32 %v1149_v51, %v1137_v12  ;;  %v1456_v51 = vrot.slane %v2343_v23, 1  ;;  %v1454_v12 = vor.u32 %v1453_v37, %v1449_v61  ;;  %v3550_v23 = vld [vmem:[#allocation4_spill] sm:$0xff] }
  0xe1   : > { %1566 = vmatpush.bf16.msra.mxu2 %v3060_v53  ;;  %v3545_v53 = vld [vmem:[#allocation34_spill] sm:$0xff] }
  0xe2   : > { %1648 = vmatpush.bf16.msra.mxu3 %v2718_v16  ;;  %v1190_v52 = vpop.f32.mrf.mxu3  ;;  %v3546_v16 = vld [vmem:[#allocation40_spill] sm:$0xff] }
  0xe3   : > { %1541 = vmatpush.bf16.msra.mxu0 %v3544_v30 }
  0xe4   : > { %1554 = vmatpush.bf16.msra.mxu1 %v3533_v1 }
  0xe5   : > { %1567 = vmatpush.bf16.msra.mxu2 %v3071_v44 }
  0xe6   : > { %1649 = vmatpush.bf16.msra.mxu3 %v2749_v22  ;;  %v1163_v22 = vadd.f32 %v1162_v0, %v1150_v5  ;;  %v3552_v5 = vld [vmem:[#allocation8_spill] sm:$0xff] }
  0xe7   : > { %1542 = vmatpush.bf16.msra.mxu0 %v3545_v53 }
  0xe8   : > { %1555 = vmatpush.bf16.msra.mxu1 %v3534_v20  ;;  %v1176_v0 = vadd.f32 %v1175_v31, %v1163_v22 }
  0xe9   : > { %1568 = vmatpush.bf16.msra.mxu2 %v3546_v16 }
  0xea   : > { %1650 = vmatpush.bf16.msra.mxu3 %v2773_v27  ;;  %v2345_v27 = vld [vmem:[%s2728_s28 + $0x18] sm:$0xf] }
  0xeb   : > { %1543 = vmatpush.bf16.msra.mxu0 %v3547_v56 }
  0xec   : > { %1556 = vmatpush.bf16.msra.mxu1 %v3015_v41  ;;  %v3286_v31 = vpop.f32.mrf.mxu1 }
  0xed   : > { %1569 = vmatpush.bf16.msra.mxu2 %v3089_v57 }
  0xee   : > { %1651 = vmatpush.bf16.msra.mxu3 %v2797_v32  ;;  %1544 = vmatmul.bf16.vlgmr.msra.gmra.mxu0 %v1411_v10  ;;  %v3549_v32 = vld [vmem:[#allocation3_spill] sm:$0xff] }
  0xef   : > { %1657 = vmatpush.bf16.msrb.mxu0 %v3548_v4  ;;  %1557 = vmatmul.bf16.vlgmr.msra.gmra.mxu1 %v1454_v12  ;;  %v3561_v4 = vld [vmem:[#allocation29_spill] sm:$0xff] }
  0xf0   : > { %1670 = vmatpush.bf16.msrb.mxu1 %v2621_v2  ;;  %1570 = vmatmul.bf16.vlgmr.msra.gmra.mxu2 %v1456_v51  ;;  %v1189_v2 = vadd.f32 %v1188_v8, %v1176_v0  ;;  %v2353_v8 = vld [vmem:[%s3241_s19] sm:$0xf] }
  0xf1   : > { %1683 = vmatpush.bf16.msrb.mxu2 %v2630_v3  ;;  %1652 = vmatmul.bf16.vlgmr.msra.gmra.mxu3 %v2345_v27  ;;  %v1201_v3 = vpop.f32.mrf.mxu0 }
  0xf2   : > { %1696 = vmatpush.bf16.msrb.mxu3 %v2819_v38  ;;  %v3284_v38 = vadd.f32 %v1201_v3, %v1189_v2  ;;  %v3562_v2 = vld [vmem:[#allocation33_spill] sm:$0xff] }
  0xf3   : > { %1658 = vmatpush.bf16.msrb.mxu0 %v3549_v32 }
  0xf4   : > { %1671 = vmatpush.bf16.msrb.mxu1 %v2653_v6  ;;  %v1205_v6 = vpack.c.bf16 %v3284_v38, %v3284_v38 }
  0xf5   : > { %1684 = vmatpush.bf16.msrb.mxu2 %v2658_v7  ;;  %v3551_v7 = vld [vmem:[#allocation6_spill] sm:$0xff] }
  0xf6   : > { %1697 = vmatpush.bf16.msrb.mxu3 %v2846_v45  ;;  %1206 = vst [vmem:[%s3293_s8] sm:$0xf] %v1205_v6  ;;  %v2349_v45 = vld [vmem:[%s2728_s28 + $0x18] sm:$0xf] }
  0xf7   : > { %1659 = vmatpush.bf16.msrb.mxu0 %v3550_v23 }
  0xf8   : > { %1672 = vmatpush.bf16.msrb.mxu1 %v3535_v49  ;;  %v3306_v49 = vpop.f32.mrf.mxu3 }
  0xf9   : > { %1685 = vmatpush.bf16.msrb.mxu2 %v2686_v11  ;;  %v3302_v11 = vpop.f32.mrf.mxu2  ;;  %v1203_v52 = vpop.f32.mrf.mxu0 }
  0xfa   : > { %1698 = vmatpush.bf16.msrb.mxu3 %v2871_v50  ;;  %v2455_v50 = vld [vmem:[%s2728_s28 + $0x18] sm:$0x10]  ;;  %s422_s28 = sadd.s32 1, %s3211_s9 }
  0xfb   : > { %1660 = vmatpush.bf16.msrb.mxu0 %v3551_v7  ;;  %v2350_v61 = vor.u32 %v2455_v50, %v2349_v45  ;;  %p425_p9 = scmp.lt.s32.totalorder %s422_s28, 9 }
  0xfc   : > { %1673 = vmatpush.bf16.msrb.mxu1 %v3536_v17  ;;  %v1283_v17 = vpop.f32.mrf.mxu1 }
  0xfd   : > { %1686 = vmatpush.bf16.msrb.mxu2 %v2711_v15  ;;  %v3314_v15 = vor.u32 %v2456_v63, %v2353_v8  ;;  %v1607_v37 = vshll.u32 %v2350_v61, 16  ;;  %s3577_s28 = smov (!%p425_p9, %s422_s28), 9  ;;  %v1612_v10 = vrot.slane %v2350_v61, 1 }
  0xfe   : > { %1699 = vmatpush.bf16.msrb.mxu3 %v2895_v54  ;;  %v3553_v54 = vld [vmem:[#allocation10_spill] sm:$0xff]  ;;  %s1998_s7 = sshll.u32 %s3577_s28, 1 }
  0xff   : > { %1661 = vmatpush.bf16.msrb.mxu0 %v3552_v5  ;;  %s429_s9 = sadd.s32 %s2662_s30, %s1998_s7  ;;  %s2003_s30 = sshll.u32 %s2525_s22, 1 }
 0x100   : > { %1674 = vmatpush.bf16.msrb.mxu1 %v3537_v13  ;;  %v1622_v13 = vshll.u32 %v3314_v15, 16  ;;  %v1309_v51 = vpop.f32.mrf.mxu3  ;;  %s1999_s11 = sshll.u32 %s429_s9, 2  ;;  %s446_s15 = sadd.s32 %s2521_s21, %s2003_s30 }
 0x101   : > { %1687 = vmatpush.bf16.msrb.mxu2 %v2740_v19  ;;  %v1296_v22 = vpop.f32.mrf.mxu2  ;;  %v1605_v19 = vshrl.u32 %v2350_v61, 16  ;;  %s3348_s14 = scalar_lea.vmem %s3415_s2, %s1999_s11  ;;  %p447_p10 = scmp.lt.s32.totalorder %s446_s15, 3 }
 0x102   : > { %1700 = vmatpush.bf16.msrb.mxu3 %v2919_v58  ;;  %v1609_v58 = vrot.slane %v1607_v37, 1 }
 0x103   : > { %1662 = vmatpush.bf16.msrb.mxu0 %v3553_v54  ;;  %s3579_s15 = smov (!%p447_p10, %s446_s15), 3 }
 0x104   : > { %1675 = vmatpush.bf16.msrb.mxu1 %v3538_v39  ;;  %v1624_v39 = vrot.slane %v1622_v13, 1  ;;  %s449_s16 = scalar_lea.vmem %s3418_s5, %s3579_s15  ;;  %s456_s18 = scalar_lea.vmem %s3419_s6, %s3579_s15 }
 0x105   : > { %1688 = vmatpush.bf16.msrb.mxu2 %v2766_v25  ;;  %v1620_v25 = vshrl.u32 %v3314_v15, 16 }
 0x106   : > { %1701 = vmatpush.bf16.msrb.mxu3 %v2947_v26  ;;  %v1610_v26 = vor.u32 %v1609_v58, %v1605_v19 }
 0x107   : > { %1663 = vmatpush.bf16.msrb.mxu0 %v2778_v28  ;;  %v1595_v28 = vld [vmem:[%s3241_s19] sm:$0xf] }
 0x108   : > { %1676 = vmatpush.bf16.msrb.mxu1 %v2785_v29  ;;  %v1625_v29 = vor.u32 %v1624_v39, %v1620_v25 }
 0x109   : > { %1689 = vmatpush.bf16.msrb.mxu2 %v3523_v43  ;;  %v3554_v43 = vld [vmem:[#allocation14_spill] sm:$0xff] }
 0x10a   : > { %1702 = vmatpush.bf16.msrb.mxu3 %v3524_v47  ;;  %v2357_v47 = vld [vmem:[%s3348_s14] sm:$0xf] }
 0x10b   : > { %1664 = vmatpush.bf16.msrb.mxu0 %v2802_v33  ;;  %v3555_v33 = vld [vmem:[#allocation17_spill] sm:$0xff] }
 0x10c   : > { %1677 = vmatpush.bf16.msrb.mxu1 %v2809_v34  ;;  %v1320_v34 = vpop.f32.mrf.mxu0 }
 0x10d   : > { %1690 = vmatpush.bf16.msrb.mxu2 %v3527_v60  ;;  %v3556_v60 = vld [vmem:[#allocation20_spill] sm:$0xff] }
 0x10e   : > { %1703 = vmatpush.bf16.msrb.mxu3 %v2998_v42  ;;  %1665 = vmatmul.bf16.vlgmr.msrb.gmra.mxu0 %v1610_v26  ;;  %v3557_v42 = vld [vmem:[#allocation23_spill] sm:$0xff] }
 0x10f   : > { %1709 = vmatpush.bf16.msra.mxu0 %v3554_v43  ;;  %1678 = vmatmul.bf16.vlgmr.msrb.gmra.mxu1 %v1612_v10 }
 0x110   : > { %1722 = vmatpush.bf16.msra.mxu1 %v3539_v55  ;;  %1691 = vmatmul.bf16.vlgmr.msrb.gmra.mxu2 %v1595_v28  ;;  %v1295_v55 = vadd.f32 %v3302_v11, %v3286_v31  ;;  %v3563_v31 = vld [vmem:[#allocation36_spill] sm:$0xff] }
 0x111   : > { %1735 = vmatpush.bf16.msra.mxu2 %v3528_v48  ;;  %1704 = vmatmul.bf16.vlgmr.msrb.gmra.mxu3 %v1625_v29  ;;  %v1333_v48 = vpop.f32.mrf.mxu1 }
 0x112   : > { %1748 = vmatpush.bf16.msra.mxu3 %v3021_v62  ;;  %v3558_v62 = vld [vmem:[#allocation38_spill] sm:$0xff] }
 0x113   : > { %1710 = vmatpush.bf16.msra.mxu0 %v3555_v33 }
 0x114   : > { %1723 = vmatpush.bf16.msra.mxu1 %v3540_v9  ;;  %v3559_v9 = vld [vmem:[#allocation26_spill] sm:$0xff] }
 0x115   : > { %1736 = vmatpush.bf16.msra.mxu2 %v3529_v18  ;;  %v2457_v18 = vld [vmem:[%s3348_s14] sm:$0x10] }
 0x116   : > { %1749 = vmatpush.bf16.msra.mxu3 %v3033_v21  ;;  %v1346_v21 = vpop.f32.mrf.mxu2 }
 0x117   : > { %1711 = vmatpush.bf16.msra.mxu0 %v3556_v60 }
 0x118   : > { %1724 = vmatpush.bf16.msra.mxu1 %v3541_v46  ;;  %v2358_v46 = vor.u32 %v2457_v18, %v2357_v47 }
 0x119   : > { %1737 = vmatpush.bf16.msra.mxu2 %v3530_v24  ;;  %v1359_v24 = vpop.f32.mrf.mxu3  ;;  %v1335_v12 = vpop.f32.mrf.mxu1 }
 0x11a   : > { %1750 = vmatpush.bf16.msra.mxu3 %v3042_v35  ;;  %v1322_v35 = vpop.f32.mrf.mxu0  ;;  %v1637_v27 = vshll.u32 %v2358_v46, 16  ;;  %v1642_v6 = vrot.slane %v2358_v46, 1 }
 0x11b   : > { %1712 = vmatpush.bf16.msra.mxu0 %v3557_v42 }
 0x11c   : > { %1725 = vmatpush.bf16.msra.mxu1 %v3542_v59  ;;  %v3560_v59 = vld [vmem:[#allocation39_spill] sm:$0xff]  ;;  %v1639_v3 = vrot.slane %v1637_v27, 1 }
 0x11d   : > { %1738 = vmatpush.bf16.msra.mxu2 %v3531_v40  ;;  %v1308_v40 = vadd.f32 %v3306_v49, %v1295_v55 }
 0x11e   : > { %1751 = vmatpush.bf16.msra.mxu3 %v3558_v62  ;;  %v1348_v0 = vpop.f32.mrf.mxu2 }
 0x11f   : > { %1713 = vmatpush.bf16.msra.mxu0 %v3559_v9  ;;  %v1321_v32 = vadd.f32 %v1320_v34, %v1308_v40 }
 0x120   : > { %1726 = vmatpush.bf16.msra.mxu1 %v3543_v36 }
 0x121   : > { %1739 = vmatpush.bf16.msra.mxu2 %v3532_v14  ;;  %v1361_v36 = vpop.f32.mrf.mxu3  ;;  %v1635_v14 = vshrl.u32 %v2358_v46, 16  ;;  %v1334_v23 = vadd.f32 %v1333_v48, %v1321_v32 }
 0x122   : > { %1752 = vmatpush.bf16.msra.mxu3 %v3560_v59 }
 0x123   : > { %1714 = vmatpush.bf16.msra.mxu0 %v3561_v4 }
 0x124   : > { %1727 = vmatpush.bf16.msra.mxu1 %v3544_v30  ;;  %v1627_v30 = vrot.slane %v3314_v15, 1 }
 0x125   : > { %1740 = vmatpush.bf16.msra.mxu2 %v3533_v1  ;;  %v1597_v1 = vld [vmem:[%s3348_s14] sm:$0xf] }
 0x126   : > { %1753 = vmatpush.bf16.msra.mxu3 %v3071_v44  ;;  %v1640_v44 = vor.u32 %v1639_v3, %v1635_v14 }
 0x127   : > { %1715 = vmatpush.bf16.msra.mxu0 %v3562_v2 }
 0x128   : > { %1728 = vmatpush.bf16.msra.mxu1 %v3545_v53  ;;  %v1213_v53 = vmul.f32 %v3284_v38, %v3284_v38 }
 0x129   : > { %1741 = vmatpush.bf16.msra.mxu2 %v3534_v20  ;;  %v1207_v20 = vrot.slane %v3284_v38, 4 }
 0x12a   : > { %1754 = vmatpush.bf16.msra.mxu3 %v3546_v16  ;;  %v1347_v16 = vadd.f32 %v1346_v21, %v1334_v23  ;;  %v1214_v7 = vrot.slane %v1213_v53, 4 }
 0x12b   : > { %1716 = vmatpush.bf16.msra.mxu0 %v3563_v31  ;;  %v1372_v45 = vpop.f32.mrf.mxu0 }
 0x12c   : > { %1729 = vmatpush.bf16.msra.mxu1 %v3547_v56  ;;  %v1208_v56 = vadd.f32 %v1207_v20, %v3284_v38  ;;  %v1360_v11 = vadd.f32 %v1359_v24, %v1347_v16  ;;  %v1385_v50 = vpop.f32.mrf.mxu1 }
 0x12d   : > { %1742 = vmatpush.bf16.msra.mxu2 %v3015_v41  ;;  %v1215_v41 = vadd.f32 %v1214_v7, %v1213_v53 }
 0x12e   : > { %1755 = vmatpush.bf16.msra.mxu3 %v3089_v57  ;;  %1717 = vmatmul.bf16.vlgmr.msra.gmra.mxu0 %v1627_v30  ;;  %v1373_v49 = vadd.f32 %v1372_v45, %v1360_v11  ;;  %v1209_v57 = vrot.slane %v1208_v56, 2 }
 0x12f   : > { %1730 = vmatmul.bf16.vlgmr.msra.gmra.mxu1 %v1597_v1  ;;  %v1216_v63 = vrot.slane %v1215_v41, 2 }
 0x130   : > { %1743 = vmatmul.bf16.vlgmr.msra.gmra.mxu2 %v1640_v44  ;;  %v1386_v8 = vadd.f32 %v1385_v50, %v1373_v49  ;;  %v1210_v17 = vadd.f32 %v1209_v57, %v1208_v56 }
 0x131   : > { %1756 = vmatmul.bf16.vlgmr.msra.gmra.mxu3 %v1642_v6  ;;  %v1217_v38 = vadd.f32 %v1216_v63, %v1215_v41 }
 0x132   : > { %v1389_v52 = vpack.c.bf16 %v1386_v8, %v1386_v8  ;;  %v1392_v5 = vrot.slane %v1386_v8, 4  ;;  %v1398_v61 = vmul.f32 %v1386_v8, %v1386_v8  ;;  %v1211_v25 = vrot.slane %v1210_v17, 1 }
 0x133   : > { %v1467_v37 = vpop.f32.mrf.mxu2  ;;  %v1374_v22 = vpop.f32.mrf.mxu0  ;;  %v1218_v28 = vrot.slane %v1217_v38, 1 }
 0x134   : > { %2327 = vst [vmem:[%s3293_s8 + $0x4] sm:$0xf] %v1389_v52  ;;  %v1393_v15 = vadd.f32 %v1392_v5, %v1386_v8  ;;  %v1399_v54 = vrot.slane %v1398_v61, 4  ;;  %v1480_v13 = vpop.f32.mrf.mxu3  ;;  %v1387_v51 = vpop.f32.mrf.mxu1  ;;  %v1212_v43 = vadd.f32 %v1211_v25, %v1210_v17 }
 0x135   : > { %v1219_v42 = vadd.f32 %v1218_v28, %v1217_v38  ;;  %v1481_v12 = vadd.f32 %v1480_v13, %v1467_v37 }
 0x136   : > { %v1394_v19 = vrot.slane %v1393_v15, 2  ;;  %v1400_v58 = vadd.f32 %v1399_v54, %v1398_v61 }
 0x138   : > { %v1395_v39 = vadd.f32 %v1394_v19, %v1393_v15  ;;  %v1401_v26 = vrot.slane %v1400_v58, 2 }
 0x13a   : > { %v1396_v29 = vrot.slane %v1395_v39, 1  ;;  %v1402_v10 = vadd.f32 %v1401_v26, %v1400_v58 }
 0x13b   : > { %v1469_v60 = vpop.f32.mrf.mxu2 }
 0x13c   : > { %v1397_v33 = vadd.f32 %v1396_v29, %v1395_v39  ;;  %v1403_v34 = vrot.slane %v1402_v10, 1  ;;  %v1482_v48 = vpop.f32.mrf.mxu3 }
 0x13e   : > { %v1404_v62 = vadd.f32 %v1403_v34, %v1402_v10  ;;  %v3382_v21 = vadd.f32 %v1397_v33, %v1212_v43 }
 0x140   : > { %v3384_v47 = vadd.f32 %v1404_v62, %v1219_v42 }
 0x14b   : > { %v1493_v18 = vpop.f32.mrf.mxu0 }
 0x14c   : > { %v1506_v24 = vpop.f32.mrf.mxu1  ;;  %v1494_v4 = vadd.f32 %v1493_v18, %v1481_v12 }
 0x14e   : > { %v1507_v27 = vadd.f32 %v1506_v24, %v1494_v4 }
 0x153   : > { %v1519_v35 = vpop.f32.mrf.mxu2  ;;  %v1495_v9 = vpop.f32.mrf.mxu0 }
 0x154   : > { %v1532_v55 = vpop.f32.mrf.mxu3  ;;  %v1508_v46 = vpop.f32.mrf.mxu1  ;;  %v1520_v0 = vadd.f32 %v1519_v35, %v1507_v27 }
 0x156   : > { %v1533_v36 = vadd.f32 %v1532_v55, %v1520_v0 }
 0x15b   : > { %v1521_v59 = vpop.f32.mrf.mxu2 }
 0x15c   : > { %v1534_v40 = vpop.f32.mrf.mxu3 }
 0x16b   : > { %v1545_v32 = vpop.f32.mrf.mxu0 }
 0x16c   : > { %v1546_v2 = vadd.f32 %v1545_v32, %v1533_v36  ;;  %v1558_v14 = vpop.f32.mrf.mxu1 }
 0x16e   : > { %v1559_v3 = vadd.f32 %v1558_v14, %v1546_v2 }
 0x173   : > { %v1571_v30 = vpop.f32.mrf.mxu2  ;;  %v1547_v1 = vpop.f32.mrf.mxu0 }
 0x174   : > { %v1572_v23 = vadd.f32 %v1571_v30, %v1559_v3  ;;  %v1653_v31 = vpop.f32.mrf.mxu3  ;;  %v1560_v6 = vpop.f32.mrf.mxu1 }
 0x176   : > { %v1575_v44 = vpack.c.bf16 %v1572_v23, %v1572_v23  ;;  %v1584_v63 = vmul.f32 %v1572_v23, %v1572_v23  ;;  %v1578_v5 = vrot.slane %v1572_v23, 4 }
 0x178   : > { %2344 = vst [vmem:[%s3293_s8 + $0x8] sm:$0xf] %v1575_v44  ;;  %v1585_v61 = vrot.slane %v1584_v63, 4  ;;  %v1579_v37 = vadd.f32 %v1578_v5, %v1572_v23 }
 0x17a   : > { %v1586_v22 = vadd.f32 %v1585_v61, %v1584_v63  ;;  %v1580_v51 = vrot.slane %v1579_v37, 2 }
 0x17b   : > { %v1573_v53 = vpop.f32.mrf.mxu2 }
 0x17c   : > { %v1655_v20 = vpop.f32.mrf.mxu3  ;;  %v1587_v25 = vrot.slane %v1586_v22, 2  ;;  %v1581_v29 = vadd.f32 %v1580_v51, %v1579_v37 }
 0x17e   : > { %v1588_v43 = vadd.f32 %v1587_v25, %v1586_v22  ;;  %v1582_v48 = vrot.slane %v1581_v29, 1 }
 0x180   : > { %v1589_v35 = vrot.slane %v1588_v43, 1  ;;  %v1583_v46 = vadd.f32 %v1582_v48, %v1581_v29 }
 0x182   : > { %v1590_v40 = vadd.f32 %v1589_v35, %v1588_v43  ;;  %v1591_v0 = vadd.f32 %v1583_v46, %v3382_v21 }
 0x184   : > { %v1592_v2 = vadd.f32 %v1590_v40, %v3384_v47 }
 0x18b   : > { %v1666_v16 = vpop.f32.mrf.mxu0 }
 0x18c   : > { %v1679_v7 = vpop.f32.mrf.mxu1  ;;  %v1667_v57 = vadd.f32 %v1666_v16, %v1653_v31 }
 0x18e   : > { %v1680_v8 = vadd.f32 %v1679_v7, %v1667_v57 }
 0x193   : > { %v1692_v56 = vpop.f32.mrf.mxu2  ;;  %v1668_v45 = vpop.f32.mrf.mxu0 }
 0x194   : > { %v1705_v11 = vpop.f32.mrf.mxu3  ;;  %v1681_v50 = vpop.f32.mrf.mxu1  ;;  %v1693_v52 = vadd.f32 %v1692_v56, %v1680_v8 }
 0x196   : > { %v1706_v17 = vadd.f32 %v1705_v11, %v1693_v52 }
 0x19b   : > { %v1694_v41 = vpop.f32.mrf.mxu2 }
 0x19c   : > { %v1707_v49 = vpop.f32.mrf.mxu3 }
 0x1ab   : > { %v1718_v15 = vpop.f32.mrf.mxu0 }
 0x1ac   : > { %v1731_v54 = vpop.f32.mrf.mxu1  ;;  %v1719_v13 = vadd.f32 %v1718_v15, %v1706_v17 }
 0x1ae   : > { %v1732_v38 = vadd.f32 %v1731_v54, %v1719_v13 }
 0x1b3   : > { %v1744_v19 = vpop.f32.mrf.mxu2  ;;  %v1720_v26 = vpop.f32.mrf.mxu0 }
 0x1b4   : > { %v1757_v58 = vpop.f32.mrf.mxu3  ;;  %v1745_v39 = vadd.f32 %v1744_v19, %v1732_v38  ;;  %v1733_v28 = vpop.f32.mrf.mxu1 }
 0x1b6   : > { %v1758_v10 = vadd.f32 %v1757_v58, %v1745_v39 }
 0x1b8   : > { %v1761_v33 = vpack.c.bf16 %v1758_v10, %v1758_v10  ;;  %v1764_v34 = vrot.slane %v1758_v10, 4  ;;  %v1770_v60 = vmul.f32 %v1758_v10, %v1758_v10 }
 0x1ba   : > { %2359 = vst [vmem:[%s3293_s8 + $0xc] sm:$0xf] %v1761_v33  ;;  %v1765_v42 = vadd.f32 %v1764_v34, %v1758_v10  ;;  %v1771_v62 = vrot.slane %v1770_v60, 4 }
 0x1bb   : > { %v1746_v18 = vpop.f32.mrf.mxu2 }
 0x1bc   : > { %v1759_v24 = vpop.f32.mrf.mxu3  ;;  %v1766_v55 = vrot.slane %v1765_v42, 2  ;;  %v1772_v9 = vadd.f32 %v1771_v62, %v1770_v60 }
 0x1be   : > { %v1767_v12 = vadd.f32 %v1766_v55, %v1765_v42  ;;  %v1773_v59 = vrot.slane %v1772_v9, 2 }
 0x1c0   : > { %v1768_v4 = vrot.slane %v1767_v12, 1  ;;  %v1774_v27 = vadd.f32 %v1773_v59, %v1772_v9 }
 0x1c2   : > { %v1769_v36 = vadd.f32 %v1768_v4, %v1767_v12  ;;  %v1775_v32 = vrot.slane %v1774_v27, 1 }
 0x1c4   : > { %v1776_v14 = vadd.f32 %v1775_v32, %v1774_v27  ;;  %v1777_v3 = vadd.f32 %v1769_v36, %v1591_v0 }
 0x1c6   : > { %v1778_v30 = vadd.f32 %v1776_v14, %v1592_v2  ;;  %1779 = vst [vmem:[%s449_s16] sm:$0x1] %v1777_v3 }
 0x1c8   : > { %1780 = vst [vmem:[%s456_s18] sm:$0x1] %v1778_v30 }
 0x1c9 PF: > { %s17_s25 = sadd.s32 1, %s2537_s25   ;;  %s3564_s21 = smov %s2529_s23 }
 0x1ca   : > { %p14_p11 = scmp.ge.s32.totalorder %s17_s25, 6   ;;  %s3565_s22 = smov %s2533_s24 }
 0x1cb   : > { %s3566_s23 = smov %s3569_s26  ;;  %s3567_s24 = smov %s3573_s27 }
 0x1cc   :  { %16 = sbr.rel (!%p14_p11) target bundleno = 3 (0x3), region = 102 }

// kernel: resnet_forward.24
= control target key start
LH: loop header
LB: loop body
LE: loop exit
PB: predicated region body
PF: predicated region fallthrough
CT: control target
= control target key end

     0   :  { %s466_s21 = smov 0   ;;  %s498_s0 = inlined_call_operand.vmem [shape: bf16[32,128], index: 0, kind: input, shape index: {}]   ;;  %s499_s1 = inlined_call_operand.vmem [shape: f32[1,128], index: 1, kind: input, shape index: {}]   ;;  %s500_s2 = inlined_call_operand.vmem [shape: f32[1,128], index: 2, kind: input, shape index: {}]   ;;  %s501_s3 = inlined_call_operand.vmem [shape: bf16[32,128], index: 3, kind: input, shape index: {}]   ;;  %s502_s4 = inlined_call_operand.vmem [shape: f32[1,128], index: 4, kind: input, shape index: {}]   ;;  %s503_s5 = inlined_call_operand.vmem [shape: f32[1,128], index: 5, kind: input, shape index: {}]   ;;  %s504_s6 = inlined_call_operand.vmem [shape: bf16[32,128], index: 6, kind: output, shape index: {}]  }
   0x1 LB: > { %s385_s22 = sadd.s32 4294967295, %s429_s21   ;;  %p389_p0 = scmp.ge.s32.totalorder %s429_s21, 1  ;;  %s429_s21 = sphi %s466_s21, %s16_s21  }
   0x2   : > { %p224_p1 = scmp.lt.s32.totalorder %s429_s21, 3 }
   0x4   : > { %p225_p2 = pnand %p389_p0, %p224_p1 }
   0x5   : > { %s390_s23 = sshll.u32 (!%p225_p2), %s385_s22, 1 }
   0x6   : > { %228 = sbr.rel (%p225_p2) target bundleno = 29 (0x1d), region = 44  ;;  %p260_p3 = scmp.lt.s32.totalorder (!%p225_p2), %s390_s23, 3 }
   0xb   : > { %s506_s23 = smov (!%p260_p3, %s390_s23), 3  ;;  %v419_v0 = vld [vmem:[%s499_s1] ss:$0 sm:$0xff] }
   0xc   : > { %s391_s24 = sshll.u32 %s506_s23, 2  ;;  %v421_v1 = vld [vmem:[%s502_s4] ss:$0 sm:$0xff] }
   0xd   : > { %s263_s27 = scalar_lea.vmem %s498_s0, %s391_s24  ;;  %s269_s30 = scalar_lea.vmem %s501_s3, %s391_s24  ;;  %v420_v6 = vld [vmem:[%s500_s2] ss:$0 sm:$0xff] }
   0xe   : > { %v399_v2 = vld [vmem:[%s263_s27] sm:$0xff]   ;;  %s275_s17 = scalar_lea.vmem %s504_s6, %s391_s24 }
   0xf   : > { %v403_v3 = vld [vmem:[%s269_s30] sm:$0xff]   ;;  %v400_v4 = vunpack.c.l.bf16 %v399_v2  ;;  %v401_v5 = vunpack.c.h.bf16 %v399_v2 }
  0x10   : > { %v404_v7 = vunpack.c.l.bf16 %v403_v3  ;;  %v405_v8 = vunpack.c.h.bf16 %v403_v3  ;;  %v422_v9 = vld [vmem:[%s503_s5] ss:$0 sm:$0xff] }
  0x11   : > { %v285_v10 = vmul.f32 %v419_v0, %v400_v4  ;;  %v286_v11 = vmul.f32 %v419_v0, %v401_v5 }
  0x12   : > { %v301_v12 = vmul.f32 %v421_v1, %v404_v7  ;;  %v302_v13 = vmul.f32 %v421_v1, %v405_v8 }
  0x13   : > { %v291_v14 = vadd.f32 %v420_v6, %v285_v10  ;;  %v292_v15 = vadd.f32 %v420_v6, %v286_v11 }
  0x14   : > { %v307_v16 = vadd.f32 %v422_v9, %v301_v12  ;;  %v308_v17 = vadd.f32 %v422_v9, %v302_v13 }
  0x16   : > { %v309_v18 = vadd.f32 %v307_v16, %v291_v14  ;;  %v310_v19 = vadd.f32 %v308_v17, %v292_v15 }
  0x18   : > { %v311_v20 = vmax.f32 %v309_v18, 0.0  ;;  %v312_v21 = vmax.f32 %v310_v19, 0.0 }
  0x1a   : > { %v409_v22 = vpack.c.bf16 %v312_v21, %v311_v20 }
  0x1c   : > { %410 = vst [vmem:[%s275_s17] sm:$0xff] %v409_v22  }
  0x1d PF: > { %s16_s21 = sadd.s32 1, %s429_s21  }
  0x1e   : > { %p13_p4 = scmp.ge.s32.totalorder %s16_s21, 4  }
  0x20   :  { %15 = sbr.rel (!%p13_p4) target bundleno = 1 (0x1), region = 77 }

// kernel: resnet_forward.21
= control target key start
LH: loop header
LB: loop body
LE: loop exit
PB: predicated region body
PF: predicated region fallthrough
CT: control target
= control target key end

     0   :  { %s1710_s15 = smov 0   ;;  %s1712_s16 = smov 0   ;;  %s1994_s0 = inlined_call_operand.vmem [shape: bf16[32,1152], index: 0, kind: input, shape index: {}]   ;;  %s1995_s1 = inlined_call_operand.vmem [shape: bf16[1152,128], index: 1, kind: input, shape index: {}]   ;;  %s1996_s2 = inlined_call_operand.vmem [shape: bf16[32,128], index: 2, kind: output, shape index: {0}]   ;;  %s1997_s3 = inlined_call_operand.vmem [shape: f32[2,1,128], index: 3, kind: output, shape index: {1}]   ;;  %s1998_s4 = inlined_call_operand.vmem [shape: f32[2,1,128], index: 4, kind: output, shape index: {2}]  }
   0x1   :  { %s1714_s17 = smov 0  }
   0x2 LB: > { %s27_s18 = sadd.s32 1, %s1679_s16  ;;  %p1219_p0 = scmp.ge.s32.totalorder %s1683_s17, 1  ;;  %s1683_s17 = sphi %s1714_s17, %s15_s17   ;;  %s1679_s16 = sphi %s1712_s16, %s2000_s16   ;;  %s1675_s15 = sphi %s1710_s15, %s1999_s15  }
   0x3   : > { %p29_p1 = scmp.ge.s32.totalorder %s27_s18, 2  ;;  %p196_p2 = scmp.lt.s32.totalorder %s1683_s17, 3 }
   0x5   : > { %s2002_s18 = smov (%p29_p1, %s27_s18), 0  ;;  %p197_p3 = pnand %p1219_p0, %p196_p2 }
   0x6   : > { %s1220_s21 = sshll.u32 (!%p197_p3), %s1675_s15, 1  ;;  %p262_p5 = scmp.lt.s32.totalorder (!%p197_p3), %s1675_s15, 1 }
   0x7   : > { %200 = sbr.rel (%p197_p3) target bundleno = 261 (0x105), region = 28  ;;  %p243_p4 = scmp.lt.s32.totalorder (!%p197_p3), %s1220_s21, 3 }
   0xc   : > { %v1566_v0 = vld [vmem:[%s1995_s1 + $0x38] sm:$0xff]  ;;  %v1565_v4 = vld [vmem:[%s1995_s1 + $0x30] sm:$0xff]  ;;  %v1564_v8 = vld [vmem:[%s1995_s1 + $0x28] sm:$0xff]  ;;  %s2004_s21 = smov (!%p243_p4, %s1220_s21), 3  ;;  %s2006_s15 = smov (!%p262_p5, %s1675_s15), 1 }
   0xd   : > { %v1582_v1 = vld [vmem:[%s1995_s1 + $0xb8] sm:$0xff]  ;;  %906 = vmatpush.bf16.msra.mxu0 %v1566_v0  ;;  %v1581_v5 = vld [vmem:[%s1995_s1 + $0xb0] sm:$0xff]  ;;  %v1580_v9 = vld [vmem:[%s1995_s1 + $0xa8] sm:$0xff]  ;;  %s1636_s25 = smul.u32 36, %s2004_s21  ;;  %s267_s28 = scalar_lea.vmem %s1997_s3, %s2006_s15 }
   0xe   : > { %v1574_v2 = vld [vmem:[%s1995_s1 + $0x78] sm:$0xff]  ;;  %934 = vmatpush.bf16.msra.mxu2 %v1582_v1  ;;  %v1573_v6 = vld [vmem:[%s1995_s1 + $0x70] sm:$0xff]  ;;  %v1572_v10 = vld [vmem:[%s1995_s1 + $0x68] sm:$0xff]  ;;  %s273_s5 = scalar_lea.vmem %s1998_s4, %s2006_s15 }
   0xf   : > { %v1590_v3 = vld [vmem:[%s1995_s1 + $0xf8] sm:$0xff]  ;;  %920 = vmatpush.bf16.msra.mxu1 %v1574_v2  ;;  %v1589_v7 = vld [vmem:[%s1995_s1 + $0xf0] sm:$0xff]  ;;  %v1588_v11 = vld [vmem:[%s1995_s1 + $0xe8] sm:$0xff]  ;;  %s1821_s10 = scalar_lea.vmem %s1994_s0, %s1636_s25 }
  0x10   : > { %948 = vmatpush.bf16.msra.mxu3 %v1590_v3  ;;  %v1563_v12 = vld [vmem:[%s1995_s1 + $0x20] sm:$0xff]  ;;  %v1562_v16 = vld [vmem:[%s1995_s1 + $0x18] sm:$0xff]  ;;  %v1561_v20 = vld [vmem:[%s1995_s1 + $0x10] sm:$0xff] }
  0x11   : > { %907 = vmatpush.bf16.msra.mxu0 %v1565_v4  ;;  %v1579_v13 = vld [vmem:[%s1995_s1 + $0xa0] sm:$0xff]  ;;  %v1578_v17 = vld [vmem:[%s1995_s1 + $0x98] sm:$0xff]  ;;  %v1577_v21 = vld [vmem:[%s1995_s1 + $0x90] sm:$0xff] }
  0x12   : > { %935 = vmatpush.bf16.msra.mxu2 %v1581_v5  ;;  %v1571_v14 = vld [vmem:[%s1995_s1 + $0x60] sm:$0xff]  ;;  %v1570_v18 = vld [vmem:[%s1995_s1 + $0x58] sm:$0xff]  ;;  %v1569_v22 = vld [vmem:[%s1995_s1 + $0x50] sm:$0xff] }
  0x13   : > { %921 = vmatpush.bf16.msra.mxu1 %v1573_v6  ;;  %v1587_v15 = vld [vmem:[%s1995_s1 + $0xe0] sm:$0xff]  ;;  %v1586_v19 = vld [vmem:[%s1995_s1 + $0xd8] sm:$0xff]  ;;  %v1585_v23 = vld [vmem:[%s1995_s1 + $0xd0] sm:$0xff] }
  0x14   : > { %949 = vmatpush.bf16.msra.mxu3 %v1589_v7  ;;  %v1560_v24 = vld [vmem:[%s1995_s1 + $0x8] sm:$0xff]  ;;  %v1559_v28 = vld [vmem:[%s1995_s1] sm:$0xff]  ;;  %v1598_v30 = vld [vmem:[%s1995_s1 + $0x138] sm:$0xff] }
  0x15   : > { %908 = vmatpush.bf16.msra.mxu0 %v1564_v8  ;;  %v1576_v25 = vld [vmem:[%s1995_s1 + $0x88] sm:$0xff]  ;;  %v1575_v29 = vld [vmem:[%s1995_s1 + $0x80] sm:$0xff]  ;;  %v1614_v31 = vld [vmem:[%s1995_s1 + $0x1b8] sm:$0xff] }
  0x16   : > { %936 = vmatpush.bf16.msra.mxu2 %v1580_v9  ;;  %v1568_v26 = vld [vmem:[%s1995_s1 + $0x48] sm:$0xff]  ;;  %v1567_v32 = vld [vmem:[%s1995_s1 + $0x40] sm:$0xff]  ;;  %v1606_v38 = vld [vmem:[%s1995_s1 + $0x178] sm:$0xff] }
  0x17   : > { %922 = vmatpush.bf16.msra.mxu1 %v1572_v10  ;;  %v1584_v27 = vld [vmem:[%s1995_s1 + $0xc8] sm:$0xff]  ;;  %v1583_v33 = vld [vmem:[%s1995_s1 + $0xc0] sm:$0xff]  ;;  %v1622_v39 = vld [vmem:[%s1995_s1 + $0x1f8] sm:$0xff] }
  0x18   : > { %950 = vmatpush.bf16.msra.mxu3 %v1588_v11  ;;  %v1226_v34 = vld [vmem:[%s1821_s10] sm:$0xf]  ;;  %v1554_v35 = vld [vmem:[%s1821_s10 + $0x20] sm:$0xf0]  ;;  %v1234_v36 = vld [vmem:[%s1821_s10 + $0x8] sm:$0xf] }
  0x19   : > { %909 = vmatpush.bf16.msra.mxu0 %v1563_v12  ;;  %v1555_v37 = vld [vmem:[%s1821_s10 + $0x28] sm:$0xf0]  ;;  %v1550_v40 = vld [vmem:[%s1821_s10 + $0x4] sm:$0xf]  ;;  %v1228_v41 = vld [vmem:[%s1821_s10 + $0x24] sm:$0xf0]  ;;  %v1227_v44 = vor.u32 %v1554_v35, %v1226_v34 }
  0x1a   : > { %937 = vmatpush.bf16.msra.mxu2 %v1579_v13  ;;  %v1551_v42 = vld [vmem:[%s1821_s10 + $0xc] sm:$0xf]  ;;  %v1236_v43 = vld [vmem:[%s1821_s10 + $0x2c] sm:$0xf0]  ;;  %v1235_v45 = vor.u32 %v1555_v37, %v1234_v36  ;;  %v1231_v48 = vor.u32 %v1550_v40, %v1228_v41  ;;  %v1595_v56 = vld [vmem:[%s1995_s1 + $0x120] sm:$0xff] }
  0x1b   : > { %923 = vmatpush.bf16.msra.mxu1 %v1571_v14  ;;  %v1597_v46 = vld [vmem:[%s1995_s1 + $0x130] sm:$0xff]  ;;  %v1239_v49 = vor.u32 %v1551_v42, %v1236_v43  ;;  %v1596_v52 = vld [vmem:[%s1995_s1 + $0x128] sm:$0xff]  ;;  %v1611_v57 = vld [vmem:[%s1995_s1 + $0x1a0] sm:$0xff] }
  0x1c   : > { %951 = vmatpush.bf16.msra.mxu3 %v1587_v15  ;;  %v1613_v47 = vld [vmem:[%s1995_s1 + $0x1b0] sm:$0xff]  ;;  %v1612_v53 = vld [vmem:[%s1995_s1 + $0x1a8] sm:$0xff]  ;;  %v1603_v58 = vld [vmem:[%s1995_s1 + $0x160] sm:$0xff] }
  0x1d   : > { %910 = vmatpush.bf16.msra.mxu0 %v1562_v16  ;;  %v1605_v50 = vld [vmem:[%s1995_s1 + $0x170] sm:$0xff]  ;;  %v1604_v54 = vld [vmem:[%s1995_s1 + $0x168] sm:$0xff]  ;;  %v1619_v59 = vld [vmem:[%s1995_s1 + $0x1e0] sm:$0xff] }
  0x1e   : > { %938 = vmatpush.bf16.msra.mxu2 %v1578_v17  ;;  %v1621_v51 = vld [vmem:[%s1995_s1 + $0x1f0] sm:$0xff]  ;;  %v1620_v55 = vld [vmem:[%s1995_s1 + $0x1e8] sm:$0xff]  ;;  %v1594_v60 = vld [vmem:[%s1995_s1 + $0x118] sm:$0xff] }
  0x1f   : > { %924 = vmatpush.bf16.msra.mxu1 %v1570_v18  ;;  %v1610_v61 = vld [vmem:[%s1995_s1 + $0x198] sm:$0xff]  ;;  %v1593_v0 = vld [vmem:[%s1995_s1 + $0x110] sm:$0xff]  ;;  %v1592_v4 = vld [vmem:[%s1995_s1 + $0x108] sm:$0xff] }
  0x20   : > { %952 = vmatpush.bf16.msra.mxu3 %v1586_v19  ;;  %v1602_v62 = vld [vmem:[%s1995_s1 + $0x158] sm:$0xff]  ;;  %v1609_v1 = vld [vmem:[%s1995_s1 + $0x190] sm:$0xff]  ;;  %v1608_v5 = vld [vmem:[%s1995_s1 + $0x188] sm:$0xff] }
  0x21   : > { %911 = vmatpush.bf16.msra.mxu0 %v1561_v20  ;;  %v1618_v63 = vld [vmem:[%s1995_s1 + $0x1d8] sm:$0xff]  ;;  %v1601_v2 = vld [vmem:[%s1995_s1 + $0x150] sm:$0xff]  ;;  %v1600_v6 = vld [vmem:[%s1995_s1 + $0x148] sm:$0xff] }
  0x22   : > { %939 = vmatpush.bf16.msra.mxu2 %v1577_v21  ;;  %v1617_v3 = vld [vmem:[%s1995_s1 + $0x1d0] sm:$0xff]  ;;  %v1616_v7 = vld [vmem:[%s1995_s1 + $0x1c8] sm:$0xff]  ;;  %v1591_v8 = vld [vmem:[%s1995_s1 + $0x100] sm:$0xff] }
  0x23   : > { %925 = vmatpush.bf16.msra.mxu1 %v1569_v22  ;;  %v1607_v9 = vld [vmem:[%s1995_s1 + $0x180] sm:$0xff]  ;;  %v1630_v10 = vld [vmem:[%s1995_s1 + $0x238] sm:$0xff]  ;;  %v1242_v11 = vld [vmem:[%s1821_s10 + $0x10] sm:$0xf] }
  0x24   : > { %953 = vmatpush.bf16.msra.mxu3 %v1585_v23  ;;  %v1556_v12 = vld [vmem:[%s1821_s10 + $0x30] sm:$0xf0]  ;;  %v1250_v13 = vld [vmem:[%s1821_s10 + $0x18] sm:$0xf]  ;;  %v1557_v14 = vld [vmem:[%s1821_s10 + $0x38] sm:$0xf0] }
  0x25   : > { %912 = vmatpush.bf16.msra.mxu0 %v1560_v24  ;;  %v1599_v15 = vld [vmem:[%s1995_s1 + $0x140] sm:$0xff]  ;;  %v1552_v17 = vld [vmem:[%s1821_s10 + $0x14] sm:$0xf]  ;;  %v1244_v18 = vld [vmem:[%s1821_s10 + $0x34] sm:$0xf0]  ;;  %v1243_v21 = vor.u32 %v1556_v12, %v1242_v11  ;;  %v1251_v22 = vor.u32 %v1557_v14, %v1250_v13 }
  0x26   : > { %940 = vmatpush.bf16.msra.mxu2 %v1576_v25  ;;  %v1615_v16 = vld [vmem:[%s1995_s1 + $0x1c0] sm:$0xff]  ;;  %v1553_v19 = vld [vmem:[%s1821_s10 + $0x1c] sm:$0xf]  ;;  %v1247_v23 = vor.u32 %v1552_v17, %v1244_v18  ;;  %v1629_v25 = vld [vmem:[%s1995_s1 + $0x230] sm:$0xff] }
  0x27   : > { %926 = vmatpush.bf16.msra.mxu1 %v1568_v26  ;;  %v1252_v20 = vld [vmem:[%s1821_s10 + $0x3c] sm:$0xf0]  ;;  %v1628_v26 = vld [vmem:[%s1995_s1 + $0x228] sm:$0xff] }
  0x28   : > { %954 = vmatpush.bf16.msra.mxu3 %v1584_v27  ;;  %v1255_v24 = vor.u32 %v1553_v19, %v1252_v20  ;;  %v1627_v27 = vld [vmem:[%s1995_s1 + $0x220] sm:$0xff] }
  0x29   : > { %913 = vmatpush.bf16.msra.mxu0 %v1559_v28  ;;  %v1626_v28 = vld [vmem:[%s1995_s1 + $0x218] sm:$0xff] }
  0x2a   : > { %941 = vmatpush.bf16.msra.mxu2 %v1575_v29  ;;  %v1625_v29 = vld [vmem:[%s1995_s1 + $0x210] sm:$0xff] }
  0x2b   : > { %927 = vmatpush.bf16.msra.mxu1 %v1567_v32  ;;  %v1258_v32 = vld [vmem:[%s1821_s10 + $0x20] sm:$0xf] }
  0x2c   : > { %955 = vmatpush.bf16.msra.mxu3 %v1583_v33  ;;  %914 = vmatmul.bf16.vlgmr.msra.gmra.mxu0 %v1227_v44  ;;  %v1558_v33 = vld [vmem:[%s1821_s10 + $0x40] sm:$0xf0]  ;;  %s1223_s10 = sshll.u32 %s2004_s21, 2 }
  0x2d   : > { %962 = vmatpush.bf16.msrb.mxu0 %v1598_v30  ;;  %942 = vmatmul.bf16.vlgmr.msra.gmra.mxu2 %v1235_v45  ;;  %v1624_v30 = vld [vmem:[%s1995_s1 + $0x208] sm:$0xff]  ;;  %v1259_v34 = vor.u32 %v1558_v33, %v1258_v32  ;;  %s260_s26 = scalar_lea.vmem %s1996_s2, %s1223_s10 }
  0x2e   : > { %990 = vmatpush.bf16.msrb.mxu2 %v1614_v31  ;;  %928 = vmatmul.bf16.vlgmr.msra.gmra.mxu1 %v1231_v48  ;;  %v1623_v31 = vld [vmem:[%s1995_s1 + $0x200] sm:$0xff] }
  0x2f   : > { %976 = vmatpush.bf16.msrb.mxu1 %v1606_v38  ;;  %956 = vmatmul.bf16.vlgmr.msra.gmra.mxu3 %v1239_v49 }
  0x30   : > { %1004 = vmatpush.bf16.msrb.mxu3 %v1622_v39 }
  0x31   : > { %963 = vmatpush.bf16.msrb.mxu0 %v1597_v46 }
  0x32   : > { %991 = vmatpush.bf16.msrb.mxu2 %v1613_v47 }
  0x33   : > { %977 = vmatpush.bf16.msrb.mxu1 %v1605_v50 }
  0x34   : > { %1005 = vmatpush.bf16.msrb.mxu3 %v1621_v51 }
  0x35   : > { %964 = vmatpush.bf16.msrb.mxu0 %v1596_v52 }
  0x36   : > { %992 = vmatpush.bf16.msrb.mxu2 %v1612_v53 }
  0x37   : > { %978 = vmatpush.bf16.msrb.mxu1 %v1604_v54 }
  0x38   : > { %1006 = vmatpush.bf16.msrb.mxu3 %v1620_v55 }
  0x39   : > { %965 = vmatpush.bf16.msrb.mxu0 %v1595_v56 }
  0x3a   : > { %993 = vmatpush.bf16.msrb.mxu2 %v1611_v57 }
  0x3b   : > { %979 = vmatpush.bf16.msrb.mxu1 %v1603_v58 }
  0x3c   : > { %1007 = vmatpush.bf16.msrb.mxu3 %v1619_v59 }
  0x3d   : > { %966 = vmatpush.bf16.msrb.mxu0 %v1594_v60 }
  0x3e   : > { %994 = vmatpush.bf16.msrb.mxu2 %v1610_v61 }
  0x3f   : > { %980 = vmatpush.bf16.msrb.mxu1 %v1602_v62 }
  0x40   : > { %1008 = vmatpush.bf16.msrb.mxu3 %v1618_v63 }
  0x41   : > { %967 = vmatpush.bf16.msrb.mxu0 %v1593_v0 }
  0x42   : > { %995 = vmatpush.bf16.msrb.mxu2 %v1609_v1 }
  0x43   : > { %981 = vmatpush.bf16.msrb.mxu1 %v1601_v2 }
  0x44   : > { %1009 = vmatpush.bf16.msrb.mxu3 %v1617_v3 }
  0x45   : > { %968 = vmatpush.bf16.msrb.mxu0 %v1592_v4 }
  0x46   : > { %996 = vmatpush.bf16.msrb.mxu2 %v1608_v5 }
  0x47   : > { %982 = vmatpush.bf16.msrb.mxu1 %v1600_v6 }
  0x48   : > { %1010 = vmatpush.bf16.msrb.mxu3 %v1616_v7 }
  0x49   : > { %969 = vmatpush.bf16.msrb.mxu0 %v1591_v8 }
  0x4a   : > { %997 = vmatpush.bf16.msrb.mxu2 %v1607_v9 }
  0x4b   : > { %983 = vmatpush.bf16.msrb.mxu1 %v1599_v15 }
  0x4c   : > { %1011 = vmatpush.bf16.msrb.mxu3 %v1615_v16  ;;  %970 = vmatmul.bf16.vlgmr.msrb.gmra.mxu0 %v1243_v21 }
  0x4d   : > { %1018 = vmatpush.bf16.msra.mxu0 %v1630_v10  ;;  %998 = vmatmul.bf16.vlgmr.msrb.gmra.mxu2 %v1251_v22 }
  0x4e   : > { %984 = vmatmul.bf16.vlgmr.msrb.gmra.mxu1 %v1247_v23 }
  0x4f   : > { %1012 = vmatmul.bf16.vlgmr.msrb.gmra.mxu3 %v1255_v24 }
  0x51   : > { %1019 = vmatpush.bf16.msra.mxu0 %v1629_v25 }
  0x55   : > { %1020 = vmatpush.bf16.msra.mxu0 %v1628_v26 }
  0x59   : > { %1021 = vmatpush.bf16.msra.mxu0 %v1627_v27 }
  0x5d   : > { %1022 = vmatpush.bf16.msra.mxu0 %v1626_v28 }
  0x61   : > { %1023 = vmatpush.bf16.msra.mxu0 %v1625_v29 }
  0x65   : > { %1024 = vmatpush.bf16.msra.mxu0 %v1624_v30 }
  0x69   : > { %1025 = vmatpush.bf16.msra.mxu0 %v1623_v31 }
  0x6c   : > { %1026 = vmatmul.bf16.vlgmr.msra.gmra.mxu0 %v1259_v34 }
  0xa9   : > { %v915_v35 = vpop.f32.mrf.mxu0 }
  0xab   : > { %v929_v36 = vpop.f32.mrf.mxu1 }
  0xac   : > { %v930_v42 = vadd.f32 %v929_v36, %v915_v35 }
  0xb0   : > { %v943_v37 = vpop.f32.mrf.mxu2 }
  0xb1   : > { %v917_v38 = vpop.f32.mrf.mxu0  ;;  %v944_v45 = vadd.f32 %v943_v37, %v930_v42 }
  0xb2   : > { %v957_v39 = vpop.f32.mrf.mxu3 }
  0xb3   : > { %v931_v40 = vpop.f32.mrf.mxu1  ;;  %v958_v48 = vadd.f32 %v957_v39, %v944_v45 }
  0xb4   : > { %v932_v46 = vadd.f32 %v931_v40, %v917_v38 }
  0xb8   : > { %v945_v41 = vpop.f32.mrf.mxu2 }
  0xb9   : > { %v946_v50 = vadd.f32 %v945_v41, %v932_v46 }
  0xba   : > { %v959_v44 = vpop.f32.mrf.mxu3 }
  0xbb   : > { %v960_v54 = vadd.f32 %v959_v44, %v946_v50 }
  0xc9   : > { %v971_v43 = vpop.f32.mrf.mxu0 }
  0xca   : > { %v972_v52 = vadd.f32 %v971_v43, %v958_v48 }
  0xcb   : > { %v985_v47 = vpop.f32.mrf.mxu1 }
  0xcc   : > { %v986_v55 = vadd.f32 %v985_v47, %v972_v52 }
  0xd0   : > { %v999_v49 = vpop.f32.mrf.mxu2 }
  0xd1   : > { %v973_v51 = vpop.f32.mrf.mxu0  ;;  %v1000_v60 = vadd.f32 %v999_v49, %v986_v55 }
  0xd2   : > { %v1013_v53 = vpop.f32.mrf.mxu3  ;;  %v974_v56 = vadd.f32 %v973_v51, %v960_v54 }
  0xd3   : > { %v987_v57 = vpop.f32.mrf.mxu1  ;;  %v1014_v0 = vadd.f32 %v1013_v53, %v1000_v60 }
  0xd4   : > { %v988_v61 = vadd.f32 %v987_v57, %v974_v56 }
  0xd8   : > { %v1001_v58 = vpop.f32.mrf.mxu2 }
  0xd9   : > { %v1002_v62 = vadd.f32 %v1001_v58, %v988_v61 }
  0xda   : > { %v1015_v63 = vpop.f32.mrf.mxu3 }
  0xdb   : > { %v1016_v1 = vadd.f32 %v1015_v63, %v1002_v62 }
  0xe9   : > { %v1027_v59 = vpop.f32.mrf.mxu0 }
  0xea   : > { %v1028_v2 = vadd.f32 %v1027_v59, %v1014_v0 }
  0xec   : > { %v1044_v5 = vmul.f32 %v1028_v2, %v1028_v2 }
  0xf1   : > { %v1029_v3 = vpop.f32.mrf.mxu0 }
  0xf2   : > { %v1030_v4 = vadd.f32 %v1029_v3, %v1016_v1 }
  0xf4   : > { %v1634_v6 = vpack.c.bf16 %v1030_v4, %v1028_v2  ;;  %v1036_v7 = vadd.f32 %v1030_v4, %v1028_v2  ;;  %v1045_v8 = vmul.f32 %v1030_v4, %v1030_v4 }
  0xf6   : > { %1635 = vst [vmem:[%s260_s26] sm:$0xff] %v1634_v6   ;;  %v1037_v9 = vrot.slane %v1036_v7, 4  ;;  %v1046_v10 = vadd.f32 %v1045_v8, %v1044_v5 }
  0xf8   : > { %v1038_v11 = vadd.f32 %v1037_v9, %v1036_v7  ;;  %v1047_v12 = vrot.slane %v1046_v10, 4 }
  0xfa   : > { %v1039_v13 = vrot.slane %v1038_v11, 2  ;;  %v1048_v14 = vadd.f32 %v1047_v12, %v1046_v10 }
  0xfc   : > { %v1040_v15 = vadd.f32 %v1039_v13, %v1038_v11  ;;  %v1049_v16 = vrot.slane %v1048_v14, 2 }
  0xfe   : > { %v1041_v17 = vrot.slane %v1040_v15, 1  ;;  %v1050_v18 = vadd.f32 %v1049_v16, %v1048_v14 }
 0x100   : > { %v1042_v19 = vadd.f32 %v1041_v17, %v1040_v15  ;;  %v1051_v20 = vrot.slane %v1050_v18, 1 }
 0x102   : > { %1043 = vst [vmem:[%s267_s28] sm:$0x1] %v1042_v19  ;;  %v1052_v21 = vadd.f32 %v1051_v20, %v1050_v18 }
 0x104   : > { %1053 = vst [vmem:[%s273_s5] sm:$0x1] %v1052_v21 }
 0x105 PF: > { %s15_s17 = sadd.s32 1, %s1683_s17   ;;  %s1999_s15 = smov %s1679_s16 }
 0x106   : > { %p12_p6 = scmp.ge.s32.totalorder %s15_s17, 4   ;;  %s2000_s16 = smov %s2002_s18 }
 0x108   :  { %14 = sbr.rel (!%p12_p6) target bundleno = 2 (0x2), region = 85 }

// kernel: resnet_forward.27
= control target key start
LH: loop header
LB: loop body
LE: loop exit
PB: predicated region body
PF: predicated region fallthrough
CT: control target
= control target key end

     0   :  { %s222_s1 = inlined_call_operand.vmem [shape: bf16[128,128], index: 1, kind: input, shape index: {}]   ;;  %s223_s0 = inlined_call_operand.vmem [shape: bf16[8,128], index: 0, kind: input, shape index: {}]   ;;  %s224_s2 = inlined_call_operand.vmem [shape: bf16[8,128], index: 2, kind: output, shape index: {0}]   ;;  %s225_s3 = inlined_call_operand.vmem [shape: f32[1,1,128], index: 3, kind: output, shape index: {1}]   ;;  %s226_s4 = inlined_call_operand.vmem [shape: f32[1,1,128], index: 4, kind: output, shape index: {2}]  }
   0x1   :  { %v160_v0 = vld [vmem:[%s222_s1 + $0x38] sm:$0xff]  ;;  %v159_v1 = vld [vmem:[%s222_s1 + $0x30] sm:$0xff]  ;;  %v158_v2 = vld [vmem:[%s222_s1 + $0x28] sm:$0xff] }
   0x2   :  { %79 = vmatpush.bf16.msra.mxu0 %v160_v0  ;;  %v157_v3 = vld [vmem:[%s222_s1 + $0x20] sm:$0xff]  ;;  %v156_v4 = vld [vmem:[%s222_s1 + $0x18] sm:$0xff]  ;;  %v155_v5 = vld [vmem:[%s222_s1 + $0x10] sm:$0xff] }
   0x3   :  { %v154_v6 = vld [vmem:[%s222_s1 + $0x8] sm:$0xff]  ;;  %v153_v7 = vld [vmem:[%s222_s1] sm:$0xff] }
   0x4   :  { %v14_v8 = vld [vmem:[%s223_s0] sm:$0xf] }
   0x6   :  { %80 = vmatpush.bf16.msra.mxu0 %v159_v1 }
   0xa   :  { %81 = vmatpush.bf16.msra.mxu0 %v158_v2 }
   0xe   :  { %82 = vmatpush.bf16.msra.mxu0 %v157_v3 }
  0x12   :  { %83 = vmatpush.bf16.msra.mxu0 %v156_v4 }
  0x16   :  { %84 = vmatpush.bf16.msra.mxu0 %v155_v5 }
  0x1a   :  { %85 = vmatpush.bf16.msra.mxu0 %v154_v6 }
  0x1e   :  { %86 = vmatpush.bf16.msra.mxu0 %v153_v7 }
  0x21   :  { %87 = vmatmul.bf16.vlgmr.msra.gmra.mxu0 %v14_v8 }
  0x9e   :  { %v88_v9 = vpop.f32.mrf.mxu0 }
  0x9f   :  { %v92_v10 = vpack.c.bf16 %v88_v9, %v88_v9  ;;  %v94_v11 = vrot.slane %v88_v9, 4  ;;  %v101_v12 = vmul.f32 %v88_v9, %v88_v9 }
  0xa1   :  { %93 = vst [vmem:[%s224_s2] sm:$0xf] %v92_v10  ;;  %v95_v13 = vadd.f32 %v94_v11, %v88_v9  ;;  %v102_v14 = vrot.slane %v101_v12, 4 }
  0xa3   :  { %v96_v15 = vrot.slane %v95_v13, 2  ;;  %v103_v16 = vadd.f32 %v102_v14, %v101_v12 }
  0xa5   :  { %v97_v17 = vadd.f32 %v96_v15, %v95_v13  ;;  %v104_v18 = vrot.slane %v103_v16, 2 }
  0xa6   :  { %v90_v19 = vpop.f32.mrf.mxu0 }
  0xa7   :  { %v98_v20 = vrot.slane %v97_v17, 1  ;;  %v105_v21 = vadd.f32 %v104_v18, %v103_v16 }
  0xa9   :  { %v99_v22 = vadd.f32 %v98_v20, %v97_v17  ;;  %v106_v23 = vrot.slane %v105_v21, 1 }
  0xab   :  { %100 = vst [vmem:[%s225_s3] sm:$0x1] %v99_v22  ;;  %v107_v24 = vadd.f32 %v106_v23, %v105_v21 }
  0xad   :  { %108 = vst [vmem:[%s226_s4] sm:$0x1] %v107_v24 }

// kernel: resnet_forward.22
= control target key start
LH: loop header
LB: loop body
LE: loop exit
PB: predicated region body
PF: predicated region fallthrough
CT: control target
= control target key end

     0   :  { %s2065_s21 = smov 0   ;;  %s2067_s22 = smov 0   ;;  %s2692_s0 = inlined_call_operand.vmem [shape: bf16[2,6,6,128], index: 0, kind: input, shape index: {}, may-alias: {0,1,2}]   ;;  %s2693_s1 = inlined_call_operand.vmem [shape: bf16[2,6,6,128], index: 1, kind: input, shape index: {}, may-alias: {0,1,2}]   ;;  %s2694_s2 = inlined_call_operand.vmem [shape: bf16[2,6,6,128], index: 2, kind: input, shape index: {}, may-alias: {0,1,2}]   ;;  %s2695_s3 = inlined_call_operand.vmem [shape: bf16[1152,128], index: 3, kind: input, shape index: {}]   ;;  %s2696_s4 = inlined_call_operand.vmem [shape: bf16[2,4,4,128], index: 4, kind: output, shape index: {0}]   ;;  %s2697_s5 = inlined_call_operand.vmem [shape: f32[4,1,128], index: 5, kind: output, shape index: {1}]   ;;  %s2698_s6 = inlined_call_operand.vmem [shape: f32[4,1,128], index: 6, kind: output, shape index: {2}]  }
   0x1   :  { %s2069_s23 = smov 0   ;;  %s2071_s24 = smov 0  }
   0x2   :  { %s2073_s25 = smov 0  }
   0x3 LB: > { %s26_s26 = sadd.s32 1, %s2020_s23  ;;  %s29_s27 = sadd.s32 1, %s2024_s24  ;;  %s2028_s25 = sphi %s2073_s25, %s17_s25   ;;  %s2024_s24 = sphi %s2071_s24, %s2738_s24   ;;  %s2020_s23 = sphi %s2069_s23, %s2737_s23   ;;  %s2016_s22 = sphi %s2067_s22, %s2736_s22   ;;  %s2012_s21 = sphi %s2065_s21, %s2735_s21  }
   0x4   : > { %p27_p0 = scmp.ge.s32.totalorder %s26_s26, 2  ;;  %p1560_p1 = scmp.ge.s32.totalorder %s2028_s25, 1 }
   0x5   : > { %p296_p2 = scmp.lt.s32.totalorder %s2028_s25, 5 }
   0x6   : > { %s2740_s26 = smov (%p27_p0, %s26_s26), 0  ;;  %s2742_s27 = smov (!%p27_p0, %s29_s27), %s2024_s24 }
   0x7   : > { %p297_p3 = pnand %p1560_p1, %p296_p2  ;;  %p31_p4 = scmp.ge.s32.totalorder %s2742_s27, 2 }
   0x9   : > { %s2744_s27 = smov (%p31_p4, %s2742_s27), 0  ;;  %300 = sbr.rel (%p297_p3) target bundleno = 322 (0x142), region = 36 }
   0xe   : > { %v2102_v0 = vld [vmem:[%s2695_s3 + $0x38] sm:$0xff]  ;;  %s2115_s10 = sshll.u32 %s2012_s21, 1  ;;  %p366_p5 = scmp.lt.s32.totalorder %s2016_s22, 1  ;;  %v2129_v4 = vld [vmem:[%s2695_s3 + $0x30] sm:$0xff]  ;;  %v2164_v8 = vld [vmem:[%s2695_s3 + $0x28] sm:$0xff]  ;;  %vm1163_vm0 = vcmask 1043456  }
   0xf   : > { %v2107_v1 = vld [vmem:[%s2695_s3 + $0x78] sm:$0xff]  ;;  %p368_p6 = scmp.lt.s32.totalorder %s2115_s10, 5  ;;  %1044 = vmatpush.bf16.msra.mxu0 %v2102_v0  ;;  %v2134_v5 = vld [vmem:[%s2695_s3 + $0x70] sm:$0xff]  ;;  %s2156_s7 = sadd.s32 2, %s2115_s10  ;;  %v2169_v9 = vld [vmem:[%s2695_s3 + $0x68] sm:$0xff] }
  0x10   : > { %v2112_v2 = vld [vmem:[%s2695_s3 + $0xb8] sm:$0xff]  ;;  %1057 = vmatpush.bf16.msra.mxu1 %v2107_v1  ;;  %s2137_s17 = scalar_select %p366_p5, %s2016_s22, 1  ;;  %v2144_v6 = vld [vmem:[%s2695_s3 + $0xb0] sm:$0xff]  ;;  %v2177_v10 = vld [vmem:[%s2695_s3 + $0xa8] sm:$0xff] }
  0x11   : > { %v2121_v3 = vld [vmem:[%s2695_s3 + $0xf8] sm:$0xff]  ;;  %1070 = vmatpush.bf16.msra.mxu2 %v2112_v2  ;;  %v2149_v7 = vld [vmem:[%s2695_s3 + $0xf0] sm:$0xff]  ;;  %s369_s29 = scalar_select %p368_p6, %s2115_s10, 5  ;;  %v2182_v11 = vld [vmem:[%s2695_s3 + $0xe8] sm:$0xff] }
  0x12   : > { %1083 = vmatpush.bf16.msra.mxu3 %v2121_v3  ;;  %s2153_s30 = smul.u32 6, %s2137_s17  ;;  %s389_s8 = sadd.s32 1, %s2156_s7  ;;  %v2189_v12 = vld [vmem:[%s2695_s3 + $0x20] sm:$0xff]  ;;  %v2222_v16 = vld [vmem:[%s2695_s3 + $0x18] sm:$0xff]  ;;  %v2247_v22 = vld [vmem:[%s2695_s3 + $0x10] sm:$0xff] }
  0x13   : > { %1045 = vmatpush.bf16.msra.mxu0 %v2129_v4  ;;  %p392_p7 = scmp.lt.s32.totalorder %s389_s8, 5  ;;  %v2194_v13 = vld [vmem:[%s2695_s3 + $0x60] sm:$0xff]  ;;  %v2227_v17 = vld [vmem:[%s2695_s3 + $0x58] sm:$0xff]  ;;  %v2252_v23 = vld [vmem:[%s2695_s3 + $0x50] sm:$0xff]  ;;  %p379_p8 = scmp.lt.s32.totalorder %s2156_s7, 5 }
  0x14   : > { %1058 = vmatpush.bf16.msra.mxu1 %v2134_v5  ;;  %s371_s14 = sadd.s32 %s2153_s30, %s369_s29  ;;  %v2203_v14 = vld [vmem:[%s2695_s3 + $0xa0] sm:$0xff]  ;;  %v2234_v18 = vld [vmem:[%s2695_s3 + $0x98] sm:$0xff]  ;;  %v2259_v24 = vld [vmem:[%s2695_s3 + $0x90] sm:$0xff]  ;;  %p404_p9 = scmp.lt.s32.totalorder %s2115_s10, 3 }
  0x15   : > { %1071 = vmatpush.bf16.msra.mxu2 %v2144_v6  ;;  %s1562_s20 = sshll.u32 %s371_s14, 2  ;;  %s2746_s8 = smov (!%p392_p7, %s389_s8), 5  ;;  %v2208_v15 = vld [vmem:[%s2695_s3 + $0xe0] sm:$0xff]  ;;  %v2239_v19 = vld [vmem:[%s2695_s3 + $0xd8] sm:$0xff]  ;;  %v2264_v25 = vld [vmem:[%s2695_s3 + $0xd0] sm:$0xff] }
  0x16   : > { %1084 = vmatpush.bf16.msra.mxu3 %v2149_v7  ;;  %s395_s16 = sadd.s32 %s2153_s30, %s2746_s8  ;;  %s2215_s28 = scalar_lea.vmem %s2692_s0, %s1562_s20  ;;  %v2271_v27 = vld [vmem:[%s2695_s3 + $0x8] sm:$0xff]  ;;  %v2295_v32 = vld [vmem:[%s2695_s3] sm:$0xff]  ;;  %v2313_v35 = vld [vmem:[%s2695_s3 + $0x138] sm:$0xff] }
  0x17   : > { %1046 = vmatpush.bf16.msra.mxu0 %v2164_v8  ;;  %v569_v20 = vld [vmem:[%s2215_s28] sm:$0x7]  ;;  %v2276_v28 = vld [vmem:[%s2695_s3 + $0x48] sm:$0xff]  ;;  %v2318_v38 = vld [vmem:[%s2695_s3 + $0x178] sm:$0xff]  ;;  %s2748_s7 = smov (!%p379_p8, %s2156_s7), 5  ;;  %s2750_s10 = smov (!%p404_p9, %s2115_s10), 3 }
  0x18   : > { %1059 = vmatpush.bf16.msra.mxu1 %v2169_v9  ;;  %v574_v21 = vunpack.c.l.b16 %v569_v20  ;;  %v2283_v29 = vld [vmem:[%s2695_s3 + $0x88] sm:$0xff]  ;;  %v2300_v33 = vld [vmem:[%s2695_s3 + $0x40] sm:$0xff]  ;;  %v2323_v39 = vld [vmem:[%s2695_s3 + $0x1b8] sm:$0xff]  ;;  %s382_s18 = sadd.s32 %s2153_s30, %s2748_s7  ;;  %s1568_s30 = sshll.u32 %s2137_s17, 2 }
  0x19   : > { %1072 = vmatpush.bf16.msra.mxu2 %v2177_v10  ;;  %v2288_v30 = vld [vmem:[%s2695_s3 + $0xc8] sm:$0xff]  ;;  %v2308_v34 = vld [vmem:[%s2695_s3 + $0x80] sm:$0xff]  ;;  %v2335_v41 = vld [vmem:[%s2695_s3 + $0x1f8] sm:$0xff]  ;;  %s1564_s7 = sshll.u32 %s382_s18, 2  ;;  %s407_s8 = sadd.s32 %s1568_s30, %s2750_s10 }
  0x1a   : > { %1085 = vmatpush.bf16.msra.mxu3 %v2182_v11  ;;  %v575_v26 = vpack.c.b16 %v574_v21, %v574_v21  ;;  %2711 = vst [vmem:[#allocation2_spill] sm:$0xff] %v2288_v30  ;;  %v2328_v40 = vld [vmem:[%s2695_s3 + $0xc0] sm:$0xff]  ;;  %v2345_v43 = vld [vmem:[%s2695_s3 + $0x130] sm:$0xff]  ;;  %v2372_v49 = vld [vmem:[%s2695_s3 + $0x128] sm:$0xff]  ;;  %s2413_s13 = scalar_lea.vmem %s2693_s1, %s1564_s7  ;;  %s1570_s10 = sshll.u32 %s2016_s22, 1 }
  0x1b   : > { %1047 = vmatpush.bf16.msra.mxu0 %v2189_v12  ;;  %2712 = vst [vmem:[#allocation3_spill] sm:$0xff] %v2328_v40  ;;  %v2352_v45 = vld [vmem:[%s2695_s3 + $0x170] sm:$0xff]  ;;  %v1572_v48 = vld [vmem:[%s2215_s28 + $0x4] sm:$0x7]  ;;  %v2379_v50 = vld [vmem:[%s2695_s3 + $0x168] sm:$0xff]  ;;  %s412_s17 = sadd.s32 %s2012_s21, %s1570_s10 }
  0x1c   : > { %1060 = vmatpush.bf16.msra.mxu1 %v2194_v13  ;;  %v579_v31 = vshll.u32 %v575_v26, 16  ;;  %v577_v36 = vshrl.u32 %v575_v26, 16  ;;  %2713 = vst [vmem:[#allocation4_spill] sm:$0xff] %v2335_v41  ;;  %v584_v42 = vrot.slane %v575_v26, 1  ;;  %v2357_v46 = vld [vmem:[%s2695_s3 + $0x1b0] sm:$0xff]  ;;  %v2384_v51 = vld [vmem:[%s2695_s3 + $0x1a8] sm:$0xff]  ;;  %v587_v61 = vunpack.c.l.b16 %v1572_v48 }
  0x1d   : > { %1073 = vmatpush.bf16.msra.mxu2 %v2203_v14  ;;  %v2364_v47 = vld [vmem:[%s2695_s3 + $0x1f0] sm:$0xff]  ;;  %v2390_v52 = vld [vmem:[%s2695_s3 + $0x1e8] sm:$0xff]  ;;  %v2396_v53 = vld [vmem:[%s2695_s3 + $0x120] sm:$0xff]  ;;  %p413_p10 = scmp.lt.s32.totalorder %s412_s17, 3 }
  0x1e   : > { %1086 = vmatpush.bf16.msra.mxu3 %v2208_v15  ;;  %v581_v37 = vrot.slane %v579_v31, 1  ;;  %2714 = vst [vmem:[#allocation5_spill] sm:$0xff] %v2364_v47  ;;  %v2403_v54 = vld [vmem:[%s2695_s3 + $0x160] sm:$0xff]  ;;  %v2425_v57 = vld [vmem:[%s2695_s3 + $0x118] sm:$0xff]  ;;  %v588_v21 = vpack.c.b16 %v587_v61, %v587_v61  ;;  %v2457_v26 = vld [vmem:[%s2695_s3 + $0x150] sm:$0xff] }
  0x1f   : > { %1048 = vmatpush.bf16.msra.mxu0 %v2222_v16  ;;  %2715 = vst [vmem:[#allocation6_spill] sm:$0xff] %v2390_v52  ;;  %v2408_v55 = vld [vmem:[%s2695_s3 + $0x1a0] sm:$0xff]  ;;  %v2433_v59 = vld [vmem:[%s2695_s3 + $0x158] sm:$0xff]  ;;  %v2462_v31 = vld [vmem:[%s2695_s3 + $0x190] sm:$0xff]  ;;  %s2752_s17 = smov (!%p413_p10, %s412_s17), 3 }
  0x20   : > { %1061 = vmatpush.bf16.msra.mxu1 %v2227_v17  ;;  %v582_v44 = vor.u32 %v581_v37, %v577_v36  ;;  %v2419_v56 = vld [vmem:[%s2695_s3 + $0x1e0] sm:$0xff]  ;;  %v2438_v60 = vld [vmem:[%s2695_s3 + $0x198] sm:$0xff]  ;;  %v2468_v36 = vld [vmem:[%s2695_s3 + $0x1d0] sm:$0xff]  ;;  %v592_v61 = vshll.u32 %v588_v21, 16  ;;  %s415_s7 = scalar_lea.vmem %s2697_s5, %s2752_s17  ;;  %s422_s11 = scalar_lea.vmem %s2698_s6, %s2752_s17 }
  0x21   : > { %1074 = vmatpush.bf16.msra.mxu2 %v2234_v18  ;;  %2716 = vst [vmem:[#allocation7_spill] sm:$0xff] %v2419_v56  ;;  %v572_v58 = vld [vmem:[%s2413_s13] sm:$0x7]  ;;  %v2444_v62 = vld [vmem:[%s2695_s3 + $0x1d8] sm:$0xff] }
  0x22   : > { %1087 = vmatpush.bf16.msra.mxu3 %v2239_v19  ;;  %2717 = vst [vmem:[#allocation8_spill] sm:$0xff] %v2444_v62  ;;  %v600_v63 = vunpack.c.l.b16 %v572_v58 }
  0x23   : > { %1049 = vmatpush.bf16.msra.mxu0 %v2247_v22  ;;  %2718 = vst [vmem:[#allocation9_spill] sm:$0xff] %v2468_v36 }
  0x24   : > { %1062 = vmatpush.bf16.msra.mxu1 %v2252_v23  ;;  %v2470_v37 = vpack.c.b16 %v600_v63, %v600_v63  ;;  %v2494_v63 = vld [vmem:[%s2695_s3 + $0x1c8] sm:$0xff] }
  0x25   : > { %1075 = vmatpush.bf16.msra.mxu2 %v2259_v24  ;;  %2722 = vst [vmem:[#allocation13_spill] sm:$0xff] %v2494_v63 }
  0x26   : > { %1088 = vmatpush.bf16.msra.mxu3 %v2264_v25 }
  0x27   : > { %1050 = vmatpush.bf16.msra.mxu0 %v2271_v27 }
  0x28   : > { %1063 = vmatpush.bf16.msra.mxu1 %v2276_v28 }
  0x29   : > { %1076 = vmatpush.bf16.msra.mxu2 %v2283_v29 }
  0x2a   : > { %1089 = vmatpush.bf16.msra.mxu3 %v2288_v30  ;;  %v597_v30 = vrot.slane %v588_v21, 1 }
  0x2b   : > { %1051 = vmatpush.bf16.msra.mxu0 %v2295_v32 }
  0x2c   : > { %1064 = vmatpush.bf16.msra.mxu1 %v2300_v33 }
  0x2d   : > { %1077 = vmatpush.bf16.msra.mxu2 %v2308_v34 }
  0x2e   : > { %1090 = vmatpush.bf16.msra.mxu3 %v2328_v40  ;;  %1052 = vmatmul.bf16.vlgmr.msra.gmra.mxu0 %v569_v20  ;;  %v2450_v20 = vld [vmem:[%s2695_s3 + $0x110] sm:$0xff]  ;;  %v2518_v40 = vld [vmem:[%s2695_s3 + $0x238] sm:$0xff] }
  0x2f   : > { %1096 = vmatpush.bf16.msrb.mxu0 %v2313_v35  ;;  %1065 = vmatmul.bf16.vlgmr.msra.gmra.mxu1 %v582_v44  ;;  %v2483_v44 = vld [vmem:[%s2695_s3 + $0x148] sm:$0xff] }
  0x30   : > { %1109 = vmatpush.bf16.msrb.mxu1 %v2318_v38  ;;  %1078 = vmatmul.bf16.vlgmr.msra.gmra.mxu2 %v584_v42  ;;  %v2476_v42 = vld [vmem:[%s2695_s3 + $0x108] sm:$0xff]  ;;  %2720 = vst [vmem:[#allocation11_spill] sm:$0xff] %v2483_v44 }
  0x31   : > { %1122 = vmatpush.bf16.msrb.mxu2 %v2323_v39  ;;  %1091 = vmatmul.bf16.vlgmr.msra.gmra.mxu3 %v1572_v48  ;;  %2719 = vst [vmem:[#allocation10_spill] sm:$0xff] %v2476_v42  ;;  %v2488_v48 = vld [vmem:[%s2695_s3 + $0x188] sm:$0xff] }
  0x32   : > { %1135 = vmatpush.bf16.msrb.mxu3 %v2335_v41  ;;  %2721 = vst [vmem:[#allocation12_spill] sm:$0xff] %v2488_v48  ;;  %v594_v41 = vrot.slane %v592_v61, 1 }
  0x33   : > { %1097 = vmatpush.bf16.msrb.mxu0 %v2345_v43 }
  0x34   : > { %1110 = vmatpush.bf16.msrb.mxu1 %v2352_v45 }
  0x35   : > { %1123 = vmatpush.bf16.msrb.mxu2 %v2357_v46 }
  0x36   : > { %1136 = vmatpush.bf16.msrb.mxu3 %v2364_v47  ;;  %v590_v47 = vshrl.u32 %v588_v21, 16 }
  0x37   : > { %1098 = vmatpush.bf16.msrb.mxu0 %v2372_v49 }
  0x38   : > { %1111 = vmatpush.bf16.msrb.mxu1 %v2379_v50  ;;  %v595_v61 = vor.u32 %v594_v41, %v590_v47  ;;  %v2732_v41 = vld [vmem:[#allocation8_spill] sm:$0xff] }
  0x39   : > { %1124 = vmatpush.bf16.msrb.mxu2 %v2384_v51 }
  0x3a   : > { %1137 = vmatpush.bf16.msrb.mxu3 %v2390_v52  ;;  %v2513_v52 = vld [vmem:[%s2695_s3 + $0x180] sm:$0xff] }
  0x3b   : > { %1099 = vmatpush.bf16.msrb.mxu0 %v2396_v53 }
  0x3c   : > { %1112 = vmatpush.bf16.msrb.mxu1 %v2403_v54 }
  0x3d   : > { %1125 = vmatpush.bf16.msrb.mxu2 %v2408_v55 }
  0x3e   : > { %1138 = vmatpush.bf16.msrb.mxu3 %v2419_v56  ;;  %v2501_v56 = vld [vmem:[%s2695_s3 + $0x100] sm:$0xff] }
  0x3f   : > { %1100 = vmatpush.bf16.msrb.mxu0 %v2425_v57 }
  0x40   : > { %1113 = vmatpush.bf16.msrb.mxu1 %v2433_v59 }
  0x41   : > { %1126 = vmatpush.bf16.msrb.mxu2 %v2438_v60 }
  0x42   : > { %1139 = vmatpush.bf16.msrb.mxu3 %v2444_v62  ;;  %v605_v62 = vshll.u32 %v2470_v37, 16 }
  0x43   : > { %1101 = vmatpush.bf16.msrb.mxu0 %v2450_v20 }
  0x44   : > { %1114 = vmatpush.bf16.msrb.mxu1 %v2457_v26 }
  0x45   : > { %1127 = vmatpush.bf16.msrb.mxu2 %v2462_v31 }
  0x46   : > { %1140 = vmatpush.bf16.msrb.mxu3 %v2468_v36  ;;  %v2508_v36 = vld [vmem:[%s2695_s3 + $0x140] sm:$0xff] }
  0x47   : > { %1102 = vmatpush.bf16.msrb.mxu0 %v2476_v42  ;;  %v607_v42 = vrot.slane %v605_v62, 1 }
  0x48   : > { %1115 = vmatpush.bf16.msrb.mxu1 %v2483_v44  ;;  %v603_v44 = vshrl.u32 %v2470_v37, 16 }
  0x49   : > { %1128 = vmatpush.bf16.msrb.mxu2 %v2488_v48  ;;  %v2524_v48 = vld [vmem:[%s2695_s3 + $0x1c0] sm:$0xff] }
  0x4a   : > { %1141 = vmatpush.bf16.msrb.mxu3 %v2494_v63  ;;  %v2535_v63 = vld [vmem:[%s2695_s3 + $0x230] sm:$0xff]  ;;  %v608_v62 = vor.u32 %v607_v42, %v603_v44 }
  0x4b   : > { %1103 = vmatpush.bf16.msrb.mxu0 %v2501_v56 }
  0x4c   : > { %1116 = vmatpush.bf16.msrb.mxu1 %v2508_v36 }
  0x4d   : > { %1129 = vmatpush.bf16.msrb.mxu2 %v2513_v52 }
  0x4e   : > { %1142 = vmatpush.bf16.msrb.mxu3 %v2524_v48  ;;  %1104 = vmatmul.bf16.vlgmr.msrb.gmra.mxu0 %v595_v61 }
  0x4f   : > { %1148 = vmatpush.bf16.msra.mxu0 %v2518_v40  ;;  %1117 = vmatmul.bf16.vlgmr.msrb.gmra.mxu1 %v597_v30 }
  0x50   : > { %1221 = vmatpush.bf16.msra.mxu1 %v2102_v0  ;;  %1130 = vmatmul.bf16.vlgmr.msrb.gmra.mxu2 %v572_v58  ;;  %v2545_v0 = vld [vmem:[%s2695_s3 + $0x228] sm:$0xff] }
  0x51   : > { %1234 = vmatpush.bf16.msra.mxu2 %v2107_v1  ;;  %1143 = vmatmul.bf16.vlgmr.msrb.gmra.mxu3 %v608_v62  ;;  %v2554_v1 = vld [vmem:[%s2695_s3 + $0x220] sm:$0xff] }
  0x52   : > { %1247 = vmatpush.bf16.msra.mxu3 %v2112_v2  ;;  %v1861_v2 = vld [vmem:[%s2215_s28 + $0x4] sm:$0x7] }
  0x53   : > { %1149 = vmatpush.bf16.msra.mxu0 %v2535_v63 }
  0x54   : > { %1222 = vmatpush.bf16.msra.mxu1 %v2129_v4  ;;  %v1183_v4 = vunpack.c.l.b16 %v1861_v2 }
  0x55   : > { %1235 = vmatpush.bf16.msra.mxu2 %v2134_v5  ;;  %v2564_v5 = vld [vmem:[%s2695_s3 + $0x218] sm:$0xff] }
  0x56   : > { %1248 = vmatpush.bf16.msra.mxu3 %v2144_v6  ;;  %v1184_v6 = vpack.c.b16 %v1183_v4, %v1183_v4 }
  0x57   : > { %1150 = vmatpush.bf16.msra.mxu0 %v2545_v0 }
  0x58   : > { %1223 = vmatpush.bf16.msra.mxu1 %v2164_v8  ;;  %v2573_v8 = vld [vmem:[%s2695_s3 + $0x210] sm:$0xff] }
  0x59   : > { %1236 = vmatpush.bf16.msra.mxu2 %v2169_v9  ;;  %v2582_v9 = vld [vmem:[%s2695_s3 + $0x208] sm:$0xff] }
  0x5a   : > { %1249 = vmatpush.bf16.msra.mxu3 %v2177_v10  ;;  %v1188_v10 = vshll.u32 %v1184_v6, 16 }
  0x5b   : > { %1151 = vmatpush.bf16.msra.mxu0 %v2554_v1 }
  0x5c   : > { %1224 = vmatpush.bf16.msra.mxu1 %v2189_v12  ;;  %v2591_v12 = vld [vmem:[%s2695_s3 + $0x200] sm:$0xff] }
  0x5d   : > { %1237 = vmatpush.bf16.msra.mxu2 %v2194_v13  ;;  %v1186_v13 = vshrl.u32 %v1184_v6, 16 }
  0x5e   : > { %1250 = vmatpush.bf16.msra.mxu3 %v2203_v14  ;;  %v1190_v14 = vrot.slane %v1188_v10, 1 }
  0x5f   : > { %1152 = vmatpush.bf16.msra.mxu0 %v2564_v5 }
  0x60   : > { %1225 = vmatpush.bf16.msra.mxu1 %v2222_v16  ;;  %v610_v16 = vrot.slane %v2470_v37, 1 }
  0x61   : > { %1238 = vmatpush.bf16.msra.mxu2 %v2227_v17  ;;  %v1191_v17 = vor.u32 %v1190_v14, %v1186_v13 }
  0x62   : > { %1251 = vmatpush.bf16.msra.mxu3 %v2234_v18  ;;  %v1193_v18 = vrot.slane %v1184_v6, 1 }
  0x63   : > { %1153 = vmatpush.bf16.msra.mxu0 %v2573_v8 }
  0x64   : > { %1226 = vmatpush.bf16.msra.mxu1 %v2247_v22 }
  0x65   : > { %1239 = vmatpush.bf16.msra.mxu2 %v2252_v23 }
  0x66   : > { %1252 = vmatpush.bf16.msra.mxu3 %v2259_v24 }
  0x67   : > { %1154 = vmatpush.bf16.msra.mxu0 %v2582_v9 }
  0x68   : > { %1227 = vmatpush.bf16.msra.mxu1 %v2271_v27  ;;  %v2725_v27 = vld [vmem:[#allocation11_spill] sm:$0xff] }
  0x69   : > { %1240 = vmatpush.bf16.msra.mxu2 %v2276_v28  ;;  %v2726_v28 = vld [vmem:[#allocation12_spill] sm:$0xff] }
  0x6a   : > { %1253 = vmatpush.bf16.msra.mxu3 %v2283_v29  ;;  %v2727_v29 = vld [vmem:[#allocation3_spill] sm:$0xff] }
  0x6b   : > { %1155 = vmatpush.bf16.msra.mxu0 %v2591_v12 }
  0x6c   : > { %1228 = vmatpush.bf16.msra.mxu1 %v2295_v32  ;;  %v2728_v32 = vld [vmem:[#allocation4_spill] sm:$0xff] }
  0x6d   : > { %1241 = vmatpush.bf16.msra.mxu2 %v2300_v33 }
  0x6e   : > { %1156 = vmatmul.bf16.vlgmr.msra.gmra.mxu0 %v610_v16  ;;  %1254 = vmatpush.bf16.msra.mxu3 %v2308_v34  ;;  %v2729_v34 = vld [vmem:[#allocation5_spill] sm:$0xff] }
  0x6f   : > { %1260 = vmatpush.bf16.msrb.mxu0 %v2121_v3  ;;  %1229 = vmatmul.bf16.vlgmr.msra.gmra.mxu1 %v1861_v2  ;;  %v1180_v3 = vld [vmem:[%s2413_s13] sm:$0x7]  ;;  %s1566_s13 = sshll.u32 %s395_s16, 2  ;;  %s1569_s16 = sshll.u32 %s407_s8, 1 }
  0x70   : > { %1273 = vmatpush.bf16.msrb.mxu1 %v2313_v35  ;;  %1242 = vmatmul.bf16.vlgmr.msra.gmra.mxu2 %v1191_v17  ;;  %v1196_v22 = vunpack.c.l.b16 %v1180_v3  ;;  %s397_s15 = scalar_lea.vmem %s2694_s2, %s1566_s13  ;;  %v2730_v35 = vld [vmem:[#allocation6_spill] sm:$0xff]  ;;  %s2661_s28 = scalar_lea.vmem %s2696_s4, %s1569_s16 }
  0x71   : > { %1286 = vmatpush.bf16.msrb.mxu2 %v2318_v38  ;;  %1255 = vmatmul.bf16.vlgmr.msra.gmra.mxu3 %v1193_v18  ;;  %v1181_v33 = vld [vmem:[%s397_s15] sm:$0x7] }
  0x72   : > { %1299 = vmatpush.bf16.msrb.mxu3 %v2323_v39  ;;  %v1209_v38 = vunpack.c.l.b16 %v1181_v33  ;;  %v2731_v39 = vld [vmem:[#allocation7_spill] sm:$0xff] }
  0x73   : > { %1261 = vmatpush.bf16.msrb.mxu0 %v2149_v7  ;;  %v1197_v7 = vpack.c.b16 %v1196_v22, %v1196_v22 }
  0x74   : > { %1274 = vmatpush.bf16.msrb.mxu1 %v2345_v43 }
  0x75   : > { %1287 = vmatpush.bf16.msrb.mxu2 %v2352_v45  ;;  %v1199_v23 = vshrl.u32 %v1197_v7, 16  ;;  %v2733_v45 = vld [vmem:[#allocation9_spill] sm:$0xff] }
  0x76   : > { %1300 = vmatpush.bf16.msrb.mxu3 %v2357_v46 }
  0x77   : > { %1262 = vmatpush.bf16.msrb.mxu0 %v2182_v11  ;;  %v1201_v11 = vshll.u32 %v1197_v7, 16 }
  0x78   : > { %1275 = vmatpush.bf16.msrb.mxu1 %v2372_v49  ;;  %v2734_v49 = vld [vmem:[#allocation13_spill] sm:$0xff] }
  0x79   : > { %1288 = vmatpush.bf16.msrb.mxu2 %v2379_v50  ;;  %v1203_v24 = vrot.slane %v1201_v11, 1 }
  0x7a   : > { %1301 = vmatpush.bf16.msrb.mxu3 %v2384_v51 }
  0x7b   : > { %1263 = vmatpush.bf16.msrb.mxu0 %v2208_v15  ;;  %v2723_v15 = vld [vmem:[#allocation2_spill] sm:$0xff]  ;;  %v1204_v30 = vor.u32 %v1203_v24, %v1199_v23 }
  0x7c   : > { %1276 = vmatpush.bf16.msrb.mxu1 %v2396_v53 }
  0x7d   : > { %1289 = vmatpush.bf16.msrb.mxu2 %v2403_v54 }
  0x7e   : > { %1302 = vmatpush.bf16.msrb.mxu3 %v2408_v55 }
  0x7f   : > { %1264 = vmatpush.bf16.msrb.mxu0 %v2239_v19  ;;  %v2724_v19 = vld [vmem:[#allocation10_spill] sm:$0xff] }
  0x80   : > { %1277 = vmatpush.bf16.msrb.mxu1 %v2425_v57 }
  0x81   : > { %1290 = vmatpush.bf16.msrb.mxu2 %v2433_v59 }
  0x82   : > { %1303 = vmatpush.bf16.msrb.mxu3 %v2438_v60 }
  0x83   : > { %1265 = vmatpush.bf16.msrb.mxu0 %v2264_v25  ;;  %v1206_v25 = vrot.slane %v1197_v7, 1 }
  0x84   : > { %1278 = vmatpush.bf16.msrb.mxu1 %v2450_v20 }
  0x85   : > { %1291 = vmatpush.bf16.msrb.mxu2 %v2457_v26 }
  0x86   : > { %1304 = vmatpush.bf16.msrb.mxu3 %v2462_v31 }
  0x87   : > { %1266 = vmatpush.bf16.msrb.mxu0 %v2723_v15 }
  0x88   : > { %1279 = vmatpush.bf16.msrb.mxu1 %v2724_v19 }
  0x89   : > { %1292 = vmatpush.bf16.msrb.mxu2 %v2725_v27 }
  0x8a   : > { %1305 = vmatpush.bf16.msrb.mxu3 %v2726_v28 }
  0x8b   : > { %1267 = vmatpush.bf16.msrb.mxu0 %v2727_v29 }
  0x8c   : > { %1280 = vmatpush.bf16.msrb.mxu1 %v2501_v56 }
  0x8d   : > { %1293 = vmatpush.bf16.msrb.mxu2 %v2508_v36 }
  0x8e   : > { %1306 = vmatpush.bf16.msrb.mxu3 %v2513_v52  ;;  %1268 = vmatmul.bf16.vlgmr.msrb.gmra.mxu0 %v1180_v3 }
  0x8f   : > { %1312 = vmatpush.bf16.msra.mxu0 %v2728_v32  ;;  %1281 = vmatmul.bf16.vlgmr.msrb.gmra.mxu1 %v1204_v30 }
  0x90   : > { %1325 = vmatpush.bf16.msra.mxu1 %v2518_v40  ;;  %1294 = vmatmul.bf16.vlgmr.msrb.gmra.mxu2 %v1206_v25  ;;  %v1210_v40 = vpack.c.b16 %v1209_v38, %v1209_v38 }
  0x91   : > { %1307 = vmatmul.bf16.vlgmr.msrb.gmra.mxu3 %v1181_v33 }
  0x92   : > { %v1214_v43 = vshll.u32 %v1210_v40, 16  ;;  %v1212_v46 = vshrl.u32 %v1210_v40, 16  ;;  %v1219_v51 = vrot.slane %v1210_v40, 1 }
  0x93   : > { %1313 = vmatpush.bf16.msra.mxu0 %v2729_v34 }
  0x94   : > { %1326 = vmatpush.bf16.msra.mxu1 %v2535_v63  ;;  %v1216_v47 = vrot.slane %v1214_v43, 1 }
  0x96   : > { %v1217_v50 = vor.u32 %v1216_v47, %v1212_v46 }
  0x97   : > { %1314 = vmatpush.bf16.msra.mxu0 %v2730_v35 }
  0x98   : > { %1327 = vmatpush.bf16.msra.mxu1 %v2545_v0 }
  0x9b   : > { %1315 = vmatpush.bf16.msra.mxu0 %v2731_v39 }
  0x9c   : > { %1328 = vmatpush.bf16.msra.mxu1 %v2554_v1 }
  0x9f   : > { %1316 = vmatpush.bf16.msra.mxu0 %v2732_v41 }
  0xa0   : > { %1329 = vmatpush.bf16.msra.mxu1 %v2564_v5 }
  0xa3   : > { %1317 = vmatpush.bf16.msra.mxu0 %v2733_v45 }
  0xa4   : > { %1330 = vmatpush.bf16.msra.mxu1 %v2573_v8 }
  0xa7   : > { %1318 = vmatpush.bf16.msra.mxu0 %v2734_v49 }
  0xa8   : > { %1331 = vmatpush.bf16.msra.mxu1 %v2582_v9 }
  0xab   : > { %1319 = vmatpush.bf16.msra.mxu0 %v2524_v48  ;;  %v1053_v52 = vpop.f32.mrf.mxu0 }
  0xac   : > { %1332 = vmatpush.bf16.msra.mxu1 %v2591_v12  ;;  %v1066_v53 = vpop.f32.mrf.mxu1 }
  0xad   : > { %v1067_v21 = vadd.f32 %v1066_v53, %v1053_v52 }
  0xae   : > { %1320 = vmatmul.bf16.vlgmr.msra.gmra.mxu0 %v1217_v50 }
  0xaf   : > { %1333 = vmatmul.bf16.vlgmr.msra.gmra.mxu1 %v1219_v51 }
  0xb3   : > { %v1079_v54 = vpop.f32.mrf.mxu2  ;;  %v1055_v55 = vpop.f32.mrf.mxu0 }
  0xb4   : > { %v1092_v56 = vpop.f32.mrf.mxu3  ;;  %v1068_v57 = vpop.f32.mrf.mxu1  ;;  %v1080_v31 = vadd.f32 %v1079_v54, %v1067_v21 }
  0xb6   : > { %v1093_v44 = vadd.f32 %v1092_v56, %v1080_v31 }
  0xbb   : > { %v1081_v58 = vpop.f32.mrf.mxu2 }
  0xbc   : > { %v1094_v59 = vpop.f32.mrf.mxu3 }
  0xcb   : > { %v1105_v60 = vpop.f32.mrf.mxu0 }
  0xcc   : > { %v1118_v20 = vpop.f32.mrf.mxu1  ;;  %v1106_v63 = vadd.f32 %v1105_v60, %v1093_v44 }
  0xce   : > { %v1119_v62 = vadd.f32 %v1118_v20, %v1106_v63 }
  0xd3   : > { %v1131_v26 = vpop.f32.mrf.mxu2  ;;  %v1107_v37 = vpop.f32.mrf.mxu0 }
  0xd4   : > { %v1144_v36 = vpop.f32.mrf.mxu3  ;;  %v1120_v42 = vpop.f32.mrf.mxu1  ;;  %v1132_v0 = vadd.f32 %v1131_v26, %v1119_v62 }
  0xd6   : > { %v1145_v1 = vadd.f32 %v1144_v36, %v1132_v0 }
  0xdb   : > { %v1133_v48 = vpop.f32.mrf.mxu2 }
  0xdc   : > { %v1146_v61 = vpop.f32.mrf.mxu3 }
  0xeb   : > { %v1157_v2 = vpop.f32.mrf.mxu0 }
  0xec   : > { %v1158_v4 = vadd.f32 %v1157_v2, %v1145_v1  ;;  %v1230_v5 = vpop.f32.mrf.mxu1 }
  0xee   : > { %v1161_v6 = vpack.c.bf16 %v1158_v4, %v1158_v4  ;;  %v1171_v27 = vmul.f32 %v1158_v4, %v1158_v4  ;;  %v1164_v29 = vsel %vm1163_vm0, %v1158_v4, 0.0 }
  0xef   : > { %v1165_v32 = vrot.slane %v1164_v29, 4 }
  0xf0   : > { %1162 = vst [vmem:[%s2661_s28] sm:$0x3] %v1161_v6  ;;  %v1172_v25 = vsel %vm1163_vm0, %v1171_v27, 0.0 }
  0xf1   : > { %v1173_v33 = vrot.slane %v1172_v25, 4  ;;  %v1166_v35 = vadd.f32 %v1165_v32, %v1164_v29 }
  0xf3   : > { %v1243_v8 = vpop.f32.mrf.mxu2  ;;  %v1159_v9 = vpop.f32.mrf.mxu0  ;;  %v1174_v41 = vadd.f32 %v1173_v33, %v1172_v25  ;;  %v1167_v45 = vrot.slane %v1166_v35, 2 }
  0xf4   : > { %v1256_v10 = vpop.f32.mrf.mxu3  ;;  %v1232_v12 = vpop.f32.mrf.mxu1  ;;  %v1244_v22 = vadd.f32 %v1243_v8, %v1230_v5 }
  0xf5   : > { %v1175_v50 = vrot.slane %v1174_v41, 2  ;;  %v1168_v53 = vadd.f32 %v1167_v45, %v1166_v35 }
  0xf6   : > { %v1257_v15 = vadd.f32 %v1256_v10, %v1244_v22 }
  0xf7   : > { %v1176_v58 = vadd.f32 %v1175_v50, %v1174_v41  ;;  %v1169_v20 = vrot.slane %v1168_v53, 1 }
  0xf9   : > { %v1177_v31 = vrot.slane %v1176_v58, 1  ;;  %v1170_v42 = vadd.f32 %v1169_v20, %v1168_v53 }
  0xfb   : > { %v1245_v13 = vpop.f32.mrf.mxu2  ;;  %v1178_v63 = vadd.f32 %v1177_v31, %v1176_v58 }
  0xfc   : > { %v1258_v14 = vpop.f32.mrf.mxu3 }
 0x10b   : > { %v1269_v16 = vpop.f32.mrf.mxu0 }
 0x10c   : > { %v1282_v17 = vpop.f32.mrf.mxu1  ;;  %v1270_v24 = vadd.f32 %v1269_v16, %v1257_v15 }
 0x10e   : > { %v1283_v28 = vadd.f32 %v1282_v17, %v1270_v24 }
 0x113   : > { %v1295_v18 = vpop.f32.mrf.mxu2  ;;  %v1271_v3 = vpop.f32.mrf.mxu0 }
 0x114   : > { %v1284_v7 = vpop.f32.mrf.mxu1  ;;  %v1308_v11 = vpop.f32.mrf.mxu3  ;;  %v1296_v30 = vadd.f32 %v1295_v18, %v1283_v28 }
 0x116   : > { %v1309_v34 = vadd.f32 %v1308_v11, %v1296_v30 }
 0x11b   : > { %v1297_v23 = vpop.f32.mrf.mxu2 }
 0x11c   : > { %v1310_v19 = vpop.f32.mrf.mxu3 }
 0x12b   : > { %v1321_v38 = vpop.f32.mrf.mxu0 }
 0x12c   : > { %v1334_v39 = vpop.f32.mrf.mxu1  ;;  %v1322_v40 = vadd.f32 %v1321_v38, %v1309_v34 }
 0x12e   : > { %v1335_v43 = vadd.f32 %v1334_v39, %v1322_v40 }
 0x130   : > { %v1338_v46 = vpack.c.bf16 %v1335_v43, %v1335_v43  ;;  %v1341_v47 = vsel %vm1163_vm0, %v1335_v43, 0.0  ;;  %v1348_v49 = vmul.f32 %v1335_v43, %v1335_v43 }
 0x131   : > { %v1342_v51 = vrot.slane %v1341_v47, 4 }
 0x132   : > { %1862 = vst [vmem:[%s2661_s28 + $0x2] sm:$0x3] %v1338_v46  ;;  %v1349_v52 = vsel %vm1163_vm0, %v1348_v49, 0.0 }
 0x133   : > { %v1343_v54 = vadd.f32 %v1342_v51, %v1341_v47  ;;  %v1350_v55 = vrot.slane %v1349_v52, 4  ;;  %v1323_v56 = vpop.f32.mrf.mxu0 }
 0x134   : > { %v1336_v57 = vpop.f32.mrf.mxu1 }
 0x135   : > { %v1344_v59 = vrot.slane %v1343_v54, 2  ;;  %v1351_v60 = vadd.f32 %v1350_v55, %v1349_v52 }
 0x137   : > { %v1345_v21 = vadd.f32 %v1344_v59, %v1343_v54  ;;  %v1352_v26 = vrot.slane %v1351_v60, 2 }
 0x139   : > { %v1346_v36 = vrot.slane %v1345_v21, 1  ;;  %v1353_v37 = vadd.f32 %v1352_v26, %v1351_v60 }
 0x13b   : > { %v1347_v44 = vadd.f32 %v1346_v36, %v1345_v21  ;;  %v1354_v48 = vrot.slane %v1353_v37, 1 }
 0x13d   : > { %v1355_v61 = vadd.f32 %v1354_v48, %v1353_v37  ;;  %v1356_v62 = vadd.f32 %v1347_v44, %v1170_v42 }
 0x13f   : > { %v1357_v0 = vadd.f32 %v1355_v61, %v1178_v63  ;;  %1358 = vst [vmem:[%s415_s7] sm:$0x1] %v1356_v62 }
 0x141   : > { %1359 = vst [vmem:[%s422_s11] sm:$0x1] %v1357_v0 }
 0x142 PF: > { %s17_s25 = sadd.s32 1, %s2028_s25   ;;  %s2735_s21 = smov %s2020_s23 }
 0x143   : > { %p14_p11 = scmp.ge.s32.totalorder %s17_s25, 6   ;;  %s2736_s22 = smov %s2024_s24 }
 0x144   : > { %s2737_s23 = smov %s2740_s26  ;;  %s2738_s24 = smov %s2744_s27 }
 0x145   :  { %16 = sbr.rel (!%p14_p11) target bundleno = 3 (0x3), region = 98 }

// kernel: resnet_forward.28
= control target key start
LH: loop header
LB: loop body
LE: loop exit
PB: predicated region body
PF: predicated region fallthrough
CT: control target
= control target key end

     0   :  { %s115_s0 = inlined_call_operand.vmem [shape: bf16[8,128], index: 0, kind: input, shape index: {}]   ;;  %s116_s1 = inlined_call_operand.vmem [shape: f32[1,128], index: 1, kind: input, shape index: {}]   ;;  %s117_s2 = inlined_call_operand.vmem [shape: f32[1,128], index: 2, kind: input, shape index: {}]   ;;  %s118_s3 = inlined_call_operand.vmem [shape: bf16[8,128], index: 3, kind: input, shape index: {}]   ;;  %s119_s4 = inlined_call_operand.vmem [shape: f32[1,128], index: 4, kind: input, shape index: {}]   ;;  %s120_s5 = inlined_call_operand.vmem [shape: f32[1,128], index: 5, kind: input, shape index: {}]   ;;  %s121_s6 = inlined_call_operand.vmem [shape: bf16[8,128], index: 6, kind: output, shape index: {}]  }
   0x1   :  { %v23_v0 = vld [vmem:[%s115_s0] sm:$0xf] }
   0x2   :  { %v55_v1 = vld [vmem:[%s116_s1] ss:$0 sm:$0xff]  ;;  %v24_v2 = vunpack.c.l.bf16 %v23_v0 }
   0x3   :  { %v56_v3 = vld [vmem:[%s117_s2] ss:$0 sm:$0xff] }
   0x4   :  { %v35_v4 = vld [vmem:[%s118_s3] sm:$0xf]  ;;  %v29_v7 = vmul.f32 %v55_v1, %v24_v2 }
   0x5   :  { %v36_v5 = vunpack.c.l.bf16 %v35_v4  ;;  %v57_v6 = vld [vmem:[%s119_s4] ss:$0 sm:$0xff] }
   0x6   :  { %v58_v8 = vld [vmem:[%s120_s5] ss:$0 sm:$0xff]  ;;  %v34_v10 = vadd.f32 %v56_v3, %v29_v7 }
   0x7   :  { %v41_v9 = vmul.f32 %v57_v6, %v36_v5 }
   0x9   :  { %v46_v11 = vadd.f32 %v58_v8, %v41_v9 }
   0xb   :  { %v47_v12 = vadd.f32 %v46_v11, %v34_v10 }
   0xd   :  { %v48_v13 = vmax.f32 %v47_v12, 0.0 }
   0xf   :  { %v49_v14 = vpack.c.bf16 %v48_v13, %v48_v13 }
  0x11   :  { %50 = vst [vmem:[%s121_s6] sm:$0xf] %v49_v14 }

// kernel: resnet_forward.25
= control target key start
LH: loop header
LB: loop body
LE: loop exit
PB: predicated region body
PF: predicated region fallthrough
CT: control target
= control target key end

     0   :  { %s1398_s1 = inlined_call_operand.vmem [shape: bf16[1152,128], index: 1, kind: input, shape index: {}]   ;;  %s1399_s0 = inlined_call_operand.vmem [shape: bf16[8,1152], index: 0, kind: input, shape index: {}]   ;;  %s1400_s2 = inlined_call_operand.vmem [shape: bf16[8,128], index: 2, kind: output, shape index: {0}]   ;;  %s1401_s3 = inlined_call_operand.vmem [shape: f32[1,1,128], index: 3, kind: output, shape index: {1}]   ;;  %s1402_s4 = inlined_call_operand.vmem [shape: f32[1,1,128], index: 4, kind: output, shape index: {2}]  }
   0x1   :  { %v1068_v0 = vld [vmem:[%s1398_s1 + $0x38] sm:$0xff]  ;;  %v1067_v4 = vld [vmem:[%s1398_s1 + $0x30] sm:$0xff]  ;;  %v1066_v8 = vld [vmem:[%s1398_s1 + $0x28] sm:$0xff] }
   0x2   :  { %v1084_v1 = vld [vmem:[%s1398_s1 + $0xb8] sm:$0xff]  ;;  %627 = vmatpush.bf16.msra.mxu0 %v1068_v0  ;;  %v1083_v5 = vld [vmem:[%s1398_s1 + $0xb0] sm:$0xff]  ;;  %v1082_v9 = vld [vmem:[%s1398_s1 + $0xa8] sm:$0xff] }
   0x3   :  { %v1092_v2 = vld [vmem:[%s1398_s1 + $0xf8] sm:$0xff]  ;;  %653 = vmatpush.bf16.msra.mxu2 %v1084_v1  ;;  %v1091_v6 = vld [vmem:[%s1398_s1 + $0xf0] sm:$0xff]  ;;  %v1090_v10 = vld [vmem:[%s1398_s1 + $0xe8] sm:$0xff] }
   0x4   :  { %v1076_v3 = vld [vmem:[%s1398_s1 + $0x78] sm:$0xff]  ;;  %666 = vmatpush.bf16.msra.mxu3 %v1092_v2  ;;  %v1075_v7 = vld [vmem:[%s1398_s1 + $0x70] sm:$0xff]  ;;  %v1074_v11 = vld [vmem:[%s1398_s1 + $0x68] sm:$0xff] }
   0x5   :  { %640 = vmatpush.bf16.msra.mxu1 %v1076_v3  ;;  %v1065_v12 = vld [vmem:[%s1398_s1 + $0x20] sm:$0xff]  ;;  %v1064_v16 = vld [vmem:[%s1398_s1 + $0x18] sm:$0xff]  ;;  %v1063_v20 = vld [vmem:[%s1398_s1 + $0x10] sm:$0xff] }
   0x6   :  { %628 = vmatpush.bf16.msra.mxu0 %v1067_v4  ;;  %v1081_v13 = vld [vmem:[%s1398_s1 + $0xa0] sm:$0xff]  ;;  %v1080_v17 = vld [vmem:[%s1398_s1 + $0x98] sm:$0xff]  ;;  %v1079_v21 = vld [vmem:[%s1398_s1 + $0x90] sm:$0xff] }
   0x7   :  { %654 = vmatpush.bf16.msra.mxu2 %v1083_v5  ;;  %v1089_v14 = vld [vmem:[%s1398_s1 + $0xe0] sm:$0xff]  ;;  %v1088_v18 = vld [vmem:[%s1398_s1 + $0xd8] sm:$0xff]  ;;  %v1087_v22 = vld [vmem:[%s1398_s1 + $0xd0] sm:$0xff] }
   0x8   :  { %667 = vmatpush.bf16.msra.mxu3 %v1091_v6  ;;  %v1073_v15 = vld [vmem:[%s1398_s1 + $0x60] sm:$0xff]  ;;  %v1072_v19 = vld [vmem:[%s1398_s1 + $0x58] sm:$0xff]  ;;  %v1071_v23 = vld [vmem:[%s1398_s1 + $0x50] sm:$0xff] }
   0x9   :  { %641 = vmatpush.bf16.msra.mxu1 %v1075_v7  ;;  %v1062_v24 = vld [vmem:[%s1398_s1 + $0x8] sm:$0xff]  ;;  %v14_v29 = vld [vmem:[%s1399_s0] sm:$0xff]  ;;  %v1100_v34 = vld [vmem:[%s1398_s1 + $0x138] sm:$0xff] }
   0xa   :  { %629 = vmatpush.bf16.msra.mxu0 %v1066_v8  ;;  %v1078_v25 = vld [vmem:[%s1398_s1 + $0x88] sm:$0xff]  ;;  %v1061_v30 = vld [vmem:[%s1398_s1] sm:$0xff]  ;;  %v168_v33 = vunpack.c.l.b16 %v14_v29  ;;  %v1116_v35 = vld [vmem:[%s1398_s1 + $0x1b8] sm:$0xff]  ;;  %v169_v39 = vunpack.c.h.b16 %v14_v29 }
   0xb   :  { %655 = vmatpush.bf16.msra.mxu2 %v1082_v9  ;;  %v1086_v26 = vld [vmem:[%s1398_s1 + $0xc8] sm:$0xff]  ;;  %v1077_v31 = vld [vmem:[%s1398_s1 + $0x80] sm:$0xff]  ;;  %v1124_v40 = vld [vmem:[%s1398_s1 + $0x1f8] sm:$0xff] }
   0xc   :  { %668 = vmatpush.bf16.msra.mxu3 %v1090_v10  ;;  %v1070_v27 = vld [vmem:[%s1398_s1 + $0x48] sm:$0xff]  ;;  %v1085_v36 = vld [vmem:[%s1398_s1 + $0xc0] sm:$0xff]  ;;  %v1108_v41 = vld [vmem:[%s1398_s1 + $0x178] sm:$0xff]  ;;  %v177_v43 = vpack.c.b16 %v168_v33, %v168_v33  ;;  %v178_v47 = vpack.c.b16 %v169_v39, %v169_v39 }
   0xd   :  { %642 = vmatpush.bf16.msra.mxu1 %v1074_v11  ;;  %v15_v28 = vld [vmem:[%s1399_s0 + $0x8] sm:$0xff]  ;;  %v1069_v37 = vld [vmem:[%s1398_s1 + $0x40] sm:$0xff]  ;;  %v1099_v44 = vld [vmem:[%s1398_s1 + $0x130] sm:$0xff] }
   0xe   :  { %630 = vmatpush.bf16.msra.mxu0 %v1065_v12  ;;  %v170_v32 = vunpack.c.l.b16 %v15_v28  ;;  %v171_v38 = vunpack.c.h.b16 %v15_v28  ;;  %v1115_v45 = vld [vmem:[%s1398_s1 + $0x1b0] sm:$0xff]  ;;  %v1098_v50 = vld [vmem:[%s1398_s1 + $0x128] sm:$0xff]  ;;  %v1097_v54 = vld [vmem:[%s1398_s1 + $0x120] sm:$0xff] }
   0xf   :  { %656 = vmatpush.bf16.msra.mxu2 %v1081_v13  ;;  %v1123_v48 = vld [vmem:[%s1398_s1 + $0x1f0] sm:$0xff]  ;;  %v1114_v51 = vld [vmem:[%s1398_s1 + $0x1a8] sm:$0xff]  ;;  %v1113_v55 = vld [vmem:[%s1398_s1 + $0x1a0] sm:$0xff] }
  0x10   :  { %669 = vmatpush.bf16.msra.mxu3 %v1089_v14  ;;  %v179_v42 = vpack.c.b16 %v170_v32, %v170_v32  ;;  %v180_v46 = vpack.c.b16 %v171_v38, %v171_v38  ;;  %v1107_v49 = vld [vmem:[%s1398_s1 + $0x170] sm:$0xff]  ;;  %v1122_v52 = vld [vmem:[%s1398_s1 + $0x1e8] sm:$0xff]  ;;  %v1121_v56 = vld [vmem:[%s1398_s1 + $0x1e0] sm:$0xff] }
  0x11   :  { %643 = vmatpush.bf16.msra.mxu1 %v1073_v15  ;;  %v1106_v53 = vld [vmem:[%s1398_s1 + $0x168] sm:$0xff]  ;;  %v1105_v57 = vld [vmem:[%s1398_s1 + $0x160] sm:$0xff]  ;;  %v1096_v58 = vld [vmem:[%s1398_s1 + $0x118] sm:$0xff] }
  0x12   :  { %631 = vmatpush.bf16.msra.mxu0 %v1064_v16  ;;  %v1112_v59 = vld [vmem:[%s1398_s1 + $0x198] sm:$0xff]  ;;  %v1095_v62 = vld [vmem:[%s1398_s1 + $0x110] sm:$0xff]  ;;  %v1094_v2 = vld [vmem:[%s1398_s1 + $0x108] sm:$0xff] }
  0x13   :  { %657 = vmatpush.bf16.msra.mxu2 %v1080_v17  ;;  %v1120_v60 = vld [vmem:[%s1398_s1 + $0x1d8] sm:$0xff]  ;;  %v1111_v63 = vld [vmem:[%s1398_s1 + $0x190] sm:$0xff]  ;;  %v1110_v3 = vld [vmem:[%s1398_s1 + $0x188] sm:$0xff] }
  0x14   :  { %670 = vmatpush.bf16.msra.mxu3 %v1088_v18  ;;  %v1104_v61 = vld [vmem:[%s1398_s1 + $0x158] sm:$0xff]  ;;  %v1119_v0 = vld [vmem:[%s1398_s1 + $0x1d0] sm:$0xff]  ;;  %v1118_v6 = vld [vmem:[%s1398_s1 + $0x1c8] sm:$0xff] }
  0x15   :  { %644 = vmatpush.bf16.msra.mxu1 %v1072_v19  ;;  %v1103_v1 = vld [vmem:[%s1398_s1 + $0x150] sm:$0xff]  ;;  %v17_v4 = vld [vmem:[%s1399_s0 + $0x18] sm:$0xff]  ;;  %v1102_v7 = vld [vmem:[%s1398_s1 + $0x148] sm:$0xff] }
  0x16   :  { %632 = vmatpush.bf16.msra.mxu0 %v1063_v20  ;;  %v16_v5 = vld [vmem:[%s1399_s0 + $0x10] sm:$0xff]  ;;  %v174_v8 = vunpack.c.l.b16 %v17_v4  ;;  %v1093_v10 = vld [vmem:[%s1398_s1 + $0x100] sm:$0xff]  ;;  %v1132_v12 = vld [vmem:[%s1398_s1 + $0x238] sm:$0xff]  ;;  %v175_v13 = vunpack.c.h.b16 %v17_v4 }
  0x17   :  { %658 = vmatpush.bf16.msra.mxu2 %v1079_v21  ;;  %v172_v9 = vunpack.c.l.b16 %v16_v5  ;;  %v1109_v11 = vld [vmem:[%s1398_s1 + $0x180] sm:$0xff]  ;;  %v173_v16 = vunpack.c.h.b16 %v16_v5  ;;  %v1131_v19 = vld [vmem:[%s1398_s1 + $0x230] sm:$0xff] }
  0x18   :  { %671 = vmatpush.bf16.msra.mxu3 %v1087_v22  ;;  %v1117_v14 = vld [vmem:[%s1398_s1 + $0x1c0] sm:$0xff]  ;;  %v183_v17 = vpack.c.b16 %v174_v8, %v174_v8  ;;  %v184_v20 = vpack.c.b16 %v175_v13, %v175_v13  ;;  %v1130_v22 = vld [vmem:[%s1398_s1 + $0x228] sm:$0xff] }
  0x19   :  { %645 = vmatpush.bf16.msra.mxu1 %v1071_v23  ;;  %v1101_v15 = vld [vmem:[%s1398_s1 + $0x140] sm:$0xff]  ;;  %v181_v18 = vpack.c.b16 %v172_v9, %v172_v9  ;;  %v182_v21 = vpack.c.b16 %v173_v16, %v173_v16 }
  0x1a   :  { %633 = vmatpush.bf16.msra.mxu0 %v1062_v24  ;;  %v1129_v23 = vld [vmem:[%s1398_s1 + $0x220] sm:$0xff]  ;;  %v1128_v24 = vld [vmem:[%s1398_s1 + $0x218] sm:$0xff] }
  0x1b   :  { %659 = vmatpush.bf16.msra.mxu2 %v1078_v25  ;;  %v1127_v25 = vld [vmem:[%s1398_s1 + $0x210] sm:$0xff]  ;;  %v1125_v29 = vld [vmem:[%s1398_s1 + $0x200] sm:$0xff] }
  0x1c   :  { %672 = vmatpush.bf16.msra.mxu3 %v1086_v26  ;;  %v1126_v26 = vld [vmem:[%s1398_s1 + $0x208] sm:$0xff] }
  0x1d   :  { %646 = vmatpush.bf16.msra.mxu1 %v1070_v27  ;;  %v18_v27 = vld [vmem:[%s1399_s0 + $0x20] sm:$0xf] }
  0x1e   :  { %634 = vmatpush.bf16.msra.mxu0 %v1061_v30  ;;  %v176_v28 = vunpack.c.l.b16 %v18_v27 }
  0x1f   :  { %660 = vmatpush.bf16.msra.mxu2 %v1077_v31 }
  0x20   :  { %673 = vmatpush.bf16.msra.mxu3 %v1085_v36  ;;  %v185_v30 = vpack.c.b16 %v176_v28, %v176_v28 }
  0x21   :  { %647 = vmatpush.bf16.msra.mxu1 %v1069_v37  ;;  %635 = vmatmul.bf16.vlgmr.msra.gmra.mxu0 %v177_v43 }
  0x22   :  { %679 = vmatpush.bf16.msrb.mxu0 %v1100_v34  ;;  %661 = vmatmul.bf16.vlgmr.msra.gmra.mxu2 %v179_v42 }
  0x23   :  { %705 = vmatpush.bf16.msrb.mxu2 %v1116_v35  ;;  %674 = vmatmul.bf16.vlgmr.msra.gmra.mxu3 %v180_v46 }
  0x24   :  { %718 = vmatpush.bf16.msrb.mxu3 %v1124_v40  ;;  %648 = vmatmul.bf16.vlgmr.msra.gmra.mxu1 %v178_v47 }
  0x25   :  { %692 = vmatpush.bf16.msrb.mxu1 %v1108_v41 }
  0x26   :  { %680 = vmatpush.bf16.msrb.mxu0 %v1099_v44 }
  0x27   :  { %706 = vmatpush.bf16.msrb.mxu2 %v1115_v45 }
  0x28   :  { %719 = vmatpush.bf16.msrb.mxu3 %v1123_v48 }
  0x29   :  { %693 = vmatpush.bf16.msrb.mxu1 %v1107_v49 }
  0x2a   :  { %681 = vmatpush.bf16.msrb.mxu0 %v1098_v50 }
  0x2b   :  { %707 = vmatpush.bf16.msrb.mxu2 %v1114_v51 }
  0x2c   :  { %720 = vmatpush.bf16.msrb.mxu3 %v1122_v52 }
  0x2d   :  { %694 = vmatpush.bf16.msrb.mxu1 %v1106_v53 }
  0x2e   :  { %682 = vmatpush.bf16.msrb.mxu0 %v1097_v54 }
  0x2f   :  { %708 = vmatpush.bf16.msrb.mxu2 %v1113_v55 }
  0x30   :  { %721 = vmatpush.bf16.msrb.mxu3 %v1121_v56 }
  0x31   :  { %695 = vmatpush.bf16.msrb.mxu1 %v1105_v57 }
  0x32   :  { %683 = vmatpush.bf16.msrb.mxu0 %v1096_v58 }
  0x33   :  { %709 = vmatpush.bf16.msrb.mxu2 %v1112_v59 }
  0x34   :  { %722 = vmatpush.bf16.msrb.mxu3 %v1120_v60 }
  0x35   :  { %696 = vmatpush.bf16.msrb.mxu1 %v1104_v61 }
  0x36   :  { %684 = vmatpush.bf16.msrb.mxu0 %v1095_v62 }
  0x37   :  { %710 = vmatpush.bf16.msrb.mxu2 %v1111_v63 }
  0x38   :  { %723 = vmatpush.bf16.msrb.mxu3 %v1119_v0 }
  0x39   :  { %697 = vmatpush.bf16.msrb.mxu1 %v1103_v1 }
  0x3a   :  { %685 = vmatpush.bf16.msrb.mxu0 %v1094_v2 }
  0x3b   :  { %711 = vmatpush.bf16.msrb.mxu2 %v1110_v3 }
  0x3c   :  { %724 = vmatpush.bf16.msrb.mxu3 %v1118_v6 }
  0x3d   :  { %698 = vmatpush.bf16.msrb.mxu1 %v1102_v7 }
  0x3e   :  { %686 = vmatpush.bf16.msrb.mxu0 %v1093_v10 }
  0x3f   :  { %712 = vmatpush.bf16.msrb.mxu2 %v1109_v11 }
  0x40   :  { %725 = vmatpush.bf16.msrb.mxu3 %v1117_v14 }
  0x41   :  { %699 = vmatpush.bf16.msrb.mxu1 %v1101_v15  ;;  %687 = vmatmul.bf16.vlgmr.msrb.gmra.mxu0 %v181_v18 }
  0x42   :  { %731 = vmatpush.bf16.msra.mxu0 %v1132_v12  ;;  %713 = vmatmul.bf16.vlgmr.msrb.gmra.mxu2 %v183_v17 }
  0x43   :  { %726 = vmatmul.bf16.vlgmr.msrb.gmra.mxu3 %v184_v20 }
  0x44   :  { %700 = vmatmul.bf16.vlgmr.msrb.gmra.mxu1 %v182_v21 }
  0x46   :  { %732 = vmatpush.bf16.msra.mxu0 %v1131_v19 }
  0x4a   :  { %733 = vmatpush.bf16.msra.mxu0 %v1130_v22 }
  0x4e   :  { %734 = vmatpush.bf16.msra.mxu0 %v1129_v23 }
  0x52   :  { %735 = vmatpush.bf16.msra.mxu0 %v1128_v24 }
  0x56   :  { %736 = vmatpush.bf16.msra.mxu0 %v1127_v25 }
  0x5a   :  { %737 = vmatpush.bf16.msra.mxu0 %v1126_v26 }
  0x5e   :  { %738 = vmatpush.bf16.msra.mxu0 %v1125_v29 }
  0x61   :  { %739 = vmatmul.bf16.vlgmr.msra.gmra.mxu0 %v185_v30 }
  0x9e   :  { %v636_v31 = vpop.f32.mrf.mxu0 }
  0xa1   :  { %v649_v32 = vpop.f32.mrf.mxu1 }
  0xa2   :  { %v650_v41 = vadd.f32 %v649_v32, %v636_v31 }
  0xa5   :  { %v662_v33 = vpop.f32.mrf.mxu2 }
  0xa6   :  { %v675_v34 = vpop.f32.mrf.mxu3  ;;  %v638_v35 = vpop.f32.mrf.mxu0  ;;  %v663_v43 = vadd.f32 %v662_v33, %v650_v41 }
  0xa8   :  { %v676_v47 = vadd.f32 %v675_v34, %v663_v43 }
  0xa9   :  { %v651_v36 = vpop.f32.mrf.mxu1 }
  0xad   :  { %v664_v37 = vpop.f32.mrf.mxu2 }
  0xae   :  { %v677_v38 = vpop.f32.mrf.mxu3 }
  0xbe   :  { %v688_v39 = vpop.f32.mrf.mxu0 }
  0xbf   :  { %v689_v49 = vadd.f32 %v688_v39, %v676_v47 }
  0xc1   :  { %v701_v40 = vpop.f32.mrf.mxu1 }
  0xc2   :  { %v702_v51 = vadd.f32 %v701_v40, %v689_v49 }
  0xc5   :  { %v714_v42 = vpop.f32.mrf.mxu2 }
  0xc6   :  { %v727_v44 = vpop.f32.mrf.mxu3  ;;  %v690_v45 = vpop.f32.mrf.mxu0  ;;  %v715_v52 = vadd.f32 %v714_v42, %v702_v51 }
  0xc8   :  { %v728_v53 = vadd.f32 %v727_v44, %v715_v52 }
  0xc9   :  { %v703_v46 = vpop.f32.mrf.mxu1 }
  0xcd   :  { %v716_v48 = vpop.f32.mrf.mxu2 }
  0xce   :  { %v729_v50 = vpop.f32.mrf.mxu3 }
  0xde   :  { %v740_v54 = vpop.f32.mrf.mxu0 }
  0xdf   :  { %v741_v55 = vadd.f32 %v740_v54, %v728_v53 }
  0xe1   :  { %v744_v56 = vpack.c.bf16 %v741_v55, %v741_v55  ;;  %v746_v57 = vrot.slane %v741_v55, 4  ;;  %v753_v58 = vmul.f32 %v741_v55, %v741_v55 }
  0xe3   :  { %745 = vst [vmem:[%s1400_s2] sm:$0xf] %v744_v56  ;;  %v747_v59 = vadd.f32 %v746_v57, %v741_v55  ;;  %v754_v60 = vrot.slane %v753_v58, 4 }
  0xe5   :  { %v748_v61 = vrot.slane %v747_v59, 2  ;;  %v755_v62 = vadd.f32 %v754_v60, %v753_v58 }
  0xe6   :  { %v742_v63 = vpop.f32.mrf.mxu0 }
  0xe7   :  { %v749_v0 = vadd.f32 %v748_v61, %v747_v59  ;;  %v756_v1 = vrot.slane %v755_v62, 2 }
  0xe9   :  { %v750_v2 = vrot.slane %v749_v0, 1  ;;  %v757_v3 = vadd.f32 %v756_v1, %v755_v62 }
  0xeb   :  { %v751_v4 = vadd.f32 %v750_v2, %v749_v0  ;;  %v758_v5 = vrot.slane %v757_v3, 1 }
  0xed   :  { %752 = vst [vmem:[%s1401_s3] sm:$0x1] %v751_v4  ;;  %v759_v6 = vadd.f32 %v758_v5, %v757_v3 }
  0xef   :  { %760 = vst [vmem:[%s1402_s4] sm:$0x1] %v759_v6 }

// kernel: resnet_forward.31
= control target key start
LH: loop header
LB: loop body
LE: loop exit
PB: predicated region body
PF: predicated region fallthrough
CT: control target
= control target key end

     0   :  { %vm94_vm0 = vcmask 1041408   ;;  %s225_s1 = inlined_call_operand.vmem [shape: bf16[128,128], index: 1, kind: input, shape index: {}]   ;;  %s226_s0 = inlined_call_operand.vmem [shape: bf16[2,128], index: 0, kind: input, shape index: {}]   ;;  %s227_s2 = inlined_call_operand.vmem [shape: bf16[2,128], index: 2, kind: output, shape index: {0}]   ;;  %s228_s3 = inlined_call_operand.vmem [shape: f32[1,1,128], index: 3, kind: output, shape index: {1}]   ;;  %s229_s4 = inlined_call_operand.vmem [shape: f32[1,1,128], index: 4, kind: output, shape index: {2}]  }
   0x1   :  { %v163_v0 = vld [vmem:[%s225_s1 + $0x38] sm:$0xff]  ;;  %v162_v1 = vld [vmem:[%s225_s1 + $0x30] sm:$0xff]  ;;  %v161_v2 = vld [vmem:[%s225_s1 + $0x28] sm:$0xff] }
   0x2   :  { %79 = vmatpush.bf16.msra.mxu0 %v163_v0  ;;  %v160_v3 = vld [vmem:[%s225_s1 + $0x20] sm:$0xff]  ;;  %v159_v4 = vld [vmem:[%s225_s1 + $0x18] sm:$0xff]  ;;  %v158_v5 = vld [vmem:[%s225_s1 + $0x10] sm:$0xff] }
   0x3   :  { %v157_v6 = vld [vmem:[%s225_s1 + $0x8] sm:$0xff]  ;;  %v156_v7 = vld [vmem:[%s225_s1] sm:$0xff] }
   0x4   :  { %v14_v8 = vld [vmem:[%s226_s0] sm:$0x1] }
   0x6   :  { %80 = vmatpush.bf16.msra.mxu0 %v162_v1 }
   0xa   :  { %81 = vmatpush.bf16.msra.mxu0 %v161_v2 }
   0xe   :  { %82 = vmatpush.bf16.msra.mxu0 %v160_v3 }
  0x12   :  { %83 = vmatpush.bf16.msra.mxu0 %v159_v4 }
  0x16   :  { %84 = vmatpush.bf16.msra.mxu0 %v158_v5 }
  0x1a   :  { %85 = vmatpush.bf16.msra.mxu0 %v157_v6 }
  0x1e   :  { %86 = vmatpush.bf16.msra.mxu0 %v156_v7 }
  0x21   :  { %87 = vmatmul.bf16.vlgmr.msra.gmra.mxu0 %v14_v8 }
  0x9e   :  { %v88_v9 = vpop.f32.mrf.mxu0 }
  0x9f   :  { %v92_v10 = vpack.c.bf16 %v88_v9, %v88_v9  ;;  %v95_v11 = vsel %vm94_vm0, %v88_v9, 0.0  ;;  %v103_v12 = vmul.f32 %v88_v9, %v88_v9 }
  0xa0   :  { %v96_v13 = vrot.slane %v95_v11, 4 }
  0xa1   :  { %93 = vst [vmem:[%s227_s2] sm:$0x1] %v92_v10  ;;  %v104_v14 = vsel %vm94_vm0, %v103_v12, 0.0 }
  0xa2   :  { %v97_v15 = vadd.f32 %v96_v13, %v95_v11  ;;  %v105_v16 = vrot.slane %v104_v14, 4 }
  0xa4   :  { %v98_v17 = vrot.slane %v97_v15, 2  ;;  %v106_v18 = vadd.f32 %v105_v16, %v104_v14 }
  0xa6   :  { %v99_v19 = vadd.f32 %v98_v17, %v97_v15  ;;  %v107_v20 = vrot.slane %v106_v18, 2  ;;  %v90_v21 = vpop.f32.mrf.mxu0 }
  0xa8   :  { %v100_v22 = vrot.slane %v99_v19, 1  ;;  %v108_v23 = vadd.f32 %v107_v20, %v106_v18 }
  0xaa   :  { %v101_v24 = vadd.f32 %v100_v22, %v99_v19  ;;  %v109_v25 = vrot.slane %v108_v23, 1 }
  0xac   :  { %102 = vst [vmem:[%s228_s3] sm:$0x1] %v101_v24  ;;  %v110_v26 = vadd.f32 %v109_v25, %v108_v23 }
  0xae   :  { %111 = vst [vmem:[%s229_s4] sm:$0x1] %v110_v26 }

// kernel: resnet_forward.26
= control target key start
LH: loop header
LB: loop body
LE: loop exit
PB: predicated region body
PF: predicated region fallthrough
CT: control target
= control target key end

     0   :  { %s2000_s21 = smov 0   ;;  %s2002_s22 = smov 0   ;;  %s2587_s0 = inlined_call_operand.vmem [shape: bf16[2,4,4,128], index: 0, kind: input, shape index: {}, may-alias: {0,1,2}]   ;;  %s2588_s1 = inlined_call_operand.vmem [shape: bf16[2,4,4,128], index: 1, kind: input, shape index: {}, may-alias: {0,1,2}]   ;;  %s2589_s2 = inlined_call_operand.vmem [shape: bf16[2,4,4,128], index: 2, kind: input, shape index: {}, may-alias: {0,1,2}]   ;;  %s2590_s3 = inlined_call_operand.vmem [shape: bf16[1152,128], index: 3, kind: input, shape index: {}]   ;;  %s2591_s4 = inlined_call_operand.vmem [shape: bf16[2,2,2,128], index: 4, kind: output, shape index: {0}]   ;;  %s2592_s5 = inlined_call_operand.vmem [shape: f32[2,1,128], index: 5, kind: output, shape index: {1}]   ;;  %s2593_s6 = inlined_call_operand.vmem [shape: f32[2,1,128], index: 6, kind: output, shape index: {2}]  }
   0x1   :  { %s2004_s23 = smov 0  }
   0x2 LB: > { %s29_s24 = sadd.s32 1, %s1959_s22  ;;  %p1537_p0 = scmp.ge.s32.totalorder %s1963_s23, 1  ;;  %s1963_s23 = sphi %s2004_s23, %s17_s23   ;;  %s1959_s22 = sphi %s2002_s22, %s2631_s22   ;;  %s1955_s21 = sphi %s2000_s21, %s2630_s21  }
   0x3   : > { %p31_p1 = scmp.ge.s32.totalorder %s29_s24, 2  ;;  %p292_p2 = scmp.lt.s32.totalorder %s1963_s23, 3 }
   0x5   : > { %s2633_s24 = smov (%p31_p1, %s29_s24), 0  ;;  %p293_p3 = pnand %p1537_p0, %p292_p2 }
   0x7   : > { %296 = sbr.rel (%p293_p3) target bundleno = 320 (0x140), region = 36 }
   0xc   : > { %v2021_v0 = vld [vmem:[%s2590_s3 + $0x38] sm:$0xff]  ;;  %v2043_v4 = vld [vmem:[%s2590_s3 + $0x30] sm:$0xff]  ;;  %p359_p4 = scmp.lt.s32.totalorder %s1955_s21, 1  ;;  %v2067_v8 = vld [vmem:[%s2590_s3 + $0x28] sm:$0xff]  ;;  %vm1157_vm0 = vcmask 1041408  }
   0xd   : > { %v2026_v1 = vld [vmem:[%s2590_s3 + $0x78] sm:$0xff]  ;;  %1038 = vmatpush.bf16.msra.mxu0 %v2021_v0  ;;  %v2048_v5 = vld [vmem:[%s2590_s3 + $0x70] sm:$0xff]  ;;  %v2072_v9 = vld [vmem:[%s2590_s3 + $0x68] sm:$0xff] }
   0xe   : > { %v2031_v2 = vld [vmem:[%s2590_s3 + $0xb8] sm:$0xff]  ;;  %1051 = vmatpush.bf16.msra.mxu1 %v2026_v1  ;;  %v2055_v6 = vld [vmem:[%s2590_s3 + $0xb0] sm:$0xff]  ;;  %s2635_s21 = smov (!%p359_p4, %s1955_s21), 1  ;;  %v2081_v10 = vld [vmem:[%s2590_s3 + $0xa8] sm:$0xff] }
   0xf   : > { %v2036_v3 = vld [vmem:[%s2590_s3 + $0xf8] sm:$0xff]  ;;  %1064 = vmatpush.bf16.msra.mxu2 %v2031_v2  ;;  %v2060_v7 = vld [vmem:[%s2590_s3 + $0xf0] sm:$0xff]  ;;  %v2086_v11 = vld [vmem:[%s2590_s3 + $0xe8] sm:$0xff]  ;;  %s2101_s9 = sshll.u32 %s2635_s21, 3  ;;  %s411_s19 = scalar_lea.vmem %s2593_s6, %s2635_s21 }
  0x10   : > { %1077 = vmatpush.bf16.msra.mxu3 %v2036_v3  ;;  %v2093_v12 = vld [vmem:[%s2590_s3 + $0x20] sm:$0xff]  ;;  %s2119_s16 = scalar_lea.vmem %s2587_s0, %s2101_s9  ;;  %v2126_v16 = vld [vmem:[%s2590_s3 + $0x18] sm:$0xff]  ;;  %v2151_v21 = vld [vmem:[%s2590_s3 + $0x10] sm:$0xff]  ;;  %s1840_s29 = sadd.s32 4, %s2101_s9 }
  0x11   : > { %1039 = vmatpush.bf16.msra.mxu0 %v2043_v4  ;;  %v2098_v13 = vld [vmem:[%s2590_s3 + $0x60] sm:$0xff]  ;;  %v2131_v17 = vld [vmem:[%s2590_s3 + $0x58] sm:$0xff]  ;;  %v2156_v22 = vld [vmem:[%s2590_s3 + $0x50] sm:$0xff]  ;;  %s2325_s13 = scalar_lea.vmem %s2588_s1, %s1840_s29  ;;  %s1842_s29 = sadd.s32 6, %s2101_s9 }
  0x12   : > { %1052 = vmatpush.bf16.msra.mxu1 %v2048_v5  ;;  %v2108_v14 = vld [vmem:[%s2590_s3 + $0xa0] sm:$0xff]  ;;  %v2138_v18 = vld [vmem:[%s2590_s3 + $0x98] sm:$0xff]  ;;  %v2163_v23 = vld [vmem:[%s2590_s3 + $0x90] sm:$0xff]  ;;  %s390_s8 = scalar_lea.vmem %s2589_s2, %s1842_s29  ;;  %s1544_s9 = sshll.u32 %s2635_s21, 1 }
  0x13   : > { %1065 = vmatpush.bf16.msra.mxu2 %v2055_v6  ;;  %v2113_v15 = vld [vmem:[%s2590_s3 + $0xe0] sm:$0xff]  ;;  %v2143_v19 = vld [vmem:[%s2590_s3 + $0xd8] sm:$0xff]  ;;  %v2168_v24 = vld [vmem:[%s2590_s3 + $0xd0] sm:$0xff]  ;;  %s2562_s12 = scalar_lea.vmem %s2591_s4, %s1544_s9 }
  0x14   : > { %1078 = vmatpush.bf16.msra.mxu3 %v2060_v7  ;;  %v557_v20 = vld [vmem:[%s2119_s16] sm:$0x3]  ;;  %v2175_v25 = vld [vmem:[%s2590_s3 + $0x8] sm:$0xff]  ;;  %v2216_v35 = vld [vmem:[%s2590_s3 + $0x138] sm:$0xff] }
  0x15   : > { %1040 = vmatpush.bf16.msra.mxu0 %v2067_v8  ;;  %562 = vst [vmem:[#allocation1] ss:$4 sm:$0xff] %v557_v20  ;;  %v2180_v26 = vld [vmem:[%s2590_s3 + $0x48] sm:$0xff]  ;;  %v2199_v31 = vld [vmem:[%s2590_s3] sm:$0xff]  ;;  %v2221_v37 = vld [vmem:[%s2590_s3 + $0x178] sm:$0xff] }
  0x16   : > { %1053 = vmatpush.bf16.msra.mxu1 %v2072_v9  ;;  %v2187_v27 = vld [vmem:[%s2590_s3 + $0x88] sm:$0xff]  ;;  %v2204_v32 = vld [vmem:[%s2590_s3 + $0x40] sm:$0xff]  ;;  %v2226_v38 = vld [vmem:[%s2590_s3 + $0x1b8] sm:$0xff] }
  0x17   : > { %1066 = vmatpush.bf16.msra.mxu2 %v2081_v10  ;;  %v2192_v28 = vld [vmem:[%s2590_s3 + $0xc8] sm:$0xff]  ;;  %v2211_v34 = vld [vmem:[%s2590_s3 + $0x80] sm:$0xff]  ;;  %v2238_v40 = vld [vmem:[%s2590_s3 + $0x1f8] sm:$0xff] }
  0x18   : > { %1079 = vmatpush.bf16.msra.mxu3 %v2086_v11  ;;  %2606 = vst [vmem:[#allocation2_spill] sm:$0xff] %v2192_v28  ;;  %v2231_v39 = vld [vmem:[%s2590_s3 + $0xc0] sm:$0xff]  ;;  %v2246_v43 = vld [vmem:[%s2590_s3 + $0x130] sm:$0xff]  ;;  %v2271_v49 = vld [vmem:[%s2590_s3 + $0x128] sm:$0xff] }
  0x19   : > { %1041 = vmatpush.bf16.msra.mxu0 %v2093_v12  ;;  %2607 = vst [vmem:[#allocation3_spill] sm:$0xff] %v2231_v39  ;;  %v1545_v41 = vld [vmem:[%s2119_s16 + $0x2] sm:$0x3]  ;;  %v2253_v44 = vld [vmem:[%s2590_s3 + $0x170] sm:$0xff]  ;;  %v2278_v50 = vld [vmem:[%s2590_s3 + $0x168] sm:$0xff] }
  0x1a   : > { %1054 = vmatpush.bf16.msra.mxu1 %v2098_v13  ;;  %2608 = vst [vmem:[#allocation4_spill] sm:$0xff] %v2238_v40  ;;  %v2258_v45 = vld [vmem:[%s2590_s3 + $0x1b0] sm:$0xff]  ;;  %v2283_v51 = vld [vmem:[%s2590_s3 + $0x1a8] sm:$0xff]  ;;  %v2295_v53 = vld [vmem:[%s2590_s3 + $0x120] sm:$0xff] }
  0x1b   : > { %1067 = vmatpush.bf16.msra.mxu2 %v2108_v14  ;;  %v2265_v48 = vld [vmem:[%s2590_s3 + $0x1f0] sm:$0xff]  ;;  %v2289_v52 = vld [vmem:[%s2590_s3 + $0x1e8] sm:$0xff]  ;;  %v2302_v54 = vld [vmem:[%s2590_s3 + $0x160] sm:$0xff] }
  0x1c   : > { %1080 = vmatpush.bf16.msra.mxu3 %v2113_v15  ;;  %v563_v29 = vld.sshfl [vmem:[#allocation1] sm:$0xff pattern:$0x73625140]  ;;  %2609 = vst [vmem:[#allocation5_spill] sm:$0xff] %v2265_v48  ;;  %v2320_v58 = vld [vmem:[%s2590_s3 + $0x118] sm:$0xff]  ;;  %v2350_v63 = vld [vmem:[%s2590_s3 + $0x110] sm:$0xff] }
  0x1d   : > { %1042 = vmatpush.bf16.msra.mxu0 %v2126_v16  ;;  %571 = vst [vmem:[#allocation1] ss:$4 sm:$0xff] %v557_v20  ;;  %v566_v30 = vshll.u32 %v563_v29, 16  ;;  %v564_v33 = vshrl.u32 %v563_v29, 16  ;;  %v2307_v55 = vld [vmem:[%s2590_s3 + $0x1a0] sm:$0xff]  ;;  %v2332_v59 = vld [vmem:[%s2590_s3 + $0x158] sm:$0xff] }
  0x1e   : > { %1055 = vmatpush.bf16.msra.mxu1 %v2131_v17  ;;  %2610 = vst [vmem:[#allocation6_spill] sm:$0xff] %v2289_v52  ;;  %v2314_v57 = vld [vmem:[%s2590_s3 + $0x1e0] sm:$0xff]  ;;  %v2337_v60 = vld [vmem:[%s2590_s3 + $0x198] sm:$0xff]  ;;  %v2362_v29 = vld [vmem:[%s2590_s3 + $0x190] sm:$0xff] }
  0x1f   : > { %1068 = vmatpush.bf16.msra.mxu2 %v2138_v18  ;;  %v568_v36 = vrot.slane %v566_v30, 1  ;;  %2611 = vst [vmem:[#allocation7_spill] sm:$0xff] %v2314_v57  ;;  %v2343_v61 = vld [vmem:[%s2590_s3 + $0x1d8] sm:$0xff]  ;;  %v560_v62 = vld [vmem:[%s2325_s13] sm:$0x3] }
  0x20   : > { %1081 = vmatpush.bf16.msra.mxu3 %v2143_v19  ;;  %2612 = vst [vmem:[#allocation8_spill] sm:$0xff] %v2343_v61 }
  0x21   : > { %1043 = vmatpush.bf16.msra.mxu0 %v2151_v21  ;;  %v569_v42 = vor.u32 %v568_v36, %v564_v33  ;;  %v2368_v33 = vld [vmem:[%s2590_s3 + $0x1d0] sm:$0xff]  ;;  %v2374_v36 = vld [vmem:[%s2590_s3 + $0x108] sm:$0xff] }
  0x22   : > { %1056 = vmatpush.bf16.msra.mxu1 %v2156_v22  ;;  %2613 = vst [vmem:[#allocation9_spill] sm:$0xff] %v2368_v33 }
  0x23   : > { %1069 = vmatpush.bf16.msra.mxu2 %v2163_v23  ;;  %2614 = vst [vmem:[#allocation10_spill] sm:$0xff] %v2374_v36 }
  0x24   : > { %1082 = vmatpush.bf16.msra.mxu3 %v2168_v24  ;;  %v572_v46 = vld.sshfl [vmem:[#allocation1] sm:$0xff pattern:$0x73625140] }
  0x25   : > { %1044 = vmatpush.bf16.msra.mxu0 %v2175_v25  ;;  %v574_v47 = vrot.slane %v572_v46, 1  ;;  %577 = vst [vmem:[#allocation1] ss:$4 sm:$0xff] %v1545_v41 }
  0x26   : > { %1057 = vmatpush.bf16.msra.mxu1 %v2180_v26 }
  0x27   : > { %1070 = vmatpush.bf16.msra.mxu2 %v2187_v27 }
  0x28   : > { %1083 = vmatpush.bf16.msra.mxu3 %v2192_v28 }
  0x29   : > { %1045 = vmatpush.bf16.msra.mxu0 %v2199_v31 }
  0x2a   : > { %1058 = vmatpush.bf16.msra.mxu1 %v2204_v32 }
  0x2b   : > { %1071 = vmatpush.bf16.msra.mxu2 %v2211_v34 }
  0x2c   : > { %1084 = vmatpush.bf16.msra.mxu3 %v2231_v39  ;;  %1046 = vmatmul.bf16.vlgmr.msra.gmra.mxu0 %v557_v20  ;;  %v578_v56 = vld.sshfl [vmem:[#allocation1] sm:$0xff pattern:$0x73625140]  ;;  %v2357_v20 = vld [vmem:[%s2590_s3 + $0x150] sm:$0xff]  ;;  %v2415_v39 = vld [vmem:[%s2590_s3 + $0x238] sm:$0xff] }
  0x2d   : > { %1090 = vmatpush.bf16.msrb.mxu0 %v2216_v35  ;;  %1059 = vmatmul.bf16.vlgmr.msra.gmra.mxu1 %v569_v42  ;;  %586 = vst [vmem:[#allocation1] ss:$4 sm:$0xff] %v1545_v41  ;;  %v2386_v42 = vld [vmem:[%s2590_s3 + $0x188] sm:$0xff]  ;;  %v581_v46 = vshll.u32 %v578_v56, 16 }
  0x2e   : > { %1103 = vmatpush.bf16.msrb.mxu1 %v2221_v37  ;;  %1072 = vmatmul.bf16.vlgmr.msra.gmra.mxu2 %v574_v47  ;;  %2616 = vst [vmem:[#allocation12_spill] sm:$0xff] %v2386_v42  ;;  %v2392_v47 = vld [vmem:[%s2590_s3 + $0x1c8] sm:$0xff] }
  0x2f   : > { %1116 = vmatpush.bf16.msrb.mxu2 %v2226_v38  ;;  %1085 = vmatmul.bf16.vlgmr.msra.gmra.mxu3 %v1545_v41  ;;  %v2381_v41 = vld [vmem:[%s2590_s3 + $0x148] sm:$0xff]  ;;  %2617 = vst [vmem:[#allocation13_spill] sm:$0xff] %v2392_v47 }
  0x30   : > { %1129 = vmatpush.bf16.msrb.mxu3 %v2238_v40  ;;  %2615 = vst [vmem:[#allocation11_spill] sm:$0xff] %v2381_v41  ;;  %v583_v40 = vrot.slane %v581_v46, 1 }
  0x31   : > { %1091 = vmatpush.bf16.msrb.mxu0 %v2246_v43 }
  0x32   : > { %1104 = vmatpush.bf16.msrb.mxu1 %v2253_v44 }
  0x33   : > { %1117 = vmatpush.bf16.msrb.mxu2 %v2258_v45 }
  0x34   : > { %1130 = vmatpush.bf16.msrb.mxu3 %v2265_v48  ;;  %v587_v30 = vld.sshfl [vmem:[#allocation1] sm:$0xff pattern:$0x73625140]  ;;  %v579_v48 = vshrl.u32 %v578_v56, 16 }
  0x35   : > { %1092 = vmatpush.bf16.msrb.mxu0 %v2271_v49  ;;  %592 = vst [vmem:[#allocation1] ss:$4 sm:$0xff] %v560_v62  ;;  %v589_v28 = vrot.slane %v587_v30, 1 }
  0x36   : > { %1105 = vmatpush.bf16.msrb.mxu1 %v2278_v50  ;;  %v584_v46 = vor.u32 %v583_v40, %v579_v48  ;;  %v2629_v48 = vld [vmem:[#allocation13_spill] sm:$0xff] }
  0x37   : > { %1118 = vmatpush.bf16.msrb.mxu2 %v2283_v51 }
  0x38   : > { %1131 = vmatpush.bf16.msrb.mxu3 %v2289_v52 }
  0x39   : > { %1093 = vmatpush.bf16.msrb.mxu0 %v2295_v53 }
  0x3a   : > { %1106 = vmatpush.bf16.msrb.mxu1 %v2302_v54 }
  0x3b   : > { %1119 = vmatpush.bf16.msrb.mxu2 %v2307_v55 }
  0x3c   : > { %1132 = vmatpush.bf16.msrb.mxu3 %v2314_v57  ;;  %v2403_v57 = vld [vmem:[%s2590_s3 + $0x140] sm:$0xff] }
  0x3d   : > { %1094 = vmatpush.bf16.msrb.mxu0 %v2320_v58  ;;  %v593_v52 = vld.sshfl [vmem:[#allocation1] sm:$0xff pattern:$0x73625140] }
  0x3e   : > { %1107 = vmatpush.bf16.msrb.mxu1 %v2332_v59  ;;  %601 = vst [vmem:[#allocation1] ss:$4 sm:$0xff] %v560_v62 }
  0x3f   : > { %1120 = vmatpush.bf16.msrb.mxu2 %v2337_v60 }
  0x40   : > { %1133 = vmatpush.bf16.msrb.mxu3 %v2343_v61  ;;  %v2398_v61 = vld [vmem:[%s2590_s3 + $0x100] sm:$0xff] }
  0x41   : > { %1095 = vmatpush.bf16.msrb.mxu0 %v2350_v63 }
  0x42   : > { %1108 = vmatpush.bf16.msrb.mxu1 %v2357_v20 }
  0x43   : > { %1121 = vmatpush.bf16.msrb.mxu2 %v2362_v29 }
  0x44   : > { %1134 = vmatpush.bf16.msrb.mxu3 %v2368_v33  ;;  %v2410_v33 = vld [vmem:[%s2590_s3 + $0x180] sm:$0xff] }
  0x45   : > { %1096 = vmatpush.bf16.msrb.mxu0 %v2374_v36  ;;  %v596_v36 = vshll.u32 %v593_v52, 16  ;;  %v602_v40 = vld.sshfl [vmem:[#allocation1] sm:$0xff pattern:$0x73625140] }
  0x46   : > { %1109 = vmatpush.bf16.msrb.mxu1 %v2381_v41  ;;  %v594_v41 = vshrl.u32 %v593_v52, 16 }
  0x47   : > { %1122 = vmatpush.bf16.msrb.mxu2 %v2386_v42  ;;  %v2421_v42 = vld [vmem:[%s2590_s3 + $0x1c0] sm:$0xff]  ;;  %v598_v56 = vrot.slane %v596_v36, 1 }
  0x48   : > { %1135 = vmatpush.bf16.msrb.mxu3 %v2392_v47  ;;  %v2431_v47 = vld [vmem:[%s2590_s3 + $0x230] sm:$0xff]  ;;  %v2436_v36 = vld [vmem:[%s2119_s16 + $0x2] sm:$0x3]  ;;  %s406_s16 = scalar_lea.vmem %s2592_s5, %s2635_s21 }
  0x49   : > { %1097 = vmatpush.bf16.msrb.mxu0 %v2398_v61  ;;  %v599_v52 = vor.u32 %v598_v56, %v594_v41  ;;  %1177 = vst [vmem:[#allocation1] ss:$4 sm:$0xff] %v2436_v36 }
  0x4a   : > { %1110 = vmatpush.bf16.msrb.mxu1 %v2403_v57 }
  0x4b   : > { %1123 = vmatpush.bf16.msrb.mxu2 %v2410_v33 }
  0x4c   : > { %1136 = vmatpush.bf16.msrb.mxu3 %v2421_v42  ;;  %1098 = vmatmul.bf16.vlgmr.msrb.gmra.mxu0 %v584_v46 }
  0x4d   : > { %1142 = vmatpush.bf16.msra.mxu0 %v2415_v39  ;;  %1111 = vmatmul.bf16.vlgmr.msrb.gmra.mxu1 %v589_v28  ;;  %v2622_v28 = vld [vmem:[#allocation3_spill] sm:$0xff] }
  0x4e   : > { %1221 = vmatpush.bf16.msra.mxu1 %v2021_v0  ;;  %1124 = vmatmul.bf16.vlgmr.msrb.gmra.mxu2 %v560_v62  ;;  %v2444_v0 = vld [vmem:[%s2590_s3 + $0x228] sm:$0xff] }
  0x4f   : > { %1234 = vmatpush.bf16.msra.mxu2 %v2026_v1  ;;  %1137 = vmatmul.bf16.vlgmr.msrb.gmra.mxu3 %v599_v52  ;;  %v2454_v1 = vld [vmem:[%s2590_s3 + $0x220] sm:$0xff] }
  0x50   : > { %1247 = vmatpush.bf16.msra.mxu3 %v2031_v2  ;;  %v1178_v2 = vld.sshfl [vmem:[#allocation1] sm:$0xff pattern:$0x73625140] }
  0x51   : > { %1143 = vmatpush.bf16.msra.mxu0 %v2431_v47  ;;  %1186 = vst [vmem:[#allocation1] ss:$4 sm:$0xff] %v2436_v36 }
  0x52   : > { %1222 = vmatpush.bf16.msra.mxu1 %v2043_v4  ;;  %v2463_v4 = vld [vmem:[%s2590_s3 + $0x218] sm:$0xff] }
  0x53   : > { %1235 = vmatpush.bf16.msra.mxu2 %v2048_v5  ;;  %v2473_v5 = vld [vmem:[%s2590_s3 + $0x210] sm:$0xff] }
  0x54   : > { %1248 = vmatpush.bf16.msra.mxu3 %v2055_v6  ;;  %v2476_v6 = vld [vmem:[%s2325_s13] sm:$0x3] }
  0x55   : > { %1144 = vmatpush.bf16.msra.mxu0 %v2444_v0 }
  0x56   : > { %1223 = vmatpush.bf16.msra.mxu1 %v2067_v8 }
  0x57   : > { %1236 = vmatpush.bf16.msra.mxu2 %v2072_v9  ;;  %v2485_v9 = vld [vmem:[%s2590_s3 + $0x208] sm:$0xff] }
  0x58   : > { %1249 = vmatpush.bf16.msra.mxu3 %v2081_v10  ;;  %v1187_v8 = vld.sshfl [vmem:[#allocation1] sm:$0xff pattern:$0x73625140]  ;;  %v1181_v10 = vshll.u32 %v1178_v2, 16 }
  0x59   : > { %1145 = vmatpush.bf16.msra.mxu0 %v2454_v1  ;;  %1192 = vst [vmem:[#allocation1] ss:$4 sm:$0xff] %v2476_v6 }
  0x5a   : > { %1224 = vmatpush.bf16.msra.mxu1 %v2093_v12  ;;  %v2495_v12 = vld [vmem:[%s2590_s3 + $0x200] sm:$0xff] }
  0x5b   : > { %1237 = vmatpush.bf16.msra.mxu2 %v2098_v13  ;;  %v1179_v13 = vshrl.u32 %v1178_v2, 16 }
  0x5c   : > { %1250 = vmatpush.bf16.msra.mxu3 %v2108_v14  ;;  %v1183_v14 = vrot.slane %v1181_v10, 1 }
  0x5d   : > { %1146 = vmatpush.bf16.msra.mxu0 %v2463_v4 }
  0x5e   : > { %1225 = vmatpush.bf16.msra.mxu1 %v2126_v16  ;;  %v604_v16 = vrot.slane %v602_v40, 1 }
  0x5f   : > { %1238 = vmatpush.bf16.msra.mxu2 %v2131_v17 }
  0x60   : > { %1251 = vmatpush.bf16.msra.mxu3 %v2138_v18  ;;  %v1193_v17 = vld.sshfl [vmem:[#allocation1] sm:$0xff pattern:$0x73625140]  ;;  %v1184_v18 = vor.u32 %v1183_v14, %v1179_v13 }
  0x61   : > { %1147 = vmatpush.bf16.msra.mxu0 %v2473_v5  ;;  %1201 = vst [vmem:[#allocation1] ss:$4 sm:$0xff] %v2476_v6 }
  0x62   : > { %1226 = vmatpush.bf16.msra.mxu1 %v2151_v21  ;;  %v1189_v21 = vrot.slane %v1187_v8, 1 }
  0x63   : > { %1239 = vmatpush.bf16.msra.mxu2 %v2156_v22  ;;  %v1175_v22 = vld [vmem:[%s390_s8] sm:$0x3] }
  0x64   : > { %1252 = vmatpush.bf16.msra.mxu3 %v2163_v23 }
  0x65   : > { %1148 = vmatpush.bf16.msra.mxu0 %v2485_v9 }
  0x66   : > { %1227 = vmatpush.bf16.msra.mxu1 %v2175_v25  ;;  %v2619_v25 = vld [vmem:[#allocation10_spill] sm:$0xff] }
  0x67   : > { %1240 = vmatpush.bf16.msra.mxu2 %v2180_v26  ;;  %v2620_v26 = vld [vmem:[#allocation11_spill] sm:$0xff] }
  0x68   : > { %1253 = vmatpush.bf16.msra.mxu3 %v2187_v27  ;;  %v2621_v27 = vld [vmem:[#allocation12_spill] sm:$0xff] }
  0x69   : > { %1149 = vmatpush.bf16.msra.mxu0 %v2495_v12 }
  0x6a   : > { %1228 = vmatpush.bf16.msra.mxu1 %v2199_v31 }
  0x6b   : > { %1241 = vmatpush.bf16.msra.mxu2 %v2204_v32  ;;  %v2623_v32 = vld [vmem:[#allocation4_spill] sm:$0xff] }
  0x6c   : > { %1150 = vmatmul.bf16.vlgmr.msra.gmra.mxu0 %v604_v16  ;;  %1254 = vmatpush.bf16.msra.mxu3 %v2211_v34  ;;  %v2624_v34 = vld [vmem:[#allocation5_spill] sm:$0xff] }
  0x6d   : > { %1260 = vmatpush.bf16.msrb.mxu0 %v2036_v3  ;;  %1229 = vmatmul.bf16.vlgmr.msra.gmra.mxu1 %v2436_v36  ;;  %v1202_v3 = vld.sshfl [vmem:[#allocation1] sm:$0xff pattern:$0x73625140] }
  0x6e   : > { %1273 = vmatpush.bf16.msrb.mxu1 %v2216_v35  ;;  %1242 = vmatmul.bf16.vlgmr.msra.gmra.mxu2 %v1184_v18  ;;  %1207 = vst [vmem:[#allocation1] ss:$4 sm:$0xff] %v1175_v22  ;;  %v2625_v35 = vld [vmem:[#allocation6_spill] sm:$0xff] }
  0x6f   : > { %1286 = vmatpush.bf16.msrb.mxu2 %v2221_v37  ;;  %1255 = vmatmul.bf16.vlgmr.msra.gmra.mxu3 %v1189_v21  ;;  %v2626_v37 = vld [vmem:[#allocation7_spill] sm:$0xff] }
  0x70   : > { %1299 = vmatpush.bf16.msrb.mxu3 %v2226_v38  ;;  %v2627_v38 = vld [vmem:[#allocation8_spill] sm:$0xff] }
  0x71   : > { %1261 = vmatpush.bf16.msrb.mxu0 %v2060_v7 }
  0x72   : > { %1274 = vmatpush.bf16.msrb.mxu1 %v2246_v43  ;;  %v2628_v43 = vld [vmem:[#allocation9_spill] sm:$0xff] }
  0x73   : > { %1287 = vmatpush.bf16.msrb.mxu2 %v2253_v44 }
  0x74   : > { %1300 = vmatpush.bf16.msrb.mxu3 %v2258_v45 }
  0x75   : > { %1262 = vmatpush.bf16.msrb.mxu0 %v2086_v11  ;;  %v1208_v7 = vld.sshfl [vmem:[#allocation1] sm:$0xff pattern:$0x73625140]  ;;  %v1196_v11 = vshll.u32 %v1193_v17, 16 }
  0x76   : > { %1275 = vmatpush.bf16.msrb.mxu1 %v2271_v49  ;;  %1216 = vst [vmem:[#allocation1] ss:$4 sm:$0xff] %v1175_v22  ;;  %v1209_v44 = vshrl.u32 %v1208_v7, 16 }
  0x77   : > { %1288 = vmatpush.bf16.msrb.mxu2 %v2278_v50  ;;  %v1198_v23 = vrot.slane %v1196_v11, 1 }
  0x78   : > { %1301 = vmatpush.bf16.msrb.mxu3 %v2283_v51 }
  0x79   : > { %1263 = vmatpush.bf16.msrb.mxu0 %v2113_v15  ;;  %v2618_v15 = vld [vmem:[#allocation2_spill] sm:$0xff] }
  0x7a   : > { %1276 = vmatpush.bf16.msrb.mxu1 %v2295_v53 }
  0x7b   : > { %1289 = vmatpush.bf16.msrb.mxu2 %v2302_v54 }
  0x7c   : > { %1302 = vmatpush.bf16.msrb.mxu3 %v2307_v55 }
  0x7d   : > { %1264 = vmatpush.bf16.msrb.mxu0 %v2143_v19  ;;  %v1194_v19 = vshrl.u32 %v1193_v17, 16  ;;  %v1217_v49 = vld.sshfl [vmem:[#allocation1] sm:$0xff pattern:$0x73625140] }
  0x7e   : > { %1277 = vmatpush.bf16.msrb.mxu1 %v2320_v58  ;;  %v1219_v51 = vrot.slane %v1217_v49, 1 }
  0x7f   : > { %1290 = vmatpush.bf16.msrb.mxu2 %v2332_v59  ;;  %v1199_v31 = vor.u32 %v1198_v23, %v1194_v19 }
  0x80   : > { %1303 = vmatpush.bf16.msrb.mxu3 %v2337_v60 }
  0x81   : > { %1265 = vmatpush.bf16.msrb.mxu0 %v2168_v24  ;;  %v1204_v24 = vrot.slane %v1202_v3, 1 }
  0x82   : > { %1278 = vmatpush.bf16.msrb.mxu1 %v2350_v63 }
  0x83   : > { %1291 = vmatpush.bf16.msrb.mxu2 %v2357_v20 }
  0x84   : > { %1304 = vmatpush.bf16.msrb.mxu3 %v2362_v29 }
  0x85   : > { %1266 = vmatpush.bf16.msrb.mxu0 %v2618_v15 }
  0x86   : > { %1279 = vmatpush.bf16.msrb.mxu1 %v2619_v25 }
  0x87   : > { %1292 = vmatpush.bf16.msrb.mxu2 %v2620_v26 }
  0x88   : > { %1305 = vmatpush.bf16.msrb.mxu3 %v2621_v27 }
  0x89   : > { %1267 = vmatpush.bf16.msrb.mxu0 %v2622_v28 }
  0x8a   : > { %1280 = vmatpush.bf16.msrb.mxu1 %v2398_v61 }
  0x8b   : > { %1293 = vmatpush.bf16.msrb.mxu2 %v2403_v57 }
  0x8c   : > { %1306 = vmatpush.bf16.msrb.mxu3 %v2410_v33  ;;  %1268 = vmatmul.bf16.vlgmr.msrb.gmra.mxu0 %v2476_v6 }
  0x8d   : > { %1312 = vmatpush.bf16.msra.mxu0 %v2623_v32  ;;  %1281 = vmatmul.bf16.vlgmr.msrb.gmra.mxu1 %v1199_v31 }
  0x8e   : > { %1325 = vmatpush.bf16.msra.mxu1 %v2415_v39  ;;  %1294 = vmatmul.bf16.vlgmr.msrb.gmra.mxu2 %v1204_v24  ;;  %v1211_v39 = vshll.u32 %v1208_v7, 16 }
  0x8f   : > { %1307 = vmatmul.bf16.vlgmr.msrb.gmra.mxu3 %v1175_v22 }
  0x90   : > { %v1213_v45 = vrot.slane %v1211_v39, 1 }
  0x91   : > { %1313 = vmatpush.bf16.msra.mxu0 %v2624_v34 }
  0x92   : > { %1326 = vmatpush.bf16.msra.mxu1 %v2431_v47  ;;  %v1214_v50 = vor.u32 %v1213_v45, %v1209_v44 }
  0x95   : > { %1314 = vmatpush.bf16.msra.mxu0 %v2625_v35 }
  0x96   : > { %1327 = vmatpush.bf16.msra.mxu1 %v2444_v0 }
  0x99   : > { %1315 = vmatpush.bf16.msra.mxu0 %v2626_v37 }
  0x9a   : > { %1328 = vmatpush.bf16.msra.mxu1 %v2454_v1 }
  0x9d   : > { %1316 = vmatpush.bf16.msra.mxu0 %v2627_v38 }
  0x9e   : > { %1329 = vmatpush.bf16.msra.mxu1 %v2463_v4 }
  0xa1   : > { %1317 = vmatpush.bf16.msra.mxu0 %v2628_v43 }
  0xa2   : > { %1330 = vmatpush.bf16.msra.mxu1 %v2473_v5 }
  0xa5   : > { %1318 = vmatpush.bf16.msra.mxu0 %v2629_v48 }
  0xa6   : > { %1331 = vmatpush.bf16.msra.mxu1 %v2485_v9 }
  0xa9   : > { %1319 = vmatpush.bf16.msra.mxu0 %v2421_v42  ;;  %v1047_v53 = vpop.f32.mrf.mxu0 }
  0xaa   : > { %1332 = vmatpush.bf16.msra.mxu1 %v2495_v12  ;;  %v1060_v54 = vpop.f32.mrf.mxu1 }
  0xab   : > { %v1061_v20 = vadd.f32 %v1060_v54, %v1047_v53 }
  0xac   : > { %1320 = vmatmul.bf16.vlgmr.msra.gmra.mxu0 %v1214_v50 }
  0xad   : > { %1333 = vmatmul.bf16.vlgmr.msra.gmra.mxu1 %v1219_v51 }
  0xb1   : > { %v1073_v55 = vpop.f32.mrf.mxu2  ;;  %v1049_v57 = vpop.f32.mrf.mxu0 }
  0xb2   : > { %v1062_v58 = vpop.f32.mrf.mxu1  ;;  %v1086_v59 = vpop.f32.mrf.mxu3  ;;  %v1074_v30 = vadd.f32 %v1073_v55, %v1061_v20 }
  0xb4   : > { %v1087_v47 = vadd.f32 %v1086_v59, %v1074_v30 }
  0xb9   : > { %v1075_v60 = vpop.f32.mrf.mxu2 }
  0xba   : > { %v1088_v61 = vpop.f32.mrf.mxu3 }
  0xc9   : > { %v1099_v62 = vpop.f32.mrf.mxu0 }
  0xca   : > { %v1112_v63 = vpop.f32.mrf.mxu1  ;;  %v1100_v46 = vadd.f32 %v1099_v62, %v1087_v47 }
  0xcc   : > { %v1113_v36 = vadd.f32 %v1112_v63, %v1100_v46 }
  0xd1   : > { %v1125_v29 = vpop.f32.mrf.mxu2  ;;  %v1101_v41 = vpop.f32.mrf.mxu0 }
  0xd2   : > { %v1138_v33 = vpop.f32.mrf.mxu3  ;;  %v1114_v42 = vpop.f32.mrf.mxu1  ;;  %v1126_v40 = vadd.f32 %v1125_v29, %v1113_v36 }
  0xd4   : > { %v1139_v0 = vadd.f32 %v1138_v33, %v1126_v40 }
  0xd9   : > { %v1127_v56 = vpop.f32.mrf.mxu2 }
  0xda   : > { %v1140_v52 = vpop.f32.mrf.mxu3 }
  0xe9   : > { %v1151_v1 = vpop.f32.mrf.mxu0 }
  0xea   : > { %v1152_v2 = vadd.f32 %v1151_v1, %v1139_v0  ;;  %v1230_v4 = vpop.f32.mrf.mxu1 }
  0xec   : > { %v1155_v5 = vpack.c.bf16 %v1152_v2, %v1152_v2  ;;  %v1165_v23 = vmul.f32 %v1152_v2, %v1152_v2  ;;  %v1158_v26 = vsel %vm1157_vm0, %v1152_v2, 0.0 }
  0xed   : > { %v1159_v24 = vrot.slane %v1158_v26, 4 }
  0xee   : > { %1156 = vst [vmem:[%s2562_s12] sm:$0x1] %v1155_v5  ;;  %v1166_v27 = vsel %vm1157_vm0, %v1165_v23, 0.0 }
  0xef   : > { %v1167_v31 = vrot.slane %v1166_v27, 4  ;;  %v1160_v34 = vadd.f32 %v1159_v24, %v1158_v26 }
  0xf1   : > { %v1243_v6 = vpop.f32.mrf.mxu2  ;;  %v1153_v8 = vpop.f32.mrf.mxu0  ;;  %v1168_v39 = vadd.f32 %v1167_v31, %v1166_v27  ;;  %v1161_v44 = vrot.slane %v1160_v34, 2 }
  0xf2   : > { %v1256_v9 = vpop.f32.mrf.mxu3  ;;  %v1232_v10 = vpop.f32.mrf.mxu1  ;;  %v1244_v21 = vadd.f32 %v1243_v6, %v1230_v4 }
  0xf3   : > { %v1169_v50 = vrot.slane %v1168_v39, 2  ;;  %v1162_v54 = vadd.f32 %v1161_v44, %v1160_v34 }
  0xf4   : > { %v1257_v7 = vadd.f32 %v1256_v9, %v1244_v21 }
  0xf5   : > { %v1170_v60 = vadd.f32 %v1169_v50, %v1168_v39  ;;  %v1163_v63 = vrot.slane %v1162_v54, 1 }
  0xf7   : > { %v1171_v30 = vrot.slane %v1170_v60, 1  ;;  %v1164_v42 = vadd.f32 %v1163_v63, %v1162_v54 }
  0xf9   : > { %v1245_v12 = vpop.f32.mrf.mxu2  ;;  %v1172_v46 = vadd.f32 %v1171_v30, %v1170_v60 }
  0xfa   : > { %v1258_v13 = vpop.f32.mrf.mxu3 }
 0x109   : > { %v1269_v14 = vpop.f32.mrf.mxu0 }
 0x10a   : > { %v1282_v16 = vpop.f32.mrf.mxu1  ;;  %v1270_v15 = vadd.f32 %v1269_v14, %v1257_v7 }
 0x10c   : > { %v1283_v25 = vadd.f32 %v1282_v16, %v1270_v15 }
 0x111   : > { %v1295_v17 = vpop.f32.mrf.mxu2  ;;  %v1271_v18 = vpop.f32.mrf.mxu0 }
 0x112   : > { %v1284_v3 = vpop.f32.mrf.mxu1  ;;  %v1308_v22 = vpop.f32.mrf.mxu3  ;;  %v1296_v28 = vadd.f32 %v1295_v17, %v1283_v25 }
 0x114   : > { %v1309_v32 = vadd.f32 %v1308_v22, %v1296_v28 }
 0x119   : > { %v1297_v11 = vpop.f32.mrf.mxu2 }
 0x11a   : > { %v1310_v19 = vpop.f32.mrf.mxu3 }
 0x129   : > { %v1321_v35 = vpop.f32.mrf.mxu0 }
 0x12a   : > { %v1334_v37 = vpop.f32.mrf.mxu1  ;;  %v1322_v38 = vadd.f32 %v1321_v35, %v1309_v32 }
 0x12c   : > { %v1335_v43 = vadd.f32 %v1334_v37, %v1322_v38 }
 0x12e   : > { %v1338_v45 = vpack.c.bf16 %v1335_v43, %v1335_v43  ;;  %v1341_v48 = vsel %vm1157_vm0, %v1335_v43, 0.0  ;;  %v1348_v49 = vmul.f32 %v1335_v43, %v1335_v43 }
 0x12f   : > { %v1342_v51 = vrot.slane %v1341_v48, 4 }
 0x130   : > { %1835 = vst [vmem:[%s2562_s12 + $0x1] sm:$0x1] %v1338_v45  ;;  %v1349_v53 = vsel %vm1157_vm0, %v1348_v49, 0.0 }
 0x131   : > { %v1343_v55 = vadd.f32 %v1342_v51, %v1341_v48  ;;  %v1350_v57 = vrot.slane %v1349_v53, 4  ;;  %v1323_v58 = vpop.f32.mrf.mxu0 }
 0x132   : > { %v1336_v59 = vpop.f32.mrf.mxu1 }
 0x133   : > { %v1344_v61 = vrot.slane %v1343_v55, 2  ;;  %v1351_v62 = vadd.f32 %v1350_v57, %v1349_v53 }
 0x135   : > { %v1345_v20 = vadd.f32 %v1344_v61, %v1343_v55  ;;  %v1352_v29 = vrot.slane %v1351_v62, 2 }
 0x137   : > { %v1346_v33 = vrot.slane %v1345_v20, 1  ;;  %v1353_v41 = vadd.f32 %v1352_v29, %v1351_v62 }
 0x139   : > { %v1347_v47 = vadd.f32 %v1346_v33, %v1345_v20  ;;  %v1354_v56 = vrot.slane %v1353_v41, 1 }
 0x13b   : > { %v1355_v52 = vadd.f32 %v1354_v56, %v1353_v41  ;;  %v1356_v36 = vadd.f32 %v1347_v47, %v1164_v42 }
 0x13d   : > { %v1357_v40 = vadd.f32 %v1355_v52, %v1172_v46  ;;  %1358 = vst [vmem:[%s406_s16] sm:$0x1] %v1356_v36 }
 0x13f   : > { %1359 = vst [vmem:[%s411_s19] sm:$0x1] %v1357_v40 }
 0x140 PF: > { %s17_s23 = sadd.s32 1, %s1963_s23   ;;  %s2630_s21 = smov %s1959_s22 }
 0x141   : > { %p14_p5 = scmp.ge.s32.totalorder %s17_s23, 4   ;;  %s2631_s22 = smov %s2633_s24 }
 0x143   :  { %16 = sbr.rel (!%p14_p5) target bundleno = 2 (0x2), region = 98 }

// kernel: resnet_forward.29
= control target key start
LH: loop header
LB: loop body
LE: loop exit
PB: predicated region body
PF: predicated region fallthrough
CT: control target
= control target key end

     0   :  { %vm733_vm0 = vcmask 1041408   ;;  %s1391_s1 = inlined_call_operand.vmem [shape: bf16[1152,128], index: 1, kind: input, shape index: {}]   ;;  %s1392_s0 = inlined_call_operand.vmem [shape: bf16[2,1152], index: 0, kind: input, shape index: {}]   ;;  %s1393_s2 = inlined_call_operand.vmem [shape: bf16[2,128], index: 2, kind: output, shape index: {0}]   ;;  %s1394_s3 = inlined_call_operand.vmem [shape: f32[1,1,128], index: 3, kind: output, shape index: {1}]   ;;  %s1395_s4 = inlined_call_operand.vmem [shape: f32[1,1,128], index: 4, kind: output, shape index: {2}]  }
   0x1   :  { %v1058_v0 = vld [vmem:[%s1391_s1 + $0x38] sm:$0xff]  ;;  %v1057_v4 = vld [vmem:[%s1391_s1 + $0x30] sm:$0xff]  ;;  %v1056_v8 = vld [vmem:[%s1391_s1 + $0x28] sm:$0xff] }
   0x2   :  { %v1074_v1 = vld [vmem:[%s1391_s1 + $0xb8] sm:$0xff]  ;;  %614 = vmatpush.bf16.msra.mxu0 %v1058_v0  ;;  %v1073_v5 = vld [vmem:[%s1391_s1 + $0xb0] sm:$0xff]  ;;  %v1072_v9 = vld [vmem:[%s1391_s1 + $0xa8] sm:$0xff] }
   0x3   :  { %v1082_v2 = vld [vmem:[%s1391_s1 + $0xf8] sm:$0xff]  ;;  %640 = vmatpush.bf16.msra.mxu2 %v1074_v1  ;;  %v1081_v6 = vld [vmem:[%s1391_s1 + $0xf0] sm:$0xff]  ;;  %v1080_v10 = vld [vmem:[%s1391_s1 + $0xe8] sm:$0xff] }
   0x4   :  { %v1066_v3 = vld [vmem:[%s1391_s1 + $0x78] sm:$0xff]  ;;  %653 = vmatpush.bf16.msra.mxu3 %v1082_v2  ;;  %v1065_v7 = vld [vmem:[%s1391_s1 + $0x70] sm:$0xff]  ;;  %v1064_v11 = vld [vmem:[%s1391_s1 + $0x68] sm:$0xff] }
   0x5   :  { %627 = vmatpush.bf16.msra.mxu1 %v1066_v3  ;;  %v1055_v12 = vld [vmem:[%s1391_s1 + $0x20] sm:$0xff]  ;;  %v1054_v16 = vld [vmem:[%s1391_s1 + $0x18] sm:$0xff]  ;;  %v1053_v21 = vld [vmem:[%s1391_s1 + $0x10] sm:$0xff] }
   0x6   :  { %615 = vmatpush.bf16.msra.mxu0 %v1057_v4  ;;  %v1071_v13 = vld [vmem:[%s1391_s1 + $0xa0] sm:$0xff]  ;;  %v1070_v17 = vld [vmem:[%s1391_s1 + $0x98] sm:$0xff]  ;;  %v1069_v22 = vld [vmem:[%s1391_s1 + $0x90] sm:$0xff] }
   0x7   :  { %641 = vmatpush.bf16.msra.mxu2 %v1073_v5  ;;  %v1079_v14 = vld [vmem:[%s1391_s1 + $0xe0] sm:$0xff]  ;;  %v1078_v18 = vld [vmem:[%s1391_s1 + $0xd8] sm:$0xff]  ;;  %v1077_v23 = vld [vmem:[%s1391_s1 + $0xd0] sm:$0xff] }
   0x8   :  { %654 = vmatpush.bf16.msra.mxu3 %v1081_v6  ;;  %v1063_v15 = vld [vmem:[%s1391_s1 + $0x60] sm:$0xff]  ;;  %v1062_v19 = vld [vmem:[%s1391_s1 + $0x58] sm:$0xff]  ;;  %v1061_v24 = vld [vmem:[%s1391_s1 + $0x50] sm:$0xff] }
   0x9   :  { %628 = vmatpush.bf16.msra.mxu1 %v1065_v7  ;;  %v14_v20 = vld [vmem:[%s1392_s0] sm:$0xff]  ;;  %v1052_v25 = vld [vmem:[%s1391_s1 + $0x8] sm:$0xff]  ;;  %v1090_v31 = vld [vmem:[%s1391_s1 + $0x138] sm:$0xff] }
   0xa   :  { %616 = vmatpush.bf16.msra.mxu0 %v1056_v8  ;;  %161 = vst [vmem:[#allocation1] ss:$9 sm:$0xff] %v14_v20  ;;  %v1068_v26 = vld [vmem:[%s1391_s1 + $0x88] sm:$0xff]  ;;  %v1051_v29 = vld [vmem:[%s1391_s1] sm:$0xff]  ;;  %v1106_v32 = vld [vmem:[%s1391_s1 + $0x1b8] sm:$0xff] }
   0xb   :  { %642 = vmatpush.bf16.msra.mxu2 %v1072_v9  ;;  %v1076_v27 = vld [vmem:[%s1391_s1 + $0xc8] sm:$0xff]  ;;  %v1067_v30 = vld [vmem:[%s1391_s1 + $0x80] sm:$0xff]  ;;  %v1114_v34 = vld [vmem:[%s1391_s1 + $0x1f8] sm:$0xff] }
   0xc   :  { %655 = vmatpush.bf16.msra.mxu3 %v1080_v10  ;;  %v1060_v28 = vld [vmem:[%s1391_s1 + $0x48] sm:$0xff]  ;;  %v1075_v33 = vld [vmem:[%s1391_s1 + $0xc0] sm:$0xff]  ;;  %v1089_v36 = vld [vmem:[%s1391_s1 + $0x130] sm:$0xff] }
   0xd   :  { %629 = vmatpush.bf16.msra.mxu1 %v1064_v11  ;;  %v1059_v35 = vld [vmem:[%s1391_s1 + $0x40] sm:$0xff]  ;;  %v1098_v37 = vld [vmem:[%s1391_s1 + $0x178] sm:$0xff]  ;;  %v1105_v38 = vld [vmem:[%s1391_s1 + $0x1b0] sm:$0xff] }
   0xe   :  { %617 = vmatpush.bf16.msra.mxu0 %v1055_v12  ;;  %v15_v39 = vld [vmem:[%s1392_s0 + $0x8] sm:$0x1]  ;;  %v1113_v48 = vld [vmem:[%s1391_s1 + $0x1f0] sm:$0xff]  ;;  %v1087_v54 = vld [vmem:[%s1391_s1 + $0x120] sm:$0xff] }
   0xf   :  { %643 = vmatpush.bf16.msra.mxu2 %v1071_v13  ;;  %v1097_v49 = vld [vmem:[%s1391_s1 + $0x170] sm:$0xff]  ;;  %v1088_v50 = vld [vmem:[%s1391_s1 + $0x128] sm:$0xff]  ;;  %v1103_v55 = vld [vmem:[%s1391_s1 + $0x1a0] sm:$0xff] }
  0x10   :  { %656 = vmatpush.bf16.msra.mxu3 %v1079_v14  ;;  %v1104_v51 = vld [vmem:[%s1391_s1 + $0x1a8] sm:$0xff]  ;;  %v1111_v56 = vld [vmem:[%s1391_s1 + $0x1e0] sm:$0xff]  ;;  %v1086_v58 = vld [vmem:[%s1391_s1 + $0x118] sm:$0xff] }
  0x11   :  { %630 = vmatpush.bf16.msra.mxu1 %v1063_v15  ;;  %v164_v40 = vld [vmem:[#allocation1 + $0x12] sm:$0xff]  ;;  %v162_v41 = vld [vmem:[#allocation1] sm:$0xff]  ;;  %v163_v43 = vld [vmem:[#allocation1 + $0x9] sm:$0xff] }
  0x12   :  { %618 = vmatpush.bf16.msra.mxu0 %v1054_v16  ;;  %v165_v42 = vld [vmem:[#allocation1 + $0x1b] sm:$0xff]  ;;  %v1270_v45 = vld [vmem:[#allocation1 + $0x24] sm:$0xff]  ;;  %v1274_v47 = vld [vmem:[#allocation1 + $0x2d] sm:$0xff] }
  0x13   :  { %644 = vmatpush.bf16.msra.mxu2 %v1070_v17  ;;  %v1268_v44 = vld [vmem:[#allocation1 + $0x36] sm:$0xff]  ;;  %v1272_v46 = vld [vmem:[#allocation1 + $0x3f] sm:$0xff]  ;;  %v1112_v52 = vld [vmem:[%s1391_s1 + $0x1e8] sm:$0xff] }
  0x14   :  { %657 = vmatpush.bf16.msra.mxu3 %v1078_v18  ;;  %171 = vst [vmem:[#allocation1] ss:$9 sm:$0xff] %v15_v39  ;;  %v1096_v53 = vld [vmem:[%s1391_s1 + $0x168] sm:$0xff]  ;;  %v1095_v57 = vld [vmem:[%s1391_s1 + $0x160] sm:$0xff]  ;;  %v1102_v59 = vld [vmem:[%s1391_s1 + $0x198] sm:$0xff] }
  0x15   :  { %631 = vmatpush.bf16.msra.mxu1 %v1062_v19  ;;  %v1110_v60 = vld [vmem:[%s1391_s1 + $0x1d8] sm:$0xff]  ;;  %v1085_v62 = vld [vmem:[%s1391_s1 + $0x110] sm:$0xff]  ;;  %v1084_v2 = vld [vmem:[%s1391_s1 + $0x108] sm:$0xff] }
  0x16   :  { %619 = vmatpush.bf16.msra.mxu0 %v1053_v21  ;;  %v1094_v61 = vld [vmem:[%s1391_s1 + $0x158] sm:$0xff]  ;;  %v1101_v63 = vld [vmem:[%s1391_s1 + $0x190] sm:$0xff]  ;;  %v1100_v3 = vld [vmem:[%s1391_s1 + $0x188] sm:$0xff] }
  0x17   :  { %645 = vmatpush.bf16.msra.mxu2 %v1069_v22  ;;  %v1109_v0 = vld [vmem:[%s1391_s1 + $0x1d0] sm:$0xff]  ;;  %v1108_v4 = vld [vmem:[%s1391_s1 + $0x1c8] sm:$0xff]  ;;  %v1083_v6 = vld [vmem:[%s1391_s1 + $0x100] sm:$0xff] }
  0x18   :  { %658 = vmatpush.bf16.msra.mxu3 %v1077_v23  ;;  %v1093_v1 = vld [vmem:[%s1391_s1 + $0x150] sm:$0xff]  ;;  %v1092_v5 = vld [vmem:[%s1391_s1 + $0x148] sm:$0xff]  ;;  %v1099_v7 = vld [vmem:[%s1391_s1 + $0x180] sm:$0xff] }
  0x19   :  { %632 = vmatpush.bf16.msra.mxu1 %v1061_v24  ;;  %v1122_v8 = vld [vmem:[%s1391_s1 + $0x238] sm:$0xff]  ;;  %v1107_v9 = vld [vmem:[%s1391_s1 + $0x1c0] sm:$0xff]  ;;  %v1121_v11 = vld [vmem:[%s1391_s1 + $0x230] sm:$0xff] }
  0x1a   :  { %620 = vmatpush.bf16.msra.mxu0 %v1052_v25  ;;  %v1091_v10 = vld [vmem:[%s1391_s1 + $0x140] sm:$0xff]  ;;  %v1120_v12 = vld [vmem:[%s1391_s1 + $0x228] sm:$0xff]  ;;  %v1118_v14 = vld [vmem:[%s1391_s1 + $0x218] sm:$0xff] }
  0x1b   :  { %646 = vmatpush.bf16.msra.mxu2 %v1068_v26  ;;  %v1119_v13 = vld [vmem:[%s1391_s1 + $0x220] sm:$0xff]  ;;  %v1117_v15 = vld [vmem:[%s1391_s1 + $0x210] sm:$0xff]  ;;  %v1116_v16 = vld [vmem:[%s1391_s1 + $0x208] sm:$0xff] }
  0x1c   :  { %659 = vmatpush.bf16.msra.mxu3 %v1076_v27  ;;  %v1115_v17 = vld [vmem:[%s1391_s1 + $0x200] sm:$0xff] }
  0x1d   :  { %633 = vmatpush.bf16.msra.mxu1 %v1060_v28  ;;  %v172_v18 = vld [vmem:[#allocation1] sm:$0xff] }
  0x1e   :  { %621 = vmatpush.bf16.msra.mxu0 %v1051_v29 }
  0x1f   :  { %647 = vmatpush.bf16.msra.mxu2 %v1067_v30 }
  0x20   :  { %660 = vmatpush.bf16.msra.mxu3 %v1075_v33 }
  0x21   :  { %634 = vmatpush.bf16.msra.mxu1 %v1059_v35  ;;  %622 = vmatmul.bf16.vlgmr.msra.gmra.mxu0 %v162_v41 }
  0x22   :  { %666 = vmatpush.bf16.msrb.mxu0 %v1090_v31  ;;  %648 = vmatmul.bf16.vlgmr.msra.gmra.mxu2 %v164_v40 }
  0x23   :  { %692 = vmatpush.bf16.msrb.mxu2 %v1106_v32  ;;  %661 = vmatmul.bf16.vlgmr.msra.gmra.mxu3 %v165_v42 }
  0x24   :  { %705 = vmatpush.bf16.msrb.mxu3 %v1114_v34  ;;  %635 = vmatmul.bf16.vlgmr.msra.gmra.mxu1 %v163_v43 }
  0x25   :  { %679 = vmatpush.bf16.msrb.mxu1 %v1098_v37 }
  0x26   :  { %667 = vmatpush.bf16.msrb.mxu0 %v1089_v36 }
  0x27   :  { %693 = vmatpush.bf16.msrb.mxu2 %v1105_v38 }
  0x28   :  { %706 = vmatpush.bf16.msrb.mxu3 %v1113_v48 }
  0x29   :  { %680 = vmatpush.bf16.msrb.mxu1 %v1097_v49 }
  0x2a   :  { %668 = vmatpush.bf16.msrb.mxu0 %v1088_v50 }
  0x2b   :  { %694 = vmatpush.bf16.msrb.mxu2 %v1104_v51 }
  0x2c   :  { %707 = vmatpush.bf16.msrb.mxu3 %v1112_v52 }
  0x2d   :  { %681 = vmatpush.bf16.msrb.mxu1 %v1096_v53 }
  0x2e   :  { %669 = vmatpush.bf16.msrb.mxu0 %v1087_v54 }
  0x2f   :  { %695 = vmatpush.bf16.msrb.mxu2 %v1103_v55 }
  0x30   :  { %708 = vmatpush.bf16.msrb.mxu3 %v1111_v56 }
  0x31   :  { %682 = vmatpush.bf16.msrb.mxu1 %v1095_v57 }
  0x32   :  { %670 = vmatpush.bf16.msrb.mxu0 %v1086_v58 }
  0x33   :  { %696 = vmatpush.bf16.msrb.mxu2 %v1102_v59 }
  0x34   :  { %709 = vmatpush.bf16.msrb.mxu3 %v1110_v60 }
  0x35   :  { %683 = vmatpush.bf16.msrb.mxu1 %v1094_v61 }
  0x36   :  { %671 = vmatpush.bf16.msrb.mxu0 %v1085_v62 }
  0x37   :  { %697 = vmatpush.bf16.msrb.mxu2 %v1101_v63 }
  0x38   :  { %710 = vmatpush.bf16.msrb.mxu3 %v1109_v0 }
  0x39   :  { %684 = vmatpush.bf16.msrb.mxu1 %v1093_v1 }
  0x3a   :  { %672 = vmatpush.bf16.msrb.mxu0 %v1084_v2 }
  0x3b   :  { %698 = vmatpush.bf16.msrb.mxu2 %v1100_v3 }
  0x3c   :  { %711 = vmatpush.bf16.msrb.mxu3 %v1108_v4 }
  0x3d   :  { %685 = vmatpush.bf16.msrb.mxu1 %v1092_v5 }
  0x3e   :  { %673 = vmatpush.bf16.msrb.mxu0 %v1083_v6 }
  0x3f   :  { %699 = vmatpush.bf16.msrb.mxu2 %v1099_v7 }
  0x40   :  { %712 = vmatpush.bf16.msrb.mxu3 %v1107_v9 }
  0x41   :  { %686 = vmatpush.bf16.msrb.mxu1 %v1091_v10  ;;  %674 = vmatmul.bf16.vlgmr.msrb.gmra.mxu0 %v1270_v45 }
  0x42   :  { %718 = vmatpush.bf16.msra.mxu0 %v1122_v8  ;;  %700 = vmatmul.bf16.vlgmr.msrb.gmra.mxu2 %v1268_v44 }
  0x43   :  { %713 = vmatmul.bf16.vlgmr.msrb.gmra.mxu3 %v1272_v46 }
  0x44   :  { %687 = vmatmul.bf16.vlgmr.msrb.gmra.mxu1 %v1274_v47 }
  0x46   :  { %719 = vmatpush.bf16.msra.mxu0 %v1121_v11 }
  0x4a   :  { %720 = vmatpush.bf16.msra.mxu0 %v1120_v12 }
  0x4e   :  { %721 = vmatpush.bf16.msra.mxu0 %v1119_v13 }
  0x52   :  { %722 = vmatpush.bf16.msra.mxu0 %v1118_v14 }
  0x56   :  { %723 = vmatpush.bf16.msra.mxu0 %v1117_v15 }
  0x5a   :  { %724 = vmatpush.bf16.msra.mxu0 %v1116_v16 }
  0x5e   :  { %725 = vmatpush.bf16.msra.mxu0 %v1115_v17 }
  0x61   :  { %726 = vmatmul.bf16.vlgmr.msra.gmra.mxu0 %v172_v18 }
  0x9e   :  { %v623_v19 = vpop.f32.mrf.mxu0 }
  0xa1   :  { %v636_v20 = vpop.f32.mrf.mxu1 }
  0xa2   :  { %v637_v29 = vadd.f32 %v636_v20, %v623_v19 }
  0xa5   :  { %v649_v21 = vpop.f32.mrf.mxu2 }
  0xa6   :  { %v662_v22 = vpop.f32.mrf.mxu3  ;;  %v625_v23 = vpop.f32.mrf.mxu0  ;;  %v650_v31 = vadd.f32 %v649_v21, %v637_v29 }
  0xa8   :  { %v663_v35 = vadd.f32 %v662_v22, %v650_v31 }
  0xa9   :  { %v638_v24 = vpop.f32.mrf.mxu1 }
  0xad   :  { %v651_v25 = vpop.f32.mrf.mxu2 }
  0xae   :  { %v664_v26 = vpop.f32.mrf.mxu3 }
  0xbe   :  { %v675_v27 = vpop.f32.mrf.mxu0 }
  0xbf   :  { %v676_v37 = vadd.f32 %v675_v27, %v663_v35 }
  0xc1   :  { %v688_v28 = vpop.f32.mrf.mxu1 }
  0xc2   :  { %v689_v39 = vadd.f32 %v688_v28, %v676_v37 }
  0xc5   :  { %v701_v30 = vpop.f32.mrf.mxu2 }
  0xc6   :  { %v714_v32 = vpop.f32.mrf.mxu3  ;;  %v677_v33 = vpop.f32.mrf.mxu0  ;;  %v702_v40 = vadd.f32 %v701_v30, %v689_v39 }
  0xc8   :  { %v715_v41 = vadd.f32 %v714_v32, %v702_v40 }
  0xc9   :  { %v690_v34 = vpop.f32.mrf.mxu1 }
  0xcd   :  { %v703_v36 = vpop.f32.mrf.mxu2 }
  0xce   :  { %v716_v38 = vpop.f32.mrf.mxu3 }
  0xde   :  { %v727_v42 = vpop.f32.mrf.mxu0 }
  0xdf   :  { %v728_v43 = vadd.f32 %v727_v42, %v715_v41 }
  0xe1   :  { %v731_v44 = vpack.c.bf16 %v728_v43, %v728_v43  ;;  %v734_v45 = vsel %vm733_vm0, %v728_v43, 0.0  ;;  %v742_v46 = vmul.f32 %v728_v43, %v728_v43 }
  0xe2   :  { %v735_v47 = vrot.slane %v734_v45, 4 }
  0xe3   :  { %732 = vst [vmem:[%s1393_s2] sm:$0x1] %v731_v44  ;;  %v743_v48 = vsel %vm733_vm0, %v742_v46, 0.0 }
  0xe4   :  { %v736_v49 = vadd.f32 %v735_v47, %v734_v45  ;;  %v744_v50 = vrot.slane %v743_v48, 4 }
  0xe6   :  { %v737_v51 = vrot.slane %v736_v49, 2  ;;  %v745_v52 = vadd.f32 %v744_v50, %v743_v48  ;;  %v729_v53 = vpop.f32.mrf.mxu0 }
  0xe8   :  { %v738_v54 = vadd.f32 %v737_v51, %v736_v49  ;;  %v746_v55 = vrot.slane %v745_v52, 2 }
  0xea   :  { %v739_v56 = vrot.slane %v738_v54, 1  ;;  %v747_v57 = vadd.f32 %v746_v55, %v745_v52 }
  0xec   :  { %v740_v58 = vadd.f32 %v739_v56, %v738_v54  ;;  %v748_v59 = vrot.slane %v747_v57, 1 }
  0xee   :  { %741 = vst [vmem:[%s1394_s3] sm:$0x1] %v740_v58  ;;  %v749_v60 = vadd.f32 %v748_v59, %v747_v57 }
  0xf0   :  { %750 = vst [vmem:[%s1395_s4] sm:$0x1] %v749_v60 }

// kernel: resnet_forward.32
= control target key start
LH: loop header
LB: loop body
LE: loop exit
PB: predicated region body
PF: predicated region fallthrough
CT: control target
= control target key end

     0   :  { %s115_s0 = inlined_call_operand.vmem [shape: bf16[2,128], index: 0, kind: input, shape index: {}]   ;;  %s116_s1 = inlined_call_operand.vmem [shape: f32[1,128], index: 1, kind: input, shape index: {}]   ;;  %s117_s2 = inlined_call_operand.vmem [shape: f32[1,128], index: 2, kind: input, shape index: {}]   ;;  %s118_s3 = inlined_call_operand.vmem [shape: bf16[2,128], index: 3, kind: input, shape index: {}]   ;;  %s119_s4 = inlined_call_operand.vmem [shape: f32[1,128], index: 4, kind: input, shape index: {}]   ;;  %s120_s5 = inlined_call_operand.vmem [shape: f32[1,128], index: 5, kind: input, shape index: {}]   ;;  %s121_s6 = inlined_call_operand.vmem [shape: bf16[2,128], index: 6, kind: output, shape index: {}]  }
   0x1   :  { %v23_v0 = vld [vmem:[%s115_s0] sm:$0x1] }
   0x2   :  { %v55_v1 = vld [vmem:[%s116_s1] ss:$0 sm:$0xff]  ;;  %v24_v2 = vunpack.c.l.bf16 %v23_v0 }
   0x3   :  { %v56_v3 = vld [vmem:[%s117_s2] ss:$0 sm:$0xff] }
   0x4   :  { %v35_v4 = vld [vmem:[%s118_s3] sm:$0x1]  ;;  %v29_v7 = vmul.f32 %v55_v1, %v24_v2 }
   0x5   :  { %v36_v5 = vunpack.c.l.bf16 %v35_v4  ;;  %v57_v6 = vld [vmem:[%s119_s4] ss:$0 sm:$0xff] }
   0x6   :  { %v58_v8 = vld [vmem:[%s120_s5] ss:$0 sm:$0xff]  ;;  %v34_v10 = vadd.f32 %v56_v3, %v29_v7 }
   0x7   :  { %v41_v9 = vmul.f32 %v57_v6, %v36_v5 }
   0x9   :  { %v46_v11 = vadd.f32 %v58_v8, %v41_v9 }
   0xb   :  { %v47_v12 = vadd.f32 %v46_v11, %v34_v10 }
   0xd   :  { %v48_v13 = vmax.f32 %v47_v12, 0.0 }
   0xf   :  { %v49_v14 = vpack.c.bf16 %v48_v13, %v48_v13 }
  0x11   :  { %50 = vst [vmem:[%s121_s6] sm:$0x1] %v49_v14 }

// kernel: resnet_forward.33
= control target key start
LH: loop header
LB: loop body
LE: loop exit
PB: predicated region body
PF: predicated region fallthrough
CT: control target
= control target key end

     0   :  { %s236_s0 = inlined_call_operand.vmem [shape: bf16[2,128], index: 0, kind: input, shape index: {}]   ;;  %s237_s1 = inlined_call_operand.vmem [shape: bf16[128,128], index: 1, kind: input, shape index: {}]   ;;  %s238_s2 = inlined_call_operand.vmem [shape: f32[1,128], index: 2, kind: input, shape index: {}]   ;;  %s239_s3 = inlined_call_operand.hbm [shape: f32[2,128], index: 3, kind: output, shape index: {}]  }
   0x1   :  { %v153_v0 = vld [vmem:[%s237_s1 + $0x38] sm:$0xff]  ;;  %v152_v1 = vld [vmem:[%s237_s1 + $0x30] sm:$0xff] }
   0x2   :  { %84 = vmatpush.bf16.msra.mxu0 %v153_v0 }
   0x3   :  { %8 = vsyncpa [#allocation3], 0  ;;  %v151_v2 = vld [vmem:[%s237_s1 + $0x28] sm:$0xff]  ;;  %v150_v3 = vld [vmem:[%s237_s1 + $0x20] sm:$0xff]  ;;  %s182_s5 = smov [#allocation2]   ;;  %s105_s9 = sshll.u32 %s239_s3, 4  ;;  %s106_s9 = int_to_ptr.hbm [resolvable:$true] %s105_s9 }
   0x4   :  { %v149_v4 = vld [vmem:[%s237_s1 + $0x18] sm:$0xff]  ;;  %v148_v5 = vld [vmem:[%s237_s1 + $0x10] sm:$0xff]  ;;  %v147_v6 = vld [vmem:[%s237_s1 + $0x8] sm:$0xff]  ;;  %s103_s6 = sshll.u32 %s182_s5, 4  ;;  %s104_s6 = int_to_ptr.vmem [resolvable:$true] %s103_s6 }
   0x5   :  { %v146_v7 = vld [vmem:[%s237_s1] sm:$0xff] }
   0x6   :  { %85 = vmatpush.bf16.msra.mxu0 %v152_v1  ;;  %v15_v8 = vld [vmem:[%s236_s0] sm:$0x1] }
   0x7   :  { %v155_v9 = vld [vmem:[%s238_s2] ss:$0 sm:$0xff] }
   0xa   :  { %86 = vmatpush.bf16.msra.mxu0 %v151_v2 }
   0xe   :  { %87 = vmatpush.bf16.msra.mxu0 %v150_v3 }
  0x12   :  { %88 = vmatpush.bf16.msra.mxu0 %v149_v4 }
  0x16   :  { %89 = vmatpush.bf16.msra.mxu0 %v148_v5 }
  0x1a   :  { %90 = vmatpush.bf16.msra.mxu0 %v147_v6 }
  0x1e   :  { %91 = vmatpush.bf16.msra.mxu0 %v146_v7 }
  0x21   :  { %92 = vmatmul.bf16.vlgmr.msra.gmra.mxu0 %v15_v8 }
  0x9e   :  { %v93_v10 = vpop.f32.mrf.mxu0 }
  0x9f   :  { %v94_v11 = vadd.f32 %v155_v9, %v93_v10 }
  0xa1   :  { %97 = vst [vmem:[#allocation2] sm:$0x3] %v94_v11 }
  0xa2   :  { %108 = dma.vmem_to_hbm [thread:$0]  %s104_s6, 32, %s106_s9, [#allocation3]  }
  0xa6   :  { %v95_v12 = vpop.f32.mrf.mxu0 }
  0xa7   :  { %180 = dma.done.wait [#allocation3], 32  }
  0xa8   :  { %181 = vsyncadd [#allocation3], 4294967264 }
  0xa9   :  { %113 = vsyncpa [#allocation3], 1 }

// kernel: resnet_forward.30
= control target key start
LH: loop header
LB: loop body
LE: loop exit
PB: predicated region body
PF: predicated region fallthrough
CT: control target
= control target key end

     0   :  { %s1747_s21 = smov 0   ;;  %s1749_s22 = smov 0   ;;  %s2019_s0 = inlined_call_operand.vmem [shape: bf16[2,3,3,128], index: 0, kind: input, shape index: {}, may-alias: {0,1,2}]   ;;  %s2020_s1 = inlined_call_operand.vmem [shape: bf16[2,3,3,128], index: 1, kind: input, shape index: {}, may-alias: {0,1,2}]   ;;  %s2021_s2 = inlined_call_operand.vmem [shape: bf16[2,3,3,128], index: 2, kind: input, shape index: {}, may-alias: {0,1,2}]   ;;  %s2022_s3 = inlined_call_operand.vmem [shape: bf16[1152,128], index: 3, kind: input, shape index: {}]   ;;  %s2023_s4 = inlined_call_operand.vmem [shape: bf16[2,1,1,128], index: 4, kind: output, shape index: {0}]   ;;  %s2024_s5 = inlined_call_operand.vmem [shape: f32[2,1,128], index: 5, kind: output, shape index: {1}]   ;;  %s2025_s6 = inlined_call_operand.vmem [shape: f32[2,1,128], index: 6, kind: output, shape index: {2}]  }
   0x1   :  { %s1751_s23 = smov 0  }
   0x2 LB: > { %s29_s24 = sadd.s32 1, %s1706_s22  ;;  %p1291_p0 = scmp.ge.s32.totalorder %s1710_s23, 1  ;;  %s1710_s23 = sphi %s1751_s23, %s17_s23   ;;  %s1706_s22 = sphi %s1749_s22, %s2027_s22   ;;  %s1702_s21 = sphi %s1747_s21, %s2026_s21  }
   0x3   : > { %p31_p1 = scmp.ge.s32.totalorder %s29_s24, 2  ;;  %p278_p2 = scmp.lt.s32.totalorder %s1710_s23, 3 }
   0x5   : > { %s2029_s24 = smov (%p31_p1, %s29_s24), 0  ;;  %p279_p3 = pnand %p1291_p0, %p278_p2 }
   0x6   : > { %p338_p4 = scmp.lt.s32.totalorder (!%p279_p3), %s1702_s21, 1 }
   0x7   : > { %282 = sbr.rel (%p279_p3) target bundleno = 242 (0xf2), region = 36 }
   0xc   : > { %v1596_v0 = vld [vmem:[%s2022_s3 + $0x38] sm:$0xff]  ;;  %v1595_v4 = vld [vmem:[%s2022_s3 + $0x30] sm:$0xff]  ;;  %s2031_s21 = smov (!%p338_p4, %s1702_s21), 1  ;;  %v1594_v8 = vld [vmem:[%s2022_s3 + $0x28] sm:$0xff]  ;;  %vm1112_vm0 = vcmask 1040384  }
   0xd   : > { %v1612_v1 = vld [vmem:[%s2022_s3 + $0xb8] sm:$0xff]  ;;  %994 = vmatpush.bf16.msra.mxu0 %v1596_v0  ;;  %v1611_v5 = vld [vmem:[%s2022_s3 + $0xb0] sm:$0xff]  ;;  %v1610_v9 = vld [vmem:[%s2022_s3 + $0xa8] sm:$0xff]  ;;  %s1804_s29 = smul.u32 6, %s2031_s21  ;;  %vm1113_vm1 = vsmask.f32 256  ;;  %s375_s30 = scalar_lea.vmem %s2024_s5, %s2031_s21 }
   0xe   : > { %v1620_v2 = vld [vmem:[%s2022_s3 + $0xf8] sm:$0xff]  ;;  %1020 = vmatpush.bf16.msra.mxu2 %v1612_v1  ;;  %v1619_v6 = vld [vmem:[%s2022_s3 + $0xf0] sm:$0xff]  ;;  %v1618_v10 = vld [vmem:[%s2022_s3 + $0xe8] sm:$0xff]  ;;  %s380_s9 = scalar_lea.vmem %s2025_s6, %s2031_s21 }
   0xf   : > { %v1604_v3 = vld [vmem:[%s2022_s3 + $0x78] sm:$0xff]  ;;  %1033 = vmatpush.bf16.msra.mxu3 %v1620_v2  ;;  %v1603_v7 = vld [vmem:[%s2022_s3 + $0x70] sm:$0xff]  ;;  %v1602_v11 = vld [vmem:[%s2022_s3 + $0x68] sm:$0xff]  ;;  %s345_s16 = scalar_lea.vmem %s2019_s0, %s1804_s29  ;;  %s1586_s26 = sadd.s32 2, %s1804_s29 }
  0x10   : > { %1007 = vmatpush.bf16.msra.mxu1 %v1604_v3  ;;  %v1593_v12 = vld [vmem:[%s2022_s3 + $0x20] sm:$0xff]  ;;  %v1592_v16 = vld [vmem:[%s2022_s3 + $0x18] sm:$0xff]  ;;  %v1591_v21 = vld [vmem:[%s2022_s3 + $0x10] sm:$0xff]  ;;  %s354_s10 = scalar_lea.vmem %s2020_s1, %s1586_s26  ;;  %s1588_s28 = sadd.s32 4, %s1804_s29 }
  0x11   : > { %995 = vmatpush.bf16.msra.mxu0 %v1595_v4  ;;  %v1609_v13 = vld [vmem:[%s2022_s3 + $0xa0] sm:$0xff]  ;;  %v1608_v17 = vld [vmem:[%s2022_s3 + $0x98] sm:$0xff]  ;;  %v1607_v22 = vld [vmem:[%s2022_s3 + $0x90] sm:$0xff]  ;;  %s364_s12 = scalar_lea.vmem %s2021_s2, %s1588_s28  ;;  %s371_s26 = scalar_lea.vmem %s2023_s4, %s2031_s21 }
  0x12   : > { %1021 = vmatpush.bf16.msra.mxu2 %v1611_v5  ;;  %v1617_v14 = vld [vmem:[%s2022_s3 + $0xe0] sm:$0xff]  ;;  %v1616_v18 = vld [vmem:[%s2022_s3 + $0xd8] sm:$0xff]  ;;  %v1615_v23 = vld [vmem:[%s2022_s3 + $0xd0] sm:$0xff] }
  0x13   : > { %1034 = vmatpush.bf16.msra.mxu3 %v1619_v6  ;;  %v1601_v15 = vld [vmem:[%s2022_s3 + $0x60] sm:$0xff]  ;;  %v1600_v19 = vld [vmem:[%s2022_s3 + $0x58] sm:$0xff]  ;;  %v1599_v24 = vld [vmem:[%s2022_s3 + $0x50] sm:$0xff] }
  0x14   : > { %1008 = vmatpush.bf16.msra.mxu1 %v1603_v7  ;;  %v526_v20 = vld [vmem:[%s345_s16] sm:$0x3]  ;;  %v1590_v25 = vld [vmem:[%s2022_s3 + $0x8] sm:$0xff]  ;;  %v1628_v32 = vld [vmem:[%s2022_s3 + $0x138] sm:$0xff] }
  0x15   : > { %996 = vmatpush.bf16.msra.mxu0 %v1594_v8  ;;  %530 = vst [vmem:[#allocation1] ss:$4 sm:$0xff] %v526_v20  ;;  %v1606_v26 = vld [vmem:[%s2022_s3 + $0x88] sm:$0xff]  ;;  %v1589_v30 = vld [vmem:[%s2022_s3] sm:$0xff]  ;;  %v1644_v33 = vld [vmem:[%s2022_s3 + $0x1b8] sm:$0xff] }
  0x16   : > { %1022 = vmatpush.bf16.msra.mxu2 %v1610_v9  ;;  %v1614_v27 = vld [vmem:[%s2022_s3 + $0xc8] sm:$0xff]  ;;  %v1605_v31 = vld [vmem:[%s2022_s3 + $0x80] sm:$0xff]  ;;  %v1652_v36 = vld [vmem:[%s2022_s3 + $0x1f8] sm:$0xff] }
  0x17   : > { %1035 = vmatpush.bf16.msra.mxu3 %v1618_v10  ;;  %v1598_v28 = vld [vmem:[%s2022_s3 + $0x48] sm:$0xff]  ;;  %v1613_v34 = vld [vmem:[%s2022_s3 + $0xc0] sm:$0xff]  ;;  %v1636_v37 = vld [vmem:[%s2022_s3 + $0x178] sm:$0xff] }
  0x18   : > { %1009 = vmatpush.bf16.msra.mxu1 %v1602_v11  ;;  %v1597_v35 = vld [vmem:[%s2022_s3 + $0x40] sm:$0xff]  ;;  %v1627_v39 = vld [vmem:[%s2022_s3 + $0x130] sm:$0xff]  ;;  %v1626_v46 = vld [vmem:[%s2022_s3 + $0x128] sm:$0xff] }
  0x19   : > { %997 = vmatpush.bf16.msra.mxu0 %v1593_v12  ;;  %v527_v38 = vld [vmem:[%s354_s10] sm:$0x3]  ;;  %v1643_v40 = vld [vmem:[%s2022_s3 + $0x1b0] sm:$0xff]  ;;  %v1642_v47 = vld [vmem:[%s2022_s3 + $0x1a8] sm:$0xff] }
  0x1a   : > { %1023 = vmatpush.bf16.msra.mxu2 %v1609_v13  ;;  %v1651_v44 = vld [vmem:[%s2022_s3 + $0x1f0] sm:$0xff]  ;;  %v1650_v48 = vld [vmem:[%s2022_s3 + $0x1e8] sm:$0xff]  ;;  %v1625_v50 = vld [vmem:[%s2022_s3 + $0x120] sm:$0xff] }
  0x1b   : > { %1036 = vmatpush.bf16.msra.mxu3 %v1617_v14  ;;  %v1635_v45 = vld [vmem:[%s2022_s3 + $0x170] sm:$0xff]  ;;  %v1634_v49 = vld [vmem:[%s2022_s3 + $0x168] sm:$0xff]  ;;  %v1641_v51 = vld [vmem:[%s2022_s3 + $0x1a0] sm:$0xff] }
  0x1c   : > { %1010 = vmatpush.bf16.msra.mxu1 %v1601_v15  ;;  %v531_v29 = vld.sshfl [vmem:[#allocation1] sm:$0xff pattern:$0x73625140]  ;;  %v1624_v55 = vld [vmem:[%s2022_s3 + $0x118] sm:$0xff]  ;;  %v1623_v60 = vld [vmem:[%s2022_s3 + $0x110] sm:$0xff] }
  0x1d   : > { %998 = vmatpush.bf16.msra.mxu0 %v1592_v16  ;;  %535 = vst [vmem:[#allocation1] ss:$4 sm:$0xff] %v526_v20  ;;  %v532_v43 = vshrl.u32 %v531_v29, 16  ;;  %v1649_v53 = vld [vmem:[%s2022_s3 + $0x1e0] sm:$0xff]  ;;  %v1640_v56 = vld [vmem:[%s2022_s3 + $0x198] sm:$0xff]  ;;  %v1639_v61 = vld [vmem:[%s2022_s3 + $0x190] sm:$0xff] }
  0x1e   : > { %1024 = vmatpush.bf16.msra.mxu2 %v1608_v17  ;;  %v1633_v54 = vld [vmem:[%s2022_s3 + $0x160] sm:$0xff]  ;;  %v1648_v57 = vld [vmem:[%s2022_s3 + $0x1d8] sm:$0xff]  ;;  %v1647_v63 = vld [vmem:[%s2022_s3 + $0x1d0] sm:$0xff] }
  0x1f   : > { %1037 = vmatpush.bf16.msra.mxu3 %v1616_v18  ;;  %v1632_v58 = vld [vmem:[%s2022_s3 + $0x158] sm:$0xff]  ;;  %v528_v59 = vld [vmem:[%s364_s12] sm:$0x3]  ;;  %v1631_v0 = vld [vmem:[%s2022_s3 + $0x150] sm:$0xff] }
  0x20   : > { %1011 = vmatpush.bf16.msra.mxu1 %v1600_v19  ;;  %v1622_v1 = vld [vmem:[%s2022_s3 + $0x108] sm:$0xff]  ;;  %v1621_v5 = vld [vmem:[%s2022_s3 + $0x100] sm:$0xff]  ;;  %v1660_v8 = vld [vmem:[%s2022_s3 + $0x238] sm:$0xff] }
  0x21   : > { %999 = vmatpush.bf16.msra.mxu0 %v1591_v21  ;;  %v1638_v2 = vld [vmem:[%s2022_s3 + $0x188] sm:$0xff]  ;;  %v1637_v6 = vld [vmem:[%s2022_s3 + $0x180] sm:$0xff]  ;;  %v1659_v12 = vld [vmem:[%s2022_s3 + $0x230] sm:$0xff] }
  0x22   : > { %1025 = vmatpush.bf16.msra.mxu2 %v1607_v22  ;;  %v1646_v3 = vld [vmem:[%s2022_s3 + $0x1c8] sm:$0xff]  ;;  %v1645_v9 = vld [vmem:[%s2022_s3 + $0x1c0] sm:$0xff]  ;;  %v1656_v17 = vld [vmem:[%s2022_s3 + $0x218] sm:$0xff] }
  0x23   : > { %1038 = vmatpush.bf16.msra.mxu3 %v1615_v23  ;;  %v1630_v4 = vld [vmem:[%s2022_s3 + $0x148] sm:$0xff]  ;;  %v1629_v10 = vld [vmem:[%s2022_s3 + $0x140] sm:$0xff]  ;;  %v1655_v18 = vld [vmem:[%s2022_s3 + $0x210] sm:$0xff] }
  0x24   : > { %1012 = vmatpush.bf16.msra.mxu1 %v1599_v24  ;;  %v536_v41 = vld.sshfl [vmem:[#allocation1] sm:$0xff pattern:$0x73625140]  ;;  %v1658_v15 = vld [vmem:[%s2022_s3 + $0x228] sm:$0xff]  ;;  %vm1114_vm2 = vmand %vm1112_vm0, %vm1113_vm1 }
  0x25   : > { %1000 = vmatpush.bf16.msra.mxu0 %v1590_v25  ;;  %v538_v42 = vrot.slane %v536_v41, 1  ;;  %541 = vst [vmem:[#allocation1] ss:$4 sm:$0xff] %v527_v38  ;;  %v1657_v16 = vld [vmem:[%s2022_s3 + $0x220] sm:$0xff]  ;;  %v1654_v19 = vld [vmem:[%s2022_s3 + $0x208] sm:$0xff] }
  0x26   : > { %1026 = vmatpush.bf16.msra.mxu2 %v1606_v26 }
  0x27   : > { %1039 = vmatpush.bf16.msra.mxu3 %v1614_v27 }
  0x28   : > { %1013 = vmatpush.bf16.msra.mxu1 %v1598_v28 }
  0x29   : > { %1001 = vmatpush.bf16.msra.mxu0 %v1589_v30 }
  0x2a   : > { %1027 = vmatpush.bf16.msra.mxu2 %v1605_v31 }
  0x2b   : > { %1040 = vmatpush.bf16.msra.mxu3 %v1613_v34 }
  0x2c   : > { %1014 = vmatpush.bf16.msra.mxu1 %v1597_v35  ;;  %1002 = vmatmul.bf16.vlgmr.msra.gmra.mxu0 %v526_v20  ;;  %v542_v52 = vld.sshfl [vmem:[#allocation1] sm:$0xff pattern:$0x73625140] }
  0x2d   : > { %1046 = vmatpush.bf16.msrb.mxu0 %v1628_v32  ;;  %1028 = vmatmul.bf16.vlgmr.msra.gmra.mxu2 %v538_v42  ;;  %546 = vst [vmem:[#allocation1] ss:$4 sm:$0xff] %v527_v38  ;;  %v543_v11 = vshrl.u32 %v542_v52, 16  ;;  %v1653_v20 = vld [vmem:[%s2022_s3 + $0x200] sm:$0xff] }
  0x2e   : > { %1072 = vmatpush.bf16.msrb.mxu2 %v1644_v33  ;;  %1041 = vmatmul.bf16.vlgmr.msra.gmra.mxu3 %v527_v38 }
  0x2f   : > { %1085 = vmatpush.bf16.msrb.mxu3 %v1652_v36  ;;  %1015 = vmatmul.bf16.vlgmr.msra.gmra.mxu1 %v532_v43 }
  0x30   : > { %1059 = vmatpush.bf16.msrb.mxu1 %v1636_v37 }
  0x31   : > { %1047 = vmatpush.bf16.msrb.mxu0 %v1627_v39 }
  0x32   : > { %1073 = vmatpush.bf16.msrb.mxu2 %v1643_v40 }
  0x33   : > { %1086 = vmatpush.bf16.msrb.mxu3 %v1651_v44 }
  0x34   : > { %1060 = vmatpush.bf16.msrb.mxu1 %v1635_v45  ;;  %v547_v62 = vld.sshfl [vmem:[#allocation1] sm:$0xff pattern:$0x73625140] }
  0x35   : > { %1048 = vmatpush.bf16.msrb.mxu0 %v1626_v46  ;;  %552 = vst [vmem:[#allocation1] ss:$4 sm:$0xff] %v528_v59  ;;  %v549_v14 = vrot.slane %v547_v62, 1 }
  0x36   : > { %1074 = vmatpush.bf16.msrb.mxu2 %v1642_v47 }
  0x37   : > { %1087 = vmatpush.bf16.msrb.mxu3 %v1650_v48  ;;  %v1115_v48 = vld [vmem:[%s371_s26] sm:$0x1] }
  0x38   : > { %1061 = vmatpush.bf16.msrb.mxu1 %v1634_v49 }
  0x39   : > { %1049 = vmatpush.bf16.msrb.mxu0 %v1625_v50 }
  0x3a   : > { %1075 = vmatpush.bf16.msrb.mxu2 %v1641_v51 }
  0x3b   : > { %1088 = vmatpush.bf16.msrb.mxu3 %v1649_v53 }
  0x3c   : > { %1062 = vmatpush.bf16.msrb.mxu1 %v1633_v54  ;;  %v553_v7 = vld.sshfl [vmem:[#allocation1] sm:$0xff pattern:$0x73625140] }
  0x3d   : > { %1050 = vmatpush.bf16.msrb.mxu0 %v1624_v55  ;;  %557 = vst [vmem:[#allocation1] ss:$4 sm:$0xff] %v528_v59  ;;  %v554_v13 = vshrl.u32 %v553_v7, 16 }
  0x3e   : > { %1076 = vmatpush.bf16.msrb.mxu2 %v1640_v56 }
  0x3f   : > { %1089 = vmatpush.bf16.msrb.mxu3 %v1648_v57 }
  0x40   : > { %1063 = vmatpush.bf16.msrb.mxu1 %v1632_v58 }
  0x41   : > { %1051 = vmatpush.bf16.msrb.mxu0 %v1623_v60 }
  0x42   : > { %1077 = vmatpush.bf16.msrb.mxu2 %v1639_v61 }
  0x43   : > { %1090 = vmatpush.bf16.msrb.mxu3 %v1647_v63 }
  0x44   : > { %1064 = vmatpush.bf16.msrb.mxu1 %v1631_v0  ;;  %v558_v21 = vld.sshfl [vmem:[#allocation1] sm:$0xff pattern:$0x73625140] }
  0x45   : > { %1052 = vmatpush.bf16.msrb.mxu0 %v1622_v1  ;;  %v560_v22 = vrot.slane %v558_v21, 1 }
  0x46   : > { %1078 = vmatpush.bf16.msrb.mxu2 %v1638_v2 }
  0x47   : > { %1091 = vmatpush.bf16.msrb.mxu3 %v1646_v3 }
  0x48   : > { %1065 = vmatpush.bf16.msrb.mxu1 %v1630_v4 }
  0x49   : > { %1053 = vmatpush.bf16.msrb.mxu0 %v1621_v5 }
  0x4a   : > { %1079 = vmatpush.bf16.msrb.mxu2 %v1637_v6 }
  0x4b   : > { %1092 = vmatpush.bf16.msrb.mxu3 %v1645_v9 }
  0x4c   : > { %1066 = vmatpush.bf16.msrb.mxu1 %v1629_v10  ;;  %1054 = vmatmul.bf16.vlgmr.msrb.gmra.mxu0 %v543_v11 }
  0x4d   : > { %1098 = vmatpush.bf16.msra.mxu0 %v1660_v8  ;;  %1080 = vmatmul.bf16.vlgmr.msrb.gmra.mxu2 %v528_v59 }
  0x4e   : > { %1093 = vmatmul.bf16.vlgmr.msrb.gmra.mxu3 %v554_v13 }
  0x4f   : > { %1067 = vmatmul.bf16.vlgmr.msrb.gmra.mxu1 %v549_v14 }
  0x51   : > { %1099 = vmatpush.bf16.msra.mxu0 %v1659_v12 }
  0x55   : > { %1100 = vmatpush.bf16.msra.mxu0 %v1658_v15 }
  0x59   : > { %1101 = vmatpush.bf16.msra.mxu0 %v1657_v16 }
  0x5d   : > { %1102 = vmatpush.bf16.msra.mxu0 %v1656_v17 }
  0x61   : > { %1103 = vmatpush.bf16.msra.mxu0 %v1655_v18 }
  0x65   : > { %1104 = vmatpush.bf16.msra.mxu0 %v1654_v19 }
  0x69   : > { %1105 = vmatpush.bf16.msra.mxu0 %v1653_v20 }
  0x6c   : > { %1106 = vmatmul.bf16.vlgmr.msra.gmra.mxu0 %v560_v22 }
  0xa9   : > { %v1003_v23 = vpop.f32.mrf.mxu0 }
  0xac   : > { %v1016_v24 = vpop.f32.mrf.mxu1 }
  0xad   : > { %v1017_v33 = vadd.f32 %v1016_v24, %v1003_v23 }
  0xb0   : > { %v1029_v25 = vpop.f32.mrf.mxu2 }
  0xb1   : > { %v1042_v26 = vpop.f32.mrf.mxu3  ;;  %v1005_v27 = vpop.f32.mrf.mxu0  ;;  %v1030_v35 = vadd.f32 %v1029_v25, %v1017_v33 }
  0xb3   : > { %v1043_v39 = vadd.f32 %v1042_v26, %v1030_v35 }
  0xb4   : > { %v1018_v28 = vpop.f32.mrf.mxu1 }
  0xb8   : > { %v1031_v29 = vpop.f32.mrf.mxu2 }
  0xb9   : > { %v1044_v30 = vpop.f32.mrf.mxu3 }
  0xc9   : > { %v1055_v31 = vpop.f32.mrf.mxu0 }
  0xca   : > { %v1056_v41 = vadd.f32 %v1055_v31, %v1043_v39 }
  0xcc   : > { %v1068_v32 = vpop.f32.mrf.mxu1 }
  0xcd   : > { %v1069_v43 = vadd.f32 %v1068_v32, %v1056_v41 }
  0xd0   : > { %v1081_v34 = vpop.f32.mrf.mxu2 }
  0xd1   : > { %v1094_v36 = vpop.f32.mrf.mxu3  ;;  %v1057_v37 = vpop.f32.mrf.mxu0  ;;  %v1082_v44 = vadd.f32 %v1081_v34, %v1069_v43 }
  0xd3   : > { %v1095_v45 = vadd.f32 %v1094_v36, %v1082_v44 }
  0xd4   : > { %v1070_v38 = vpop.f32.mrf.mxu1 }
  0xd8   : > { %v1083_v40 = vpop.f32.mrf.mxu2 }
  0xd9   : > { %v1096_v42 = vpop.f32.mrf.mxu3 }
  0xe9   : > { %v1107_v46 = vpop.f32.mrf.mxu0 }
  0xea   : > { %v1108_v47 = vadd.f32 %v1107_v46, %v1095_v45 }
  0xec   : > { %v1111_v49 = vpack.c.bf16 %v1108_v47, %v1108_v47  ;;  %v1119_v50 = vmul.f32 %v1108_v47, %v1108_v47  ;;  %1121 = vst [vmem:[%s375_s30] sm:$0x1] %v1108_v47 }
  0xee   : > { %v1116_v51 = vsel %vm1114_vm2, %v1111_v49, %v1115_v48  ;;  %1122 = vst [vmem:[%s380_s9] sm:$0x1] %v1119_v50 }
  0xef   : > { %1117 = vst [vmem:[%s371_s26] sm:$0x1] %v1116_v51 }
  0xf1   : > { %v1109_v52 = vpop.f32.mrf.mxu0 }
  0xf2 PF: > { %s17_s23 = sadd.s32 1, %s1710_s23   ;;  %s2026_s21 = smov %s1706_s22 }
  0xf3   : > { %p14_p5 = scmp.ge.s32.totalorder %s17_s23, 4   ;;  %s2027_s22 = smov %s2029_s24 }
  0xf5   :  { %16 = sbr.rel (!%p14_p5) target bundleno = 2 (0x2), region = 96 }

</bundles_post_ra>
